<compile_context>
chip_gen: v7x
topology: tpu7x:2x2x1
jax: 0.10.0
libtpu: 0.0.40
codegen_flags: <defaults>
</compile_context>

<pallas_src>
import functools

import jax
import jax.numpy as jnp
from jax import lax
from jax.experimental import pallas as pl
from jax.experimental.pallas import tpu as pltpu


def _round_up(x, m):
    return ((x + m - 1) // m) * m


def _full_spec(shape):
    """BlockSpec covering the whole array (block_shape == array shape), grid=(1,)."""
    zeros = (0,) * len(shape)
    return pl.BlockSpec(shape, lambda i: zeros)


# ------------------------------------------------------------------
# Kernel 1: fused backbone  (stem matmul + SiLU + 1x1 matmul + SiLU + GAP accumulate)
# ------------------------------------------------------------------
def _backbone_kernel(p_ref, ws_ref, bs_ref, wh_ref, bh_ref, pooled_ref, acc_ref,
                     *, hw, hw_pad, tile_rows):
    t = pl.program_id(1)

    @pl.when(t == 0)
    def _init():
        acc_ref[...] = jnp.zeros_like(acc_ref)

    x = p_ref[0]                                                       # (tile_rows, 32) bf16
    h = jnp.dot(x, ws_ref[...], preferred_element_type=jnp.float32) + bs_ref[...]
    h = h * jax.nn.sigmoid(h)                                          # SiLU in f32
    h2 = jnp.dot(h.astype(wh_ref.dtype), wh_ref[...],
                 preferred_element_type=jnp.float32) + bh_ref[...]
    h2 = h2 * jax.nn.sigmoid(h2)                                       # SiLU in f32

    if hw_pad > hw:  # static branch: mask rows that exist only due to spatial padding
        rows = t * tile_rows + lax.broadcasted_iota(jnp.int32, (tile_rows, 1), 0)
        h2 = h2 * (rows < hw).astype(jnp.float32)

    acc_ref[...] += jnp.sum(h2, axis=0, keepdims=True)

    @pl.when(t == pl.num_programs(1) - 1)
    def _finalize():
        pooled_ref[0] = acc_ref[...] * (1.0 / hw)                      # GAP = mean over HW


def backbone_fused(patches, stem_w, stem_b, head_w, head_b, *, hw, tile_rows):
    b, hw_pad, kp = patches.shape
    cmid = stem_w.shape[1]
    cout = head_w.shape[1]
    n_t = hw_pad // tile_rows

    kernel = functools.partial(_backbone_kernel, hw=hw, hw_pad=hw_pad,
                               tile_rows=tile_rows)
    pooled = pl.pallas_call(
        kernel,
        out_shape=jax.ShapeDtypeStruct((b, 1, cout), jnp.float32),
        grid=(b, n_t),
        in_specs=[
            pl.BlockSpec((1, tile_rows, kp), lambda bi, ti: (bi, ti, 0)),  # patch tiles
            pl.BlockSpec((kp, cmid), lambda bi, ti: (0, 0)),               # resident weights
            pl.BlockSpec((1, cmid), lambda bi, ti: (0, 0)),
            pl.BlockSpec((cmid, cout), lambda bi, ti: (0, 0)),
            pl.BlockSpec((1, cout), lambda bi, ti: (0, 0)),
        ],
        out_specs=pl.BlockSpec((1, 1, cout), lambda bi, ti: (bi, 0, 0)),
        scratch_shapes=[pltpu.VMEM((1, cout), jnp.float32)],
        compiler_params=pltpu.CompilerParams(
            dimension_semantics=("parallel", "arbitrary"),
            vmem_limit_bytes=32 * 1024 * 1024,
        ),
    )(patches, stem_w, stem_b, head_w, head_b)
    return pooled[:, 0, :]


# ------------------------------------------------------------------
# Kernel 2: fused classifier head
#   Linear(1280,512) -> [Dropout id] -> ReLU -> Linear(512,128) -> [Dropout id]
#   -> ReLU -> Linear(128,64) -> Linear(64,4 padded to 128 lanes)
# ------------------------------------------------------------------
def _head_kernel(x_ref, w1_ref, b1_ref, w2_ref, b2_ref, w3_ref, b3_ref,
                 w4_ref, b4_ref, o_ref):
    h = x_ref[...]
    h = jnp.dot(h.astype(w1_ref.dtype), w1_ref[...],
                preferred_element_type=jnp.float32) + b1_ref[...]
    h = jnp.maximum(h, 0.0)           # Dropout(p=0.2) identity at inference; ReLU
    h = jnp.dot(h.astype(w2_ref.dtype), w2_ref[...],
                preferred_element_type=jnp.float32) + b2_ref[...]
    h = jnp.maximum(h, 0.0)           # Dropout(p=0.2) identity at inference; ReLU
    h = jnp.dot(h.astype(w3_ref.dtype), w3_ref[...],
                preferred_element_type=jnp.float32) + b3_ref[...]
    h = jnp.dot(h.astype(w4_ref.dtype), w4_ref[...],
                preferred_element_type=jnp.float32) + b4_ref[...]
    o_ref[...] = h


def mlp_head(pooled, p):
    m = pooled.shape[0]
    n_out = p["fc4_w"].shape[1]
    n_pad = 128                                         # lane-dense final store
    w4p = jnp.pad(p["fc4_w"], ((0, 0), (0, n_pad - n_out)))
    b4p = jnp.pad(p["fc4_b"], (0, n_pad - n_out))
    args = [
        pooled,
        p["fc1_w"].astype(jnp.bfloat16), p["fc1_b"].reshape(1, -1),
        p["fc2_w"].astype(jnp.bfloat16), p["fc2_b"].reshape(1, -1),
        p["fc3_w"].astype(jnp.bfloat16), p["fc3_b"].reshape(1, -1),
        w4p.astype(jnp.bfloat16), b4p.reshape(1, -1),
    ]
    out = pl.pallas_call(
        _head_kernel,
        out_shape=jax.ShapeDtypeStruct((m, n_pad), jnp.float32),
        grid=(1,),
        in_specs=[_full_spec(a.shape) for a in args],
        out_specs=_full_spec((m, n_pad)),
        compiler_params=pltpu.CompilerParams(
            dimension_semantics=("arbitrary",)),
    )(*args)
    return out[:, :n_out]


# ------------------------------------------------------------------
# Glue: im2col for the 3x3 stride-2 pad-1 stem conv (pure indexing / reshape)
# Patch channel order is (ky, kx, cin) flattened — stem weight uses same order.
# ------------------------------------------------------------------
def _im2col_3x3_s2(x_nhwc):
    b, h, w, c = x_nhwc.shape
    assert h % 2 == 0 and w % 2 == 0, "stride-2 stem assumes even H and W"
    ho, wo = h // 2, w // 2
    xp = jnp.pad(x_nhwc, ((0, 0), (1, 1), (1, 1), (0, 0)))
    cols = []
    for ky in range(3):
        for kx in range(3):
            cols.append(xp[:, ky:ky + h:2, kx:kx + w:2, :])
    patches = jnp.concatenate(cols, axis=-1)            # (B, Ho, Wo, 9*C)
    return patches.reshape(b, ho * wo, 9 * c)


# ------------------------------------------------------------------
# Parameters (deterministic synthetic init; shapes follow the module)
# ------------------------------------------------------------------
def init_params(key):
    ks = jax.random.split(key, 8)

    def w(k, shape, scale):
        return (scale * jax.random.normal(k, shape, jnp.float32)).astype(jnp.float32)

    p = {
        # reduced backbone
        "stem_w": w(ks[0], (27, 24), 0.10),       # 3x3x3 -> 24 (im2col layout)
        "stem_b": jnp.zeros((24,), jnp.float32),
        "head_w": w(ks[1], (24, 1280), 0.05),     # 1x1 conv -> 1280 features
        "head_b": jnp.zeros((1280,), jnp.float32),
        # custom classifier from MyNet.__init__  (stored (in, out))
        "fc1_w": w(ks[2], (1280, 512), 0.03),
        "fc1_b": jnp.zeros((512,), jnp.float32),
        "fc2_w": w(ks[3], (512, 128), 0.05),
        "fc2_b": jnp.zeros((128,), jnp.float32),
        "fc3_w": w(ks[4], (128, 64), 0.08),
        "fc3_b": jnp.zeros((64,), jnp.float32),
        "fc4_w": w(ks[5], (64, 4), 0.10),
        "fc4_b": jnp.zeros((4,), jnp.float32),
    }
    return p


@jax.jit
def mynet_forward(img_nchw, params):
    b, _, h, w = img_nchw.shape
    x = jnp.transpose(img_nchw, (0, 2, 3, 1))               # NCHW -> NHWC (glue)
    ho, wo = h // 2, w // 2
    hw = ho * wo

    patches = _im2col_3x3_s2(x)                             # (B, HW, 27) f32

    # lane-friendly padding: K 27->32, mid channels 24->32, HW -> multiple of tile_rows
    tile_rows = min(512, _round_up(hw, 8))
    hw_pad = _round_up(hw, tile_rows)
    k_pad, c_mid_pad = 32, 32
    patches = jnp.pad(patches,
                      ((0, 0), (0, hw_pad - hw), (0, k_pad - patches.shape[2])))
    patches = patches.astype(jnp.bfloat16)

    stem_w = jnp.pad(params["stem_w"],
                     ((0, k_pad - params["stem_w"].shape[0]),
                      (0, c_mid_pad - params["stem_w"].shape[1]))).astype(jnp.bfloat16)
    stem_b = jnp.pad(params["stem_b"],
                     (0, c_mid_pad - params["stem_b"].shape[0])).reshape(1, -1)
    head_w = jnp.pad(params["head_w"],
                     ((0, c_mid_pad - params["head_w"].shape[0]),
                      (0, 0))).astype(jnp.bfloat16)
    head_b = params["head_b"].reshape(1, -1)

    pooled = backbone_fused(patches, stem_w, stem_b, head_w, head_b,
                            hw=hw, tile_rows=tile_rows)      # (B, 1280) f32
    logits = mlp_head(pooled, params)                        # (B, 4)  f32
    return logits


if __name__ == "__main__":
    key = jax.random.PRNGKey(0)
    k_param, k_img = jax.random.split(key)
    params = init_params(k_param)

    # small image consistent with a 3-channel CNN input (NCHW, like PyTorch)
    img = jax.random.normal(k_img, (2, 3, 32, 32), jnp.float32)

    out = mynet_forward(img, params)
    out = jax.block_until_ready(out)
    assert out.shape == (2, 4) and out.dtype == jnp.float32
    assert bool(jnp.all(jnp.isfinite(out)))
    print("KERNEL_OK")
</pallas_src>

<mosaic_0001>
module attributes {stable_mosaic.version = 11 : i64} {
  func.func @_backbone_kernel(%arg0: i32, %arg1: i32, %arg2: memref<1x256x32xbf16, #tpu.memory_space<vmem>>, %arg3: memref<32x32xbf16, #tpu.memory_space<vmem>>, %arg4: memref<1x32xf32, #tpu.memory_space<vmem>>, %arg5: memref<32x1280xbf16, #tpu.memory_space<vmem>>, %arg6: memref<1x1280xf32, #tpu.memory_space<vmem>>, %arg7: memref<1x1x1280xf32, #tpu.memory_space<vmem>>, %arg8: memref<1x1280xf32, #tpu.memory_space<vmem>>) attributes {dimension_semantics = [#tpu.dimension_semantics<parallel>, #tpu.dimension_semantics<arbitrary>], iteration_bounds = array<i64: 2, 1>, scalar_prefetch = 0 : i64, scratch_operands = 1 : i64, tpu.core_type = #tpu.core_type<tc>, window_params = [{transform_indices = @transform_0, window_bounds = array<i64: 1, 256, 32>}, {pipeline_mode = #tpu.pipeline_mode<synchronous>, transform_indices = @transform_1, window_bounds = array<i64: 32, 32>}, {pipeline_mode = #tpu.pipeline_mode<synchronous>, transform_indices = @transform_2, window_bounds = array<i64: 1, 32>}, {pipeline_mode = #tpu.pipeline_mode<synchronous>, transform_indices = @transform_3, window_bounds = array<i64: 32, 1280>}, {pipeline_mode = #tpu.pipeline_mode<synchronous>, transform_indices = @transform_4, window_bounds = array<i64: 1, 1280>}, {transform_indices = @transform_5, window_bounds = array<i64: 1, 1, 1280>}]} {
    %c0_i32 = arith.constant 0 : i32
    %0 = arith.cmpi eq, %arg1, %c0_i32 : i32
    %1 = arith.extui %0 : i1 to i32
    %c0_i32_0 = arith.constant 0 : i32
    %2 = arith.cmpi ne, %1, %c0_i32_0 : i32
    scf.if %2 {
      %cst_21 = arith.constant 0.000000e+00 : f32
      %36 = vector.broadcast %cst_21 : f32 to vector<1x1280xf32>
      %c0_22 = arith.constant 0 : index
      %c0_23 = arith.constant 0 : index
      %37 = vector.load %arg8[%c0_22, %c0_23] : memref<1x1280xf32, #tpu.memory_space<vmem>>, vector<1x1280xf32>
      tpu.vector_store %arg8[%c0_22, %c0_23], %36 {strides = array<i32>} : memref<1x1280xf32, #tpu.memory_space<vmem>>, vector<1x1280xf32>,
    } else {
    }
    %c0 = arith.constant 0 : index
    %c0_1 = arith.constant 0 : index
    %c0_2 = arith.constant 0 : index
    %3 = vector.load %arg2[%c0, %c0_1, %c0_2] : memref<1x256x32xbf16, #tpu.memory_space<vmem>>, vector<1x256x32xbf16>
    %4 = vector.shape_cast %3 : vector<1x256x32xbf16> to vector<256x32xbf16>
    %c0_3 = arith.constant 0 : index
    %c0_4 = arith.constant 0 : index
    %5 = vector.load %arg3[%c0_3, %c0_4] : memref<32x32xbf16, #tpu.memory_space<vmem>>, vector<32x32xbf16>
    %cst = arith.constant dense<0.000000e+00> : vector<256x32xf32>
    %6 = tpu.matmul %4, %5, %cst {dimension_numbers = #tpu.dot_dimension_numbers<[1], [0], [0], [1], [0, 0, 1, 1], [], []>} : vector<256x32xbf16>, vector<32x32xbf16>, vector<256x32xf32> -> vector<256x32xf32>
    %c0_5 = arith.constant 0 : index
    %c0_6 = arith.constant 0 : index
    %7 = vector.load %arg4[%c0_5, %c0_6] : memref<1x32xf32, #tpu.memory_space<vmem>>, vector<1x32xf32>
    %8 = vector.broadcast %7 : vector<1x32xf32> to vector<256x32xf32>
    %9 = arith.addf %6, %8 : vector<256x32xf32>
    %10 = arith.negf %9 : vector<256x32xf32>
    %11 = math.exp %10 : vector<256x32xf32>
    %cst_7 = arith.constant 1.000000e+00 : f32
    %12 = vector.broadcast %cst_7 : f32 to vector<256x32xf32>
    %13 = arith.addf %12, %11 : vector<256x32xf32>
    %14 = arith.divf %12, %13 : vector<256x32xf32>
    %15 = arith.mulf %9, %14 : vector<256x32xf32>
    %16 = arith.truncf %15 : vector<256x32xf32> to vector<256x32xbf16>
    %c0_8 = arith.constant 0 : index
    %c0_9 = arith.constant 0 : index
    %17 = vector.load %arg5[%c0_8, %c0_9] : memref<32x1280xbf16, #tpu.memory_space<vmem>>, vector<32x1280xbf16>
    %cst_10 = arith.constant dense<0.000000e+00> : vector<256x1280xf32>
    %18 = tpu.matmul %16, %17, %cst_10 {dimension_numbers = #tpu.dot_dimension_numbers<[1], [0], [0], [1], [0, 0, 1, 1], [], []>} : vector<256x32xbf16>, vector<32x1280xbf16>, vector<256x1280xf32> -> vector<256x1280xf32>
    %c0_11 = arith.constant 0 : index
    %c0_12 = arith.constant 0 : index
    %19 = vector.load %arg6[%c0_11, %c0_12] : memref<1x1280xf32, #tpu.memory_space<vmem>>, vector<1x1280xf32>
    %20 = vector.broadcast %19 : vector<1x1280xf32> to vector<256x1280xf32>
    %21 = arith.addf %18, %20 : vector<256x1280xf32>
    %22 = arith.negf %21 : vector<256x1280xf32>
    %23 = math.exp %22 : vector<256x1280xf32>
    %cst_13 = arith.constant 1.000000e+00 : f32
    %24 = vector.broadcast %cst_13 : f32 to vector<256x1280xf32>
    %25 = arith.addf %24, %23 : vector<256x1280xf32>
    %26 = arith.divf %24, %25 : vector<256x1280xf32>
    %27 = arith.mulf %21, %26 : vector<256x1280xf32>
    %c0_14 = arith.constant 0 : index
    %c0_15 = arith.constant 0 : index
    %28 = vector.load %arg8[%c0_14, %c0_15] : memref<1x1280xf32, #tpu.memory_space<vmem>>, vector<1x1280xf32>
    %cst_16 = arith.constant dense<0.000000e+00> : vector<1280xf32>
    %29 = vector.multi_reduction <add>, %27, %cst_16 [0] : vector<256x1280xf32> to vector<1280xf32>
    %30 = vector.shape_cast %29 : vector<1280xf32> to vector<1x1280xf32>
    %31 = arith.addf %28, %30 : vector<1x1280xf32>
    %c0_17 = arith.constant 0 : index
    %c0_18 = arith.constant 0 : index
    %32 = vector.load %arg8[%c0_17, %c0_18] : memref<1x1280xf32, #tpu.memory_space<vmem>>, vector<1x1280xf32>
    tpu.vector_store %arg8[%c0_17, %c0_18], %31 {strides = array<i32>} : memref<1x1280xf32, #tpu.memory_space<vmem>>, vector<1x1280xf32>,
    %c0_i32_19 = arith.constant 0 : i32
    %33 = arith.cmpi eq, %arg1, %c0_i32_19 : i32
    %34 = arith.extui %33 : i1 to i32
    %c0_i32_20 = arith.constant 0 : i32
    %35 = arith.cmpi ne, %34, %c0_i32_20 : i32
    scf.if %35 {
      %c0_21 = arith.constant 0 : index
      %c0_22 = arith.constant 0 : index
      %36 = vector.load %arg8[%c0_21, %c0_22] : memref<1x1280xf32, #tpu.memory_space<vmem>>, vector<1x1280xf32>
      %cst_23 = arith.constant 3.906250e-03 : f32
      %37 = vector.broadcast %cst_23 : f32 to vector<1x1280xf32>
      %38 = arith.mulf %36, %37 : vector<1x1280xf32>
      %c0_24 = arith.constant 0 : index
      %c0_25 = arith.constant 0 : index
      %c0_26 = arith.constant 0 : index
      %39 = vector.load %arg7[%c0_24, %c0_25, %c0_26] : memref<1x1x1280xf32, #tpu.memory_space<vmem>>, vector<1x1x1280xf32>
      %40 = vector.shape_cast %39 : vector<1x1x1280xf32> to vector<1x1280xf32>
      %41 = vector.shape_cast %38 : vector<1x1280xf32> to vector<1x1x1280xf32>
      tpu.vector_store %arg7[%c0_24, %c0_25, %c0_26], %41 {strides = array<i32>} : memref<1x1x1280xf32, #tpu.memory_space<vmem>>, vector<1x1x1280xf32>,
    } else {
    }
    return
  }
  func.func @transform_0(%arg0: i32, %arg1: i32) -> (i32, i32, i32) {
    %c0_i32 = arith.constant 0 : i32
    %c0_i32_0 = arith.constant 0 : i32
    return %arg0, %arg1, %c0_i32 : i32, i32, i32
  }
  func.func @transform_1(%arg0: i32, %arg1: i32) -> (i32, i32) {
    %c0_i32 = arith.constant 0 : i32
    %c0_i32_0 = arith.constant 0 : i32
    %c0_i32_1 = arith.constant 0 : i32
    return %c0_i32, %c0_i32_0 : i32, i32
  }
  func.func @transform_2(%arg0: i32, %arg1: i32) -> (i32, i32) {
    %c0_i32 = arith.constant 0 : i32
    %c0_i32_0 = arith.constant 0 : i32
    %c0_i32_1 = arith.constant 0 : i32
    return %c0_i32, %c0_i32_0 : i32, i32
  }
  func.func @transform_3(%arg0: i32, %arg1: i32) -> (i32, i32) {
    %c0_i32 = arith.constant 0 : i32
    %c0_i32_0 = arith.constant 0 : i32
    %c0_i32_1 = arith.constant 0 : i32
    return %c0_i32, %c0_i32_0 : i32, i32
  }
  func.func @transform_4(%arg0: i32, %arg1: i32) -> (i32, i32) {
    %c0_i32 = arith.constant 0 : i32
    %c0_i32_0 = arith.constant 0 : i32
    %c0_i32_1 = arith.constant 0 : i32
    return %c0_i32, %c0_i32_0 : i32, i32
  }
  func.func @transform_5(%arg0: i32, %arg1: i32) -> (i32, i32, i32) {
    %c0_i32 = arith.constant 0 : i32
    %c0_i32_0 = arith.constant 0 : i32
    %c0_i32_1 = arith.constant 0 : i32
    return %arg0, %c0_i32, %c0_i32_0 : i32, i32, i32
  }
}

module attributes {stable_mosaic.version = 11 : i64} {
  func.func @_head_kernel(%arg0: i32, %arg1: memref<2x1280xf32, #tpu.memory_space<vmem>>, %arg2: memref<1280x512xbf16, #tpu.memory_space<vmem>>, %arg3: memref<1x512xf32, #tpu.memory_space<vmem>>, %arg4: memref<512x128xbf16, #tpu.memory_space<vmem>>, %arg5: memref<1x128xf32, #tpu.memory_space<vmem>>, %arg6: memref<128x64xbf16, #tpu.memory_space<vmem>>, %arg7: memref<1x64xf32, #tpu.memory_space<vmem>>, %arg8: memref<64x128xbf16, #tpu.memory_space<vmem>>, %arg9: memref<1x128xf32, #tpu.memory_space<vmem>>, %arg10: memref<2x128xf32, #tpu.memory_space<vmem>>) attributes {dimension_semantics = [#tpu.dimension_semantics<arbitrary>], iteration_bounds = array<i64: 1>, scalar_prefetch = 0 : i64, scratch_operands = 0 : i64, tpu.core_type = #tpu.core_type<tc>, window_params = [{pipeline_mode = #tpu.pipeline_mode<synchronous>, transform_indices = @transform_0, window_bounds = array<i64: 2, 1280>}, {pipeline_mode = #tpu.pipeline_mode<synchronous>, transform_indices = @transform_1, window_bounds = array<i64: 1280, 512>}, {pipeline_mode = #tpu.pipeline_mode<synchronous>, transform_indices = @transform_2, window_bounds = array<i64: 1, 512>}, {pipeline_mode = #tpu.pipeline_mode<synchronous>, transform_indices = @transform_3, window_bounds = array<i64: 512, 128>}, {pipeline_mode = #tpu.pipeline_mode<synchronous>, transform_indices = @transform_4, window_bounds = array<i64: 1, 128>}, {pipeline_mode = #tpu.pipeline_mode<synchronous>, transform_indices = @transform_5, window_bounds = array<i64: 128, 64>}, {pipeline_mode = #tpu.pipeline_mode<synchronous>, transform_indices = @transform_6, window_bounds = array<i64: 1, 64>}, {pipeline_mode = #tpu.pipeline_mode<synchronous>, transform_indices = @transform_7, window_bounds = array<i64: 64, 128>}, {pipeline_mode = #tpu.pipeline_mode<synchronous>, transform_indices = @transform_8, window_bounds = array<i64: 1, 128>}, {pipeline_mode = #tpu.pipeline_mode<synchronous>, transform_indices = @transform_9, window_bounds = array<i64: 2, 128>}]} {
    %c0 = arith.constant 0 : index
    %c0_0 = arith.constant 0 : index
    %0 = vector.load %arg1[%c0, %c0_0] : memref<2x1280xf32, #tpu.memory_space<vmem>>, vector<2x1280xf32>
    %1 = arith.truncf %0 : vector<2x1280xf32> to vector<2x1280xbf16>
    %c0_1 = arith.constant 0 : index
    %c0_2 = arith.constant 0 : index
    %2 = vector.load %arg2[%c0_1, %c0_2] : memref<1280x512xbf16, #tpu.memory_space<vmem>>, vector<1280x512xbf16>
    %cst = arith.constant dense<0.000000e+00> : vector<2x512xf32>
    %3 = tpu.matmul %1, %2, %cst {dimension_numbers = #tpu.dot_dimension_numbers<[1], [0], [0], [1], [0, 0, 1, 1], [], []>} : vector<2x1280xbf16>, vector<1280x512xbf16>, vector<2x512xf32> -> vector<2x512xf32>
    %c0_3 = arith.constant 0 : index
    %c0_4 = arith.constant 0 : index
    %4 = vector.load %arg3[%c0_3, %c0_4] : memref<1x512xf32, #tpu.memory_space<vmem>>, vector<1x512xf32>
    %5 = vector.broadcast %4 : vector<1x512xf32> to vector<2x512xf32>
    %6 = arith.addf %3, %5 : vector<2x512xf32>
    %cst_5 = arith.constant 0.000000e+00 : f32
    %7 = vector.broadcast %cst_5 : f32 to vector<2x512xf32>
    %8 = arith.maximumf %6, %7 : vector<2x512xf32>
    %9 = arith.truncf %8 : vector<2x512xf32> to vector<2x512xbf16>
    %c0_6 = arith.constant 0 : index
    %c0_7 = arith.constant 0 : index
    %10 = vector.load %arg4[%c0_6, %c0_7] : memref<512x128xbf16, #tpu.memory_space<vmem>>, vector<512x128xbf16>
    %cst_8 = arith.constant dense<0.000000e+00> : vector<2x128xf32>
    %11 = tpu.matmul %9, %10, %cst_8 {dimension_numbers = #tpu.dot_dimension_numbers<[1], [0], [0], [1], [0, 0, 1, 1], [], []>} : vector<2x512xbf16>, vector<512x128xbf16>, vector<2x128xf32> -> vector<2x128xf32>
    %c0_9 = arith.constant 0 : index
    %c0_10 = arith.constant 0 : index
    %12 = vector.load %arg5[%c0_9, %c0_10] : memref<1x128xf32, #tpu.memory_space<vmem>>, vector<1x128xf32>
    %13 = vector.broadcast %12 : vector<1x128xf32> to vector<2x128xf32>
    %14 = arith.addf %11, %13 : vector<2x128xf32>
    %cst_11 = arith.constant 0.000000e+00 : f32
    %15 = vector.broadcast %cst_11 : f32 to vector<2x128xf32>
    %16 = arith.maximumf %14, %15 : vector<2x128xf32>
    %17 = arith.truncf %16 : vector<2x128xf32> to vector<2x128xbf16>
    %c0_12 = arith.constant 0 : index
    %c0_13 = arith.constant 0 : index
    %18 = vector.load %arg6[%c0_12, %c0_13] : memref<128x64xbf16, #tpu.memory_space<vmem>>, vector<128x64xbf16>
    %cst_14 = arith.constant dense<0.000000e+00> : vector<2x64xf32>
    %19 = tpu.matmul %17, %18, %cst_14 {dimension_numbers = #tpu.dot_dimension_numbers<[1], [0], [0], [1], [0, 0, 1, 1], [], []>} : vector<2x128xbf16>, vector<128x64xbf16>, vector<2x64xf32> -> vector<2x64xf32>
    %c0_15 = arith.constant 0 : index
    %c0_16 = arith.constant 0 : index
    %20 = vector.load %arg7[%c0_15, %c0_16] : memref<1x64xf32, #tpu.memory_space<vmem>>, vector<1x64xf32>
    %21 = vector.broadcast %20 : vector<1x64xf32> to vector<2x64xf32>
    %22 = arith.addf %19, %21 : vector<2x64xf32>
    %23 = arith.truncf %22 : vector<2x64xf32> to vector<2x64xbf16>
    %c0_17 = arith.constant 0 : index
    %c0_18 = arith.constant 0 : index
    %24 = vector.load %arg8[%c0_17, %c0_18] : memref<64x128xbf16, #tpu.memory_space<vmem>>, vector<64x128xbf16>
    %cst_19 = arith.constant dense<0.000000e+00> : vector<2x128xf32>
    %25 = tpu.matmul %23, %24, %cst_19 {dimension_numbers = #tpu.dot_dimension_numbers<[1], [0], [0], [1], [0, 0, 1, 1], [], []>} : vector<2x64xbf16>, vector<64x128xbf16>, vector<2x128xf32> -> vector<2x128xf32>
    %c0_20 = arith.constant 0 : index
    %c0_21 = arith.constant 0 : index
    %26 = vector.load %arg9[%c0_20, %c0_21] : memref<1x128xf32, #tpu.memory_space<vmem>>, vector<1x128xf32>
    %27 = vector.broadcast %26 : vector<1x128xf32> to vector<2x128xf32>
    %28 = arith.addf %25, %27 : vector<2x128xf32>
    %c0_22 = arith.constant 0 : index
    %c0_23 = arith.constant 0 : index
    %29 = vector.load %arg10[%c0_22, %c0_23] : memref<2x128xf32, #tpu.memory_space<vmem>>, vector<2x128xf32>
    tpu.vector_store %arg10[%c0_22, %c0_23], %28 {strides = array<i32>} : memref<2x128xf32, #tpu.memory_space<vmem>>, vector<2x128xf32>,
    return
  }
  func.func @transform_0(%arg0: i32) -> (i32, i32) {
    %c0_i32 = arith.constant 0 : i32
    %c0_i32_0 = arith.constant 0 : i32
    %c0_i32_1 = arith.constant 0 : i32
    return %c0_i32, %c0_i32_0 : i32, i32
  }
  func.func @transform_1(%arg0: i32) -> (i32, i32) {
    %c0_i32 = arith.constant 0 : i32
    %c0_i32_0 = arith.constant 0 : i32
    %c0_i32_1 = arith.constant 0 : i32
    return %c0_i32, %c0_i32_0 : i32, i32
  }
  func.func @transform_2(%arg0: i32) -> (i32, i32) {
    %c0_i32 = arith.constant 0 : i32
    %c0_i32_0 = arith.constant 0 : i32
    %c0_i32_1 = arith.constant 0 : i32
    return %c0_i32, %c0_i32_0 : i32, i32
  }
  func.func @transform_3(%arg0: i32) -> (i32, i32) {
    %c0_i32 = arith.constant 0 : i32
    %c0_i32_0 = arith.constant 0 : i32
    %c0_i32_1 = arith.constant 0 : i32
    return %c0_i32, %c0_i32_0 : i32, i32
  }
  func.func @transform_4(%arg0: i32) -> (i32, i32) {
    %c0_i32 = arith.constant 0 : i32
    %c0_i32_0 = arith.constant 0 : i32
    %c0_i32_1 = arith.constant 0 : i32
    return %c0_i32, %c0_i32_0 : i32, i32
  }
  func.func @transform_5(%arg0: i32) -> (i32, i32) {
    %c0_i32 = arith.constant 0 : i32
    %c0_i32_0 = arith.constant 0 : i32
    %c0_i32_1 = arith.constant 0 : i32
    return %c0_i32, %c0_i32_0 : i32, i32
  }
  func.func @transform_6(%arg0: i32) -> (i32, i32) {
    %c0_i32 = arith.constant 0 : i32
    %c0_i32_0 = arith.constant 0 : i32
    %c0_i32_1 = arith.constant 0 : i32
    return %c0_i32, %c0_i32_0 : i32, i32
  }
  func.func @transform_7(%arg0: i32) -> (i32, i32) {
    %c0_i32 = arith.constant 0 : i32
    %c0_i32_0 = arith.constant 0 : i32
    %c0_i32_1 = arith.constant 0 : i32
    return %c0_i32, %c0_i32_0 : i32, i32
  }
  func.func @transform_8(%arg0: i32) -> (i32, i32) {
    %c0_i32 = arith.constant 0 : i32
    %c0_i32_0 = arith.constant 0 : i32
    %c0_i32_1 = arith.constant 0 : i32
    return %c0_i32, %c0_i32_0 : i32, i32
  }
  func.func @transform_9(%arg0: i32) -> (i32, i32) {
    %c0_i32 = arith.constant 0 : i32
    %c0_i32_0 = arith.constant 0 : i32
    %c0_i32_1 = arith.constant 0 : i32
    return %c0_i32, %c0_i32_0 : i32, i32
  }
}

</mosaic_0001>

<bundles_post_ra>
// kernel: mynet_forward.2
= control target key start
LH: loop header
LB: loop body
LE: loop exit
PB: predicated region body
PF: predicated region fallthrough
CT: control target
= control target key end

     0   :  { %s6904_s18 = smov 0   ;;  %s6906_s19 = smov 0   ;;  %s10134_s0 = inlined_call_operand.vmem [shape: bf16[2,256,32], index: 0, kind: input, shape index: {}]   ;;  %s10135_s1 = inlined_call_operand.vmem [shape: bf16[32,32], index: 1, kind: input, shape index: {}]   ;;  %s10136_s2 = inlined_call_operand.vmem [shape: f32[1,32], index: 2, kind: input, shape index: {}]   ;;  %s10137_s3 = inlined_call_operand.vmem [shape: bf16[32,1280], index: 3, kind: input, shape index: {}]   ;;  %s10138_s4 = inlined_call_operand.vmem [shape: f32[1,1280], index: 4, kind: input, shape index: {}]   ;;  %s10139_s5 = inlined_call_operand.vmem [shape: f32[2,1,1280], index: 5, kind: output, shape index: {}]  }
   0x1   :  { %s6908_s20 = smov 0  }
   0x2 LB: > { %s27_s21 = sadd.s32 1, %s6865_s19  ;;  %p4810_p0 = scmp.ge.s32.totalorder %s6869_s20, 1  ;;  %s6869_s20 = sphi %s6908_s20, %s15_s20   ;;  %s6865_s19 = sphi %s6906_s19, %s10573_s19   ;;  %s6861_s18 = sphi %s6904_s18, %s10572_s18  }
   0x3   : > { %p29_p1 = scmp.ge.s32.totalorder %s27_s21, 2  ;;  %p206_p2 = scmp.lt.s32.totalorder %s6869_s20, 3 }
   0x5   : > { %s10575_s21 = smov (%p29_p1, %s27_s21), 0  ;;  %p207_p3 = pnand %p4810_p0, %p206_p2 }
   0x7   : > { %210 = sbr.rel (%p207_p3) target bundleno = 1187 (0x4a3), region = 40 }
   0xe   : > { %v5389_v0 = vld [vmem:[%s10135_s1] sm:$0xff]   ;;  %p238_p4 = scmp.lt.s32.totalorder %s6861_s18, 1  ;;  %v5390_v1 = vld [vmem:[%s10135_s1 + $0x8] sm:$0xff]   ;;  %vm397_vm0 = vcmask 261120   ;;  %v5412_v20 = vld [vmem:[%s10137_s3 + $0x54] ss:$40 sps:$4 sm:$0xff]  }
   0xf   : > { %5321 = vmatprep.subr.bf16.mxu0 %v5389_v0  ;;  %v5409_v18 = vld [vmem:[%s10137_s3 + $0x4] ss:$40 sps:$4 sm:$0xff]   ;;  %v5407_v19 = vld [vmem:[%s10137_s3] ss:$40 sps:$4 sm:$0xff]   ;;  %v5410_v21 = vld [vmem:[%s10137_s3 + $0x50] ss:$40 sps:$4 sm:$0xff]  }
  0x10   : > { %s10577_s18 = smov (!%p238_p4, %s6861_s18), 1  ;;  %5322 = vmatpush3.bf16.msra.mxu0 %v5389_v0  ;;  %5357 = vmatprep.subr.bf16.mxu1 %v5409_v18  ;;  %v10144_v22 = vmov 0   ;;  %v5418_v23 = vld [vmem:[%s10137_s3 + $0xc] ss:$40 sps:$4 sm:$0xff]   ;;  %v6991_v25 = vld [vmem:[%s10136_s2] ss:$0 sm:$0xff] }
  0x11   : > { %5323 = vmatprep.subr.bf16.mxu0 %v5390_v1  ;;  %s5302_s26 = sshll.u32 %s10577_s18, 7  ;;  %5359 = vmatpush1.bf16.msra.mxu1 %v5407_v19  ;;  %v5415_v24 = vld [vmem:[%s10137_s3 + $0x14] ss:$40 sps:$4 sm:$0xff]   ;;  %s5361_s13 = smul.u32 10, %s10577_s18 }
  0x12   : > { %s6934_s29 = scalar_lea.vmem %s10134_s0, %s5302_s26  ;;  %5358 = vmatprep.subr.bf16.mxu1 %v5412_v20  ;;  %1141 = vmatprep.mubr.bf16.mxu1 %v10144_v22 }
  0x13   : > { %v5391_v2 = vld [vmem:[%s6934_s29] sm:$0xff]   ;;  %v5392_v3 = vld [vmem:[%s6934_s29 + $0x8] sm:$0xff]   ;;  %v5393_v4 = vld [vmem:[%s6934_s29 + $0x10] sm:$0xff]   ;;  %s10027_s15 = scalar_lea.vmem %s10139_s5, %s5361_s13 }
  0x14   : > { %5324 = vmatpush3.bf16.msra.mxu0 %v5390_v1  ;;  %5325 = vmatprep.mubr.msk.bf16.mxu0 %vm397_vm0, %v5391_v2  ;;  %v5394_v5 = vld [vmem:[%s6934_s29 + $0x18] sm:$0xff]   ;;  %v5395_v6 = vld [vmem:[%s6934_s29 + $0x20] sm:$0xff]   ;;  %v5396_v7 = vld [vmem:[%s6934_s29 + $0x28] sm:$0xff]  }
  0x15   : > { %v5397_v8 = vld [vmem:[%s6934_s29 + $0x30] sm:$0xff]   ;;  %v5398_v9 = vld [vmem:[%s6934_s29 + $0x38] sm:$0xff]   ;;  %v5399_v10 = vld [vmem:[%s6934_s29 + $0x40] sm:$0xff]   ;;  %1069 = vmatprep.subr.bf16.mxu0 %v5409_v18  ;;  %5360 = vmatpush1.bf16.msra.mxu1 %v5410_v21 }
  0x16   : > { %v5400_v11 = vld [vmem:[%s6934_s29 + $0x48] sm:$0xff]   ;;  %v5401_v12 = vld [vmem:[%s6934_s29 + $0x50] sm:$0xff]   ;;  %v5402_v13 = vld [vmem:[%s6934_s29 + $0x58] sm:$0xff]   ;;  %1455 = vmatprep.subr.bf16.mxu1 %v5415_v24 }
  0x17   : > { %5326 = vmatmul.mubr.msk.bf16.vlgmr.msra.gmra.mrb[0].mxu0 %vm397_vm0, %v5392_v3  ;;  %v5403_v14 = vld [vmem:[%s6934_s29 + $0x60] sm:$0xff]   ;;  %v5404_v15 = vld [vmem:[%s6934_s29 + $0x68] sm:$0xff]   ;;  %v5405_v16 = vld [vmem:[%s6934_s29 + $0x70] sm:$0xff]  }
  0x18   : > { %5329 = vmatprep.mubr.msk.bf16.mxu0 %vm397_vm0, %v5393_v4  ;;  %v5406_v17 = vld [vmem:[%s6934_s29 + $0x78] sm:$0xff]   ;;  %1070 = vmatpush1.bf16.msra.mxu0 %v5407_v19 }
  0x19   : > { %1071 = vmatprep.subr.bf16.mxu0 %v5412_v20 }
  0x1c   : > { %1072 = vmatpush1.bf16.msra.mxu0 %v5410_v21 }
  0x1d   : > { %1262 = vmatprep.subr.bf16.mxu0 %v5418_v23 }
  0x1f   : > { %5330 = vmatmul.mubr.msk.bf16.gmra.mrb[4].mxu0 %vm397_vm0, %v5394_v5 }
  0x20   : > { %5333 = vmatprep.mubr.msk.bf16.mxu0 %vm397_vm0, %v5395_v6 }
  0x27   : > { %5334 = vmatmul.mubr.msk.bf16.gmra.mrb[8].mxu0 %vm397_vm0, %v5396_v7 }
  0x28   : > { %5337 = vmatprep.mubr.msk.bf16.mxu0 %vm397_vm0, %v5397_v8 }
  0x2f   : > { %5338 = vmatmul.mubr.msk.bf16.gmra.mrb[12].mxu0 %vm397_vm0, %v5398_v9 }
  0x30   : > { %5341 = vmatprep.mubr.msk.bf16.mxu0 %vm397_vm0, %v5399_v10 }
  0x37   : > { %5342 = vmatmul.mubr.msk.bf16.gmra.mrb[16].mxu0 %vm397_vm0, %v5400_v11 }
  0x38   : > { %5345 = vmatprep.mubr.msk.bf16.mxu0 %vm397_vm0, %v5401_v12 }
  0x3f   : > { %5346 = vmatmul.mubr.msk.bf16.gmra.mrb[20].mxu0 %vm397_vm0, %v5402_v13 }
  0x40   : > { %5349 = vmatprep.mubr.msk.bf16.mxu0 %vm397_vm0, %v5403_v14 }
  0x47   : > { %5350 = vmatmul.mubr.msk.bf16.gmra.mrb[24].mxu0 %vm397_vm0, %v5404_v15 }
  0x48   : > { %5353 = vmatprep.mubr.msk.bf16.mxu0 %vm397_vm0, %v5405_v16 }
  0x4f   : > { %5354 = vmatmul.mubr.msk.bf16.gmra.mrb[28].mxu0 %vm397_vm0, %v5406_v17 }
  0x50   : > { %1101 = vmatprep.mubr.bf16.mxu0 %v10144_v22 }
  0xea   : > { %v5327_v26 = vpop.f32.mrb[0].mxu0 }
  0xeb   : > { %v6994_v27 = vadd.f32 %v5327_v26, %v6991_v25  ;;  %v480_v28 = vpop.f32.mrb[1].mxu0 }
  0xec   : > { %v6997_v29 = vadd.f32 %v6991_v25, %v480_v28  ;;  %v5328_v30 = vpop.f32.mrb[2].mxu0 }
  0xed   : > { %v4850_v31 = vmul.f32 -1.442695, %v6994_v27  ;;  %v7001_v32 = vadd.f32 %v5328_v30, %v6991_v25  ;;  %v483_v33 = vpop.f32.mrb[3].mxu0 }
  0xee   : > { %v4848_v34 = vmul.f32 -1.442695, %v6997_v29  ;;  %v7005_v35 = vadd.f32 %v6991_v25, %v483_v33 }
  0xef   : > { %5437 = vpow2.f32 %v4850_v31  ;;  %v4851_v36 = vmul.f32 -1.442695, %v7001_v32 }
  0xf0   : > { %5439 = vpow2.f32 %v4848_v34  ;;  %v4849_v37 = vmul.f32 -1.442695, %v7005_v35 }
  0xf1   : > { %5441 = vpow2.f32 %v4851_v36 }
  0xf2   : > { %5443 = vpow2.f32 %v4849_v37  ;;  %v5331_v38 = vpop.f32.mrb[4].mxu0 }
  0xf3   : > { %v7010_v39 = vadd.f32 %v5331_v38, %v6991_v25  ;;  %v496_v40 = vpop.f32.mrb[5].mxu0 }
  0xf4   : > { %v7013_v41 = vadd.f32 %v6991_v25, %v496_v40  ;;  %v5332_v42 = vpop.f32.mrb[6].mxu0 }
  0xf5   : > { %v4854_v43 = vmul.f32 -1.442695, %v7010_v39  ;;  %v7017_v44 = vadd.f32 %v5332_v42, %v6991_v25  ;;  %v499_v45 = vpop.f32.mrb[7].mxu0 }
  0xf6   : > { %v4852_v46 = vmul.f32 -1.442695, %v7013_v41  ;;  %v7021_v47 = vadd.f32 %v6991_v25, %v499_v45 }
  0xf7   : > { %5445 = vpow2.f32 %v4854_v43  ;;  %v4855_v48 = vmul.f32 -1.442695, %v7017_v44 }
  0xf8   : > { %5447 = vpow2.f32 %v4852_v46  ;;  %v4853_v49 = vmul.f32 -1.442695, %v7021_v47 }
  0xf9   : > { %v5438_v50 = vpop.eup %5437  ;;  %5449 = vpow2.f32 %v4855_v48 }
  0xfa   : > { %v5440_v51 = vpop.eup %5439  ;;  %v705_v52 = vadd.f32 1.0, %v5438_v50  ;;  %5451 = vpow2.f32 %v4853_v49  ;;  %v5335_v53 = vpop.f32.mrb[8].mxu0 }
  0xfb   : > { %v5442_v54 = vpop.eup %5441  ;;  %v703_v55 = vadd.f32 1.0, %v5440_v51  ;;  %v7026_v56 = vadd.f32 %v5335_v53, %v6991_v25  ;;  %v512_v57 = vpop.f32.mrb[9].mxu0  ;;  %v5421_v53 = vld [vmem:[%s10137_s3 + $0x5c] ss:$40 sps:$4 sm:$0xff]  }
  0xfc   : > { %v5444_v58 = vpop.eup %5443  ;;  %5453 = vrcp.f32 %v705_v52  ;;  %v706_v59 = vadd.f32 1.0, %v5442_v54  ;;  %v7029_v60 = vadd.f32 %v6991_v25, %v512_v57  ;;  %v5336_v61 = vpop.f32.mrb[10].mxu0 }
  0xfd   : > { %5455 = vrcp.f32 %v703_v55  ;;  %v704_v62 = vadd.f32 1.0, %v5444_v58  ;;  %v4858_v63 = vmul.f32 -1.442695, %v7026_v56  ;;  %v7033_v0 = vadd.f32 %v5336_v61, %v6991_v25  ;;  %v515_v1 = vpop.f32.mrb[11].mxu0 }
  0xfe   : > { %5457 = vrcp.f32 %v706_v59  ;;  %v4856_v2 = vmul.f32 -1.442695, %v7029_v60  ;;  %v7037_v3 = vadd.f32 %v6991_v25, %v515_v1 }
  0xff   : > { %5459 = vrcp.f32 %v704_v62  ;;  %v4859_v4 = vmul.f32 -1.442695, %v7033_v0 }
 0x100   : > { %5461 = vpow2.f32 %v4858_v63  ;;  %v4857_v5 = vmul.f32 -1.442695, %v7037_v3 }
 0x101   : > { %v5446_v6 = vpop.eup %5445  ;;  %5463 = vpow2.f32 %v4856_v2 }
 0x102   : > { %v5448_v7 = vpop.eup %5447  ;;  %v709_v8 = vadd.f32 1.0, %v5446_v6  ;;  %5465 = vpow2.f32 %v4859_v4  ;;  %v5339_v9 = vpop.f32.mrb[12].mxu0 }
 0x103   : > { %v5450_v10 = vpop.eup %5449  ;;  %v707_v11 = vadd.f32 1.0, %v5448_v7  ;;  %5467 = vpow2.f32 %v4857_v5  ;;  %v7042_v12 = vadd.f32 %v5339_v9, %v6991_v25  ;;  %v528_v13 = vpop.f32.mrb[13].mxu0  ;;  %v5419_v5 = vld [vmem:[%s10137_s3 + $0x58] ss:$40 sps:$4 sm:$0xff]  }
 0x104   : > { %v5452_v14 = vpop.eup %5451  ;;  %5469 = vrcp.f32 %v709_v8  ;;  %v710_v15 = vadd.f32 1.0, %v5450_v10  ;;  %v7045_v16 = vadd.f32 %v6991_v25, %v528_v13  ;;  %v5340_v17 = vpop.f32.mrb[14].mxu0  ;;  %v5427_v8 = vld [vmem:[%s10137_s3 + $0x1c] ss:$40 sps:$4 sm:$0xff]  }
 0x105   : > { %5471 = vrcp.f32 %v707_v11  ;;  %v708_v18 = vadd.f32 1.0, %v5452_v14  ;;  %v4862_v19 = vmul.f32 -1.442695, %v7042_v12  ;;  %v7049_v20 = vadd.f32 %v5340_v17, %v6991_v25  ;;  %v531_v21 = vpop.f32.mrb[15].mxu0 }
 0x106   : > { %v5454_v23 = vpop.eup %5453  ;;  %5473 = vrcp.f32 %v710_v15  ;;  %v4860_v24 = vmul.f32 -1.442695, %v7045_v16  ;;  %v7053_v26 = vadd.f32 %v6991_v25, %v531_v21 }
 0x107   : > { %v5456_v28 = vpop.eup %5455  ;;  %5475 = vrcp.f32 %v708_v18  ;;  %v4863_v30 = vmul.f32 -1.442695, %v7049_v20  ;;  %v801_v36 = vmul.f32 %v5454_v23, %v6994_v27  ;;  %v5416_v27 = vld [vmem:[%s10137_s3 + $0x8] ss:$40 sps:$4 sm:$0xff]  }
 0x108   : > { %v5458_v31 = vpop.eup %5457  ;;  %5477 = vpow2.f32 %v4862_v19  ;;  %v4861_v33 = vmul.f32 -1.442695, %v7053_v26  ;;  %v799_v40 = vmul.f32 %v5456_v28, %v6997_v29 }
 0x109   : > { %v5460_v34 = vpop.eup %5459  ;;  %v802_v37 = vmul.f32 %v5458_v31, %v7001_v32  ;;  %5479 = vpow2.f32 %v4860_v24 }
 0x10a   : > { %v5462_v38 = vpop.eup %5461  ;;  %v800_v42 = vmul.f32 %v5460_v34, %v7005_v35  ;;  %5481 = vpow2.f32 %v4863_v30  ;;  %v5343_v43 = vpop.f32.mrb[16].mxu0 }
 0x10b   : > { %v5464_v45 = vpop.eup %5463  ;;  %v7061_v46 = vpack.c.bf16 %v802_v37, %v801_v36  ;;  %v713_v48 = vadd.f32 1.0, %v5462_v38  ;;  %5483 = vpow2.f32 %v4861_v33  ;;  %v7064_v49 = vadd.f32 %v5343_v43, %v6991_v25  ;;  %v544_v50 = vpop.f32.mrb[17].mxu0 }
 0x10c   : > { %v5466_v32 = vpop.eup %5465  ;;  %v7069_v51 = vpack.c.bf16 %v800_v42, %v799_v40  ;;  %v711_v29 = vadd.f32 1.0, %v5464_v45  ;;  %v7072_v35 = vadd.f32 %v6991_v25, %v544_v50  ;;  %v5344_v52 = vpop.f32.mrb[18].mxu0 }
 0x10d   : > { %v5468_v54 = vpop.eup %5467  ;;  %5485 = vrcp.f32 %v713_v48  ;;  %v714_v55 = vadd.f32 1.0, %v5466_v32  ;;  %v4866_v57 = vmul.f32 -1.442695, %v7064_v49  ;;  %v7079_v58 = vadd.f32 %v5344_v52, %v6991_v25  ;;  %v547_v59 = vpop.f32.mrb[19].mxu0 }
 0x10e   : > { %v5470_v61 = vpop.eup %5469  ;;  %5487 = vrcp.f32 %v711_v29  ;;  %v712_v62 = vadd.f32 1.0, %v5468_v54  ;;  %v4864_v63 = vmul.f32 -1.442695, %v7072_v35  ;;  %v7083_v1 = vadd.f32 %v6991_v25, %v547_v59  ;;  %4900 = vmatmul.mubr.msk.bf16.vlgmr.msra.gmra.mrb[32].mxu0 %vm397_vm0, %v7069_v51 }
 0x10f   : > { %v5472_v2 = vpop.eup %5471  ;;  %5489 = vrcp.f32 %v714_v55  ;;  %v4867_v4 = vmul.f32 -1.442695, %v7079_v58  ;;  %1111 = vmatprep.mubr.bf16.mxu0 %v10144_v22  ;;  %1263 = vmatpush1.bf16.msra.mxu0 %v5416_v27  ;;  %v805_v10 = vmul.f32 %v5470_v61, %v7010_v39 }
 0x110   : > { %v5474_v6 = vpop.eup %5473  ;;  %5491 = vrcp.f32 %v712_v62  ;;  %v4865_v7 = vmul.f32 -1.442695, %v7083_v1  ;;  %1264 = vmatprep.subr.bf16.mxu0 %v5421_v53  ;;  %v803_v14 = vmul.f32 %v5472_v2, %v7013_v41 }
 0x111   : > { %v5476_v9 = vpop.eup %5475  ;;  %v806_v11 = vmul.f32 %v5474_v6, %v7017_v44  ;;  %5493 = vpow2.f32 %v4866_v57 }
 0x112   : > { %v5478_v13 = vpop.eup %5477  ;;  %v804_v15 = vmul.f32 %v5476_v9, %v7021_v47  ;;  %5495 = vpow2.f32 %v4864_v63  ;;  %v5347_v17 = vpop.f32.mrb[20].mxu0 }
 0x113   : > { %v5480_v18 = vpop.eup %5479  ;;  %v7100_v19 = vpack.c.bf16 %v806_v11, %v805_v10  ;;  %v717_v21 = vadd.f32 1.0, %v5478_v13  ;;  %5497 = vpow2.f32 %v4867_v4  ;;  %v7103_v23 = vadd.f32 %v5347_v17, %v6991_v25  ;;  %v560_v24 = vpop.f32.mrb[21].mxu0  ;;  %1265 = vmatpush1.bf16.msra.mxu0 %v5419_v5 }
 0x114   : > { %v5482_v39 = vpop.eup %5481  ;;  %v7105_v44 = vpack.c.bf16 %v804_v15, %v803_v14  ;;  %v715_v28 = vadd.f32 1.0, %v5480_v18  ;;  %5499 = vpow2.f32 %v4865_v7  ;;  %v7108_v41 = vadd.f32 %v6991_v25, %v560_v24  ;;  %v5348_v47 = vpop.f32.mrb[22].mxu0  ;;  %1648 = vmatprep.subr.bf16.mxu0 %v5427_v8  ;;  %v5424_v7 = vld [vmem:[%s10137_s3 + $0x64] ss:$40 sps:$4 sm:$0xff]  }
 0x115   : > { %v5484_v30 = vpop.eup %5483  ;;  %5501 = vrcp.f32 %v717_v21  ;;  %v718_v31 = vadd.f32 1.0, %v5482_v39  ;;  %v4870_v33 = vmul.f32 -1.442695, %v7103_v23  ;;  %v7112_v34 = vadd.f32 %v5348_v47, %v6991_v25  ;;  %v563_v36 = vpop.f32.mrb[23].mxu0  ;;  %v5422_v21 = vld [vmem:[%s10137_s3 + $0x60] ss:$40 sps:$4 sm:$0xff]  }
 0x116   : > { %5503 = vrcp.f32 %v715_v28  ;;  %v716_v37 = vadd.f32 1.0, %v5484_v30  ;;  %v4868_v38 = vmul.f32 -1.442695, %v7108_v41  ;;  %v7116_v40 = vadd.f32 %v6991_v25, %v563_v36  ;;  %4901 = vmatmul.mubr.msk.bf16.gmra.mrb[36].mxu0 %vm397_vm0, %v7061_v46  ;;  %v5430_v28 = vld [vmem:[%s10137_s3 + $0x24] ss:$40 sps:$4 sm:$0xff]  }
 0x117   : > { %v5486_v42 = vpop.eup %5485  ;;  %5505 = vrcp.f32 %v718_v31  ;;  %v4871_v43 = vmul.f32 -1.442695, %v7112_v34  ;;  %1121 = vmatprep.mubr.bf16.mxu0 %v10144_v22 }
 0x118   : > { %v5488_v45 = vpop.eup %5487  ;;  %5507 = vrcp.f32 %v716_v37  ;;  %v4869_v48 = vmul.f32 -1.442695, %v7116_v40  ;;  %v809_v32 = vmul.f32 %v5486_v42, %v7026_v56  ;;  %v5413_v56 = vld [vmem:[%s10137_s3 + $0x10] ss:$40 sps:$4 sm:$0xff]  }
 0x119   : > { %v5490_v50 = vpop.eup %5489  ;;  %5509 = vpow2.f32 %v4870_v33  ;;  %v807_v54 = vmul.f32 %v5488_v45, %v7029_v60 }
 0x11a   : > { %v5492_v27 = vpop.eup %5491  ;;  %v810_v29 = vmul.f32 %v5490_v50, %v7033_v0  ;;  %5511 = vpow2.f32 %v4868_v38  ;;  %v5351_v52 = vpop.f32.mrb[24].mxu0 }
 0x11b   : > { %v5494_v53 = vpop.eup %5493  ;;  %v808_v55 = vmul.f32 %v5492_v27, %v7037_v3  ;;  %5513 = vpow2.f32 %v4871_v43  ;;  %v7128_v57 = vadd.f32 %v5351_v52, %v6991_v25  ;;  %v576_v59 = vpop.f32.mrb[25].mxu0 }
 0x11c   : > { %v5496_v61 = vpop.eup %5495  ;;  %v7130_v62 = vpack.c.bf16 %v810_v29, %v809_v32  ;;  %v721_v63 = vadd.f32 1.0, %v5494_v53  ;;  %5515 = vpow2.f32 %v4869_v48  ;;  %v7136_v0 = vadd.f32 %v6991_v25, %v576_v59  ;;  %v5352_v60 = vpop.f32.mrb[26].mxu0 }
 0x11d   : > { %v5498_v2 = vpop.eup %5497  ;;  %v7138_v3 = vpack.c.bf16 %v808_v55, %v807_v54  ;;  %v719_v4 = vadd.f32 1.0, %v5496_v61  ;;  %v7141_v5 = vadd.f32 %v5352_v60, %v6991_v25  ;;  %v579_v6 = vpop.f32.mrb[27].mxu0  ;;  %v4874_v10 = vmul.f32 -1.442695, %v7128_v57 }
 0x11e   : > { %v5500_v8 = vpop.eup %5499  ;;  %5517 = vrcp.f32 %v721_v63  ;;  %v722_v9 = vadd.f32 1.0, %v5498_v2  ;;  %4902 = vmatmul.mubr.msk.bf16.gmra.mrb[40].mxu0 %vm397_vm0, %v7105_v44  ;;  %v7150_v11 = vadd.f32 %v6991_v25, %v579_v6  ;;  %v4872_v15 = vmul.f32 -1.442695, %v7136_v0 }
 0x11f   : > { %v5502_v13 = vpop.eup %5501  ;;  %5519 = vrcp.f32 %v719_v4  ;;  %v720_v14 = vadd.f32 1.0, %v5500_v8  ;;  %4904 = vmatmul.mubr.msk.bf16.vlgmr.msra.gmra.mrb[0].mxu1 %vm397_vm0, %v7138_v3  ;;  %1131 = vmatprep.mubr.bf16.mxu0 %v10144_v22  ;;  %v4875_v18 = vmul.f32 -1.442695, %v7141_v5 }
 0x120   : > { %v5504_v17 = vpop.eup %5503  ;;  %5521 = vrcp.f32 %v722_v9  ;;  %1456 = vmatpush1.bf16.msra.mxu1 %v5413_v56  ;;  %1151 = vmatprep.mubr.bf16.mxu1 %v10144_v22  ;;  %v4873_v39 = vmul.f32 -1.442695, %v7150_v11  ;;  %v813_v30 = vmul.f32 %v5502_v13, %v7042_v12  ;;  %v5425_v13 = vld [vmem:[%s10137_s3 + $0x18] ss:$40 sps:$4 sm:$0xff]  }
 0x121   : > { %v5506_v24 = vpop.eup %5505  ;;  %5523 = vrcp.f32 %v720_v14  ;;  %1457 = vmatprep.subr.bf16.mxu1 %v5424_v7  ;;  %v811_v37 = vmul.f32 %v5504_v17, %v7045_v16 }
 0x122   : > { %v5508_v47 = vpop.eup %5507  ;;  %v814_v31 = vmul.f32 %v5506_v24, %v7049_v20  ;;  %5525 = vpow2.f32 %v4874_v10  ;;  %v5355_v33 = vpop.f32.mrb[28].mxu0 }
 0x123   : > { %v5510_v36 = vpop.eup %5509  ;;  %v812_v38 = vmul.f32 %v5508_v47, %v7053_v26  ;;  %5527 = vpow2.f32 %v4872_v15  ;;  %v7170_v42 = vadd.f32 %v5355_v33, %v6991_v25  ;;  %v592_v43 = vpop.f32.mrb[29].mxu0 }
 0x124   : > { %v5512_v45 = vpop.eup %5511  ;;  %v7172_v48 = vpack.c.bf16 %v814_v31, %v813_v30  ;;  %v725_v50 = vadd.f32 1.0, %v5510_v36  ;;  %5529 = vpow2.f32 %v4875_v18  ;;  %v7175_v12 = vadd.f32 %v6991_v25, %v592_v43  ;;  %v5356_v20 = vpop.f32.mrb[30].mxu0  ;;  %1458 = vmatpush1.bf16.msra.mxu1 %v5422_v21 }
 0x125   : > { %v5514_v27 = vpop.eup %5513  ;;  %v7177_v32 = vpack.c.bf16 %v812_v38, %v811_v37  ;;  %v723_v16 = vadd.f32 1.0, %v5512_v45  ;;  %5531 = vpow2.f32 %v4873_v39  ;;  %v595_v26 = vpop.f32.mrb[31].mxu0  ;;  %1841 = vmatprep.subr.bf16.mxu1 %v5430_v28  ;;  %v4878_v53 = vmul.f32 -1.442695, %v7170_v42  ;;  %v5431_v28 = vld [vmem:[%s10137_s3 + $0x68] ss:$40 sps:$4 sm:$0xff]  }
 0x126   : > { %10163 = vst [vmem:[#allocation3_spill] sm:$0xff] %v7172_v48  ;;  %v5516_v29 = vpop.eup %5515  ;;  %5533 = vrcp.f32 %v725_v50  ;;  %v726_v52 = vadd.f32 1.0, %v5514_v27  ;;  %4903 = vmatmul.mubr.msk.bf16.gmra.mrb[44].mxu0 %vm397_vm0, %v7100_v19  ;;  %v7183_v54 = vadd.f32 %v5356_v20, %v6991_v25  ;;  %v4876_v59 = vmul.f32 -1.442695, %v7175_v12 }
 0x127   : > { %5535 = vrcp.f32 %v723_v16  ;;  %v724_v55 = vadd.f32 1.0, %v5516_v29  ;;  %4905 = vmatmul.mubr.msk.bf16.gmra.mrb[4].mxu1 %vm397_vm0, %v7130_v62  ;;  %1294 = vmatprep.mubr.bf16.mxu0 %v10144_v22  ;;  %v7190_v61 = vadd.f32 %v6991_v25, %v595_v26 }
 0x128   : > { %v5518_v63 = vpop.eup %5517  ;;  %5537 = vrcp.f32 %v726_v52  ;;  %1161 = vmatprep.mubr.bf16.mxu1 %v10144_v22  ;;  %v4879_v56 = vmul.f32 -1.442695, %v7183_v54 }
 0x129   : > { %v5520_v60 = vpop.eup %5519  ;;  %5539 = vrcp.f32 %v724_v55  ;;  %v4877_v2 = vmul.f32 -1.442695, %v7190_v61  ;;  %v817_v7 = vmul.f32 %v5518_v63, %v7064_v49  ;;  %v5433_v49 = vld [vmem:[%s10137_s3 + $0x6c] ss:$40 sps:$4 sm:$0xff]  }
 0x12a   : > { %v5522_v4 = vpop.eup %5521  ;;  %5541 = vpow2.f32 %v4878_v53  ;;  %v815_v9 = vmul.f32 %v5520_v60, %v7072_v35 }
 0x12b   : > { %v5524_v6 = vpop.eup %5523  ;;  %v818_v8 = vmul.f32 %v5522_v4, %v7079_v58  ;;  %5543 = vpow2.f32 %v4876_v59 }
 0x12c   : > { %v5526_v25 = vpop.eup %5525  ;;  %v816_v10 = vmul.f32 %v5524_v6, %v7083_v1  ;;  %5545 = vpow2.f32 %v4879_v56 }
 0x12d   : > { %v5528_v14 = vpop.eup %5527  ;;  %v7202_v15 = vpack.c.bf16 %v818_v8, %v817_v7  ;;  %v729_v17 = vadd.f32 1.0, %v5526_v25  ;;  %5547 = vpow2.f32 %v4877_v2 }
 0x12e   : > { %v5530_v58 = vpop.eup %5529  ;;  %v7207_v18 = vpack.c.bf16 %v816_v10, %v815_v9  ;;  %v727_v35 = vadd.f32 1.0, %v5528_v14  ;;  %4916 = vmatmul.mubr.msk.bf16.vlgmr.msra.gmra.mrb[48].mxu0 %vm397_vm0, %v7069_v51  ;;  %v7384_v14 = vld [vmem:[%s10138_s4] sm:$0xff] }
 0x12f   : > { %10164 = vst [vmem:[#allocation4_spill] sm:$0xff] %v7202_v15  ;;  %v5532_v1 = vpop.eup %5531  ;;  %5549 = vrcp.f32 %v729_v17  ;;  %v730_v21 = vadd.f32 1.0, %v5530_v58  ;;  %4906 = vmatmul.mubr.msk.bf16.gmra.mrb[8].mxu1 %vm397_vm0, %v7177_v32  ;;  %1304 = vmatprep.mubr.bf16.mxu0 %v10144_v22 }
 0x130   : > { %10165 = vst [vmem:[#allocation5_spill] sm:$0xff] %v7207_v18  ;;  %v5534_v24 = vpop.eup %5533  ;;  %5551 = vrcp.f32 %v727_v35  ;;  %v728_v39 = vadd.f32 1.0, %v5532_v1  ;;  %1171 = vmatprep.mubr.bf16.mxu1 %v10144_v22  ;;  %1649 = vmatpush1.bf16.msra.mxu0 %v5425_v13 }
 0x131   : > { %v5536_v47 = vpop.eup %5535  ;;  %5553 = vrcp.f32 %v730_v21  ;;  %1650 = vmatprep.subr.bf16.mxu0 %v5433_v49  ;;  %v821_v33 = vmul.f32 %v5534_v24, %v7103_v23 }
 0x132   : > { %v5538_v30 = vpop.eup %5537  ;;  %5555 = vrcp.f32 %v728_v39  ;;  %v819_v38 = vmul.f32 %v5536_v47, %v7108_v41 }
 0x133   : > { %v5540_v31 = vpop.eup %5539  ;;  %v822_v36 = vmul.f32 %v5538_v30, %v7112_v34 }
 0x134   : > { %v5542_v37 = vpop.eup %5541  ;;  %v820_v43 = vmul.f32 %v5540_v31, %v7116_v40  ;;  %1651 = vmatpush1.bf16.msra.mxu0 %v5431_v28 }
 0x135   : > { %v5544_v45 = vpop.eup %5543  ;;  %v7222_v50 = vpack.c.bf16 %v822_v36, %v821_v33  ;;  %v733_v20 = vadd.f32 1.0, %v5542_v37 }
 0x136   : > { %v5546_v27 = vpop.eup %5545  ;;  %v7224_v16 = vpack.c.bf16 %v820_v43, %v819_v38  ;;  %v731_v26 = vadd.f32 1.0, %v5544_v45  ;;  %4917 = vmatmul.mubr.msk.bf16.gmra.mrb[52].mxu0 %vm397_vm0, %v7061_v46 }
 0x137   : > { %10166 = vst [vmem:[#allocation6_spill] sm:$0xff] %v7222_v50  ;;  %v5548_v23 = vpop.eup %5547  ;;  %5557 = vrcp.f32 %v733_v20  ;;  %v734_v34 = vadd.f32 1.0, %v5546_v27  ;;  %4907 = vmatmul.mubr.msk.bf16.gmra.mrb[12].mxu1 %vm397_vm0, %v7172_v48  ;;  %1314 = vmatprep.mubr.bf16.mxu0 %v10144_v22 }
 0x138   : > { %10167 = vst [vmem:[#allocation7_spill] sm:$0xff] %v7224_v16  ;;  %5559 = vrcp.f32 %v731_v26  ;;  %v732_v41 = vadd.f32 1.0, %v5548_v23  ;;  %1181 = vmatprep.mubr.bf16.mxu1 %v10144_v22 }
 0x139   : > { %v5550_v40 = vpop.eup %5549  ;;  %5561 = vrcp.f32 %v734_v34 }
 0x13a   : > { %v5552_v29 = vpop.eup %5551  ;;  %v825_v52 = vmul.f32 %v5550_v40, %v7128_v57  ;;  %5563 = vrcp.f32 %v732_v41 }
 0x13b   : > { %v5554_v53 = vpop.eup %5553  ;;  %v823_v55 = vmul.f32 %v5552_v29, %v7136_v0 }
 0x13c   : > { %v5556_v59 = vpop.eup %5555  ;;  %v826_v63 = vmul.f32 %v5554_v53, %v7141_v5 }
 0x13d   : > { %v824_v56 = vmul.f32 %v5556_v59, %v7150_v11 }
 0x13e   : > { %v7236_v60 = vpack.c.bf16 %v826_v63, %v825_v52  ;;  %4918 = vmatmul.mubr.msk.bf16.gmra.mrb[56].mxu0 %vm397_vm0, %v7105_v44 }
 0x13f   : > { %v7240_v2 = vpack.c.bf16 %v824_v56, %v823_v55  ;;  %4908 = vmatmul.mubr.msk.bf16.gmra.mrb[16].mxu1 %vm397_vm0, %v7207_v18  ;;  %1324 = vmatprep.mubr.bf16.mxu0 %v10144_v22 }
 0x140   : > { %10168 = vst [vmem:[#allocation8_spill] sm:$0xff] %v7236_v60  ;;  %1191 = vmatprep.mubr.bf16.mxu1 %v10144_v22 }
 0x141   : > { %10169 = vst [vmem:[#allocation9_spill] sm:$0xff] %v7240_v2  ;;  %v5558_v57 = vpop.eup %5557 }
 0x142   : > { %v5560_v0 = vpop.eup %5559  ;;  %v829_v5 = vmul.f32 %v5558_v57, %v7170_v42  ;;  %v5428_v42 = vld [vmem:[%s10137_s3 + $0x20] ss:$40 sps:$4 sm:$0xff]  }
 0x143   : > { %v5562_v4 = vpop.eup %5561  ;;  %v827_v11 = vmul.f32 %v5560_v0, %v7175_v12  ;;  %v5436_v12 = vld [vmem:[%s10137_s3 + $0x74] ss:$40 sps:$4 sm:$0xff]  }
 0x144   : > { %v5564_v6 = vpop.eup %5563  ;;  %v830_v7 = vmul.f32 %v5562_v4, %v7183_v54  ;;  %v5434_v54 = vld [vmem:[%s10137_s3 + $0x70] ss:$40 sps:$4 sm:$0xff]  }
 0x145   : > { %v828_v8 = vmul.f32 %v5564_v6, %v7190_v61  ;;  %v10140_v61 = vlaneseq }
 0x146   : > { %v7250_v25 = vpack.c.bf16 %v830_v7, %v829_v5  ;;  %4919 = vmatmul.mubr.msk.bf16.gmra.mrb[60].mxu0 %vm397_vm0, %v7100_v19 }
 0x147   : > { %v7254_v9 = vpack.c.bf16 %v828_v8, %v827_v11  ;;  %4909 = vmatmul.mubr.msk.bf16.gmra.mrb[20].mxu1 %vm397_vm0, %v7202_v15  ;;  %1334 = vmatprep.mubr.bf16.mxu0 %v10144_v22  ;;  %v7374_v10 = vshrl.u32 %v10140_v61, 7 }
 0x148   : > { %10170 = vst [vmem:[#allocation10_spill] sm:$0xff] %v7250_v25  ;;  %1201 = vmatprep.mubr.bf16.mxu1 %v10144_v22 }
 0x149   : > { %10171 = vst [vmem:[#allocation11_spill] sm:$0xff] %v7254_v9  ;;  %10172 = vst [vmem:[#allocation12_spill] sm:$0xff] %v7374_v10  ;;  %v10142_v13 = vsub.s32 0, %v7374_v10  ;;  %v10141_v17 = vsub.s32 1, %v7374_v10 }
 0x14b   : > { %v7392_v49 = vrot.slane %v7384_v14, %v10142_v13  ;;  %v7399_v58 = vrot.slane %v7384_v14, %v10141_v17  ;;  %v885_v17 = vsub.s32 3, %v7374_v10 }
 0x14e   : > { %4920 = vmatmul.mubr.msk.bf16.gmra.mrb[64].mxu0 %vm397_vm0, %v7138_v3 }
 0x14f   : > { %4910 = vmatmul.mubr.msk.bf16.gmra.mrb[24].mxu1 %vm397_vm0, %v7224_v16  ;;  %1344 = vmatprep.mubr.bf16.mxu0 %v10144_v22 }
 0x150   : > { %1211 = vmatprep.mubr.bf16.mxu1 %v10144_v22 }
 0x156   : > { %4921 = vmatmul.mubr.msk.bf16.gmra.mrb[68].mxu0 %vm397_vm0, %v7130_v62 }
 0x157   : > { %4911 = vmatmul.mubr.msk.bf16.gmra.mrb[28].mxu1 %vm397_vm0, %v7222_v50  ;;  %1354 = vmatprep.mubr.bf16.mxu0 %v10144_v22 }
 0x158   : > { %1221 = vmatprep.mubr.bf16.mxu1 %v10144_v22 }
 0x15e   : > { %4922 = vmatmul.mubr.msk.bf16.gmra.mrb[72].mxu0 %vm397_vm0, %v7177_v32 }
 0x15f   : > { %4912 = vmatmul.mubr.msk.bf16.gmra.mrb[32].mxu1 %vm397_vm0, %v7240_v2  ;;  %1364 = vmatprep.mubr.bf16.mxu0 %v10144_v22 }
 0x160   : > { %1231 = vmatprep.mubr.bf16.mxu1 %v10144_v22 }
 0x166   : > { %4923 = vmatmul.mubr.msk.bf16.gmra.mrb[76].mxu0 %vm397_vm0, %v7172_v48 }
 0x167   : > { %4913 = vmatmul.mubr.msk.bf16.gmra.mrb[36].mxu1 %vm397_vm0, %v7236_v60  ;;  %1374 = vmatprep.mubr.bf16.mxu0 %v10144_v22 }
 0x168   : > { %1241 = vmatprep.mubr.bf16.mxu1 %v10144_v22 }
 0x16e   : > { %4924 = vmatmul.mubr.msk.bf16.gmra.mrb[80].mxu0 %vm397_vm0, %v7207_v18 }
 0x16f   : > { %4914 = vmatmul.mubr.msk.bf16.gmra.mrb[40].mxu1 %vm397_vm0, %v7254_v9  ;;  %1384 = vmatprep.mubr.bf16.mxu0 %v10144_v22 }
 0x170   : > { %1251 = vmatprep.mubr.bf16.mxu1 %v10144_v22 }
 0x176   : > { %4925 = vmatmul.mubr.msk.bf16.gmra.mrb[84].mxu0 %vm397_vm0, %v7202_v15 }
 0x177   : > { %4915 = vmatmul.mubr.msk.bf16.gmra.mrb[44].mxu1 %vm397_vm0, %v7250_v25  ;;  %1394 = vmatprep.mubr.bf16.mxu0 %v10144_v22 }
 0x178   : > { %1487 = vmatprep.mubr.bf16.mxu1 %v10144_v22 }
 0x17e   : > { %4926 = vmatmul.mubr.msk.bf16.gmra.mrb[88].mxu0 %vm397_vm0, %v7224_v16 }
 0x17f   : > { %4932 = vmatmul.mubr.msk.bf16.vlgmr.msra.gmra.mrb[48].mxu1 %vm397_vm0, %v7069_v51  ;;  %1404 = vmatprep.mubr.bf16.mxu0 %v10144_v22 }
 0x180   : > { %1842 = vmatpush1.bf16.msra.mxu1 %v5428_v42  ;;  %1497 = vmatprep.mubr.bf16.mxu1 %v10144_v22 }
 0x181   : > { %1843 = vmatprep.subr.bf16.mxu1 %v5436_v12 }
 0x184   : > { %1844 = vmatpush1.bf16.msra.mxu1 %v5434_v54 }
 0x186   : > { %4927 = vmatmul.mubr.msk.bf16.gmra.mrb[92].mxu0 %vm397_vm0, %v7222_v50 }
 0x187   : > { %4933 = vmatmul.mubr.msk.bf16.gmra.mrb[52].mxu1 %vm397_vm0, %v7061_v46  ;;  %1414 = vmatprep.mubr.bf16.mxu0 %v10144_v22 }
 0x188   : > { %1507 = vmatprep.mubr.bf16.mxu1 %v10144_v22 }
 0x18e   : > { %4928 = vmatmul.mubr.msk.bf16.gmra.mrb[96].mxu0 %vm397_vm0, %v7240_v2 }
 0x18f   : > { %4934 = vmatmul.mubr.msk.bf16.gmra.mrb[56].mxu1 %vm397_vm0, %v7105_v44  ;;  %1424 = vmatprep.mubr.bf16.mxu0 %v10144_v22 }
 0x190   : > { %1517 = vmatprep.mubr.bf16.mxu1 %v10144_v22 }
 0x196   : > { %4929 = vmatmul.mubr.msk.bf16.gmra.mrb[100].mxu0 %vm397_vm0, %v7236_v60 }
 0x197   : > { %4935 = vmatmul.mubr.msk.bf16.gmra.mrb[60].mxu1 %vm397_vm0, %v7100_v19  ;;  %1434 = vmatprep.mubr.bf16.mxu0 %v10144_v22 }
 0x198   : > { %1527 = vmatprep.mubr.bf16.mxu1 %v10144_v22 }
 0x19e   : > { %4930 = vmatmul.mubr.msk.bf16.gmra.mrb[104].mxu0 %vm397_vm0, %v7254_v9 }
 0x19f   : > { %4936 = vmatmul.mubr.msk.bf16.gmra.mrb[64].mxu1 %vm397_vm0, %v7138_v3  ;;  %1444 = vmatprep.mubr.bf16.mxu0 %v10144_v22 }
 0x1a0   : > { %1537 = vmatprep.mubr.bf16.mxu1 %v10144_v22 }
 0x1a6   : > { %4931 = vmatmul.mubr.msk.bf16.gmra.mrb[108].mxu0 %vm397_vm0, %v7250_v25 }
 0x1a7   : > { %4937 = vmatmul.mubr.msk.bf16.gmra.mrb[68].mxu1 %vm397_vm0, %v7130_v62  ;;  %1680 = vmatprep.mubr.bf16.mxu0 %v10144_v22 }
 0x1a8   : > { %1547 = vmatprep.mubr.bf16.mxu1 %v10144_v22 }
 0x1ae   : > { %4948 = vmatmul.mubr.msk.bf16.vlgmr.msra.gmra.mrb[112].mxu0 %vm397_vm0, %v7069_v51 }
 0x1af   : > { %4938 = vmatmul.mubr.msk.bf16.gmra.mrb[72].mxu1 %vm397_vm0, %v7177_v32  ;;  %1690 = vmatprep.mubr.bf16.mxu0 %v10144_v22 }
 0x1b0   : > { %1557 = vmatprep.mubr.bf16.mxu1 %v10144_v22 }
 0x1b6   : > { %4949 = vmatmul.mubr.msk.bf16.gmra.mrb[116].mxu0 %vm397_vm0, %v7061_v46 }
 0x1b7   : > { %4939 = vmatmul.mubr.msk.bf16.gmra.mrb[76].mxu1 %vm397_vm0, %v7172_v48  ;;  %1700 = vmatprep.mubr.bf16.mxu0 %v10144_v22 }
 0x1b8   : > { %1567 = vmatprep.mubr.bf16.mxu1 %v10144_v22 }
 0x1be   : > { %4950 = vmatmul.mubr.msk.bf16.gmra.mrb[120].mxu0 %vm397_vm0, %v7105_v44 }
 0x1bf   : > { %4940 = vmatmul.mubr.msk.bf16.gmra.mrb[80].mxu1 %vm397_vm0, %v7207_v18  ;;  %1710 = vmatprep.mubr.bf16.mxu0 %v10144_v22 }
 0x1c0   : > { %1577 = vmatprep.mubr.bf16.mxu1 %v10144_v22 }
 0x1c6   : > { %4951 = vmatmul.mubr.msk.bf16.gmra.mrb[124].mxu0 %vm397_vm0, %v7100_v19 }
 0x1c7   : > { %4941 = vmatmul.mubr.msk.bf16.gmra.mrb[84].mxu1 %vm397_vm0, %v7202_v15  ;;  %1720 = vmatprep.mubr.bf16.mxu0 %v10144_v22 }
 0x1c8   : > { %1587 = vmatprep.mubr.bf16.mxu1 %v10144_v22 }
 0x1ce   : > { %4952 = vmatmul.mubr.msk.bf16.gmra.mrb[128].mxu0 %vm397_vm0, %v7138_v3 }
 0x1cf   : > { %4942 = vmatmul.mubr.msk.bf16.gmra.mrb[88].mxu1 %vm397_vm0, %v7224_v16  ;;  %1730 = vmatprep.mubr.bf16.mxu0 %v10144_v22 }
 0x1d0   : > { %1597 = vmatprep.mubr.bf16.mxu1 %v10144_v22 }
 0x1d6   : > { %4953 = vmatmul.mubr.msk.bf16.gmra.mrb[132].mxu0 %vm397_vm0, %v7130_v62 }
 0x1d7   : > { %4943 = vmatmul.mubr.msk.bf16.gmra.mrb[92].mxu1 %vm397_vm0, %v7222_v50  ;;  %1740 = vmatprep.mubr.bf16.mxu0 %v10144_v22 }
 0x1d8   : > { %1607 = vmatprep.mubr.bf16.mxu1 %v10144_v22 }
 0x1de   : > { %4954 = vmatmul.mubr.msk.bf16.gmra.mrb[136].mxu0 %vm397_vm0, %v7177_v32 }
 0x1df   : > { %4944 = vmatmul.mubr.msk.bf16.gmra.mrb[96].mxu1 %vm397_vm0, %v7240_v2  ;;  %1750 = vmatprep.mubr.bf16.mxu0 %v10144_v22 }
 0x1e0   : > { %1617 = vmatprep.mubr.bf16.mxu1 %v10144_v22 }
 0x1e1   : > { %v1103_v35 = vpop.f32.mrb[32].mxu0 }
 0x1e2   : > { %v7404_v1 = vadd.f32 %v1103_v35, %v7392_v49  ;;  %v1105_v21 = vpop.f32.mrb[33].mxu0 }
 0x1e3   : > { %v7407_v24 = vadd.f32 %v1105_v21, %v7399_v58  ;;  %v1107_v39 = vpop.f32.mrb[34].mxu0 }
 0x1e4   : > { %v4980_v28 = vmul.f32 -1.442695, %v7404_v1  ;;  %v7411_v47 = vadd.f32 %v1107_v39, %v7392_v49  ;;  %v1109_v30 = vpop.f32.mrb[35].mxu0 }
 0x1e5   : > { %v4981_v31 = vmul.f32 -1.442695, %v7407_v24  ;;  %v7415_v33 = vadd.f32 %v1109_v30, %v7399_v58 }
 0x1e6   : > { %5565 = vpow2.f32 %v4980_v28  ;;  %v4990_v36 = vmul.f32 -1.442695, %v7411_v47  ;;  %4955 = vmatmul.mubr.msk.bf16.gmra.mrb[140].mxu0 %vm397_vm0, %v7172_v48 }
 0x1e7   : > { %5567 = vpow2.f32 %v4981_v31  ;;  %v4991_v37 = vmul.f32 -1.442695, %v7415_v33  ;;  %4945 = vmatmul.mubr.msk.bf16.gmra.mrb[100].mxu1 %vm397_vm0, %v7236_v60  ;;  %1760 = vmatprep.mubr.bf16.mxu0 %v10144_v22 }
 0x1e8   : > { %5569 = vpow2.f32 %v4990_v36  ;;  %1627 = vmatprep.mubr.bf16.mxu1 %v10144_v22 }
 0x1e9   : > { %5571 = vpow2.f32 %v4991_v37  ;;  %v1113_v38 = vpop.f32.mrb[36].mxu0 }
 0x1ea   : > { %v7426_v43 = vadd.f32 %v1113_v38, %v7392_v49  ;;  %v1115_v45 = vpop.f32.mrb[37].mxu0 }
 0x1eb   : > { %v7429_v20 = vadd.f32 %v1115_v45, %v7399_v58  ;;  %v1117_v27 = vpop.f32.mrb[38].mxu0 }
 0x1ec   : > { %v5000_v26 = vmul.f32 -1.442695, %v7426_v43  ;;  %v7433_v23 = vadd.f32 %v1117_v27, %v7392_v49  ;;  %v1119_v34 = vpop.f32.mrb[39].mxu0 }
 0x1ed   : > { %v5001_v41 = vmul.f32 -1.442695, %v7429_v20  ;;  %v7437_v40 = vadd.f32 %v1119_v34, %v7399_v58 }
 0x1ee   : > { %5573 = vpow2.f32 %v5000_v26  ;;  %v5010_v29 = vmul.f32 -1.442695, %v7433_v23  ;;  %4956 = vmatmul.mubr.msk.bf16.gmra.mrb[144].mxu0 %vm397_vm0, %v7207_v18 }
 0x1ef   : > { %5575 = vpow2.f32 %v5001_v41  ;;  %v5011_v52 = vmul.f32 -1.442695, %v7437_v40  ;;  %4946 = vmatmul.mubr.msk.bf16.gmra.mrb[104].mxu1 %vm397_vm0, %v7254_v9  ;;  %1770 = vmatprep.mubr.bf16.mxu0 %v10144_v22 }
 0x1f0   : > { %v5566_v53 = vpop.eup %5565  ;;  %5577 = vpow2.f32 %v5010_v29  ;;  %1637 = vmatprep.mubr.bf16.mxu1 %v10144_v22 }
 0x1f1   : > { %v5568_v55 = vpop.eup %5567  ;;  %v2994_v59 = vadd.f32 1.0, %v5566_v53  ;;  %5579 = vpow2.f32 %v5011_v52  ;;  %v1123_v63 = vpop.f32.mrb[40].mxu0 }
 0x1f2   : > { %v5570_v56 = vpop.eup %5569  ;;  %v2995_v57 = vadd.f32 1.0, %v5568_v55  ;;  %v7448_v0 = vadd.f32 %v1123_v63, %v7392_v49  ;;  %v1143_v5 = vpop.f32.mrb[0].mxu1 }
 0x1f3   : > { %v1125_v4 = vpop.f32.mrb[41].mxu0  ;;  %v5572_v11 = vpop.eup %5571  ;;  %5581 = vrcp.f32 %v2994_v59  ;;  %v3004_v6 = vadd.f32 1.0, %v5570_v56  ;;  %v7451_v7 = vadd.f32 %v1143_v5, %v7392_v49 }
 0x1f4   : > { %v7454_v8 = vadd.f32 %v1125_v4, %v7399_v58  ;;  %v1145_v42 = vpop.f32.mrb[1].mxu1  ;;  %v1127_v12 = vpop.f32.mrb[42].mxu0  ;;  %5583 = vrcp.f32 %v2995_v57  ;;  %v3005_v54 = vadd.f32 1.0, %v5572_v11  ;;  %v5020_v35 = vmul.f32 -1.442695, %v7448_v0 }
 0x1f5   : > { %v7458_v21 = vadd.f32 %v1145_v42, %v7399_v58  ;;  %v1147_v39 = vpop.f32.mrb[2].mxu1  ;;  %v1129_v28 = vpop.f32.mrb[43].mxu0  ;;  %5585 = vrcp.f32 %v3004_v6  ;;  %v5060_v30 = vmul.f32 -1.442695, %v7451_v7  ;;  %v7466_v38 = vadd.f32 %v1127_v12, %v7392_v49 }
 0x1f6   : > { %v5021_v31 = vmul.f32 -1.442695, %v7454_v8  ;;  %v1149_v36 = vpop.f32.mrb[3].mxu1  ;;  %5587 = vrcp.f32 %v3005_v54  ;;  %4957 = vmatmul.mubr.msk.bf16.gmra.mrb[148].mxu0 %vm397_vm0, %v7202_v15  ;;  %v7472_v27 = vadd.f32 %v1147_v39, %v7392_v49  ;;  %v7476_v41 = vadd.f32 %v1129_v28, %v7399_v58 }
 0x1f7   : > { %v5061_v37 = vmul.f32 -1.442695, %v7458_v21  ;;  %5589 = vpow2.f32 %v5020_v35  ;;  %4947 = vmatmul.mubr.msk.bf16.gmra.mrb[108].mxu1 %vm397_vm0, %v7250_v25  ;;  %1780 = vmatprep.mubr.bf16.mxu0 %v10144_v22  ;;  %v7479_v55 = vadd.f32 %v1149_v36, %v7399_v58  ;;  %v5030_v5 = vmul.f32 -1.442695, %v7466_v38 }
 0x1f8   : > { %v5574_v45 = vpop.eup %5573  ;;  %5591 = vpow2.f32 %v5060_v30  ;;  %1873 = vmatprep.mubr.bf16.mxu1 %v10144_v22  ;;  %v5070_v12 = vmul.f32 -1.442695, %v7472_v27  ;;  %v5031_v28 = vmul.f32 -1.442695, %v7476_v41 }
 0x1f9   : > { %v5576_v26 = vpop.eup %5575  ;;  %v3014_v34 = vadd.f32 1.0, %v5574_v45  ;;  %5593 = vpow2.f32 %v5021_v31  ;;  %v1133_v29 = vpop.f32.mrb[44].mxu0  ;;  %v5071_v36 = vmul.f32 -1.442695, %v7479_v55 }
 0x1fa   : > { %v5578_v52 = vpop.eup %5577  ;;  %v3015_v53 = vadd.f32 1.0, %v5576_v26  ;;  %5595 = vpow2.f32 %v5061_v37  ;;  %v1153_v59 = vpop.f32.mrb[4].mxu1  ;;  %v7483_v4 = vadd.f32 %v1133_v29, %v7392_v49 }
 0x1fb   : > { %v1135_v63 = vpop.f32.mrb[45].mxu0  ;;  %v5580_v56 = vpop.eup %5579  ;;  %5597 = vrcp.f32 %v3014_v34  ;;  %v3024_v57 = vadd.f32 1.0, %v5578_v52  ;;  %v7503_v52 = vadd.f32 %v1153_v59, %v7392_v49 }
 0x1fc   : > { %v1155_v11 = vpop.f32.mrb[5].mxu1  ;;  %v1137_v6 = vpop.f32.mrb[46].mxu0  ;;  %5599 = vrcp.f32 %v3015_v53  ;;  %v3025_v42 = vadd.f32 1.0, %v5580_v56  ;;  %v5040_v45 = vmul.f32 -1.442695, %v7483_v4 }
 0x1fd   : > { %v7486_v54 = vpop.f32.mrb[6].mxu1  ;;  %v7488_v35 = vpop.f32.mrb[47].mxu0  ;;  %5601 = vrcp.f32 %v3024_v57  ;;  %v7514_v59 = vadd.f32 %v1155_v11, %v7399_v58  ;;  %v5080_v11 = vmul.f32 -1.442695, %v7503_v52 }
 0x1fe   : > { %v5582_v39 = vpop.eup %5581  ;;  %v7491_v30 = vpop.f32.mrb[7].mxu1  ;;  %5603 = vrcp.f32 %v3025_v42  ;;  %4958 = vmatmul.mubr.msk.bf16.gmra.mrb[152].mxu0 %vm397_vm0, %v7224_v16  ;;  %v7549_v13 = vadd.f32 %v7486_v54, %v7392_v49 }
 0x1ff   : > { %v5584_v31 = vpop.eup %5583  ;;  %5605 = vpow2.f32 %v5030_v5  ;;  %4964 = vmatmul.mubr.msk.bf16.vlgmr.msra.gmra.mrb[112].mxu1 %vm397_vm0, %v7069_v51  ;;  %1790 = vmatprep.mubr.bf16.mxu0 %v10144_v22  ;;  %v3954_v34 = vmul.f32 %v5582_v39, %v7404_v1  ;;  %v7509_v51 = vadd.f32 %v1135_v63, %v7399_v58  ;;  %v7563_v54 = vadd.f32 %v7491_v30, %v7399_v58 }
 0x200   : > { %v5586_v37 = vpop.eup %5585  ;;  %5607 = vpow2.f32 %v5070_v12  ;;  %1883 = vmatprep.mubr.bf16.mxu1 %v10144_v22  ;;  %v3955_v56 = vmul.f32 %v5584_v31, %v7407_v24  ;;  %v5090_v30 = vmul.f32 -1.442695, %v7549_v13 }
 0x201   : > { %v5588_v26 = vpop.eup %5587  ;;  %v3964_v29 = vmul.f32 %v5586_v37, %v7411_v47  ;;  %5609 = vpow2.f32 %v5031_v28  ;;  %v7511_v5 = vpop.f32.mrb[48].mxu0 }
 0x202   : > { %v5590_v53 = vpop.eup %5589  ;;  %v3965_v57 = vmul.f32 %v5588_v26, %v7415_v33  ;;  %5611 = vpow2.f32 %v5071_v36  ;;  %v1163_v12 = vpop.f32.mrb[8].mxu1  ;;  %v7519_v33 = vadd.f32 %v1137_v6, %v7392_v49 }
 0x203   : > { %v5592_v1 = vpop.eup %5591  ;;  %v4276_v42 = vadd.f32 %v3964_v29, %v3954_v34  ;;  %v3034_v47 = vadd.f32 1.0, %v5590_v53  ;;  %v7516_v39 = vpop.f32.mrb[49].mxu0  ;;  %5613 = vpow2.f32 %v5040_v45  ;;  %v5041_v45 = vmul.f32 -1.442695, %v7509_v51 }
 0x204   : > { %v5594_v37 = vpop.eup %5593  ;;  %v4313_v24 = vadd.f32 %v3965_v57, %v3955_v56  ;;  %v3074_v31 = vadd.f32 1.0, %v5592_v1  ;;  %v7521_v63 = vpop.f32.mrb[9].mxu1 }
 0x205   : > { %v7523_v28 = vpop.f32.mrb[50].mxu0  ;;  %v5596_v26 = vpop.eup %5595  ;;  %5615 = vrcp.f32 %v3034_v47  ;;  %v3035_v36 = vadd.f32 1.0, %v5594_v37  ;;  %v5081_v47 = vmul.f32 -1.442695, %v7514_v59 }
 0x206   : > { %v7526_v34 = vpop.f32.mrb[10].mxu1  ;;  %v7528_v29 = vpop.f32.mrb[51].mxu0  ;;  %5617 = vrcp.f32 %v3074_v31  ;;  %v3075_v56 = vadd.f32 1.0, %v5596_v26  ;;  %4959 = vmatmul.mubr.msk.bf16.gmra.mrb[156].mxu0 %vm397_vm0, %v7222_v50  ;;  %v5050_v31 = vmul.f32 -1.442695, %v7519_v33  ;;  %v881_v26 = vsub.s32 2, %v7374_v10 }
 0x207   : > { %v5598_v53 = vpop.eup %5597  ;;  %v7531_v6 = vpop.f32.mrb[11].mxu1  ;;  %5619 = vrcp.f32 %v3035_v36  ;;  %4965 = vmatmul.mubr.msk.bf16.gmra.mrb[116].mxu1 %vm397_vm0, %v7061_v46  ;;  %1800 = vmatprep.mubr.bf16.mxu0 %v10144_v22 }
 0x208   : > { %v5600_v57 = vpop.eup %5599  ;;  %v3974_v1 = vmul.f32 %v5598_v53, %v7426_v43  ;;  %5621 = vrcp.f32 %v3075_v56  ;;  %1893 = vmatprep.mubr.bf16.mxu1 %v10144_v22 }
 0x209   : > { %v5602_v37 = vpop.eup %5601  ;;  %v3975_v61 = vmul.f32 %v5600_v57, %v7429_v20  ;;  %5623 = vpow2.f32 %v5080_v11  ;;  %v7551_v46 = vpop.f32.mrb[52].mxu0 }
 0x20a   : > { %v5604_v43 = vpop.eup %5603  ;;  %v4277_v36 = vadd.f32 %v4276_v42, %v3974_v1  ;;  %v3984_v53 = vmul.f32 %v5602_v37, %v7433_v23  ;;  %5625 = vpow2.f32 %v5041_v45  ;;  %v7555_v23 = vadd.f32 %v7488_v35, %v7399_v58  ;;  %v7557_v11 = vpop.f32.mrb[12].mxu1 }
 0x20b   : > { %v5606_v20 = vpop.eup %5605  ;;  %v4314_v56 = vadd.f32 %v4313_v24, %v3975_v61  ;;  %v3985_v57 = vmul.f32 %v5604_v43, %v7437_v40  ;;  %5627 = vpow2.f32 %v5081_v47  ;;  %v7559_v61 = vpop.f32.mrb[53].mxu0 }
 0x20c   : > { %v5608_v50 = vpop.eup %5607  ;;  %v4278_v42 = vadd.f32 %v4277_v36, %v3984_v53  ;;  %v3044_v1 = vadd.f32 1.0, %v5606_v20  ;;  %5629 = vpow2.f32 %v5050_v31  ;;  %v7565_v37 = vpop.f32.mrb[13].mxu1  ;;  %v7570_v36 = vadd.f32 %v1163_v12, %v7392_v49 }
 0x20d   : > { %v5610_v40 = vpop.eup %5609  ;;  %v4315_v24 = vadd.f32 %v4314_v56, %v3985_v57  ;;  %v3084_v45 = vadd.f32 1.0, %v5608_v50  ;;  %v7567_v43 = vpop.f32.mrb[54].mxu0  ;;  %v7578_v56 = vrot.slane %v7384_v14, %v881_v26  ;;  %v5051_v12 = vmul.f32 -1.442695, %v7555_v23 }
 0x20e   : > { %v5612_v47 = vpop.eup %5611  ;;  %5631 = vrcp.f32 %v3044_v1  ;;  %v3045_v35 = vadd.f32 1.0, %v5610_v40  ;;  %v7572_v53 = vpop.f32.mrb[14].mxu1  ;;  %4960 = vmatmul.mubr.msk.bf16.gmra.mrb[160].mxu0 %vm397_vm0, %v7240_v2  ;;  %v7590_v26 = vrot.slane %v7384_v14, %v885_v17  ;;  %v5100_v10 = vmul.f32 -1.442695, %v7570_v36 }
 0x20f   : > { %v7574_v20 = vpop.f32.mrb[55].mxu0  ;;  %v5614_v50 = vpop.eup %5613  ;;  %5633 = vrcp.f32 %v3084_v45  ;;  %v3085_v31 = vadd.f32 1.0, %v5612_v47  ;;  %v5091_v47 = vmul.f32 -1.442695, %v7563_v54  ;;  %4966 = vmatmul.mubr.msk.bf16.gmra.mrb[120].mxu1 %vm397_vm0, %v7105_v44  ;;  %v7602_v14 = vadd.f32 %v7511_v5, %v7578_v56 }
 0x210   : > { %v7580_v57 = vpop.f32.mrb[15].mxu1  ;;  %v5616_v22 = vpop.eup %5615  ;;  %5635 = vrcp.f32 %v3045_v35  ;;  %v3054_v1 = vadd.f32 1.0, %v5614_v50  ;;  %v10173_v35 = vmov 0   ;;  %v7616_v5 = vadd.f32 %v7516_v39, %v7590_v26 }
 0x211   : > { %v7585_v40 = vpop.eup %5617  ;;  %v3994_v45 = vmul.f32 %v5616_v22, %v7448_v0  ;;  %5637 = vrcp.f32 %v3085_v31  ;;  %1810 = vmatprep.mubr.bf16.mxu0 %v10173_v35  ;;  %1903 = vmatprep.mubr.bf16.mxu1 %v10173_v35  ;;  %10174 = vst [vmem:[#allocation13_spill] sm:$0xff] %v7602_v14  ;;  %v7604_v17 = vpop.f32.mrb[56].mxu0  ;;  %v7608_v31 = vadd.f32 %v7521_v63, %v7399_v58  ;;  %v4982_v39 = vmul.f32 -1.442695, %v7602_v14 }
 0x212   : > { %v5620_v50 = vpop.eup %5619  ;;  %5639 = vrcp.f32 %v3054_v1  ;;  %v7610_v1 = vpop.f32.mrb[16].mxu1  ;;  %10175 = vst [vmem:[#allocation14_spill] sm:$0xff] %v7616_v5  ;;  %v7624_v63 = vadd.f32 %v7526_v34, %v7392_v49 }
 0x213   : > { %v7597_v2 = vpop.eup %5621  ;;  %v4279_v22 = vadd.f32 %v4278_v42, %v3994_v45  ;;  %v3995_v0 = vmul.f32 %v5620_v50, %v7454_v8  ;;  %5641 = vpow2.f32 %v5090_v30  ;;  %v7612_v16 = vpop.f32.mrb[57].mxu0  ;;  %v5101_v34 = vmul.f32 -1.442695, %v7608_v31 }
 0x214   : > { %v5624_v44 = vpop.eup %5623  ;;  %5643 = vpow2.f32 %v5051_v12  ;;  %v7618_v30 = vpop.f32.mrb[17].mxu1 }
 0x215   : > { %v5626_v42 = vpop.eup %5625  ;;  %v4316_v45 = vadd.f32 %v4315_v24, %v3995_v0  ;;  %v3094_v8 = vadd.f32 1.0, %v5624_v44  ;;  %5645 = vpow2.f32 %v5091_v47  ;;  %v7620_v50 = vpop.f32.mrb[58].mxu0  ;;  %v7633_v44 = vadd.f32 %v7523_v28, %v7578_v56 }
 0x216   : > { %10176 = vst [vmem:[#allocation15_spill] sm:$0xff] %v7620_v50  ;;  %v5628_v12 = vpop.eup %5627  ;;  %v3055_v15 = vadd.f32 1.0, %v5626_v42  ;;  %5647 = vpow2.f32 %v5100_v10  ;;  %v7626_v18 = vpop.f32.mrb[18].mxu1  ;;  %4961 = vmatmul.mubr.msk.bf16.gmra.mrb[164].mxu0 %vm397_vm0, %v7236_v60 }
 0x217   : > { %v7628_v24 = vpop.f32.mrb[59].mxu0  ;;  %v5630_v47 = vpop.eup %5629  ;;  %5649 = vrcp.f32 %v3094_v8  ;;  %v3095_v0 = vadd.f32 1.0, %v5628_v12  ;;  %v4983_v12 = vmul.f32 -1.442695, %v7616_v5  ;;  %4967 = vmatmul.mubr.msk.bf16.gmra.mrb[124].mxu1 %vm397_vm0, %v7100_v19  ;;  %1820 = vmatprep.mubr.bf16.mxu0 %v10173_v35  ;;  %v7657_v19 = vadd.f32 %v7531_v6, %v7399_v58 }
 0x218   : > { %10177 = vst [vmem:[#allocation16_spill] sm:$0xff] %v7628_v24  ;;  %v7635_v48 = vpop.f32.mrb[19].mxu1  ;;  %v5632_v10 = vpop.eup %5631  ;;  %5651 = vrcp.f32 %v3055_v15  ;;  %v3064_v42 = vadd.f32 1.0, %v5630_v47  ;;  %v5110_v15 = vmul.f32 -1.442695, %v7624_v63  ;;  %1913 = vmatprep.mubr.bf16.mxu1 %v10173_v35 }
 0x219   : > { %10178 = vst [vmem:[#allocation17_spill] sm:$0xff] %v7635_v48  ;;  %v7640_v24 = vpop.eup %5633  ;;  %v4004_v8 = vmul.f32 %v5632_v10, %v7466_v38  ;;  %5653 = vrcp.f32 %v3095_v0  ;;  %v4992_v38 = vmul.f32 -1.442695, %v7633_v44  ;;  %v7653_v0 = vpop.f32.mrb[60].mxu0 }
 0x21a   : > { %v5636_v28 = vpop.eup %5635  ;;  %5655 = vrcp.f32 %v3064_v42  ;;  %v7659_v42 = vpop.f32.mrb[20].mxu1 }
 0x21b   : > { %v7649_v47 = vpop.eup %5637  ;;  %v4280_v60 = vadd.f32 %v4279_v22, %v4004_v8  ;;  %v4005_v48 = vmul.f32 %v5636_v28, %v7476_v41  ;;  %5657 = vpow2.f32 %v4982_v39  ;;  %v7661_v5 = vpop.f32.mrb[61].mxu0  ;;  %v7666_v41 = vadd.f32 %v7528_v29, %v7590_v26 }
 0x21c   : > { %v5640_v10 = vpop.eup %5639  ;;  %5659 = vpow2.f32 %v5101_v34  ;;  %10179 = vst [vmem:[#allocation18_spill] sm:$0xff] %v7661_v5  ;;  %v7668_v39 = vpop.f32.mrb[21].mxu1  ;;  %v7674_v28 = vadd.f32 %v7557_v11, %v7392_v49  ;;  %v7682_v29 = vadd.f32 %v7551_v46, %v7578_v56  ;;  %v5111_v11 = vmul.f32 -1.442695, %v7657_v19 }
 0x21d   : > { %v5642_v50 = vpop.eup %5641  ;;  %v4317_v14 = vadd.f32 %v4316_v45, %v4005_v48  ;;  %v4014_v22 = vmul.f32 %v5640_v10, %v7483_v4  ;;  %5661 = vpow2.f32 %v4983_v12  ;;  %v7670_v34 = vpop.f32.mrb[62].mxu0 }
 0x21e   : > { %10180 = vst [vmem:[#allocation19_spill] sm:$0xff] %v7670_v34  ;;  %v5644_v8 = vpop.eup %5643  ;;  %v3104_v6 = vadd.f32 1.0, %v5642_v50  ;;  %5663 = vpow2.f32 %v5110_v15  ;;  %v7676_v5 = vpop.f32.mrb[22].mxu1  ;;  %4962 = vmatmul.mubr.msk.bf16.gmra.mrb[168].mxu0 %vm397_vm0, %v7254_v9 }
 0x21f   : > { %10181 = vst [vmem:[#allocation20_spill] sm:$0xff] %v7676_v5  ;;  %v7678_v48 = vpop.f32.mrb[63].mxu0  ;;  %v5646_v4 = vpop.eup %5645  ;;  %v4281_v45 = vadd.f32 %v4280_v60, %v4014_v22  ;;  %v3065_v12 = vadd.f32 1.0, %v5644_v8  ;;  %5665 = vpow2.f32 %v4992_v38  ;;  %v4993_v60 = vmul.f32 -1.442695, %v7666_v41  ;;  %4968 = vmatmul.mubr.msk.bf16.gmra.mrb[128].mxu1 %vm397_vm0, %v7138_v3  ;;  %1830 = vmatprep.mubr.bf16.mxu0 %v10173_v35 }
 0x220   : > { %10182 = vst [vmem:[#allocation21_spill] sm:$0xff] %v7678_v48  ;;  %v7684_v10 = vpop.f32.mrb[23].mxu1  ;;  %v5648_v50 = vpop.eup %5647  ;;  %5667 = vrcp.f32 %v3104_v6  ;;  %v3105_v15 = vadd.f32 1.0, %v5646_v4  ;;  %v5120_v38 = vmul.f32 -1.442695, %v7674_v28  ;;  %v7696_v22 = vadd.f32 %v7565_v37, %v7399_v58  ;;  %1923 = vmatprep.mubr.bf16.mxu1 %v10173_v35 }
 0x221   : > { %10183 = vst [vmem:[#allocation22_spill] sm:$0xff] %v7684_v10  ;;  %v5650_v34 = vpop.eup %5649  ;;  %5669 = vrcp.f32 %v3065_v12  ;;  %v3114_v48 = vadd.f32 1.0, %v5648_v50  ;;  %v5002_v4 = vmul.f32 -1.442695, %v7682_v29  ;;  %v7703_v3 = vpop.f32.mrb[64].mxu0  ;;  %v4034_v50 = vmul.f32 %v7585_v40, %v7451_v7 }
 0x222   : > { %v5652_v46 = vpop.eup %5651  ;;  %5671 = vrcp.f32 %v3105_v15  ;;  %10184 = vst [vmem:[#allocation23_spill] sm:$0xff] %v7703_v3  ;;  %v7707_v15 = vpop.f32.mrb[24].mxu1  ;;  %v5121_v40 = vmul.f32 -1.442695, %v7696_v22 }
 0x223   : > { %v7699_v8 = vpop.eup %5653  ;;  %v4015_v6 = vmul.f32 %v5652_v46, %v7509_v51  ;;  %5673 = vrcp.f32 %v3114_v48  ;;  %v7709_v37 = vpop.f32.mrb[65].mxu0  ;;  %v7714_v51 = vadd.f32 %v7559_v61, %v7590_v26  ;;  %v4035_v61 = vmul.f32 %v7597_v2, %v7458_v21 }
 0x224   : > { %v5656_v12 = vpop.eup %5655  ;;  %5675 = vpow2.f32 %v5111_v11  ;;  %v7716_v48 = vpop.f32.mrb[25].mxu1  ;;  %v7723_v11 = vadd.f32 %v7572_v53, %v7392_v49  ;;  %v7735_v53 = vadd.f32 %v7567_v43, %v7578_v56  ;;  %v4044_v21 = vmul.f32 %v7640_v24, %v7472_v27 }
 0x225   : > { %v5658_v9 = vpop.eup %5657  ;;  %v4318_v10 = vadd.f32 %v4317_v14, %v4015_v6  ;;  %v4024_v5 = vmul.f32 %v5656_v12, %v7519_v33  ;;  %5677 = vpow2.f32 %v4993_v60  ;;  %v7718_v46 = vpop.f32.mrb[66].mxu0  ;;  %v4054_v27 = vmul.f32 %v5650_v34, %v7503_v52 }
 0x226   : > { %10185 = vst [vmem:[#allocation24_spill] sm:$0xff] %v7718_v46  ;;  %v5660_v3 = vpop.eup %5659  ;;  %v2996_v7 = vadd.f32 1.0, %v5658_v9  ;;  %5679 = vpow2.f32 %v5120_v38  ;;  %v7725_v14 = vpop.f32.mrb[26].mxu1  ;;  %4963 = vmatmul.mubr.msk.bf16.gmra.mrb[172].mxu0 %vm397_vm0, %v7250_v25 }
 0x227   : > { %10186 = vst [vmem:[#allocation25_spill] sm:$0xff] %v7725_v14  ;;  %v7727_v33 = vpop.f32.mrb[67].mxu0  ;;  %v5662_v60 = vpop.eup %5661  ;;  %v4282_v6 = vadd.f32 %v4281_v45, %v4024_v5  ;;  %v3115_v12 = vadd.f32 1.0, %v5660_v3  ;;  %5681 = vpow2.f32 %v5002_v4  ;;  %v7739_v14 = vadd.f32 %v7580_v57, %v7399_v58  ;;  %4969 = vmatmul.mubr.msk.bf16.gmra.mrb[132].mxu1 %vm397_vm0, %v7130_v62 }
 0x228   : > { %v7731_v46 = vpop.f32.mrb[27].mxu1  ;;  %v5664_v9 = vpop.eup %5663  ;;  %5683 = vrcp.f32 %v2996_v7  ;;  %v2997_v38 = vadd.f32 1.0, %v5662_v60  ;;  %v5003_v3 = vmul.f32 -1.442695, %v7714_v51  ;;  %v7750_v57 = vadd.f32 %v7574_v20, %v7590_v26  ;;  %1933 = vmatprep.mubr.bf16.mxu1 %v10173_v35 }
 0x229   : > { %v5666_v2 = vpop.eup %5665  ;;  %v4283_v5 = vadd.f32 %v4282_v6, %v4034_v50  ;;  %5685 = vrcp.f32 %v3115_v12  ;;  %v3124_v45 = vadd.f32 1.0, %v5664_v9  ;;  %v5130_v50 = vmul.f32 -1.442695, %v7723_v11  ;;  %v7755_v60 = vpop.f32.mrb[68].mxu0 }
 0x22a   : > { %v5668_v4 = vpop.eup %5667  ;;  %5687 = vrcp.f32 %v2997_v38  ;;  %v3006_v43 = vadd.f32 1.0, %v5666_v2  ;;  %v5012_v12 = vmul.f32 -1.442695, %v7735_v53  ;;  %v7761_v20 = vadd.f32 %v7610_v1, %v7392_v49  ;;  %v7763_v9 = vpop.f32.mrb[28].mxu1 }
 0x22b   : > { %v5670_v7 = vpop.eup %5669  ;;  %v4284_v24 = vadd.f32 %v4283_v5, %v4044_v21  ;;  %5689 = vrcp.f32 %v3124_v45  ;;  %v7765_v38 = vpop.f32.mrb[69].mxu0  ;;  %v4064_v34 = vmul.f32 %v5668_v4, %v7549_v13  ;;  %v5131_v21 = vmul.f32 -1.442695, %v7739_v14 }
 0x22c   : > { %v5672_v62 = vpop.eup %5671  ;;  %v4025_v6 = vmul.f32 %v5670_v7, %v7555_v23  ;;  %5691 = vrcp.f32 %v3006_v43  ;;  %10187 = vst [vmem:[#allocation26_spill] sm:$0xff] %v7765_v38  ;;  %v7769_v5 = vpop.f32.mrb[29].mxu1  ;;  %v5013_v1 = vmul.f32 -1.442695, %v7750_v57  ;;  %v7776_v7 = vadd.f32 %v7604_v17, %v7578_v56 }
 0x22d   : > { %v5674_v52 = vpop.eup %5673  ;;  %v4285_v2 = vadd.f32 %v4284_v24, %v4054_v27  ;;  %5693 = vpow2.f32 %v5121_v40  ;;  %10188 = vst [vmem:[#allocation27_spill] sm:$0xff] %v7769_v5  ;;  %v7771_v23 = vpop.f32.mrb[70].mxu0 }
 0x22e   : > { %10189 = vst [vmem:[#allocation28_spill] sm:$0xff] %v7771_v23  ;;  %v5676_v45 = vpop.eup %5675  ;;  %v4319_v43 = vadd.f32 %v4318_v10, %v4025_v6  ;;  %5695 = vpow2.f32 %v5003_v3  ;;  %v7778_v25 = vpop.f32.mrb[30].mxu1  ;;  %v4074_v27 = vmul.f32 %v5674_v52, %v7570_v36  ;;  %v4045_v3 = vmul.f32 %v7649_v47, %v7479_v55 }
 0x22f   : > { %10190 = vst [vmem:[#allocation29_spill] sm:$0xff] %v7778_v25  ;;  %v7780_v13 = vpop.f32.mrb[71].mxu0  ;;  %v5678_v40 = vpop.eup %5677  ;;  %v4286_v4 = vadd.f32 %v4285_v2, %v4064_v34  ;;  %v3125_v24 = vadd.f32 1.0, %v5676_v45  ;;  %5697 = vpow2.f32 %v5130_v50  ;;  %v7789_v34 = vadd.f32 %v7618_v30, %v7399_v58  ;;  %4970 = vmatmul.mubr.msk.bf16.gmra.mrb[136].mxu1 %vm397_vm0, %v7177_v32 }
 0x230   : > { %v7783_v23 = vpop.f32.mrb[31].mxu1  ;;  %v5680_v10 = vpop.eup %5679  ;;  %v4320_v6 = vadd.f32 %v4319_v43, %v4035_v61  ;;  %v3007_v38 = vadd.f32 1.0, %v5678_v40  ;;  %5699 = vpow2.f32 %v5012_v12  ;;  %v4055_v50 = vmul.f32 %v7699_v8, %v7514_v59  ;;  %1943 = vmatprep.mubr.bf16.mxu1 %v10173_v35 }
 0x231   : > { %v5682_v17 = vpop.eup %5681  ;;  %v4287_v5 = vadd.f32 %v4286_v4, %v4074_v27  ;;  %5701 = vrcp.f32 %v3125_v24  ;;  %v3134_v25 = vadd.f32 1.0, %v5680_v10  ;;  %v5140_v61 = vmul.f32 -1.442695, %v7761_v20  ;;  %v7797_v12 = vpop.f32.mrb[72].mxu0 }
 0x232   : > { %v5684_v36 = vpop.eup %5683  ;;  %v4321_v52 = vadd.f32 %v4320_v6, %v4045_v3  ;;  %5703 = vrcp.f32 %v3007_v38  ;;  %v3016_v55 = vadd.f32 1.0, %v5682_v17  ;;  %v4065_v2 = vmul.f32 %v5672_v62, %v7563_v54  ;;  %v7801_v43 = vpop.f32.mrb[32].mxu1  ;;  %v10191_v6 = vld [vmem:[#allocation13_spill] sm:$0xff] }
 0x233   : > { %v5686_v47 = vpop.eup %5685  ;;  %5705 = vrcp.f32 %v3134_v25  ;;  %v5022_v32 = vmul.f32 -1.442695, %v7776_v7  ;;  %v7803_v59 = vpop.f32.mrb[73].mxu0  ;;  %v5141_v38 = vmul.f32 -1.442695, %v7789_v34  ;;  %v7808_v25 = vadd.f32 %v7612_v16, %v7590_v26 }
 0x234   : > { %v5688_v30 = vpop.eup %5687  ;;  %v4322_v45 = vadd.f32 %v4321_v52, %v4055_v50  ;;  %5707 = vrcp.f32 %v3016_v55  ;;  %v7812_v40 = vadd.f32 %v7626_v18, %v7392_v49  ;;  %v7814_v54 = vpop.f32.mrb[33].mxu1  ;;  %v4075_v24 = vmul.f32 %v5686_v47, %v7608_v31  ;;  %v10192_v50 = vld [vmem:[#allocation15_spill] sm:$0xff] }
 0x235   : > { %v5690_v8 = vpop.eup %5689  ;;  %5709 = vpow2.f32 %v5131_v21  ;;  %v7816_v62 = vpop.f32.mrb[74].mxu0  ;;  %v3956_v17 = vmul.f32 %v5684_v36, %v10191_v6  ;;  %v7828_v52 = vadd.f32 %v10192_v50, %v7578_v56  ;;  %v10193_v36 = vld [vmem:[#allocation17_spill] sm:$0xff]  ;;  %v5023_v50 = vmul.f32 -1.442695, %v7808_v25 }
 0x236   : > { %v5692_v4 = vpop.eup %5691  ;;  %v4323_v27 = vadd.f32 %v4322_v45, %v4065_v2  ;;  %v4084_v21 = vmul.f32 %v5690_v8, %v7624_v63  ;;  %5711 = vpow2.f32 %v5013_v1  ;;  %v7820_v10 = vpop.f32.mrb[34].mxu1  ;;  %v7834_v6 = vadd.f32 %v10193_v36, %v7399_v58 }
 0x237   : > { %v7822_v3 = vpop.f32.mrb[75].mxu0  ;;  %v5694_v16 = vpop.eup %5693  ;;  %v3966_v18 = vmul.f32 %v5692_v4, %v7633_v44  ;;  %5713 = vpow2.f32 %v5140_v61  ;;  %v10194_v44 = vld [vmem:[#allocation3_spill] sm:$0xff] }
 0x238   : > { %v7830_v55 = vpop.f32.mrb[35].mxu1  ;;  %v5696_v31 = vpop.eup %5695  ;;  %v4324_v47 = vadd.f32 %v4323_v27, %v4075_v24  ;;  %v4288_v63 = vadd.f32 %v4287_v5, %v4084_v21  ;;  %v3135_v1 = vadd.f32 1.0, %v5694_v16  ;;  %5715 = vpow2.f32 %v5022_v32  ;;  %4971 = vmatmul.mubr.msk.bf16.gmra.mrb[140].mxu1 %vm397_vm0, %v10194_v44 }
 0x239   : > { %v5698_v2 = vpop.eup %5697  ;;  %v4350_v45 = vadd.f32 %v3966_v18, %v3956_v17  ;;  %v3017_v8 = vadd.f32 1.0, %v5696_v31  ;;  %5717 = vpow2.f32 %v5141_v38  ;;  %1953 = vmatprep.mubr.bf16.mxu1 %v10173_v35  ;;  %v5150_v27 = vmul.f32 -1.442695, %v7812_v40  ;;  %v7841_v38 = vpop.f32.mrb[76].mxu0 }
 0x23a   : > { %v5700_v61 = vpop.eup %5699  ;;  %5719 = vrcp.f32 %v3135_v1  ;;  %v3144_v4 = vadd.f32 1.0, %v5698_v2  ;;  %10195 = vst [vmem:[#allocation13_spill] sm:$0xff] %v7841_v38  ;;  %v5032_v16 = vmul.f32 -1.442695, %v7828_v52  ;;  %v7845_v17 = vpop.f32.mrb[36].mxu1  ;;  %v10198_v1 = vld [vmem:[#allocation14_spill] sm:$0xff] }
 0x23b   : > { %v5702_v5 = vpop.eup %5701  ;;  %5721 = vrcp.f32 %v3017_v8  ;;  %v3026_v32 = vadd.f32 1.0, %v5700_v61  ;;  %10196 = vst [vmem:[#allocation15_spill] sm:$0xff] %v7845_v17  ;;  %v7847_v18 = vpop.f32.mrb[77].mxu0  ;;  %v3957_v2 = vmul.f32 %v5688_v30, %v10198_v1  ;;  %v5151_v36 = vmul.f32 -1.442695, %v7834_v6 }
 0x23c   : > { %v5704_v24 = vpop.eup %5703  ;;  %v4085_v21 = vmul.f32 %v5702_v5, %v7657_v19  ;;  %5723 = vrcp.f32 %v3144_v4  ;;  %10197 = vst [vmem:[#allocation17_spill] sm:$0xff] %v7847_v18  ;;  %v7852_v44 = vpop.f32.mrb[37].mxu1 }
 0x23d   : > { %v5706_v31 = vpop.eup %5705  ;;  %v3967_v8 = vmul.f32 %v5704_v24, %v7666_v41  ;;  %5725 = vrcp.f32 %v3026_v32  ;;  %v7854_v61 = vpop.f32.mrb[78].mxu0  ;;  %v10201_v32 = vld [vmem:[#allocation16_spill] sm:$0xff] }
 0x23e   : > { %10199 = vst [vmem:[#allocation3_spill] sm:$0xff] %v7854_v61  ;;  %v5708_v19 = vpop.eup %5707  ;;  %v4325_v4 = vadd.f32 %v4324_v47, %v4085_v21  ;;  %v4094_v5 = vmul.f32 %v5706_v31, %v7674_v28  ;;  %5727 = vpow2.f32 %v5023_v50  ;;  %v7857_v38 = vpop.f32.mrb[38].mxu1  ;;  %v7864_v24 = vadd.f32 %v10201_v32, %v7590_v26 }
 0x23f   : > { %v7859_v18 = vpop.f32.mrb[79].mxu0  ;;  %v5710_v17 = vpop.eup %5709  ;;  %v4387_v30 = vadd.f32 %v3967_v8, %v3957_v2  ;;  %v3976_v41 = vmul.f32 %v5708_v19, %v7682_v29  ;;  %5729 = vpow2.f32 %v5150_v27  ;;  %v7870_v28 = vadd.f32 %v7659_v42, %v7392_v49  ;;  %v10202_v27 = vld [vmem:[#allocation5_spill] sm:$0xff] }
 0x240   : > { %10200 = vst [vmem:[#allocation14_spill] sm:$0xff] %v7859_v18  ;;  %v7866_v1 = vpop.f32.mrb[39].mxu1  ;;  %v5712_v61 = vpop.eup %5711  ;;  %v4289_v47 = vadd.f32 %v4288_v63, %v4094_v5  ;;  %v3145_v21 = vadd.f32 1.0, %v5710_v17  ;;  %5731 = vpow2.f32 %v5032_v16  ;;  %v7874_v29 = vadd.f32 %v7653_v0, %v7578_v56  ;;  %4972 = vmatmul.mubr.msk.bf16.gmra.mrb[144].mxu1 %vm397_vm0, %v10202_v27 }
 0x241   : > { %v5714_v50 = vpop.eup %5713  ;;  %v4351_v31 = vadd.f32 %v4350_v45, %v3976_v41  ;;  %v3027_v2 = vadd.f32 1.0, %v5712_v61  ;;  %5733 = vpow2.f32 %v5151_v36  ;;  %v7880_v16 = vadd.f32 %v7668_v39, %v7399_v58  ;;  %1963 = vmatprep.mubr.bf16.mxu1 %v10173_v35  ;;  %v7884_v36 = vpop.f32.mrb[80].mxu0 }
 0x242   : > { %v5716_v8 = vpop.eup %5715  ;;  %5735 = vrcp.f32 %v3145_v21  ;;  %v3154_v63 = vadd.f32 1.0, %v5714_v50  ;;  %v5033_v17 = vmul.f32 -1.442695, %v7864_v24  ;;  %10203 = vst [vmem:[#allocation16_spill] sm:$0xff] %v7884_v36  ;;  %v5160_v19 = vmul.f32 -1.442695, %v7870_v28 }
 0x243   : > { %v5718_v42 = vpop.eup %5717  ;;  %5737 = vrcp.f32 %v3027_v2  ;;  %v3036_v45 = vadd.f32 1.0, %v5716_v8  ;;  %v7887_v5 = vpop.f32.mrb[40].mxu1  ;;  %v5042_v21 = vmul.f32 -1.442695, %v7874_v29 }
 0x244   : > { %v5720_v0 = vpop.eup %5719  ;;  %5739 = vrcp.f32 %v3154_v63  ;;  %v3155_v61 = vadd.f32 1.0, %v5718_v42  ;;  %10204 = vst [vmem:[#allocation5_spill] sm:$0xff] %v7887_v5  ;;  %v7889_v41 = vpop.f32.mrb[81].mxu0  ;;  %v5161_v63 = vmul.f32 -1.442695, %v7880_v16 }
 0x245   : > { %10205 = vst [vmem:[#allocation30_spill] sm:$0xff] %v7889_v41  ;;  %v5722_v39 = vpop.eup %5721  ;;  %v4095_v32 = vmul.f32 %v5720_v0, %v7696_v22  ;;  %5741 = vrcp.f32 %v3036_v45  ;;  %v7893_v50 = vpop.f32.mrb[41].mxu1  ;;  %v10210_v45 = vld [vmem:[#allocation18_spill] sm:$0xff] }
 0x246   : > { %10206 = vst [vmem:[#allocation31_spill] sm:$0xff] %v7893_v50  ;;  %v7895_v2 = vpop.f32.mrb[82].mxu0  ;;  %v5724_v27 = vpop.eup %5723  ;;  %v3977_v8 = vmul.f32 %v5722_v39, %v7714_v51  ;;  %5743 = vrcp.f32 %v3155_v61  ;;  %v7906_v0 = vadd.f32 %v10210_v45, %v7590_v26  ;;  %v10212_v39 = vld [vmem:[#allocation20_spill] sm:$0xff] }
 0x247   : > { %10207 = vst [vmem:[#allocation32_spill] sm:$0xff] %v7895_v2  ;;  %v7899_v42 = vpop.f32.mrb[42].mxu1  ;;  %v7901_v36 = vpop.f32.mrb[83].mxu0  ;;  %v4326_v5 = vadd.f32 %v4325_v4, %v4095_v32  ;;  %v4104_v22 = vmul.f32 %v5724_v27, %v7723_v11  ;;  %5745 = vpow2.f32 %v5033_v17  ;;  %v10213_v11 = vld [vmem:[#allocation19_spill] sm:$0xff]  ;;  %v10214_v27 = vld [vmem:[#allocation4_spill] sm:$0xff] }
 0x248   : > { %10208 = vst [vmem:[#allocation33_spill] sm:$0xff] %v7899_v42  ;;  %10209 = vst [vmem:[#allocation34_spill] sm:$0xff] %v7901_v36  ;;  %v5726_v41 = vpop.eup %5725  ;;  %v7908_v2 = vpop.f32.mrb[43].mxu1  ;;  %v4388_v51 = vadd.f32 %v4387_v30, %v3977_v8  ;;  %5747 = vpow2.f32 %v5160_v19  ;;  %v7913_v42 = vadd.f32 %v10212_v39, %v7392_v49  ;;  %v7917_v17 = vadd.f32 %v10213_v11, %v7578_v56 }
 0x249   : > { %10211 = vst [vmem:[#allocation18_spill] sm:$0xff] %v7908_v2  ;;  %v5728_v50 = vpop.eup %5727  ;;  %v3986_v61 = vmul.f32 %v5726_v41, %v7735_v53  ;;  %v4290_v4 = vadd.f32 %v4289_v47, %v4104_v22  ;;  %5749 = vpow2.f32 %v5042_v21  ;;  %4973 = vmatmul.mubr.msk.bf16.gmra.mrb[148].mxu1 %vm397_vm0, %v10214_v27  ;;  %v10215_v53 = vld [vmem:[#allocation22_spill] sm:$0xff]  ;;  %v5043_v21 = vmul.f32 -1.442695, %v7906_v0  ;;  %v7931_v39 = vpop.f32.mrb[84].mxu0 }
 0x24a   : > { %v5730_v36 = vpop.eup %5729  ;;  %v3037_v32 = vadd.f32 1.0, %v5728_v50  ;;  %5751 = vpow2.f32 %v5161_v63  ;;  %v7923_v19 = vadd.f32 %v10215_v53, %v7399_v58  ;;  %1973 = vmatprep.mubr.bf16.mxu1 %v10173_v35  ;;  %v10216_v50 = vld [vmem:[#allocation21_spill] sm:$0xff]  ;;  %10217 = vst [vmem:[#allocation20_spill] sm:$0xff] %v7931_v39  ;;  %v5170_v63 = vmul.f32 -1.442695, %v7913_v42  ;;  %v7936_v11 = vpop.f32.mrb[85].mxu0 }
 0x24b   : > { %v5732_v45 = vpop.eup %5731  ;;  %v4352_v30 = vadd.f32 %v4351_v31, %v3986_v61  ;;  %v3164_v8 = vadd.f32 1.0, %v5730_v36  ;;  %v7929_v22 = vadd.f32 %v10216_v50, %v7590_v26  ;;  %v7934_v61 = vpop.f32.mrb[44].mxu1  ;;  %10219 = vst [vmem:[#allocation4_spill] sm:$0xff] %v7936_v11 }
 0x24c   : > { %v5734_v47 = vpop.eup %5733  ;;  %5753 = vrcp.f32 %v3037_v32  ;;  %v3046_v41 = vadd.f32 1.0, %v5732_v45  ;;  %10218 = vst [vmem:[#allocation19_spill] sm:$0xff] %v7934_v61  ;;  %v5052_v45 = vmul.f32 -1.442695, %v7917_v17  ;;  %v7940_v53 = vpop.f32.mrb[45].mxu1 }
 0x24d   : > { %v5736_v31 = vpop.eup %5735  ;;  %5755 = vrcp.f32 %v3164_v8  ;;  %v3165_v36 = vadd.f32 1.0, %v5734_v47  ;;  %10220 = vst [vmem:[#allocation22_spill] sm:$0xff] %v7940_v53  ;;  %v7942_v50 = vpop.f32.mrb[86].mxu0  ;;  %v5171_v47 = vmul.f32 -1.442695, %v7923_v19 }
 0x24e   : > { %v5738_v27 = vpop.eup %5737  ;;  %v4105_v32 = vmul.f32 %v5736_v31, %v7739_v14  ;;  %5757 = vrcp.f32 %v3046_v41  ;;  %10221 = vst [vmem:[#allocation21_spill] sm:$0xff] %v7942_v50  ;;  %v7946_v2 = vpop.f32.mrb[46].mxu1  ;;  %v5053_v41 = vmul.f32 -1.442695, %v7929_v22 }
 0x24f   : > { %v5740_v39 = vpop.eup %5739  ;;  %v3987_v8 = vmul.f32 %v5738_v27, %v7750_v57  ;;  %5759 = vrcp.f32 %v3165_v36  ;;  %v7948_v61 = vpop.f32.mrb[87].mxu0  ;;  %v7957_v36 = vadd.f32 %v7707_v15, %v7392_v49  ;;  %v7968_v15 = vadd.f32 %v7716_v48, %v7399_v58 }
 0x250   : > { %10222 = vst [vmem:[#allocation35_spill] sm:$0xff] %v7948_v61  ;;  %v5742_v11 = vpop.eup %5741  ;;  %v4327_v18 = vadd.f32 %v4326_v5, %v4105_v32  ;;  %v4114_v14 = vmul.f32 %v5740_v39, %v7761_v20  ;;  %5761 = vpow2.f32 %v5043_v21  ;;  %v7952_v31 = vpop.f32.mrb[47].mxu1  ;;  %v10223_v20 = vld [vmem:[#allocation23_spill] sm:$0xff] }
 0x251   : > { %v5744_v50 = vpop.eup %5743  ;;  %v4389_v53 = vadd.f32 %v4388_v51, %v3987_v8  ;;  %v3996_v57 = vmul.f32 %v5742_v11, %v7776_v7  ;;  %5763 = vpow2.f32 %v5170_v63  ;;  %v7962_v21 = vadd.f32 %v10223_v20, %v7578_v56  ;;  %v10224_v39 = vld [vmem:[#allocation7_spill] sm:$0xff] }
 0x252   : > { %v5746_v27 = vpop.eup %5745  ;;  %v4291_v61 = vadd.f32 %v4290_v4, %v4114_v14  ;;  %v4115_v5 = vmul.f32 %v5744_v50, %v7789_v34  ;;  %5765 = vpow2.f32 %v5052_v45  ;;  %4974 = vmatmul.mubr.msk.bf16.gmra.mrb[152].mxu1 %vm397_vm0, %v10224_v39  ;;  %v7973_v11 = vadd.f32 %v7709_v37, %v7590_v26  ;;  %v7975_v45 = vpop.f32.mrb[88].mxu0 }
 0x253   : > { %v5748_v51 = vpop.eup %5747  ;;  %v4353_v32 = vadd.f32 %v4352_v30, %v3996_v57  ;;  %v3047_v7 = vadd.f32 1.0, %v5746_v27  ;;  %5767 = vpow2.f32 %v5171_v47  ;;  %1983 = vmatprep.mubr.bf16.mxu1 %v10173_v35  ;;  %v5180_v8 = vmul.f32 -1.442695, %v7957_v36  ;;  %v7978_v47 = vpop.f32.mrb[48].mxu1 }
 0x254   : > { %v5750_v4 = vpop.eup %5749  ;;  %v4328_v34 = vadd.f32 %v4327_v18, %v4115_v5  ;;  %v3174_v63 = vadd.f32 1.0, %v5748_v51  ;;  %5769 = vpow2.f32 %v5053_v41  ;;  %v7980_v48 = vpop.f32.mrb[89].mxu0  ;;  %v5062_v41 = vmul.f32 -1.442695, %v7962_v21 }
 0x255   : > { %v5752_v50 = vpop.eup %5751  ;;  %5771 = vrcp.f32 %v3047_v7  ;;  %v3056_v30 = vadd.f32 1.0, %v5750_v4  ;;  %10225 = vst [vmem:[#allocation23_spill] sm:$0xff] %v7980_v48  ;;  %v7983_v57 = vpop.f32.mrb[49].mxu1  ;;  %v5181_v20 = vmul.f32 -1.442695, %v7968_v15 }
 0x256   : > { %v5754_v14 = vpop.eup %5753  ;;  %5773 = vrcp.f32 %v3174_v63  ;;  %v3175_v18 = vadd.f32 1.0, %v5752_v50  ;;  %10226 = vst [vmem:[#allocation7_spill] sm:$0xff] %v7983_v57  ;;  %v7985_v37 = vpop.f32.mrb[90].mxu0  ;;  %v5063_v63 = vmul.f32 -1.442695, %v7973_v11 }
 0x257   : > { %10227 = vst [vmem:[#allocation36_spill] sm:$0xff] %v7985_v37  ;;  %v5756_v27 = vpop.eup %5755  ;;  %v3997_v5 = vmul.f32 %v5754_v14, %v7808_v25  ;;  %5775 = vrcp.f32 %v3056_v30  ;;  %v7989_v39 = vpop.f32.mrb[50].mxu1 }
 0x258   : > { %10228 = vst [vmem:[#allocation37_spill] sm:$0xff] %v7989_v39  ;;  %v7991_v51 = vpop.f32.mrb[91].mxu0  ;;  %v5758_v7 = vpop.eup %5757  ;;  %v4124_v4 = vmul.f32 %v5756_v27, %v7812_v40  ;;  %5777 = vrcp.f32 %v3175_v18  ;;  %v10232_v40 = vld [vmem:[#allocation6_spill] sm:$0xff] }
 0x259   : > { %10229 = vst [vmem:[#allocation38_spill] sm:$0xff] %v7991_v51  ;;  %v7995_v50 = vpop.f32.mrb[51].mxu1  ;;  %v5760_v57 = vpop.eup %5759  ;;  %v4390_v37 = vadd.f32 %v4389_v53, %v3997_v5  ;;  %v4006_v48 = vmul.f32 %v5758_v7, %v7828_v52  ;;  %5779 = vpow2.f32 %v5180_v8  ;;  %v10231_v51 = vld [vmem:[#allocation25_spill] sm:$0xff]  ;;  %v10233_v53 = vld [vmem:[#allocation24_spill] sm:$0xff] }
 0x25a   : > { %10230 = vst [vmem:[#allocation39_spill] sm:$0xff] %v7995_v50  ;;  %v5762_v25 = vpop.eup %5761  ;;  %v4292_v30 = vadd.f32 %v4291_v61, %v4124_v4  ;;  %v4125_v14 = vmul.f32 %v5760_v57, %v7834_v6  ;;  %5781 = vpow2.f32 %v5062_v41  ;;  %v8001_v39 = vadd.f32 %v10231_v51, %v7392_v49  ;;  %4975 = vmatmul.mubr.msk.bf16.gmra.mrb[156].mxu1 %vm397_vm0, %v10232_v40  ;;  %v8014_v57 = vpop.f32.mrb[92].mxu0 }
 0x25b   : > { %v5764_v18 = vpop.eup %5763  ;;  %v4354_v27 = vadd.f32 %v4353_v32, %v4006_v48  ;;  %v3057_v50 = vadd.f32 1.0, %v5762_v25  ;;  %5783 = vpow2.f32 %v5181_v20  ;;  %v8007_v52 = vadd.f32 %v10233_v53, %v7578_v56  ;;  %1993 = vmatprep.mubr.bf16.mxu1 %v10173_v35  ;;  %v8020_v20 = vpop.f32.mrb[52].mxu1 }
 0x25c   : > { %v5766_v61 = vpop.eup %5765  ;;  %v4329_v6 = vadd.f32 %v4328_v34, %v4125_v14  ;;  %v3184_v8 = vadd.f32 1.0, %v5764_v18  ;;  %5785 = vpow2.f32 %v5063_v63  ;;  %v8012_v41 = vadd.f32 %v7731_v46, %v7399_v58  ;;  %v8022_v51 = vpop.f32.mrb[93].mxu0 }
 0x25d   : > { %v5768_v5 = vpop.eup %5767  ;;  %5787 = vrcp.f32 %v3057_v50  ;;  %v3066_v32 = vadd.f32 1.0, %v5766_v61  ;;  %v8018_v48 = vadd.f32 %v7727_v33, %v7590_v26  ;;  %v5190_v4 = vmul.f32 -1.442695, %v8001_v39  ;;  %v8025_v46 = vpop.f32.mrb[53].mxu1 }
 0x25e   : > { %v5770_v34 = vpop.eup %5769  ;;  %5789 = vrcp.f32 %v3184_v8  ;;  %v3185_v7 = vadd.f32 1.0, %v5768_v5  ;;  %10234 = vst [vmem:[#allocation25_spill] sm:$0xff] %v8025_v46  ;;  %v8027_v63 = vpop.f32.mrb[94].mxu0  ;;  %v5072_v14 = vmul.f32 -1.442695, %v8007_v52 }
 0x25f   : > { %10235 = vst [vmem:[#allocation6_spill] sm:$0xff] %v8027_v63  ;;  %v5772_v25 = vpop.eup %5771  ;;  %5791 = vrcp.f32 %v3066_v32  ;;  %v3067_v50 = vadd.f32 1.0, %v5770_v34  ;;  %v8030_v33 = vpop.f32.mrb[54].mxu1  ;;  %v5191_v61 = vmul.f32 -1.442695, %v8012_v41 }
 0x260   : > { %10236 = vst [vmem:[#allocation24_spill] sm:$0xff] %v8030_v33  ;;  %v8032_v40 = vpop.f32.mrb[95].mxu0  ;;  %v5774_v18 = vpop.eup %5773  ;;  %v4007_v53 = vmul.f32 %v5772_v25, %v7864_v24  ;;  %5793 = vrcp.f32 %v3185_v7  ;;  %v5073_v32 = vmul.f32 -1.442695, %v8018_v48  ;;  %v10239_v24 = vld [vmem:[#allocation9_spill] sm:$0xff] }
 0x261   : > { %10237 = vst [vmem:[#allocation40_spill] sm:$0xff] %v8032_v40  ;;  %v8036_v8 = vpop.f32.mrb[55].mxu1  ;;  %v5776_v5 = vpop.eup %5775  ;;  %v4134_v63 = vmul.f32 %v5774_v18, %v7870_v28  ;;  %5795 = vrcp.f32 %v3067_v50  ;;  %v8043_v40 = vadd.f32 %v7763_v9, %v7392_v49  ;;  %v8050_v28 = vadd.f32 %v7755_v60, %v7578_v56  ;;  %v10240_v9 = vld [vmem:[#allocation27_spill] sm:$0xff] }
 0x262   : > { %10238 = vst [vmem:[#allocation41_spill] sm:$0xff] %v8036_v8  ;;  %v5778_v34 = vpop.eup %5777  ;;  %v4391_v46 = vadd.f32 %v4390_v37, %v4007_v53  ;;  %v4016_v33 = vmul.f32 %v5776_v5, %v7874_v29  ;;  %5797 = vpow2.f32 %v5190_v4  ;;  %4976 = vmatmul.mubr.msk.bf16.gmra.mrb[160].mxu1 %vm397_vm0, %v10239_v24  ;;  %v8055_v50 = vadd.f32 %v10240_v9, %v7399_v58  ;;  %v8057_v18 = vpop.f32.mrb[96].mxu0 }
 0x263   : > { %v5780_v7 = vpop.eup %5779  ;;  %v4293_v25 = vadd.f32 %v4292_v30, %v4134_v63  ;;  %v4135_v8 = vmul.f32 %v5778_v34, %v7880_v16  ;;  %5799 = vpow2.f32 %v5072_v14  ;;  %2003 = vmatprep.mubr.bf16.mxu1 %v10173_v35  ;;  %10241 = vst [vmem:[#allocation9_spill] sm:$0xff] %v8057_v18  ;;  %v10242_v14 = vld [vmem:[#allocation26_spill] sm:$0xff]  ;;  %v8063_v53 = vpop.f32.mrb[56].mxu1  ;;  %v10245_v34 = vld [vmem:[#allocation29_spill] sm:$0xff]  ;;  %v10250_v18 = vld [vmem:[#allocation8_spill] sm:$0xff] }
 0x264   : > { %v5782_v29 = vpop.eup %5781  ;;  %v4355_v37 = vadd.f32 %v4354_v27, %v4016_v33  ;;  %v3194_v4 = vadd.f32 1.0, %v5780_v7  ;;  %5801 = vpow2.f32 %v5191_v61  ;;  %v8061_v60 = vadd.f32 %v10242_v14, %v7590_v26  ;;  %10243 = vst [vmem:[#allocation27_spill] sm:$0xff] %v8063_v53  ;;  %v8065_v5 = vpop.f32.mrb[97].mxu0 }
 0x265   : > { %v5784_v30 = vpop.eup %5783  ;;  %v4330_v63 = vadd.f32 %v4329_v6, %v4135_v8  ;;  %v3076_v16 = vadd.f32 1.0, %v5782_v29  ;;  %5803 = vpow2.f32 %v5073_v32  ;;  %10244 = vst [vmem:[#allocation26_spill] sm:$0xff] %v8065_v5  ;;  %v5200_v61 = vmul.f32 -1.442695, %v8043_v40  ;;  %v8072_v6 = vpop.f32.mrb[57].mxu1 }
 0x266   : > { %v5786_v27 = vpop.eup %5785  ;;  %5805 = vrcp.f32 %v3194_v4  ;;  %v3195_v33 = vadd.f32 1.0, %v5784_v30  ;;  %v8070_v24 = vadd.f32 %v10245_v34, %v7392_v49  ;;  %10246 = vst [vmem:[#allocation29_spill] sm:$0xff] %v8072_v6  ;;  %v8074_v8 = vpop.f32.mrb[98].mxu0  ;;  %v5082_v29 = vmul.f32 -1.442695, %v8050_v28 }
 0x267   : > { %10247 = vst [vmem:[#allocation42_spill] sm:$0xff] %v8074_v8  ;;  %v5788_v32 = vpop.eup %5787  ;;  %5807 = vrcp.f32 %v3076_v16  ;;  %v3077_v7 = vadd.f32 1.0, %v5786_v27  ;;  %v8077_v9 = vpop.f32.mrb[58].mxu1  ;;  %v5201_v34 = vmul.f32 -1.442695, %v8055_v50 }
 0x268   : > { %10248 = vst [vmem:[#allocation43_spill] sm:$0xff] %v8077_v9  ;;  %v8079_v14 = vpop.f32.mrb[99].mxu0  ;;  %v5790_v4 = vpop.eup %5789  ;;  %v4017_v30 = vmul.f32 %v5788_v32, %v7906_v0  ;;  %5809 = vrcp.f32 %v3195_v33  ;;  %v5083_v16 = vmul.f32 -1.442695, %v8061_v60 }
 0x269   : > { %10249 = vst [vmem:[#allocation44_spill] sm:$0xff] %v8079_v14  ;;  %v8083_v5 = vpop.f32.mrb[59].mxu1  ;;  %v5792_v6 = vpop.eup %5791  ;;  %v4144_v8 = vmul.f32 %v5790_v4, %v7913_v42  ;;  %5811 = vrcp.f32 %v3077_v7  ;;  %v5210_v14 = vmul.f32 -1.442695, %v8070_v24  ;;  %v10251_v42 = vld [vmem:[#allocation28_spill] sm:$0xff] }
 0x26a   : > { %v5794_v27 = vpop.eup %5793  ;;  %v4392_v53 = vadd.f32 %v4391_v46, %v4017_v30  ;;  %v4026_v9 = vmul.f32 %v5792_v6, %v7917_v17  ;;  %5813 = vpow2.f32 %v5200_v61  ;;  %4977 = vmatmul.mubr.msk.bf16.gmra.mrb[164].mxu1 %vm397_vm0, %v10250_v18  ;;  %v8094_v7 = vadd.f32 %v10251_v42, %v7578_v56  ;;  %v8102_v18 = vpop.f32.mrb[100].mxu0 }
 0x26b   : > { %v5796_v0 = vpop.eup %5795  ;;  %v4294_v33 = vadd.f32 %v4293_v25, %v4144_v8  ;;  %v4145_v32 = vmul.f32 %v5794_v27, %v7923_v19  ;;  %5815 = vpow2.f32 %v5082_v29  ;;  %2013 = vmatprep.mubr.bf16.mxu1 %v10173_v35  ;;  %v8100_v61 = vadd.f32 %v7783_v23, %v7399_v58  ;;  %v8108_v29 = vpop.f32.mrb[60].mxu1 }
 0x26c   : > { %v5798_v46 = vpop.eup %5797  ;;  %v4356_v4 = vadd.f32 %v4355_v37, %v4026_v9  ;;  %v4027_v17 = vmul.f32 %v5796_v0, %v7929_v22  ;;  %5817 = vpow2.f32 %v5201_v34  ;;  %v8106_v8 = vadd.f32 %v7780_v13, %v7590_v26  ;;  %v8110_v37 = vpop.f32.mrb[101].mxu0 }
 0x26d   : > { %v5800_v25 = vpop.eup %5799  ;;  %v4331_v19 = vadd.f32 %v4330_v63, %v4145_v32  ;;  %v3204_v6 = vadd.f32 1.0, %v5798_v46  ;;  %5819 = vpow2.f32 %v5083_v16  ;;  %v8114_v23 = vadd.f32 %v7801_v43, %v7392_v49  ;;  %v8116_v34 = vpop.f32.mrb[61].mxu1 }
 0x26e   : > { %v5802_v22 = vpop.eup %5801  ;;  %v4393_v9 = vadd.f32 %v4392_v53, %v4027_v17  ;;  %v3086_v30 = vadd.f32 1.0, %v5800_v25  ;;  %5821 = vpow2.f32 %v5210_v14  ;;  %v8118_v63 = vpop.f32.mrb[102].mxu0  ;;  %v5092_v27 = vmul.f32 -1.442695, %v8094_v7 }
 0x26f   : > { %10252 = vst [vmem:[#allocation8_spill] sm:$0xff] %v8118_v63  ;;  %v5804_v16 = vpop.eup %5803  ;;  %5823 = vrcp.f32 %v3204_v6  ;;  %v3205_v13 = vadd.f32 1.0, %v5802_v22  ;;  %v5211_v53 = vmul.f32 -1.442695, %v8100_v61  ;;  %v8122_v42 = vpop.f32.mrb[62].mxu1 }
 0x270   : > { %v5806_v0 = vpop.eup %5805  ;;  %5825 = vrcp.f32 %v3086_v30  ;;  %v3087_v32 = vadd.f32 1.0, %v5804_v16  ;;  %10253 = vst [vmem:[#allocation28_spill] sm:$0xff] %v8122_v42  ;;  %v5093_v46 = vmul.f32 -1.442695, %v8106_v8  ;;  %v5220_v6 = vmul.f32 -1.442695, %v8114_v23 }
 0x271   : > { %v5808_v14 = vpop.eup %5807  ;;  %v4154_v43 = vmul.f32 %v5806_v0, %v7957_v36  ;;  %5827 = vrcp.f32 %v3205_v13  ;;  %v8128_v22 = vpop.f32.mrb[103].mxu0  ;;  %v10256_v16 = vld [vmem:[#allocation11_spill] sm:$0xff] }
 0x272   : > { %v5810_v17 = vpop.eup %5809  ;;  %v4036_v25 = vmul.f32 %v5808_v14, %v7962_v21  ;;  %5829 = vrcp.f32 %v3087_v32  ;;  %10254 = vst [vmem:[#allocation45_spill] sm:$0xff] %v8128_v22  ;;  %v8130_v30 = vpop.f32.mrb[63].mxu1  ;;  %4978 = vmatmul.mubr.msk.bf16.gmra.mrb[168].mxu1 %vm397_vm0, %v10256_v16  ;;  %v8139_v32 = vadd.f32 %v7797_v12, %v7578_v56 }
 0x273   : > { %10255 = vst [vmem:[#allocation46_spill] sm:$0xff] %v8130_v30  ;;  %v5812_v42 = vpop.eup %5811  ;;  %v4295_v63 = vadd.f32 %v4294_v33, %v4154_v43  ;;  %v4155_v36 = vmul.f32 %v5810_v17, %v7968_v15  ;;  %5831 = vpow2.f32 %v5092_v27  ;;  %2023 = vmatprep.mubr.bf16.mxu1 %v10173_v35  ;;  %v8143_v33 = vadd.f32 %v7814_v54, %v7399_v58  ;;  %v8154_v43 = vpop.f32.mrb[104].mxu0 }
 0x274   : > { %v5814_v13 = vpop.eup %5813  ;;  %v4357_v0 = vadd.f32 %v4356_v4, %v4036_v25  ;;  %v4037_v21 = vmul.f32 %v5812_v42, %v7973_v11  ;;  %5833 = vpow2.f32 %v5211_v53  ;;  %v8147_v11 = vadd.f32 %v7803_v59, %v7590_v26  ;;  %v8159_v25 = vpop.f32.mrb[105].mxu0 }
 0x275   : > { %v5816_v14 = vpop.eup %5815  ;;  %v4332_v30 = vadd.f32 %v4331_v19, %v4155_v36  ;;  %v3214_v22 = vadd.f32 1.0, %v5814_v13  ;;  %5835 = vpow2.f32 %v5093_v46  ;;  %v8151_v19 = vadd.f32 %v7820_v10, %v7392_v49  ;;  %v10257_v36 = vld [vmem:[#allocation10_spill] sm:$0xff] }
 0x276   : > { %v5818_v15 = vpop.eup %5817  ;;  %v4394_v27 = vadd.f32 %v4393_v9, %v4037_v21  ;;  %v3096_v35 = vadd.f32 1.0, %v5816_v14  ;;  %5837 = vpow2.f32 %v5220_v6  ;;  %v5102_v54 = vmul.f32 -1.442695, %v8139_v32  ;;  %v8156_v9 = vpop.f32.mrb[64].mxu1 }
 0x277   : > { %v5820_v4 = vpop.eup %5819  ;;  %5839 = vrcp.f32 %v3214_v22  ;;  %v3215_v12 = vadd.f32 1.0, %v5818_v15  ;;  %v5221_v17 = vmul.f32 -1.442695, %v8143_v33  ;;  %v8161_v6 = vpop.f32.mrb[65].mxu1  ;;  %v5103_v16 = vmul.f32 -1.442695, %v8147_v11 }
 0x278   : > { %v5822_v53 = vpop.eup %5821  ;;  %5841 = vrcp.f32 %v3096_v35  ;;  %v3097_v42 = vadd.f32 1.0, %v5820_v4  ;;  %v5230_v14 = vmul.f32 -1.442695, %v8151_v19  ;;  %v8169_v15 = vpop.f32.mrb[106].mxu0 }
 0x279   : > { %v5824_v46 = vpop.eup %5823  ;;  %5843 = vrcp.f32 %v3215_v12  ;;  %v3224_v59 = vadd.f32 1.0, %v5822_v53  ;;  %v8171_v35 = vpop.f32.mrb[66].mxu1  ;;  %v8176_v53 = vadd.f32 %v7816_v62, %v7578_v56 }
 0x27a   : > { %v5826_v10 = vpop.eup %5825  ;;  %v4164_v22 = vmul.f32 %v5824_v46, %v8001_v39  ;;  %5845 = vrcp.f32 %v3097_v42  ;;  %4979 = vmatmul.mubr.msk.bf16.gmra.mrb[172].mxu1 %vm397_vm0, %v10257_v36 }
 0x27b   : > { %v5828_v13 = vpop.eup %5827  ;;  %v4046_v21 = vmul.f32 %v5826_v10, %v8007_v52  ;;  %5847 = vrcp.f32 %v3224_v59  ;;  %v8181_v59 = vadd.f32 %v7830_v55, %v7399_v58  ;;  %v8183_v10 = vpop.f32.mrb[107].mxu0 }
 0x27c   : > { %v5830_v4 = vpop.eup %5829  ;;  %v4296_v12 = vadd.f32 %v4295_v63, %v4164_v22  ;;  %v4165_v39 = vmul.f32 %v5828_v13, %v8012_v41  ;;  %5849 = vpow2.f32 %v5102_v54  ;;  %10258 = vst [vmem:[#allocation11_spill] sm:$0xff] %v8183_v10  ;;  %v8187_v41 = vadd.f32 %v7822_v3, %v7590_v26 }
 0x27d   : > { %v5832_v42 = vpop.eup %5831  ;;  %v4358_v46 = vadd.f32 %v4357_v0, %v4046_v21  ;;  %v4047_v52 = vmul.f32 %v5830_v4, %v8018_v48  ;;  %5851 = vpow2.f32 %v5221_v17  ;;  %v10259_v48 = vld [vmem:[#allocation15_spill] sm:$0xff]  ;;  %v5112_v21 = vmul.f32 -1.442695, %v8176_v53 }
 0x27e   : > { %v5834_v36 = vpop.eup %5833  ;;  %v4333_v63 = vadd.f32 %v4332_v30, %v4165_v39  ;;  %v3106_v22 = vadd.f32 1.0, %v5832_v42  ;;  %5853 = vpow2.f32 %v5103_v16  ;;  %v8191_v17 = vadd.f32 %v10259_v48, %v7392_v49  ;;  %v10260_v30 = vld [vmem:[#allocation13_spill] sm:$0xff]  ;;  %v8199_v39 = vpop.f32.mrb[67].mxu1 }
 0x27f   : > { %v5836_v62 = vpop.eup %5835  ;;  %v4395_v54 = vadd.f32 %v4394_v27, %v4047_v52  ;;  %v3225_v0 = vadd.f32 1.0, %v5834_v36  ;;  %5855 = vpow2.f32 %v5230_v14  ;;  %v8196_v16 = vadd.f32 %v10260_v30, %v7578_v56  ;;  %10261 = vst [vmem:[#allocation10_spill] sm:$0xff] %v8199_v39 }
 0x280   : > { %v5838_v55 = vpop.eup %5837  ;;  %5857 = vrcp.f32 %v3106_v22  ;;  %v3107_v13 = vadd.f32 1.0, %v5836_v62  ;;  %v5231_v27 = vmul.f32 -1.442695, %v8181_v59  ;;  %v5113_v52 = vmul.f32 -1.442695, %v8187_v41 }
 0x281   : > { %v5840_v4 = vpop.eup %5839  ;;  %5859 = vrcp.f32 %v3225_v0  ;;  %v3234_v3 = vadd.f32 1.0, %v5838_v55  ;;  %v5240_v62 = vmul.f32 -1.442695, %v8191_v17  ;;  %v5122_v55 = vmul.f32 -1.442695, %v8196_v16 }
 0x282   : > { %v5842_v14 = vpop.eup %5841  ;;  %v4174_v42 = vmul.f32 %v5840_v4, %v8043_v40  ;;  %5861 = vrcp.f32 %v3107_v13  ;;  %v8210_v13 = vadd.f32 %v7852_v44, %v7399_v58 }
 0x283   : > { %v5844_v36 = vpop.eup %5843  ;;  %v4056_v22 = vmul.f32 %v5842_v14, %v8050_v28  ;;  %5863 = vrcp.f32 %v3234_v3 }
 0x284   : > { %v5846_v48 = vpop.eup %5845  ;;  %v4297_v30 = vadd.f32 %v4296_v12, %v4174_v42  ;;  %v4175_v0 = vmul.f32 %v5844_v36, %v8055_v50  ;;  %5865 = vpow2.f32 %v5112_v21  ;;  %v10262_v12 = vld [vmem:[#allocation17_spill] sm:$0xff] }
 0x285   : > { %v5848_v39 = vpop.eup %5847  ;;  %v4359_v10 = vadd.f32 %v4358_v46, %v4056_v22  ;;  %v4057_v40 = vmul.f32 %v5846_v48, %v8061_v60  ;;  %5867 = vpow2.f32 %v5231_v27  ;;  %v8215_v50 = vadd.f32 %v10262_v12, %v7590_v26 }
 0x286   : > { %v5850_v28 = vpop.eup %5849  ;;  %v4334_v4 = vadd.f32 %v4333_v63, %v4175_v0  ;;  %v4184_v3 = vmul.f32 %v5848_v39, %v8070_v24  ;;  %5869 = vpow2.f32 %v5113_v52  ;;  %v8219_v60 = vadd.f32 %v7857_v38, %v7392_v49  ;;  %v10263_v63 = vld [vmem:[#allocation3_spill] sm:$0xff]  ;;  %v8225_v39 = vpop.f32.mrb[108].mxu0 }
 0x287   : > { %v5852_v21 = vpop.eup %5851  ;;  %v4396_v14 = vadd.f32 %v4395_v54, %v4057_v40  ;;  %v3116_v42 = vadd.f32 1.0, %v5850_v28  ;;  %5871 = vpow2.f32 %v5240_v62  ;;  %v8223_v24 = vadd.f32 %v10263_v63, %v7578_v56  ;;  %v8227_v52 = vpop.f32.mrb[68].mxu1 }
 0x288   : > { %v5854_v46 = vpop.eup %5853  ;;  %v4298_v44 = vadd.f32 %v4297_v30, %v4184_v3  ;;  %v3235_v27 = vadd.f32 1.0, %v5852_v21  ;;  %5873 = vpow2.f32 %v5122_v55  ;;  %v5241_v22 = vmul.f32 -1.442695, %v8210_v13  ;;  %v8233_v40 = vpop.f32.mrb[109].mxu0 }
 0x289   : > { %v5856_v36 = vpop.eup %5855  ;;  %5875 = vrcp.f32 %v3116_v42  ;;  %v3117_v54 = vadd.f32 1.0, %v5854_v46  ;;  %v5123_v48 = vmul.f32 -1.442695, %v8215_v50  ;;  %v5250_v55 = vmul.f32 -1.442695, %v8219_v60  ;;  %v8235_v28 = vpop.f32.mrb[69].mxu1 }
 0x28a   : > { %v5858_v62 = vpop.eup %5857  ;;  %5877 = vrcp.f32 %v3235_v27  ;;  %v3244_v38 = vadd.f32 1.0, %v5856_v36  ;;  %10264 = vst [vmem:[#allocation15_spill] sm:$0xff] %v8235_v28  ;;  %v5132_v21 = vmul.f32 -1.442695, %v8223_v24  ;;  %v8240_v63 = vpop.f32.mrb[110].mxu0 }
 0x28b   : > { %v5860_v30 = vpop.eup %5859  ;;  %v4066_v0 = vmul.f32 %v5858_v62, %v8094_v7  ;;  %5879 = vrcp.f32 %v3117_v54  ;;  %10265 = vst [vmem:[#allocation13_spill] sm:$0xff] %v8240_v63  ;;  %v8242_v7 = vpop.f32.mrb[70].mxu1 }
 0x28c   : > { %v5862_v3 = vpop.eup %5861  ;;  %v4185_v12 = vmul.f32 %v5860_v30, %v8100_v61  ;;  %5881 = vrcp.f32 %v3244_v38  ;;  %10266 = vst [vmem:[#allocation17_spill] sm:$0xff] %v8242_v7  ;;  %v8247_v61 = vadd.f32 %v7866_v1, %v7399_v58 }
 0x28d   : > { %v5864_v42 = vpop.eup %5863  ;;  %v4360_v46 = vadd.f32 %v4359_v10, %v4066_v0  ;;  %v4067_v27 = vmul.f32 %v5862_v3, %v8106_v8  ;;  %5883 = vpow2.f32 %v5241_v22  ;;  %v10267_v8 = vld [vmem:[#allocation14_spill] sm:$0xff] }
 0x28e   : > { %v5866_v36 = vpop.eup %5865  ;;  %v4335_v54 = vadd.f32 %v4334_v4, %v4185_v12  ;;  %v4194_v62 = vmul.f32 %v5864_v42, %v8114_v23  ;;  %5885 = vpow2.f32 %v5123_v48  ;;  %v8251_v10 = vadd.f32 %v10267_v8, %v7590_v26  ;;  %v10268_v4 = vld [vmem:[#allocation5_spill] sm:$0xff]  ;;  %v8257_v48 = vpop.f32.mrb[111].mxu0 }
 0x28f   : > { %v5868_v38 = vpop.eup %5867  ;;  %v4397_v30 = vadd.f32 %v4396_v14, %v4067_v27  ;;  %v3126_v28 = vadd.f32 1.0, %v5866_v36  ;;  %5887 = vpow2.f32 %v5250_v55  ;;  %v8255_v23 = vadd.f32 %v10268_v4, %v7392_v49  ;;  %10269 = vst [vmem:[#allocation3_spill] sm:$0xff] %v8257_v48  ;;  %v10270_v14 = vld [vmem:[#allocation16_spill] sm:$0xff]  ;;  %v8263_v42 = vpop.f32.mrb[71].mxu1 }
 0x290   : > { %v5870_v22 = vpop.eup %5869  ;;  %v4299_v0 = vadd.f32 %v4298_v44, %v4194_v62  ;;  %v3245_v3 = vadd.f32 1.0, %v5868_v38  ;;  %5889 = vpow2.f32 %v5132_v21  ;;  %v8261_v55 = vadd.f32 %v10270_v14, %v7578_v56  ;;  %10271 = vst [vmem:[#allocation14_spill] sm:$0xff] %v8263_v42 }
 0x291   : > { %v5872_v1 = vpop.eup %5871  ;;  %5891 = vrcp.f32 %v3126_v28  ;;  %v3127_v12 = vadd.f32 1.0, %v5870_v22  ;;  %v5251_v21 = vmul.f32 -1.442695, %v8247_v61  ;;  %v5133_v38 = vmul.f32 -1.442695, %v8251_v10 }
 0x292   : > { %v5874_v27 = vpop.eup %5873  ;;  %5893 = vrcp.f32 %v3245_v3  ;;  %v3254_v44 = vadd.f32 1.0, %v5872_v1  ;;  %v5260_v22 = vmul.f32 -1.442695, %v8255_v23  ;;  %v5142_v3 = vmul.f32 -1.442695, %v8261_v55 }
 0x293   : > { %v5876_v36 = vpop.eup %5875  ;;  %5895 = vrcp.f32 %v3127_v12  ;;  %v3136_v62 = vadd.f32 1.0, %v5874_v27  ;;  %v10272_v12 = vld [vmem:[#allocation31_spill] sm:$0xff] }
 0x294   : > { %v5878_v8 = vpop.eup %5877  ;;  %v4076_v28 = vmul.f32 %v5876_v36, %v8139_v32  ;;  %5897 = vrcp.f32 %v3254_v44  ;;  %v8274_v27 = vadd.f32 %v10272_v12, %v7399_v58  ;;  %v10273_v36 = vld [vmem:[#allocation30_spill] sm:$0xff] }
 0x295   : > { %v5880_v4 = vpop.eup %5879  ;;  %v4195_v14 = vmul.f32 %v5878_v8, %v8143_v33  ;;  %5899 = vrcp.f32 %v3136_v62  ;;  %v8279_v33 = vadd.f32 %v10273_v36, %v7590_v26  ;;  %v10280_v12 = vld [vmem:[#allocation18_spill] sm:$0xff] }
 0x296   : > { %v5882_v1 = vpop.eup %5881  ;;  %v4361_v42 = vadd.f32 %v4360_v46, %v4076_v28  ;;  %v4077_v48 = vmul.f32 %v5880_v4, %v8147_v11  ;;  %5901 = vpow2.f32 %v5251_v21  ;;  %v10274_v11 = vld [vmem:[#allocation33_spill] sm:$0xff]  ;;  %v8285_v21 = vpop.f32.mrb[72].mxu1  ;;  %v8300_v36 = vadd.f32 %v10280_v12, %v7399_v58 }
 0x297   : > { %v5884_v7 = vpop.eup %5883  ;;  %v4336_v32 = vadd.f32 %v4335_v54, %v4195_v14  ;;  %v4204_v44 = vmul.f32 %v5882_v1, %v8151_v19  ;;  %5903 = vpow2.f32 %v5133_v38  ;;  %v8283_v46 = vadd.f32 %v10274_v11, %v7392_v49  ;;  %10275 = vst [vmem:[#allocation5_spill] sm:$0xff] %v8285_v21  ;;  %v8287_v28 = vpop.f32.mrb[112].mxu0  ;;  %v10277_v38 = vld [vmem:[#allocation32_spill] sm:$0xff] }
 0x298   : > { %v5886_v62 = vpop.eup %5885  ;;  %v4398_v8 = vadd.f32 %v4397_v30, %v4077_v48  ;;  %v3255_v63 = vadd.f32 1.0, %v5884_v7  ;;  %5905 = vpow2.f32 %v5260_v22  ;;  %10276 = vst [vmem:[#allocation16_spill] sm:$0xff] %v8287_v28  ;;  %v8291_v14 = vadd.f32 %v10277_v38, %v7578_v56  ;;  %v8293_v1 = vpop.f32.mrb[73].mxu1 }
 0x299   : > { %v5888_v54 = vpop.eup %5887  ;;  %v4300_v4 = vadd.f32 %v4299_v0, %v4204_v44  ;;  %v3137_v19 = vadd.f32 1.0, %v5886_v62  ;;  %5907 = vpow2.f32 %v5142_v3  ;;  %10278 = vst [vmem:[#allocation31_spill] sm:$0xff] %v8293_v1  ;;  %v8295_v7 = vpop.f32.mrb[113].mxu0  ;;  %v5261_v22 = vmul.f32 -1.442695, %v8274_v27 }
 0x29a   : > { %10279 = vst [vmem:[#allocation30_spill] sm:$0xff] %v8295_v7  ;;  %v5890_v30 = vpop.eup %5889  ;;  %5909 = vrcp.f32 %v3255_v63  ;;  %v3264_v48 = vadd.f32 1.0, %v5888_v54  ;;  %v5143_v44 = vmul.f32 -1.442695, %v8279_v33  ;;  %v5270_v38 = vmul.f32 -1.442695, %v8283_v46 }
 0x29b   : > { %v5892_v0 = vpop.eup %5891  ;;  %5911 = vrcp.f32 %v3137_v19  ;;  %v3146_v3 = vadd.f32 1.0, %v5890_v30  ;;  %v8305_v7 = vpop.f32.mrb[74].mxu1  ;;  %v5152_v12 = vmul.f32 -1.442695, %v8291_v14 }
 0x29c   : > { %v5894_v62 = vpop.eup %5893  ;;  %v4086_v11 = vmul.f32 %v5892_v0, %v8176_v53  ;;  %5913 = vrcp.f32 %v3264_v48  ;;  %10281 = vst [vmem:[#allocation33_spill] sm:$0xff] %v8305_v7  ;;  %v8309_v1 = vpop.f32.mrb[114].mxu0  ;;  %v5271_v53 = vmul.f32 -1.442695, %v8300_v36  ;;  %v10283_v7 = vld [vmem:[#allocation34_spill] sm:$0xff] }
 0x29d   : > { %v5896_v63 = vpop.eup %5895  ;;  %v4205_v54 = vmul.f32 %v5894_v62, %v8181_v59  ;;  %5915 = vrcp.f32 %v3146_v3  ;;  %10282 = vst [vmem:[#allocation32_spill] sm:$0xff] %v8309_v1  ;;  %v8316_v59 = vadd.f32 %v10283_v7, %v7590_v26 }
 0x29e   : > { %v5898_v19 = vpop.eup %5897  ;;  %v4362_v30 = vadd.f32 %v4361_v42, %v4086_v11  ;;  %v4087_v28 = vmul.f32 %v5896_v63, %v8187_v41  ;;  %5917 = vpow2.f32 %v5261_v22  ;;  %v10284_v42 = vld [vmem:[#allocation19_spill] sm:$0xff]  ;;  %v8323_v22 = vpop.f32.mrb[75].mxu1 }
 0x29f   : > { %v5900_v48 = vpop.eup %5899  ;;  %v4337_v0 = vadd.f32 %v4336_v32, %v4205_v54  ;;  %v4214_v21 = vmul.f32 %v5898_v19, %v8191_v17  ;;  %5919 = vpow2.f32 %v5143_v44  ;;  %v8321_v41 = vadd.f32 %v10284_v42, %v7392_v49  ;;  %10285 = vst [vmem:[#allocation18_spill] sm:$0xff] %v8323_v22  ;;  %v10286_v17 = vld [vmem:[#allocation20_spill] sm:$0xff] }
 0x2a0   : > { %v5902_v3 = vpop.eup %5901  ;;  %v4399_v62 = vadd.f32 %v4398_v8, %v4087_v28  ;;  %v4096_v1 = vmul.f32 %v5900_v48, %v8196_v16  ;;  %5921 = vpow2.f32 %v5270_v38  ;;  %v8327_v44 = vadd.f32 %v10286_v17, %v7578_v56  ;;  %v10287_v16 = vld [vmem:[#allocation22_spill] sm:$0xff] }
 0x2a1   : > { %v5904_v11 = vpop.eup %5903  ;;  %v4301_v32 = vadd.f32 %v4300_v4, %v4214_v21  ;;  %v3265_v63 = vadd.f32 1.0, %v5902_v3  ;;  %5923 = vpow2.f32 %v5152_v12  ;;  %v8331_v28 = vadd.f32 %v10287_v16, %v7399_v58  ;;  %v8335_v3 = vpop.f32.mrb[115].mxu0  ;;  %v10289_v16 = vld [vmem:[#allocation4_spill] sm:$0xff] }
 0x2a2   : > { %v5906_v7 = vpop.eup %5905  ;;  %v4363_v54 = vadd.f32 %v4362_v30, %v4096_v1  ;;  %v3147_v8 = vadd.f32 1.0, %v5904_v11  ;;  %5925 = vpow2.f32 %v5271_v53  ;;  %v5153_v48 = vmul.f32 -1.442695, %v8316_v59  ;;  %10288 = vst [vmem:[#allocation34_spill] sm:$0xff] %v8335_v3 }
 0x2a3   : > { %v5908_v38 = vpop.eup %5907  ;;  %5927 = vrcp.f32 %v3265_v63  ;;  %v3274_v19 = vadd.f32 1.0, %v5906_v7  ;;  %v5280_v12 = vmul.f32 -1.442695, %v8321_v41  ;;  %v5162_v30 = vmul.f32 -1.442695, %v8327_v44 }
 0x2a4   : > { %v5910_v21 = vpop.eup %5909  ;;  %5929 = vrcp.f32 %v3147_v8  ;;  %v3156_v4 = vadd.f32 1.0, %v5908_v38  ;;  %v5281_v63 = vmul.f32 -1.442695, %v8331_v28  ;;  %v8344_v38 = vadd.f32 %v10289_v16, %v7590_v26 }
 0x2a5   : > { %v5912_v42 = vpop.eup %5911  ;;  %v4215_v1 = vmul.f32 %v5910_v21, %v8210_v13  ;;  %5931 = vrcp.f32 %v3274_v19 }
 0x2a6   : > { %v5914_v53 = vpop.eup %5913  ;;  %v4097_v11 = vmul.f32 %v5912_v42, %v8215_v50  ;;  %5933 = vrcp.f32 %v3156_v4  ;;  %v8349_v50 = vadd.f32 %v7946_v2, %v7392_v49 }
 0x2a7   : > { %v5916_v17 = vpop.eup %5915  ;;  %v4338_v7 = vadd.f32 %v4337_v0, %v4215_v1  ;;  %v4224_v8 = vmul.f32 %v5914_v53, %v8219_v60  ;;  %5935 = vpow2.f32 %v5153_v48  ;;  %v10290_v60 = vld [vmem:[#allocation21_spill] sm:$0xff] }
 0x2a8   : > { %v5918_v3 = vpop.eup %5917  ;;  %v4400_v13 = vadd.f32 %v4399_v62, %v4097_v11  ;;  %v4106_v19 = vmul.f32 %v5916_v17, %v8223_v24  ;;  %5937 = vpow2.f32 %v5280_v12  ;;  %v8353_v0 = vadd.f32 %v10290_v60, %v7578_v56  ;;  %v10291_v62 = vld [vmem:[#allocation12_spill] sm:$0xff]  ;;  %v8356_v24 = vpop.f32.mrb[76].mxu1 }
 0x2a9   : > { %v5920_v21 = vpop.eup %5919  ;;  %v4302_v4 = vadd.f32 %v4301_v32, %v4224_v8  ;;  %v3275_v42 = vadd.f32 1.0, %v5918_v3  ;;  %5939 = vpow2.f32 %v5162_v30  ;;  %v889_v11 = vsub.s32 4, %v10291_v62  ;;  %10292 = vst [vmem:[#allocation19_spill] sm:$0xff] %v8356_v24  ;;  %v8358_v12 = vpop.f32.mrb[116].mxu0 }
 0x2aa   : > { %v5922_v48 = vpop.eup %5921  ;;  %v4364_v1 = vadd.f32 %v4363_v54, %v4106_v19  ;;  %v3157_v53 = vadd.f32 1.0, %v5920_v21  ;;  %5941 = vpow2.f32 %v5281_v63  ;;  %10293 = vst [vmem:[#allocation20_spill] sm:$0xff] %v8358_v12  ;;  %v8362_v32 = vadd.f32 %v7952_v31, %v7399_v58  ;;  %v8364_v3 = vpop.f32.mrb[77].mxu1 }
 0x2ab   : > { %v5924_v49 = vpop.eup %5923  ;;  %5943 = vrcp.f32 %v3275_v42  ;;  %v3284_v2 = vadd.f32 1.0, %v5922_v48  ;;  %10294 = vst [vmem:[#allocation22_spill] sm:$0xff] %v8364_v3  ;;  %v8366_v30 = vpop.f32.mrb[117].mxu0  ;;  %v5163_v17 = vmul.f32 -1.442695, %v8344_v38  ;;  %v893_v8 = vsub.s32 5, %v10291_v62 }
 0x2ac   : > { %10295 = vst [vmem:[#allocation4_spill] sm:$0xff] %v8366_v30  ;;  %v5926_v54 = vpop.eup %5925  ;;  %5945 = vrcp.f32 %v3157_v53  ;;  %v3166_v63 = vadd.f32 1.0, %v5924_v49  ;;  %v8370_v16 = vpop.f32.mrb[78].mxu1  ;;  %v5290_v42 = vmul.f32 -1.442695, %v8349_v50  ;;  %v8378_v48 = vld [vmem:[%s10138_s4] sm:$0xff] }
 0x2ad   : > { %10296 = vst [vmem:[#allocation21_spill] sm:$0xff] %v8370_v16  ;;  %v5928_v19 = vpop.eup %5927  ;;  %5947 = vrcp.f32 %v3284_v2  ;;  %v3285_v21 = vadd.f32 1.0, %v5926_v54  ;;  %v5172_v60 = vmul.f32 -1.442695, %v8353_v0  ;;  %v8381_v53 = vrot.slane %v8378_v48, %v889_v11  ;;  %v8383_v49 = vpop.f32.mrb[118].mxu0 }
 0x2ae   : > { %v5930_v58 = vpop.eup %5929  ;;  %v4225_v31 = vmul.f32 %v5928_v19, %v8247_v61  ;;  %5949 = vrcp.f32 %v3166_v63  ;;  %10297 = vst [vmem:[#allocation47_spill] sm:$0xff] %v8383_v49  ;;  %v5291_v16 = vmul.f32 -1.442695, %v8362_v32  ;;  %v10298_v61 = vld [vmem:[#allocation35_spill] sm:$0xff]  ;;  %v8393_v11 = vrot.slane %v8378_v48, %v893_v8  ;;  %v8395_v12 = vpop.f32.mrb[79].mxu1 }
 0x2af   : > { %v5932_v2 = vpop.eup %5931  ;;  %v4107_v54 = vmul.f32 %v5930_v58, %v8251_v10  ;;  %5951 = vrcp.f32 %v3285_v21  ;;  %v8389_v63 = vadd.f32 %v10298_v61, %v7590_v26  ;;  %10299 = vst [vmem:[#allocation35_spill] sm:$0xff] %v8395_v12  ;;  %v8397_v49 = vpop.f32.mrb[119].mxu0  ;;  %v8402_v61 = vadd.f32 %v7975_v45, %v7578_v56 }
 0x2b0   : > { %v5934_v19 = vpop.eup %5933  ;;  %v4339_v30 = vadd.f32 %v4338_v7, %v4225_v31  ;;  %v4234_v3 = vmul.f32 %v5932_v2, %v8255_v23  ;;  %5953 = vpow2.f32 %v5163_v17  ;;  %10300 = vst [vmem:[#allocation48_spill] sm:$0xff] %v8397_v49  ;;  %v8406_v17 = vadd.f32 %v7978_v47, %v8381_v53 }
 0x2b1   : > { %v5936_v10 = vpop.eup %5935  ;;  %v4401_v21 = vadd.f32 %v4400_v13, %v4107_v54  ;;  %v4116_v58 = vmul.f32 %v5934_v19, %v8261_v55  ;;  %5955 = vpow2.f32 %v5290_v42  ;;  %v10301_v13 = vld [vmem:[#allocation23_spill] sm:$0xff]  ;;  %v5173_v54 = vmul.f32 -1.442695, %v8389_v63 }
 0x2b2   : > { %v5938_v7 = vpop.eup %5937  ;;  %v4303_v31 = vadd.f32 %v4302_v4, %v4234_v3  ;;  %v3167_v23 = vadd.f32 1.0, %v5936_v10  ;;  %5957 = vpow2.f32 %v5172_v60  ;;  %v8410_v55 = vadd.f32 %v10301_v13, %v7590_v26  ;;  %v10302_v4 = vld [vmem:[#allocation7_spill] sm:$0xff] }
 0x2b3   : > { %v5940_v8 = vpop.eup %5939  ;;  %v4365_v2 = vadd.f32 %v4364_v1, %v4116_v58  ;;  %v3294_v49 = vadd.f32 1.0, %v5938_v7  ;;  %5959 = vpow2.f32 %v5291_v16  ;;  %v8415_v3 = vadd.f32 %v10302_v4, %v8393_v11 }
 0x2b4   : > { %v5942_v42 = vpop.eup %5941  ;;  %5961 = vrcp.f32 %v3167_v23  ;;  %v3176_v45 = vadd.f32 1.0, %v5940_v8  ;;  %v5182_v1 = vmul.f32 -1.442695, %v8402_v61  ;;  %v4984_v10 = vmul.f32 -1.442695, %v8406_v17 }
 0x2b5   : > { %v5944_v60 = vpop.eup %5943  ;;  %5963 = vrcp.f32 %v3294_v49  ;;  %v3295_v47 = vadd.f32 1.0, %v5942_v42  ;;  %v5183_v23 = vmul.f32 -1.442695, %v8410_v55  ;;  %v4985_v49 = vmul.f32 -1.442695, %v8415_v3 }
 0x2b6   : > { %v5946_v19 = vpop.eup %5945  ;;  %v4235_v16 = vmul.f32 %v5944_v60, %v8274_v27  ;;  %5965 = vrcp.f32 %v3176_v45  ;;  %v10303_v45 = vld [vmem:[#allocation36_spill] sm:$0xff] }
 0x2b7   : > { %v5948_v58 = vpop.eup %5947  ;;  %v4117_v7 = vmul.f32 %v5946_v19, %v8279_v33  ;;  %5967 = vrcp.f32 %v3295_v47  ;;  %v8427_v60 = vadd.f32 %v10303_v45, %v7578_v56 }
 0x2b8   : > { %v5950_v8 = vpop.eup %5949  ;;  %v4340_v13 = vadd.f32 %v4339_v30, %v4235_v16  ;;  %v4244_v4 = vmul.f32 %v5948_v58, %v8283_v46  ;;  %5969 = vpow2.f32 %v5173_v54  ;;  %v10304_v30 = vld [vmem:[#allocation37_spill] sm:$0xff]  ;;  %v8434_v54 = vpop.f32.mrb[80].mxu1  ;;  %v10307_v58 = vld [vmem:[#allocation38_spill] sm:$0xff] }
 0x2b9   : > { %v5952_v42 = vpop.eup %5951  ;;  %v4402_v12 = vadd.f32 %v4401_v21, %v4117_v7  ;;  %v4126_v27 = vmul.f32 %v5950_v8, %v8291_v14  ;;  %5971 = vpow2.f32 %v5182_v1  ;;  %v8432_v46 = vadd.f32 %v10304_v30, %v8381_v53  ;;  %10305 = vst [vmem:[#allocation23_spill] sm:$0xff] %v8434_v54  ;;  %v8436_v16 = vpop.f32.mrb[120].mxu0 }
 0x2ba   : > { %v5954_v33 = vpop.eup %5953  ;;  %v4304_v47 = vadd.f32 %v4303_v31, %v4244_v4  ;;  %v4245_v19 = vmul.f32 %v5952_v42, %v8300_v36  ;;  %5973 = vpow2.f32 %v4984_v10  ;;  %10306 = vst [vmem:[#allocation7_spill] sm:$0xff] %v8436_v16  ;;  %v8440_v7 = vadd.f32 %v10307_v58, %v7590_v26  ;;  %v8442_v31 = vpop.f32.mrb[81].mxu1  ;;  %v10310_v42 = vld [vmem:[#allocation39_spill] sm:$0xff] }
 0x2bb   : > { %v5956_v21 = vpop.eup %5955  ;;  %v4366_v14 = vadd.f32 %v4365_v2, %v4126_v27  ;;  %v3177_v1 = vadd.f32 1.0, %v5954_v33  ;;  %5975 = vpow2.f32 %v5183_v23  ;;  %10308 = vst [vmem:[#allocation36_spill] sm:$0xff] %v8442_v31  ;;  %v8444_v36 = vpop.f32.mrb[121].mxu0  ;;  %v8448_v45 = vadd.f32 %v10310_v42, %v8393_v11 }
 0x2bc   : > { %10309 = vst [vmem:[#allocation37_spill] sm:$0xff] %v8444_v36  ;;  %v5958_v10 = vpop.eup %5957  ;;  %v4341_v8 = vadd.f32 %v4340_v13, %v4245_v19  ;;  %v3304_v4 = vadd.f32 1.0, %v5956_v21  ;;  %5977 = vpow2.f32 %v4985_v49  ;;  %v5192_v23 = vmul.f32 -1.442695, %v8427_v60  ;;  %v8454_v49 = vpop.f32.mrb[82].mxu1 }
 0x2bd   : > { %v5960_v30 = vpop.eup %5959  ;;  %5979 = vrcp.f32 %v3177_v1  ;;  %v3186_v2 = vadd.f32 1.0, %v5958_v10  ;;  %v4994_v58 = vmul.f32 -1.442695, %v8432_v46  ;;  %v5193_v13 = vmul.f32 -1.442695, %v8440_v7  ;;  %10311 = vst [vmem:[#allocation38_spill] sm:$0xff] %v8454_v49 }
 0x2be   : > { %v5962_v27 = vpop.eup %5961  ;;  %5981 = vrcp.f32 %v3304_v4  ;;  %v3305_v33 = vadd.f32 1.0, %v5960_v30  ;;  %v8456_v19 = vpop.f32.mrb[122].mxu0  ;;  %v4995_v10 = vmul.f32 -1.442695, %v8448_v45 }
 0x2bf   : > { %v5964_v31 = vpop.eup %5963  ;;  %v4127_v36 = vmul.f32 %v5962_v27, %v8316_v59  ;;  %5983 = vrcp.f32 %v3186_v2  ;;  %10312 = vst [vmem:[#allocation39_spill] sm:$0xff] %v8456_v19  ;;  %v8461_v16 = vpop.f32.mrb[83].mxu1 }
 0x2c0   : > { %v5966_v21 = vpop.eup %5965  ;;  %v4254_v1 = vmul.f32 %v5964_v31, %v8321_v41  ;;  %5985 = vrcp.f32 %v3305_v33  ;;  %10313 = vst [vmem:[#allocation49_spill] sm:$0xff] %v8461_v16  ;;  %v8463_v59 = vpop.f32.mrb[123].mxu0  ;;  %v8468_v41 = vadd.f32 %v8014_v57, %v7578_v56 }
 0x2c1   : > { %v5968_v4 = vpop.eup %5967  ;;  %v4403_v42 = vadd.f32 %v4402_v12, %v4127_v36  ;;  %v4136_v30 = vmul.f32 %v5966_v21, %v8327_v44  ;;  %5987 = vpow2.f32 %v5192_v23  ;;  %10314 = vst [vmem:[#allocation50_spill] sm:$0xff] %v8463_v59  ;;  %v8472_v44 = vadd.f32 %v8020_v20, %v8381_v53 }
 0x2c2   : > { %v5970_v2 = vpop.eup %5969  ;;  %v4305_v27 = vadd.f32 %v4304_v47, %v4254_v1  ;;  %v4255_v49 = vmul.f32 %v5968_v4, %v8331_v28  ;;  %5989 = vpow2.f32 %v4994_v58  ;;  %v8476_v28 = vadd.f32 %v8022_v51, %v7590_v26  ;;  %v10315_v58 = vld [vmem:[#allocation25_spill] sm:$0xff]  ;;  %v8486_v4 = vpop.f32.mrb[84].mxu1 }
 0x2c3   : > { %v5972_v31 = vpop.eup %5971  ;;  %v4367_v33 = vadd.f32 %v4366_v14, %v4136_v30  ;;  %v3187_v19 = vadd.f32 1.0, %v5970_v2  ;;  %5991 = vpow2.f32 %v5193_v13  ;;  %v8480_v14 = vadd.f32 %v10315_v58, %v8393_v11  ;;  %10316 = vst [vmem:[#allocation25_spill] sm:$0xff] %v8486_v4  ;;  %v8488_v30 = vpop.f32.mrb[124].mxu0 }
 0x2c4   : > { %v5974_v12 = vpop.eup %5973  ;;  %v4342_v36 = vadd.f32 %v4341_v8, %v4255_v49  ;;  %v3196_v23 = vadd.f32 1.0, %v5972_v31  ;;  %5993 = vpow2.f32 %v4995_v10  ;;  %v5202_v20 = vmul.f32 -1.442695, %v8468_v41  ;;  %10317 = vst [vmem:[#allocation51_spill] sm:$0xff] %v8488_v30 }
 0x2c5   : > { %v5976_v47 = vpop.eup %5975  ;;  %5995 = vrcp.f32 %v3187_v19  ;;  %v2998_v57 = vadd.f32 1.0, %v5974_v12  ;;  %v5004_v49 = vmul.f32 -1.442695, %v8472_v44  ;;  %v5203_v19 = vmul.f32 -1.442695, %v8476_v28 }
 0x2c6   : > { %v5978_v13 = vpop.eup %5977  ;;  %5997 = vrcp.f32 %v3196_v23  ;;  %v3197_v21 = vadd.f32 1.0, %v5976_v47  ;;  %v5005_v12 = vmul.f32 -1.442695, %v8480_v14  ;;  %v10318_v23 = vld [vmem:[#allocation6_spill] sm:$0xff] }
 0x2c7   : > { %v5980_v1 = vpop.eup %5979  ;;  %5999 = vrcp.f32 %v2998_v57  ;;  %v2999_v8 = vadd.f32 1.0, %v5978_v13  ;;  %v8494_v47 = vadd.f32 %v10318_v23, %v7578_v56  ;;  %v8496_v57 = vpop.f32.mrb[85].mxu1 }
 0x2c8   : > { %v5982_v10 = vpop.eup %5981  ;;  %v4137_v51 = vmul.f32 %v5980_v1, %v8344_v38  ;;  %6001 = vrcp.f32 %v3197_v21  ;;  %10319 = vst [vmem:[#allocation6_spill] sm:$0xff] %v8496_v57  ;;  %v8498_v38 = vpop.f32.mrb[125].mxu0  ;;  %v10321_v1 = vld [vmem:[#allocation24_spill] sm:$0xff] }
 0x2c9   : > { %v5984_v2 = vpop.eup %5983  ;;  %v4264_v31 = vmul.f32 %v5982_v10, %v8349_v50  ;;  %6003 = vrcp.f32 %v2999_v8  ;;  %10320 = vst [vmem:[#allocation52_spill] sm:$0xff] %v8498_v38  ;;  %v8503_v30 = vadd.f32 %v10321_v1, %v8381_v53  ;;  %v8506_v23 = vpop.f32.mrb[86].mxu1 }
 0x2ca   : > { %v5986_v58 = vpop.eup %5985  ;;  %v4404_v13 = vadd.f32 %v4403_v42, %v4137_v51  ;;  %v4146_v21 = vmul.f32 %v5984_v2, %v8353_v0  ;;  %6005 = vpow2.f32 %v5202_v20  ;;  %10322 = vst [vmem:[#allocation24_spill] sm:$0xff] %v8506_v23  ;;  %v10323_v42 = vld [vmem:[#allocation40_spill] sm:$0xff] }
 0x2cb   : > { %v5988_v50 = vpop.eup %5987  ;;  %v4306_v8 = vadd.f32 %v4305_v27, %v4264_v31  ;;  %v4265_v10 = vmul.f32 %v5986_v58, %v8362_v32  ;;  %6007 = vpow2.f32 %v5004_v49  ;;  %v8510_v51 = vadd.f32 %v10323_v42, %v7590_v26 }
 0x2cc   : > { %v5990_v4 = vpop.eup %5989  ;;  %v4368_v57 = vadd.f32 %v4367_v33, %v4146_v21  ;;  %v3206_v59 = vadd.f32 1.0, %v5988_v50  ;;  %6009 = vpow2.f32 %v5203_v19  ;;  %v5212_v32 = vmul.f32 -1.442695, %v8494_v47  ;;  %v8514_v21 = vpop.f32.mrb[126].mxu0 }
 0x2cd   : > { %v5992_v0 = vpop.eup %5991  ;;  %v4307_v20 = vrot.slane %v4306_v8, 4  ;;  %v4343_v2 = vadd.f32 %v4342_v36, %v4265_v10  ;;  %v3008_v1 = vadd.f32 1.0, %v5990_v4  ;;  %6011 = vpow2.f32 %v5005_v12  ;;  %10324 = vst [vmem:[#allocation40_spill] sm:$0xff] %v8514_v21 }
 0x2ce   : > { %v5994_v38 = vpop.eup %5993  ;;  %6013 = vrcp.f32 %v3206_v59  ;;  %v3207_v27 = vadd.f32 1.0, %v5992_v0  ;;  %v5014_v49 = vmul.f32 -1.442695, %v8503_v30  ;;  %v5213_v36 = vmul.f32 -1.442695, %v8510_v51  ;;  %v10325_v59 = vld [vmem:[#allocation41_spill] sm:$0xff] }
 0x2cf   : > { %v5996_v31 = vpop.eup %5995  ;;  %v4308_v33 = vadd.f32 %v4307_v20, %v4306_v8  ;;  %v4344_v58 = vrot.slane %v4343_v2, 4  ;;  %6015 = vrcp.f32 %v3008_v1  ;;  %v3009_v19 = vadd.f32 1.0, %v5994_v38  ;;  %v10326_v1 = vld [vmem:[#allocation9_spill] sm:$0xff] }
 0x2d0   : > { %v5998_v50 = vpop.eup %5997  ;;  %v4147_v42 = vmul.f32 %v5996_v31, %v8389_v63  ;;  %6017 = vrcp.f32 %v3207_v27  ;;  %v8520_v4 = vadd.f32 %v10325_v59, %v8393_v11  ;;  %v8525_v21 = vadd.f32 %v10326_v1, %v7578_v56  ;;  %v10327_v63 = vld [vmem:[#allocation27_spill] sm:$0xff]  ;;  %v8531_v31 = vpop.f32.mrb[87].mxu1 }
 0x2d1   : > { %v6000_v12 = vpop.eup %5999  ;;  %v4309_v10 = vrot.slane %v4308_v33, 2  ;;  %v4345_v0 = vadd.f32 %v4344_v58, %v4343_v2  ;;  %v4156_v8 = vmul.f32 %v5998_v50, %v8402_v61  ;;  %6019 = vrcp.f32 %v3009_v19  ;;  %10328 = vst [vmem:[#allocation41_spill] sm:$0xff] %v8531_v31  ;;  %v8534_v58 = vpop.f32.mrb[127].mxu0  ;;  %v10330_v19 = vld [vmem:[#allocation26_spill] sm:$0xff] }
 0x2d2   : > { %v6002_v20 = vpop.eup %6001  ;;  %v4405_v38 = vadd.f32 %v4404_v13, %v4147_v42  ;;  %6021 = vpow2.f32 %v5212_v32  ;;  %v8529_v27 = vadd.f32 %v10327_v63, %v8381_v53  ;;  %10329 = vst [vmem:[#allocation9_spill] sm:$0xff] %v8534_v58  ;;  %v5015_v32 = vmul.f32 -1.442695, %v8520_v4  ;;  %v10331_v42 = vld [vmem:[#allocation29_spill] sm:$0xff] }
 0x2d3   : > { %v6004_v59 = vpop.eup %6003  ;;  %v4310_v23 = vadd.f32 %v4309_v10, %v4308_v33  ;;  %v4346_v16 = vrot.slane %v4345_v0, 2  ;;  %v4369_v2 = vadd.f32 %v4368_v57, %v4156_v8  ;;  %v4157_v61 = vmul.f32 %v6002_v20, %v8410_v55 }
 0x2d4   : > { %v6006_v13 = vpop.eup %6005  ;;  %6023 = vpow2.f32 %v5014_v49  ;;  %v8539_v50 = vadd.f32 %v10330_v19, %v7590_v26  ;;  %v8543_v1 = vadd.f32 %v10331_v42, %v8393_v11  ;;  %v5222_v49 = vmul.f32 -1.442695, %v8525_v21 }
 0x2d5   : > { %v6008_v63 = vpop.eup %6007  ;;  %v4311_v33 = vrot.slane %v4310_v23, 1  ;;  %v4347_v10 = vadd.f32 %v4346_v16, %v4345_v0  ;;  %v4406_v57 = vadd.f32 %v4405_v38, %v4157_v61  ;;  %v3216_v8 = vadd.f32 1.0, %v6006_v13  ;;  %v10332_v13 = vld [vmem:[#allocation42_spill] sm:$0xff] }
 0x2d6   : > { %v6010_v55 = vpop.eup %6009  ;;  %v3018_v20 = vadd.f32 1.0, %v6008_v63  ;;  %6025 = vpow2.f32 %v5213_v36  ;;  %v5024_v58 = vmul.f32 -1.442695, %v8529_v27  ;;  %v5223_v16 = vmul.f32 -1.442695, %v8539_v50  ;;  %v8558_v63 = vpop.f32.mrb[88].mxu1 }
 0x2d7   : > { %v6012_v31 = vpop.eup %6011  ;;  %v8547_v54 = vadd.f32 %v4311_v33, %v4310_v23  ;;  %v4348_v19 = vrot.slane %v4347_v10, 1  ;;  %6027 = vrcp.f32 %v3216_v8  ;;  %v3217_v24 = vadd.f32 1.0, %v6010_v55  ;;  %10333 = vst [vmem:[#allocation27_spill] sm:$0xff] %v8558_v63  ;;  %v8560_v33 = vpop.f32.mrb[128].mxu0 }
 0x2d8   : > { %v6014_v42 = vpop.eup %6013  ;;  %6029 = vrcp.f32 %v3018_v20  ;;  %v3019_v22 = vadd.f32 1.0, %v6012_v31  ;;  %v5025_v0 = vmul.f32 -1.442695, %v8543_v1  ;;  %v8556_v23 = vadd.f32 %v10332_v13, %v7578_v56  ;;  %10334 = vst [vmem:[#allocation26_spill] sm:$0xff] %v8560_v33 }
 0x2d9   : > { %v6016_v38 = vpop.eup %6015  ;;  %v8551_v61 = vadd.f32 %v4348_v19, %v4347_v10  ;;  %v4166_v36 = vmul.f32 %v6014_v42, %v8427_v60  ;;  %6031 = vrcp.f32 %v3217_v24  ;;  %v3958_v31 = vmul.f32 %v6000_v12, %v8406_v17  ;;  %v10335_v10 = vld [vmem:[#allocation43_spill] sm:$0xff]  ;;  %v8568_v60 = vpop.f32.mrb[89].mxu1 }
 0x2da   : > { %v6018_v8 = vpop.eup %6017  ;;  %v3968_v55 = vmul.f32 %v6016_v38, %v8432_v46  ;;  %6033 = vrcp.f32 %v3019_v22  ;;  %v8566_v20 = vadd.f32 %v10335_v10, %v8381_v53  ;;  %10336 = vst [vmem:[#allocation29_spill] sm:$0xff] %v8568_v60  ;;  %v8570_v24 = vpop.f32.mrb[129].mxu0  ;;  %v3959_v46 = vmul.f32 %v6004_v59, %v8415_v3 }
 0x2db   : > { %10337 = vst [vmem:[#allocation42_spill] sm:$0xff] %v8570_v24  ;;  %v6020_v19 = vpop.eup %6019  ;;  %v4370_v13 = vadd.f32 %v4369_v2, %v4166_v36  ;;  %v4167_v33 = vmul.f32 %v6018_v8, %v8440_v7  ;;  %6035 = vpow2.f32 %v5015_v32  ;;  %v8577_v38 = vpop.f32.mrb[90].mxu1  ;;  %v10338_v24 = vld [vmem:[#allocation44_spill] sm:$0xff]  ;;  %v5232_v3 = vmul.f32 -1.442695, %v8556_v23 }
 0x2dc   : > { %v6022_v17 = vpop.eup %6021  ;;  %v4424_v22 = vadd.f32 %v3968_v55, %v3958_v31  ;;  %v3969_v12 = vmul.f32 %v6020_v19, %v8448_v45  ;;  %6037 = vpow2.f32 %v5222_v49  ;;  %v8581_v63 = vadd.f32 %v10338_v24, %v7590_v26  ;;  %v8583_v2 = vpop.f32.mrb[130].mxu0 }
 0x2dd   : > { %v4407_v10 = vadd.f32 %v4406_v57, %v4167_v33  ;;  %v3226_v60 = vadd.f32 1.0, %v6022_v17  ;;  %6039 = vpow2.f32 %v5024_v58  ;;  %v8588_v45 = vadd.f32 %v8083_v5, %v8393_v11  ;;  %v8595_v36 = vpop.f32.mrb[91].mxu1 }
 0x2de   : > { %v6024_v7 = vpop.eup %6023  ;;  %v4461_v32 = vadd.f32 %v3969_v12, %v3959_v46  ;;  %6041 = vpow2.f32 %v5223_v16  ;;  %v8592_v58 = vadd.f32 %v8102_v18, %v7578_v56  ;;  %v5034_v49 = vmul.f32 -1.442695, %v8566_v20 }
 0x2df   : > { %6043 = vrcp.f32 %v3226_v60  ;;  %v3028_v59 = vadd.f32 1.0, %v6024_v7  ;;  %v5233_v8 = vmul.f32 -1.442695, %v8581_v63  ;;  %v5035_v55 = vmul.f32 -1.442695, %v8588_v45  ;;  %v8600_v60 = vpop.f32.mrb[131].mxu0 }
 0x2e0   : > { %v6026_v57 = vpop.eup %6025  ;;  %6045 = vpow2.f32 %v5025_v0  ;;  %v5242_v24 = vmul.f32 -1.442695, %v8592_v58  ;;  %v8607_v12 = vadd.f32 %v8108_v29, %v8381_v53 }
 0x2e1   : > { %v6028_v33 = vpop.eup %6027  ;;  %6047 = vrcp.f32 %v3028_v59  ;;  %v3227_v16 = vadd.f32 1.0, %v6026_v57 }
 0x2e2   : > { %v6030_v31 = vpop.eup %6029  ;;  %v4176_v5 = vmul.f32 %v6028_v33, %v8468_v41  ;;  %6049 = vpow2.f32 %v5232_v3  ;;  %v8612_v33 = vadd.f32 %v8110_v37, %v7590_v26 }
 0x2e3   : > { %v6032_v18 = vpop.eup %6031  ;;  %v3978_v0 = vmul.f32 %v6030_v31, %v8472_v44  ;;  %6051 = vrcp.f32 %v3227_v16 }
 0x2e4   : > { %v6034_v19 = vpop.eup %6033  ;;  %v4371_v17 = vadd.f32 %v4370_v13, %v4176_v5  ;;  %v4177_v46 = vmul.f32 %v6032_v18, %v8476_v28  ;;  %6053 = vpow2.f32 %v5034_v49 }
 0x2e5   : > { %v6036_v41 = vpop.eup %6035  ;;  %v4425_v7 = vadd.f32 %v4424_v22, %v3978_v0  ;;  %v3979_v3 = vmul.f32 %v6034_v19, %v8480_v14  ;;  %6055 = vpow2.f32 %v5233_v8  ;;  %v5044_v22 = vmul.f32 -1.442695, %v8607_v12  ;;  %v8623_v8 = vpop.f32.mrb[132].mxu0 }
 0x2e6   : > { %v6038_v59 = vpop.eup %6037  ;;  %v4408_v57 = vadd.f32 %v4407_v10, %v4177_v46  ;;  %v3029_v44 = vadd.f32 1.0, %v6036_v41  ;;  %6057 = vpow2.f32 %v5035_v55  ;;  %v8619_v14 = vadd.f32 %v8116_v34, %v8393_v11  ;;  %v8621_v10 = vpop.f32.mrb[92].mxu1 }
 0x2e7   : > { %v6040_v13 = vpop.eup %6039  ;;  %v8614_v28 = vadd.f32 %v4461_v32, %v3979_v3  ;;  %v3236_v49 = vadd.f32 1.0, %v6038_v59  ;;  %6059 = vpow2.f32 %v5242_v24  ;;  %v5243_v55 = vmul.f32 -1.442695, %v8612_v33  ;;  %v8627_v18 = vpop.f32.mrb[93].mxu1 }
 0x2e8   : > { %v6042_v29 = vpop.eup %6041  ;;  %6061 = vrcp.f32 %v3029_v44  ;;  %v3038_v16 = vadd.f32 1.0, %v6040_v13  ;;  %v8629_v34 = vpop.f32.mrb[133].mxu0  ;;  %v5045_v3 = vmul.f32 -1.442695, %v8619_v14  ;;  %v10339_v44 = vld [vmem:[#allocation8_spill] sm:$0xff] }
 0x2e9   : > { %v6044_v37 = vpop.eup %6043  ;;  %6063 = vrcp.f32 %v3236_v49  ;;  %v3237_v31 = vadd.f32 1.0, %v6042_v29  ;;  %v8635_v13 = vadd.f32 %v10339_v44, %v7578_v56 }
 0x2ea   : > { %v6046_v32 = vpop.eup %6045  ;;  %v4186_v5 = vmul.f32 %v6044_v37, %v8494_v47  ;;  %6065 = vrcp.f32 %v3038_v16  ;;  %v10340_v37 = vld [vmem:[#allocation28_spill] sm:$0xff] }
 0x2eb   : > { %v6048_v0 = vpop.eup %6047  ;;  %6067 = vrcp.f32 %v3237_v31  ;;  %v3039_v24 = vadd.f32 1.0, %v6046_v32  ;;  %v5252_v44 = vmul.f32 -1.442695, %v8635_v13 }
 0x2ec   : > { %v6050_v19 = vpop.eup %6049  ;;  %v4372_v46 = vadd.f32 %v4371_v17, %v4186_v5  ;;  %v3988_v41 = vmul.f32 %v6048_v0, %v8503_v30  ;;  %6069 = vpow2.f32 %v5044_v22  ;;  %v8640_v17 = vadd.f32 %v10340_v37, %v8381_v53  ;;  %v8642_v30 = vpop.f32.mrb[94].mxu1  ;;  %v10342_v5 = vld [vmem:[#allocation45_spill] sm:$0xff] }
 0x2ed   : > { %v6052_v59 = vpop.eup %6051  ;;  %6071 = vrcp.f32 %v3039_v24  ;;  %v3246_v47 = vadd.f32 1.0, %v6050_v19  ;;  %v8644_v22 = vpop.f32.mrb[134].mxu0  ;;  %v8648_v0 = vadd.f32 %v10342_v5, %v7590_v26 }
 0x2ee   : > { %v6054_v49 = vpop.eup %6053  ;;  %v4426_v29 = vadd.f32 %v4425_v7, %v3988_v41  ;;  %v4187_v16 = vmul.f32 %v6052_v59, %v8510_v51  ;;  %6073 = vpow2.f32 %v5243_v55  ;;  %10341 = vst [vmem:[#allocation43_spill] sm:$0xff] %v8644_v22  ;;  %v10343_v7 = vld [vmem:[#allocation46_spill] sm:$0xff]  ;;  %v8656_v41 = vadd.f32 %v8154_v43, %v7578_v56 }
 0x2ef   : > { %v6056_v31 = vpop.eup %6055  ;;  %6075 = vrcp.f32 %v3246_v47  ;;  %v3048_v32 = vadd.f32 1.0, %v6054_v49  ;;  %v8652_v24 = vadd.f32 %v10343_v7, %v8393_v11  ;;  %v5054_v5 = vmul.f32 -1.442695, %v8640_v17 }
 0x2f0   : > { %v6058_v51 = vpop.eup %6057  ;;  %v4409_v55 = vadd.f32 %v4408_v57, %v4187_v16  ;;  %v3247_v19 = vadd.f32 1.0, %v6056_v31  ;;  %6077 = vpow2.f32 %v5045_v3  ;;  %v8662_v7 = vadd.f32 %v8156_v9, %v8381_v53  ;;  %v8666_v16 = vpop.f32.mrb[95].mxu1 }
 0x2f1   : > { %v6060_v59 = vpop.eup %6059  ;;  %6079 = vrcp.f32 %v3048_v32  ;;  %v3049_v47 = vadd.f32 1.0, %v6058_v51  ;;  %v5253_v43 = vmul.f32 -1.442695, %v8648_v0  ;;  %10344 = vst [vmem:[#allocation44_spill] sm:$0xff] %v8666_v16  ;;  %v8668_v31 = vpop.f32.mrb[135].mxu0 }
 0x2f2   : > { %v6062_v49 = vpop.eup %6061  ;;  %6081 = vrcp.f32 %v3247_v19  ;;  %v3256_v37 = vadd.f32 1.0, %v6060_v59  ;;  %10345 = vst [vmem:[#allocation8_spill] sm:$0xff] %v8668_v31  ;;  %v5055_v19 = vmul.f32 -1.442695, %v8652_v24  ;;  %v5262_v59 = vmul.f32 -1.442695, %v8656_v41 }
 0x2f3   : > { %v6064_v57 = vpop.eup %6063  ;;  %v3989_v3 = vmul.f32 %v6062_v49, %v8520_v4  ;;  %6083 = vrcp.f32 %v3049_v47  ;;  %v8677_v47 = vadd.f32 %v8159_v25, %v7590_v26 }
 0x2f4   : > { %v6066_v32 = vpop.eup %6065  ;;  %v4196_v51 = vmul.f32 %v6064_v57, %v8525_v21  ;;  %6085 = vrcp.f32 %v3256_v37  ;;  %v5064_v21 = vmul.f32 -1.442695, %v8662_v7 }
 0x2f5   : > { %v6068_v9 = vpop.eup %6067  ;;  %v4463_v42 = vadd.f32 %v8614_v28, %v3989_v3  ;;  %v3998_v4 = vmul.f32 %v6066_v32, %v8529_v27  ;;  %6087 = vpow2.f32 %v5252_v44  ;;  %v8683_v28 = vadd.f32 %v8161_v6, %v8393_v11  ;;  %v8694_v3 = vpop.f32.mrb[96].mxu1 }
 0x2f6   : > { %v6070_v49 = vpop.eup %6069  ;;  %v4373_v31 = vadd.f32 %v4372_v46, %v4196_v51  ;;  %v4197_v16 = vmul.f32 %v6068_v9, %v8539_v50  ;;  %6089 = vpow2.f32 %v5054_v5  ;;  %v8688_v46 = vadd.f32 %v8169_v15, %v7578_v56  ;;  %v8696_v6 = vpop.f32.mrb[136].mxu0 }
 0x2f7   : > { %v6072_v37 = vpop.eup %6071  ;;  %v4427_v57 = vadd.f32 %v4426_v29, %v3998_v4  ;;  %v3058_v22 = vadd.f32 1.0, %v6070_v49  ;;  %6091 = vpow2.f32 %v5253_v43  ;;  %v8692_v29 = vadd.f32 %v8171_v35, %v8381_v53  ;;  %v8700_v15 = vpop.f32.mrb[97].mxu1 }
 0x2f8   : > { %v6074_v27 = vpop.eup %6073  ;;  %v4410_v44 = vadd.f32 %v4409_v55, %v4197_v16  ;;  %v3999_v25 = vmul.f32 %v6072_v37, %v8543_v1  ;;  %6093 = vpow2.f32 %v5055_v19  ;;  %v5263_v16 = vmul.f32 -1.442695, %v8677_v47  ;;  %v8702_v32 = vpop.f32.mrb[137].mxu0 }
 0x2f9   : > { %v6076_v50 = vpop.eup %6075  ;;  %6095 = vrcp.f32 %v3058_v22  ;;  %v3257_v5 = vadd.f32 1.0, %v6074_v27  ;;  %10346 = vst [vmem:[#allocation28_spill] sm:$0xff] %v8702_v32  ;;  %v5065_v35 = vmul.f32 -1.442695, %v8683_v28  ;;  %v5074_v49 = vmul.f32 -1.442695, %v8692_v29 }
 0x2fa   : > { %v6078_v43 = vpop.eup %6077  ;;  %v4464_v55 = vadd.f32 %v4463_v42, %v3999_v25  ;;  %v4206_v1 = vmul.f32 %v6076_v50, %v8556_v23  ;;  %6097 = vpow2.f32 %v5262_v59  ;;  %v5272_v42 = vmul.f32 -1.442695, %v8688_v46  ;;  %v8709_v37 = vpop.f32.mrb[98].mxu1 }
 0x2fb   : > { %v6080_v22 = vpop.eup %6079  ;;  %6099 = vrcp.f32 %v3257_v5  ;;  %v3059_v51 = vadd.f32 1.0, %v6078_v43  ;;  %10347 = vst [vmem:[#allocation45_spill] sm:$0xff] %v8709_v37  ;;  %v8711_v27 = vpop.f32.mrb[138].mxu0  ;;  %v10388_v37 = vld [vmem:[#allocation35_spill] sm:$0xff] }
 0x2fc   : > { %v6082_v19 = vpop.eup %6081  ;;  %v4374_v9 = vadd.f32 %v4373_v31, %v4206_v1  ;;  %v4008_v4 = vmul.f32 %v6080_v22, %v8566_v20  ;;  %6101 = vpow2.f32 %v5064_v21  ;;  %10348 = vst [vmem:[#allocation46_spill] sm:$0xff] %v8711_v27  ;;  %v10349_v20 = vld [vmem:[#allocation11_spill] sm:$0xff]  ;;  %v8719_v1 = vpop.f32.mrb[99].mxu1  ;;  %v8910_v32 = vadd.f32 %v10388_v37, %v8393_v11 }
 0x2fd   : > { %v6084_v23 = vpop.eup %6083  ;;  %v4207_v59 = vmul.f32 %v6082_v19, %v8581_v63  ;;  %6103 = vrcp.f32 %v3059_v51  ;;  %v8716_v31 = vadd.f32 %v10349_v20, %v7590_v26  ;;  %10350 = vst [vmem:[#allocation11_spill] sm:$0xff] %v8719_v1 }
 0x2fe   : > { %v6086_v25 = vpop.eup %6085  ;;  %v4428_v50 = vadd.f32 %v4427_v57, %v4008_v4  ;;  %v4009_v5 = vmul.f32 %v6084_v23, %v8588_v45  ;;  %6105 = vpow2.f32 %v5263_v16  ;;  %v10351_v57 = vld [vmem:[#allocation10_spill] sm:$0xff] }
 0x2ff   : > { %v6088_v21 = vpop.eup %6087  ;;  %v4411_v43 = vadd.f32 %v4410_v44, %v4207_v59  ;;  %v4216_v63 = vmul.f32 %v6086_v25, %v8592_v58  ;;  %6107 = vpow2.f32 %v5065_v35  ;;  %v8723_v4 = vadd.f32 %v10351_v57, %v8393_v11  ;;  %v8732_v25 = vpop.f32.mrb[139].mxu0 }
 0x300   : > { %v6090_v22 = vpop.eup %6089  ;;  %v4465_v51 = vadd.f32 %v4464_v55, %v4009_v5  ;;  %v3266_v19 = vadd.f32 1.0, %v6088_v21  ;;  %6109 = vpow2.f32 %v5272_v42  ;;  %v8729_v44 = vadd.f32 %v8225_v39, %v7578_v56  ;;  %10352 = vst [vmem:[#allocation10_spill] sm:$0xff] %v8732_v25 }
 0x301   : > { %v6092_v45 = vpop.eup %6091  ;;  %v8725_v16 = vadd.f32 %v4374_v9, %v4216_v63  ;;  %v3068_v23 = vadd.f32 1.0, %v6090_v22  ;;  %6111 = vpow2.f32 %v5074_v49  ;;  %v5273_v55 = vmul.f32 -1.442695, %v8716_v31 }
 0x302   : > { %v6094_v58 = vpop.eup %6093  ;;  %6113 = vrcp.f32 %v3266_v19  ;;  %v3267_v35 = vadd.f32 1.0, %v6092_v45  ;;  %v5075_v49 = vmul.f32 -1.442695, %v8723_v4  ;;  %v5282_v21 = vmul.f32 -1.442695, %v8729_v44 }
 0x303   : > { %v6096_v59 = vpop.eup %6095  ;;  %6115 = vrcp.f32 %v3068_v23  ;;  %v3069_v42 = vadd.f32 1.0, %v6094_v58  ;;  %v8740_v57 = vadd.f32 %v8227_v52, %v8381_v53  ;;  %v8744_v23 = vadd.f32 %v8233_v40, %v7590_v26  ;;  %v10353_v58 = vld [vmem:[#allocation15_spill] sm:$0xff] }
 0x304   : > { %v6098_v5 = vpop.eup %6097  ;;  %v4018_v9 = vmul.f32 %v6096_v59, %v8607_v12  ;;  %6117 = vrcp.f32 %v3267_v35  ;;  %v8748_v35 = vadd.f32 %v10353_v58, %v8393_v11 }
 0x305   : > { %v6100_v20 = vpop.eup %6099  ;;  %6119 = vrcp.f32 %v3069_v42  ;;  %v3276_v39 = vadd.f32 1.0, %v6098_v5  ;;  %v5084_v58 = vmul.f32 -1.442695, %v8740_v57 }
 0x306   : > { %v6102_v63 = vpop.eup %6101  ;;  %v4429_v22 = vadd.f32 %v4428_v50, %v4018_v9  ;;  %v4217_v19 = vmul.f32 %v6100_v20, %v8612_v33  ;;  %6121 = vpow2.f32 %v5273_v55  ;;  %v10354_v55 = vld [vmem:[#allocation13_spill] sm:$0xff]  ;;  %v10356_v20 = vld [vmem:[#allocation3_spill] sm:$0xff] }
 0x307   : > { %v6104_v45 = vpop.eup %6103  ;;  %6123 = vrcp.f32 %v3276_v39  ;;  %v3078_v12 = vadd.f32 1.0, %v6102_v63  ;;  %v8753_v52 = vadd.f32 %v10354_v55, %v7578_v56  ;;  %v10355_v9 = vld [vmem:[#allocation17_spill] sm:$0xff]  ;;  %v8761_v39 = vadd.f32 %v10356_v20, %v7590_v26  ;;  %v8766_v56 = vpop.f32.mrb[140].mxu0 }
 0x308   : > { %v6106_v59 = vpop.eup %6105  ;;  %v4412_v50 = vadd.f32 %v4411_v43, %v4217_v19  ;;  %v4019_v33 = vmul.f32 %v6104_v45, %v8619_v14  ;;  %6125 = vpow2.f32 %v5075_v49  ;;  %v8757_v40 = vadd.f32 %v10355_v9, %v8381_v53  ;;  %v8764_v49 = vpop.f32.mrb[100].mxu1  ;;  %10358 = vst [vmem:[#allocation13_spill] sm:$0xff] %v8766_v56 }
 0x309   : > { %v6108_v42 = vpop.eup %6107  ;;  %6127 = vrcp.f32 %v3078_v12  ;;  %v3277_v5 = vadd.f32 1.0, %v6106_v59  ;;  %v897_v14 = vsub.s32 6, %v10291_v62  ;;  %10357 = vst [vmem:[#allocation15_spill] sm:$0xff] %v8764_v49  ;;  %v8769_v59 = vpop.f32.mrb[101].mxu1 }
 0x30a   : > { %v6110_v63 = vpop.eup %6109  ;;  %v4466_v43 = vadd.f32 %v4465_v51, %v4019_v33  ;;  %v3079_v19 = vadd.f32 1.0, %v6108_v42  ;;  %6129 = vpow2.f32 %v5282_v21  ;;  %10359 = vst [vmem:[#allocation17_spill] sm:$0xff] %v8769_v59  ;;  %v5283_v51 = vmul.f32 -1.442695, %v8744_v23  ;;  %v8773_v33 = vpop.f32.mrb[141].mxu0 }
 0x30b   : > { %v6112_v45 = vpop.eup %6111  ;;  %6131 = vrcp.f32 %v3277_v5  ;;  %v3286_v12 = vadd.f32 1.0, %v6110_v63  ;;  %v5085_v21 = vmul.f32 -1.442695, %v8748_v35  ;;  %10360 = vst [vmem:[#allocation3_spill] sm:$0xff] %v8773_v33  ;;  %v5292_v5 = vmul.f32 -1.442695, %v8753_v52 }
 0x30c   : > { %v6114_v55 = vpop.eup %6113  ;;  %6133 = vrcp.f32 %v3079_v19  ;;  %v3088_v26 = vadd.f32 1.0, %v6112_v45  ;;  %v5094_v20 = vmul.f32 -1.442695, %v8757_v40  ;;  %v5293_v19 = vmul.f32 -1.442695, %v8761_v39  ;;  %v8783_v56 = vpop.f32.mrb[102].mxu1 }
 0x30d   : > { %v6116_v42 = vpop.eup %6115  ;;  %v4226_v9 = vmul.f32 %v6114_v55, %v8635_v13  ;;  %6135 = vrcp.f32 %v3286_v12  ;;  %v8781_v45 = vrot.slane %v8378_v48, %v897_v14  ;;  %10361 = vst [vmem:[#allocation53_spill] sm:$0xff] %v8783_v56  ;;  %v8785_v33 = vpop.f32.mrb[142].mxu0  ;;  %v10363_v55 = vld [vmem:[#allocation14_spill] sm:$0xff]  ;;  %v901_v48 = vsub.s32 7, %v10291_v62 }
 0x30e   : > { %v6118_v63 = vpop.eup %6117  ;;  %v4028_v59 = vmul.f32 %v6116_v42, %v8640_v17  ;;  %6137 = vrcp.f32 %v3088_v26  ;;  %10362 = vst [vmem:[#allocation54_spill] sm:$0xff] %v8785_v33  ;;  %v8791_v25 = vadd.f32 %v10363_v55, %v8393_v11  ;;  %v8795_v14 = vpop.f32.mrb[103].mxu1 }
 0x30f   : > { %v6120_v49 = vpop.eup %6119  ;;  %v4376_v13 = vadd.f32 %v8725_v16, %v4226_v9  ;;  %v4227_v12 = vmul.f32 %v6118_v63, %v8648_v0  ;;  %6139 = vpow2.f32 %v5084_v58  ;;  %10364 = vst [vmem:[#allocation14_spill] sm:$0xff] %v8795_v14  ;;  %v10365_v0 = vld [vmem:[#allocation5_spill] sm:$0xff]  ;;  %v8801_v58 = vpop.f32.mrb[143].mxu0 }
 0x310   : > { %v6122_v17 = vpop.eup %6121  ;;  %v4430_v26 = vadd.f32 %v4429_v22, %v4028_v59  ;;  %v4029_v42 = vmul.f32 %v6120_v49, %v8652_v24  ;;  %6141 = vpow2.f32 %v5283_v51  ;;  %v8799_v16 = vadd.f32 %v10365_v0, %v8381_v53  ;;  %10366 = vst [vmem:[#allocation5_spill] sm:$0xff] %v8801_v58  ;;  %v10367_v24 = vld [vmem:[#allocation16_spill] sm:$0xff] }
 0x311   : > { %v6124_v33 = vpop.eup %6123  ;;  %v4413_v56 = vadd.f32 %v4412_v50, %v4227_v12  ;;  %v3287_v1 = vadd.f32 1.0, %v6122_v17  ;;  %6143 = vpow2.f32 %v5085_v21  ;;  %v8806_v49 = vadd.f32 %v10367_v24, %v8781_v45  ;;  %v10368_v21 = vld [vmem:[#allocation31_spill] sm:$0xff] }
 0x312   : > { %v6126_v9 = vpop.eup %6125  ;;  %v4467_v63 = vadd.f32 %v4466_v43, %v4029_v42  ;;  %v4236_v22 = vmul.f32 %v6124_v33, %v8656_v41  ;;  %6145 = vpow2.f32 %v5292_v5  ;;  %v5095_v51 = vmul.f32 -1.442695, %v8791_v25  ;;  %v6846_v41 = vld [vmem:[%s10138_s4] sm:$0xff] }
 0x313   : > { %v6128_v59 = vpop.eup %6127  ;;  %6147 = vrcp.f32 %v3287_v1  ;;  %v3089_v50 = vadd.f32 1.0, %v6126_v9  ;;  %v8811_v12 = vadd.f32 %v10368_v21, %v8393_v11  ;;  %v8817_v33 = vrot.slane %v6846_v41, %v901_v48  ;;  %v10369_v21 = vld [vmem:[#allocation30_spill] sm:$0xff] }
 0x314   : > { %v6130_v55 = vpop.eup %6129  ;;  %v4377_v17 = vadd.f32 %v4376_v13, %v4236_v22  ;;  %v4038_v43 = vmul.f32 %v6128_v59, %v8662_v7  ;;  %6149 = vpow2.f32 %v5094_v20  ;;  %v5104_v42 = vmul.f32 -1.442695, %v8799_v16 }
 0x315   : > { %v6132_v5 = vpop.eup %6131  ;;  %6151 = vrcp.f32 %v3089_v50  ;;  %v3296_v1 = vadd.f32 1.0, %v6130_v55  ;;  %v4986_v13 = vmul.f32 -1.442695, %v8806_v49  ;;  %v5105_v22 = vmul.f32 -1.442695, %v8811_v12 }
 0x316   : > { %v6134_v0 = vpop.eup %6133  ;;  %v4431_v9 = vadd.f32 %v4430_v26, %v4038_v43  ;;  %v4237_v24 = vmul.f32 %v6132_v5, %v8677_v47  ;;  %6153 = vpow2.f32 %v5293_v19  ;;  %v8827_v55 = vadd.f32 %v10369_v21, %v8817_v33  ;;  %v8829_v26 = vpop.f32.mrb[104].mxu1 }
 0x317   : > { %v6136_v7 = vpop.eup %6135  ;;  %v4039_v20 = vmul.f32 %v6134_v0, %v8683_v28  ;;  %6155 = vrcp.f32 %v3296_v1  ;;  %10370 = vst [vmem:[#allocation16_spill] sm:$0xff] %v8829_v26  ;;  %v8831_v47 = vpop.f32.mrb[144].mxu0  ;;  %v10374_v1 = vld [vmem:[#allocation33_spill] sm:$0xff] }
 0x318   : > { %v6138_v48 = vpop.eup %6137  ;;  %v4414_v59 = vadd.f32 %v4413_v56, %v4237_v24  ;;  %v4246_v50 = vmul.f32 %v6136_v7, %v8688_v46  ;;  %6157 = vpow2.f32 %v5095_v51  ;;  %10371 = vst [vmem:[#allocation31_spill] sm:$0xff] %v8831_v47  ;;  %v8834_v41 = vpop.f32.mrb[105].mxu1  ;;  %v8840_v0 = vadd.f32 %v10374_v1, %v8381_v53 }
 0x319   : > { %v6140_v19 = vpop.eup %6139  ;;  %v4468_v43 = vadd.f32 %v4467_v63, %v4039_v20  ;;  %v4048_v28 = vmul.f32 %v6138_v48, %v8692_v29  ;;  %6159 = vpow2.f32 %v5104_v42  ;;  %10372 = vst [vmem:[#allocation30_spill] sm:$0xff] %v8834_v41  ;;  %v8836_v5 = vpop.f32.mrb[145].mxu0  ;;  %v4987_v42 = vmul.f32 -1.442695, %v8827_v55  ;;  %v10375_v20 = vld [vmem:[#allocation32_spill] sm:$0xff] }
 0x31a   : > { %10373 = vst [vmem:[#allocation55_spill] sm:$0xff] %v8836_v5  ;;  %v6142_v56 = vpop.eup %6141  ;;  %v4378_v46 = vadd.f32 %v4377_v17, %v4246_v50  ;;  %v3098_v51 = vadd.f32 1.0, %v6140_v19  ;;  %6161 = vpow2.f32 %v4986_v13  ;;  %v8847_v48 = vadd.f32 %v10375_v20, %v8781_v45 }
 0x31b   : > { %v6144_v24 = vpop.eup %6143  ;;  %v8842_v7 = vadd.f32 %v4431_v9, %v4048_v28  ;;  %v3297_v21 = vadd.f32 1.0, %v6142_v56  ;;  %6163 = vpow2.f32 %v5105_v22  ;;  %v5114_v9 = vmul.f32 -1.442695, %v8840_v0  ;;  %v8851_v28 = vpop.f32.mrb[106].mxu1 }
 0x31c   : > { %v6146_v63 = vpop.eup %6145  ;;  %6165 = vrcp.f32 %v3098_v51  ;;  %v3099_v29 = vadd.f32 1.0, %v6144_v24  ;;  %10376 = vst [vmem:[#allocation33_spill] sm:$0xff] %v8851_v28  ;;  %v8853_v51 = vpop.f32.mrb[146].mxu0  ;;  %v6872_v5 = vmov 1966171168  }
 0x31d   : > { %v6148_v17 = vpop.eup %6147  ;;  %6167 = vrcp.f32 %v3297_v21  ;;  %v3306_v13 = vadd.f32 1.0, %v6146_v63  ;;  %10377 = vst [vmem:[#allocation32_spill] sm:$0xff] %v8853_v51  ;;  %v4996_v21 = vmul.f32 -1.442695, %v8847_v48 }
 0x31e   : > { %v6150_v50 = vpop.eup %6149  ;;  %v4247_v19 = vmul.f32 %v6148_v17, %v8716_v31  ;;  %6169 = vrcp.f32 %v3099_v29  ;;  %v8857_v31 = vunpack.c.l.s4 %v6872_v5  ;;  %v10378_v17 = vld [vmem:[#allocation18_spill] sm:$0xff] }
 0x31f   : > { %v6152_v22 = vpop.eup %6151  ;;  %6171 = vrcp.f32 %v3306_v13  ;;  %v3108_v56 = vadd.f32 1.0, %v6150_v50  ;;  %v8861_v28 = vadd.f32 %v10378_v17, %v8393_v11 }
 0x320   : > { %v6154_v1 = vpop.eup %6153  ;;  %v4415_v24 = vadd.f32 %v4414_v59, %v4247_v19  ;;  %v4049_v20 = vmul.f32 %v6152_v22, %v8723_v4  ;;  %6173 = vpow2.f32 %v4987_v42  ;;  %v10379_v4 = vld [vmem:[#allocation34_spill] sm:$0xff]  ;;  %v8868_v42 = vpop.f32.mrb[107].mxu1 }
 0x321   : > { %v6156_v63 = vpop.eup %6155  ;;  %6175 = vrcp.f32 %v3108_v56  ;;  %v3307_v29 = vadd.f32 1.0, %v6154_v1  ;;  %v8866_v59 = vadd.f32 %v10379_v4, %v8817_v33  ;;  %10380 = vst [vmem:[#allocation18_spill] sm:$0xff] %v8868_v42  ;;  %v8870_v19 = vpop.f32.mrb[147].mxu0  ;;  %v10382_v56 = vld [vmem:[#allocation19_spill] sm:$0xff]  ;;  %v10384_v42 = vld [vmem:[#allocation22_spill] sm:$0xff] }
 0x322   : > { %v6158_v13 = vpop.eup %6157  ;;  %v4469_v50 = vadd.f32 %v4468_v43, %v4049_v20  ;;  %v4256_v51 = vmul.f32 %v6156_v63, %v8729_v44  ;;  %6177 = vpow2.f32 %v5114_v9  ;;  %10381 = vst [vmem:[#allocation34_spill] sm:$0xff] %v8870_v19  ;;  %v8874_v1 = vadd.f32 %v10382_v56, %v8381_v53  ;;  %v10383_v43 = vld [vmem:[#allocation20_spill] sm:$0xff] }
 0x323   : > { %v6160_v5 = vpop.eup %6159  ;;  %6179 = vrcp.f32 %v3307_v29  ;;  %v3109_v22 = vadd.f32 1.0, %v6158_v13  ;;  %v8878_v20 = vadd.f32 %v10383_v43, %v8781_v45  ;;  %v5115_v19 = vmul.f32 -1.442695, %v8861_v28 }
 0x324   : > { %v6162_v44 = vpop.eup %6161  ;;  %v4379_v9 = vadd.f32 %v4378_v46, %v4256_v51  ;;  %v3118_v63 = vadd.f32 1.0, %v6160_v5  ;;  %6181 = vpow2.f32 %v4996_v21  ;;  %v4997_v56 = vmul.f32 -1.442695, %v8866_v59  ;;  %v10385_v5 = vld [vmem:[#allocation4_spill] sm:$0xff] }
 0x325   : > { %v6164_v17 = vpop.eup %6163  ;;  %6183 = vrcp.f32 %v3109_v22  ;;  %v8885_v41 = vadd.f32 %v10384_v42, %v8393_v11  ;;  %v5124_v51 = vmul.f32 -1.442695, %v8874_v1  ;;  %v5006_v21 = vmul.f32 -1.442695, %v8878_v20  ;;  %v10387_v42 = vld [vmem:[#allocation47_spill] sm:$0xff] }
 0x326   : > { %v6166_v29 = vpop.eup %6165  ;;  %6185 = vrcp.f32 %v3118_v63  ;;  %v3119_v13 = vadd.f32 1.0, %v6164_v17  ;;  %v8892_v22 = vadd.f32 %v10385_v5, %v8817_v33  ;;  %v10386_v17 = vld [vmem:[#allocation21_spill] sm:$0xff]  ;;  %v8901_v26 = vadd.f32 %v10387_v42, %v8781_v45 }
 0x327   : > { %v6168_v43 = vpop.eup %6167  ;;  %v4058_v46 = vmul.f32 %v6166_v29, %v8740_v57  ;;  %v8897_v47 = vadd.f32 %v10386_v17, %v8381_v53  ;;  %v3000_v14 = vadd.f32 1.0, %v6162_v44 }
 0x328   : > { %v6170_v4 = vpop.eup %6169  ;;  %v4257_v63 = vmul.f32 %v6168_v43, %v8744_v23  ;;  %6187 = vrcp.f32 %v3119_v13  ;;  %v5125_v13 = vmul.f32 -1.442695, %v8885_v41  ;;  %v5007_v42 = vmul.f32 -1.442695, %v8892_v22 }
 0x329   : > { %v6172_v57 = vpop.eup %6171  ;;  %v4433_v29 = vadd.f32 %v8842_v7, %v4058_v46  ;;  %v4059_v58 = vmul.f32 %v6170_v4, %v8748_v35  ;;  %6189 = vpow2.f32 %v5115_v19  ;;  %v8912_v7 = vpop.f32.mrb[108].mxu1  ;;  %v5134_v44 = vmul.f32 -1.442695, %v8897_v47 }
 0x32a   : > { %v6174_v5 = vpop.eup %6173  ;;  %v4416_v27 = vadd.f32 %v4415_v24, %v4257_v63  ;;  %v4266_v23 = vmul.f32 %v6172_v57, %v8753_v52  ;;  %6191 = vpow2.f32 %v4997_v56  ;;  %v8914_v35 = vpop.f32.mrb[148].mxu0  ;;  %v5016_v46 = vmul.f32 -1.442695, %v8901_v26 }
 0x32b   : > { %v6176_v43 = vpop.eup %6175  ;;  %v4470_v17 = vadd.f32 %v4469_v50, %v4059_v58  ;;  %6193 = vpow2.f32 %v5124_v51  ;;  %10389 = vst [vmem:[#allocation19_spill] sm:$0xff] %v8914_v35  ;;  %v8918_v4 = vpop.f32.mrb[109].mxu1  ;;  %v3001_v56 = vadd.f32 1.0, %v6174_v5 }
 0x32c   : > { %v6178_v19 = vpop.eup %6177  ;;  %v4380_v24 = vadd.f32 %v4379_v9, %v4266_v23  ;;  %v4068_v52 = vmul.f32 %v6176_v43, %v8757_v40  ;;  %6195 = vpow2.f32 %v5006_v21  ;;  %10390 = vst [vmem:[#allocation20_spill] sm:$0xff] %v8918_v4  ;;  %v8920_v58 = vpop.f32.mrb[149].mxu0 }
 0x32d   : > { %10391 = vst [vmem:[#allocation22_spill] sm:$0xff] %v8920_v58  ;;  %v6180_v50 = vpop.eup %6179  ;;  %6197 = vrcp.f32 %v3000_v14  ;;  %v3128_v37 = vadd.f32 1.0, %v6178_v19  ;;  %v8923_v51 = vpop.f32.mrb[110].mxu1  ;;  %v5135_v58 = vmul.f32 -1.442695, %v8910_v32  ;;  %v10394_v14 = vld [vmem:[#allocation48_spill] sm:$0xff] }
 0x32e   : > { %10392 = vst [vmem:[#allocation4_spill] sm:$0xff] %v8923_v51  ;;  %v8925_v63 = vpop.f32.mrb[150].mxu0  ;;  %v6182_v9 = vpop.eup %6181  ;;  %v4381_v57 = vrot.slane %v4380_v24, 4  ;;  %v4434_v40 = vadd.f32 %v4433_v29, %v4068_v52  ;;  %v4267_v21 = vmul.f32 %v6180_v50, %v8761_v39  ;;  %6199 = vpow2.f32 %v5125_v13  ;;  %v10395_v39 = vld [vmem:[#allocation23_spill] sm:$0xff] }
 0x32f   : > { %10393 = vst [vmem:[#allocation21_spill] sm:$0xff] %v8925_v63  ;;  %v6184_v23 = vpop.eup %6183  ;;  %6201 = vrcp.f32 %v3128_v37  ;;  %v3010_v43 = vadd.f32 1.0, %v6182_v9  ;;  %v8931_v5 = vadd.f32 %v10394_v14, %v8817_v33  ;;  %v8937_v13 = vadd.f32 %v10395_v39, %v8381_v53  ;;  %v10396_v52 = vld [vmem:[#allocation7_spill] sm:$0xff]  ;;  %v8943_v37 = vpop.f32.mrb[111].mxu1 }
 0x330   : > { %v6186_v19 = vpop.eup %6185  ;;  %v4382_v4 = vadd.f32 %v4381_v57, %v4380_v24  ;;  %v4417_v51 = vadd.f32 %v4416_v27, %v4267_v21  ;;  %v4069_v63 = vmul.f32 %v6184_v23, %v8791_v25  ;;  %6203 = vpow2.f32 %v5007_v42  ;;  %10397 = vst [vmem:[#allocation47_spill] sm:$0xff] %v8943_v37  ;;  %v8945_v9 = vpop.f32.mrb[151].mxu0  ;;  %v10399_v23 = vld [vmem:[#allocation36_spill] sm:$0xff] }
 0x331   : > { %v4078_v29 = vmul.f32 %v6186_v19, %v8799_v16  ;;  %6205 = vrcp.f32 %v3010_v43  ;;  %v8941_v50 = vadd.f32 %v10396_v52, %v8781_v45  ;;  %10398 = vst [vmem:[#allocation35_spill] sm:$0xff] %v8945_v9  ;;  %v8950_v43 = vadd.f32 %v10399_v23, %v8393_v11  ;;  %v10405_v23 = vld [vmem:[#allocation38_spill] sm:$0xff] }
 0x332   : > { %v6188_v24 = vpop.eup %6187  ;;  %v4383_v27 = vrot.slane %v4382_v4, 2  ;;  %v4418_v57 = vrot.slane %v4417_v51, 4  ;;  %v4471_v25 = vadd.f32 %v4470_v17, %v4069_v63  ;;  %6207 = vrcp.f32 %v3001_v56 }
 0x333   : > { %v6190_v42 = vpop.eup %6189  ;;  %v4435_v16 = vadd.f32 %v4434_v40, %v4078_v29  ;;  %v4079_v21 = vmul.f32 %v6188_v24, %v8811_v12  ;;  %6209 = vpow2.f32 %v5134_v44  ;;  %v5017_v17 = vmul.f32 -1.442695, %v8931_v5  ;;  %v8961_v24 = vpop.f32.mrb[152].mxu0 }
 0x334   : > { %v6192_v14 = vpop.eup %6191  ;;  %v4384_v19 = vadd.f32 %v4383_v27, %v4382_v4  ;;  %v4419_v39 = vadd.f32 %v4418_v57, %v4417_v51  ;;  %v3129_v52 = vadd.f32 1.0, %v6190_v42  ;;  %6211 = vpow2.f32 %v5016_v46  ;;  %10402 = vst [vmem:[#allocation23_spill] sm:$0xff] %v8961_v24 }
 0x335   : > { %v6194_v9 = vpop.eup %6193  ;;  %v8952_v37 = vadd.f32 %v4471_v25, %v4079_v21  ;;  %v3011_v35 = vadd.f32 1.0, %v6192_v14  ;;  %6213 = vpow2.f32 %v5135_v58  ;;  %v10400_v29 = vunpack.c.0.s8 %v8857_v31  ;;  %v8963_v58 = vpop.f32.mrb[112].mxu1  ;;  %v10404_v21 = vld [vmem:[#allocation37_spill] sm:$0xff] }
 0x336   : > { %v6196_v56 = vpop.eup %6195  ;;  %v4385_v63 = vrot.slane %v4384_v19, 1  ;;  %v4420_v12 = vrot.slane %v4419_v39, 2  ;;  %6215 = vrcp.f32 %v3129_v52  ;;  %v3138_v44 = vadd.f32 1.0, %v6194_v9  ;;  %10403 = vst [vmem:[#allocation7_spill] sm:$0xff] %v8963_v58  ;;  %v8983_v24 = vpop.f32.mrb[113].mxu1 }
 0x337   : > { %v6198_v40 = vpop.eup %6197  ;;  %v8958_v4 = vsub.s32 %v10400_v29, %v10291_v62  ;;  %6217 = vrcp.f32 %v3011_v35  ;;  %v3020_v46 = vadd.f32 1.0, %v6196_v56  ;;  %v5144_v51 = vmul.f32 -1.442695, %v8937_v13  ;;  %10407 = vst [vmem:[#allocation36_spill] sm:$0xff] %v8983_v24 }
 0x338   : > { %v6200_v27 = vpop.eup %6199  ;;  %v4421_v57 = vadd.f32 %v4420_v12, %v4419_v39  ;;  %6219 = vrcp.f32 %v3138_v44  ;;  %v5026_v25 = vmul.f32 -1.442695, %v8941_v50  ;;  %v5145_v9 = vmul.f32 -1.442695, %v8950_v43  ;;  %v8976_v12 = vpop.f32.mrb[153].mxu0 }
 0x339   : > { %10401 = vst [vmem:[#allocation48_spill] sm:$0xff] %v8958_v4  ;;  %v6202_v42 = vpop.eup %6201  ;;  %6221 = vrcp.f32 %v3020_v46  ;;  %v3139_v31 = vadd.f32 1.0, %v6200_v27  ;;  %v8969_v35 = vadd.f32 %v10404_v21, %v8817_v33  ;;  %v8973_v14 = vadd.f32 %v10405_v23, %v8381_v53  ;;  %v10406_v21 = vld [vmem:[#allocation39_spill] sm:$0xff] }
 0x33a   : > { %v6204_v52 = vpop.eup %6203  ;;  %v4386_v56 = vadd.f32 %v4385_v63, %v4384_v19  ;;  %v4422_v29 = vrot.slane %v4421_v57, 1  ;;  %v4088_v39 = vmul.f32 %v6202_v42, %v8840_v0  ;;  %6223 = vpow2.f32 %v5017_v17 }
 0x33b   : > { %v6206_v44 = vpop.eup %6205  ;;  %v3960_v46 = vmul.f32 %v6198_v40, %v8806_v49  ;;  %6225 = vrcp.f32 %v3139_v31  ;;  %v3021_v27 = vadd.f32 1.0, %v6204_v52  ;;  %v8981_v58 = vadd.f32 %v10406_v21, %v8781_v45  ;;  %v10408_v40 = vld [vmem:[#allocation49_spill] sm:$0xff]  ;;  %v8992_v31 = vpop.f32.mrb[154].mxu0 }
 0x33c   : > { %v6208_v23 = vpop.eup %6207  ;;  %v4423_v62 = vadd.f32 %v4422_v29, %v4421_v57  ;;  %v4436_v19 = vadd.f32 %v4435_v16, %v4088_v39  ;;  %v3970_v63 = vmul.f32 %v6206_v44, %v8847_v48  ;;  %6227 = vpow2.f32 %v5144_v51  ;;  %v10409_v29 = vld [vmem:[#allocation50_spill] sm:$0xff] }
 0x33d   : > { %v6210_v0 = vpop.eup %6209  ;;  %6229 = vrcp.f32 %v3021_v27  ;;  %v5027_v17 = vmul.f32 -1.442695, %v8969_v35  ;;  %v5154_v49 = vmul.f32 -1.442695, %v8973_v14  ;;  %v8990_v42 = vadd.f32 %v10408_v40, %v8393_v11 }
 0x33e   : > { %v6212_v52 = vpop.eup %6211  ;;  %v4657_v21 = vcombine.low %v4386_v56, %v4423_v62  ;;  %v4498_v24 = vadd.f32 %v3970_v63, %v3960_v46  ;;  %v3148_v57 = vadd.f32 1.0, %v6210_v0  ;;  %6231 = vpow2.f32 %v5026_v25  ;;  %v9008_v56 = vpop.f32.mrb[114].mxu1  ;;  %v10413_v0 = vld [vmem:[#allocation25_spill] sm:$0xff] }
 0x33f   : > { %v6214_v16 = vpop.eup %6213  ;;  %v3030_v48 = vadd.f32 1.0, %v6212_v52  ;;  %6233 = vpow2.f32 %v5145_v9  ;;  %v5036_v51 = vmul.f32 -1.442695, %v8981_v58  ;;  %v8997_v39 = vadd.f32 %v10409_v29, %v8817_v33  ;;  %v9022_v29 = vpop.f32.mrb[115].mxu1 }
 0x340   : > { %v6216_v44 = vpop.eup %6215  ;;  %v10410_v27 = vcombine.low %v8547_v54, %v8551_v61  ;;  %v9006_v62 = vrot.slane %v4657_v21, %v8958_v4  ;;  %6235 = vrcp.f32 %v3148_v57  ;;  %v3149_v25 = vadd.f32 1.0, %v6214_v16  ;;  %v9020_v16 = vpop.f32.mrb[155].mxu0 }
 0x341   : > { %v6218_v9 = vpop.eup %6217  ;;  %v4089_v46 = vmul.f32 %v6216_v44, %v8861_v28  ;;  %6237 = vrcp.f32 %v3030_v48  ;;  %v5155_v63 = vmul.f32 -1.442695, %v8990_v42  ;;  %v9014_v52 = vadd.f32 %v10413_v0, %v8381_v53 }
 0x342   : > { %v9003_v40 = vrot.slane %v10410_v27, %v8958_v4  ;;  %10412 = vst [vmem:[#allocation38_spill] sm:$0xff] %v9006_v62  ;;  %v6220_v54 = vpop.eup %6219  ;;  %v3961_v21 = vmul.f32 %v6208_v23, %v8827_v55  ;;  %v3971_v57 = vmul.f32 %v6218_v9, %v8866_v59  ;;  %6239 = vrcp.f32 %v3149_v25  ;;  %v10414_v55 = vld [vmem:[#allocation51_spill] sm:$0xff] }
 0x343   : > { %v6222_v28 = vpop.eup %6221  ;;  %v4473_v48 = vadd.f32 %v8952_v37, %v4089_v46  ;;  %v4098_v44 = vmul.f32 %v6220_v54, %v8874_v1  ;;  %6241 = vpow2.f32 %v5027_v17  ;;  %v5037_v27 = vmul.f32 -1.442695, %v8997_v39  ;;  %v10415_v37 = vld [vmem:[#allocation6_spill] sm:$0xff] }
 0x344   : > { %10411 = vst [vmem:[#allocation37_spill] sm:$0xff] %v9003_v40  ;;  %v6224_v0 = vpop.eup %6223  ;;  %v4535_v4 = vadd.f32 %v3971_v57, %v3961_v21  ;;  %v3980_v61 = vmul.f32 %v6222_v28, %v8878_v20  ;;  %6243 = vpow2.f32 %v5154_v49  ;;  %v9030_v59 = vadd.f32 %v10414_v55, %v8781_v45  ;;  %v10416_v57 = vld [vmem:[#allocation52_spill] sm:$0xff] }
 0x345   : > { %v6226_v23 = vpop.eup %6225  ;;  %v4437_v25 = vadd.f32 %v4436_v19, %v4098_v44  ;;  %v3031_v9 = vadd.f32 1.0, %v6224_v0  ;;  %6245 = vpow2.f32 %v5036_v51  ;;  %v9034_v46 = vadd.f32 %v10415_v37, %v8393_v11  ;;  %v9043_v0 = vpop.f32.mrb[156].mxu0 }
 0x346   : > { %v6228_v1 = vpop.eup %6227  ;;  %v4499_v17 = vadd.f32 %v4498_v24, %v3980_v61  ;;  %v4099_v54 = vmul.f32 %v6226_v23, %v8885_v41  ;;  %6247 = vpow2.f32 %v5155_v63  ;;  %v5164_v20 = vmul.f32 -1.442695, %v9014_v52  ;;  %v9045_v24 = vpop.f32.mrb[116].mxu1 }
 0x347   : > { %v6230_v49 = vpop.eup %6229  ;;  %6249 = vrcp.f32 %v3031_v9  ;;  %v3158_v21 = vadd.f32 1.0, %v6228_v1  ;;  %v9040_v28 = vadd.f32 %v10416_v57, %v8817_v33  ;;  %v5046_v61 = vmul.f32 -1.442695, %v9030_v59  ;;  %v9048_v55 = vpop.f32.mrb[157].mxu0  ;;  %v10417_v57 = vld [vmem:[#allocation24_spill] sm:$0xff] }
 0x348   : > { %v6232_v19 = vpop.eup %6231  ;;  %v4474_v51 = vadd.f32 %v4473_v48, %v4099_v54  ;;  %v3981_v44 = vmul.f32 %v6230_v49, %v8892_v22  ;;  %6251 = vpow2.f32 %v5037_v27  ;;  %v5165_v48 = vmul.f32 -1.442695, %v9034_v46  ;;  %v9051_v1 = vpop.f32.mrb[117].mxu1 }
 0x349   : > { %v6234_v41 = vpop.eup %6233  ;;  %6253 = vrcp.f32 %v3158_v21  ;;  %v3040_v63 = vadd.f32 1.0, %v6232_v19  ;;  %v5047_v54 = vmul.f32 -1.442695, %v9040_v28  ;;  %v9058_v19 = vadd.f32 %v10417_v57, %v8381_v53 }
 0x34a   : > { %v6236_v23 = vpop.eup %6235  ;;  %v4536_v9 = vadd.f32 %v4535_v4, %v3981_v44  ;;  %v3159_v37 = vadd.f32 1.0, %v6234_v41  ;;  %6255 = vpow2.f32 %v5164_v20  ;;  %v9060_v4 = vpop.f32.mrb[158].mxu0 }
 0x34b   : > { %v6238_v22 = vpop.eup %6237  ;;  %v4108_v27 = vmul.f32 %v6236_v23, %v8897_v47  ;;  %6257 = vrcp.f32 %v3040_v63  ;;  %10418 = vst [vmem:[#allocation39_spill] sm:$0xff] %v9060_v4  ;;  %v9062_v20 = vpop.f32.mrb[118].mxu1 }
 0x34c   : > { %v6240_v49 = vpop.eup %6239  ;;  %v3990_v21 = vmul.f32 %v6238_v22, %v8901_v26  ;;  %6259 = vrcp.f32 %v3159_v37  ;;  %10419 = vst [vmem:[#allocation49_spill] sm:$0xff] %v9062_v20  ;;  %v10420_v26 = vld [vmem:[#allocation40_spill] sm:$0xff] }
 0x34d   : > { %v6242_v44 = vpop.eup %6241  ;;  %v4438_v41 = vadd.f32 %v4437_v25, %v4108_v27  ;;  %v4109_v62 = vmul.f32 %v6240_v49, %v8910_v32  ;;  %6261 = vpow2.f32 %v5046_v61  ;;  %v9067_v37 = vadd.f32 %v10420_v26, %v8781_v45  ;;  %v10421_v32 = vld [vmem:[#allocation41_spill] sm:$0xff] }
 0x34e   : > { %v6244_v47 = vpop.eup %6243  ;;  %v4500_v63 = vadd.f32 %v4499_v17, %v3990_v21  ;;  %v3041_v23 = vadd.f32 1.0, %v6242_v44  ;;  %6263 = vpow2.f32 %v5165_v48  ;;  %v5174_v25 = vmul.f32 -1.442695, %v9058_v19  ;;  %v10422_v27 = vld [vmem:[#allocation9_spill] sm:$0xff] }
 0x34f   : > { %v6246_v22 = vpop.eup %6245  ;;  %v4475_v57 = vadd.f32 %v4474_v51, %v4109_v62  ;;  %v3168_v40 = vadd.f32 1.0, %v6244_v47  ;;  %6265 = vpow2.f32 %v5047_v54  ;;  %v9072_v61 = vadd.f32 %v10421_v32, %v8393_v11  ;;  %v10423_v47 = vld [vmem:[#allocation27_spill] sm:$0xff]  ;;  %v9086_v32 = vpop.f32.mrb[159].mxu0 }
 0x350   : > { %v6248_v4 = vpop.eup %6247  ;;  %6267 = vrcp.f32 %v3041_v23  ;;  %v3050_v20 = vadd.f32 1.0, %v6246_v22  ;;  %v9076_v49 = vadd.f32 %v10422_v27, %v8817_v33  ;;  %v5056_v51 = vmul.f32 -1.442695, %v9067_v37  ;;  %10424 = vst [vmem:[#allocation50_spill] sm:$0xff] %v9086_v32 }
 0x351   : > { %v6250_v17 = vpop.eup %6249  ;;  %6269 = vrcp.f32 %v3168_v40  ;;  %v3169_v48 = vadd.f32 1.0, %v6248_v4  ;;  %v9082_v23 = vadd.f32 %v10423_v47, %v8381_v53  ;;  %v5175_v22 = vmul.f32 -1.442695, %v9072_v61 }
 0x352   : > { %v6252_v21 = vpop.eup %6251  ;;  %v3991_v62 = vmul.f32 %v6250_v17, %v8931_v5  ;;  %6271 = vrcp.f32 %v3050_v20  ;;  %v5057_v17 = vmul.f32 -1.442695, %v9076_v49 }
 0x353   : > { %v6254_v54 = vpop.eup %6253  ;;  %6273 = vrcp.f32 %v3169_v48  ;;  %v3051_v44 = vadd.f32 1.0, %v6252_v21  ;;  %v9089_v48 = vpop.f32.mrb[119].mxu1 }
 0x354   : > { %v6256_v26 = vpop.eup %6255  ;;  %v4537_v40 = vadd.f32 %v4536_v9, %v3991_v62  ;;  %v4118_v4 = vmul.f32 %v6254_v54, %v8937_v13  ;;  %6275 = vpow2.f32 %v5174_v25  ;;  %10425 = vst [vmem:[#allocation25_spill] sm:$0xff] %v9089_v48  ;;  %v10426_v9 = vld [vmem:[#allocation26_spill] sm:$0xff]  ;;  %v5184_v54 = vmul.f32 -1.442695, %v9082_v23 }
 0x355   : > { %v6258_v5 = vpop.eup %6257  ;;  %6277 = vrcp.f32 %v3051_v44  ;;  %v3178_v20 = vadd.f32 1.0, %v6256_v26  ;;  %v9094_v13 = vadd.f32 %v10426_v9, %v8781_v45  ;;  %v10427_v44 = vld [vmem:[#allocation29_spill] sm:$0xff] }
 0x356   : > { %v6260_v27 = vpop.eup %6259  ;;  %v4439_v21 = vadd.f32 %v4438_v41, %v4118_v4  ;;  %v4000_v47 = vmul.f32 %v6258_v5, %v8941_v50  ;;  %6279 = vpow2.f32 %v5056_v51  ;;  %v9100_v26 = vadd.f32 %v10427_v44, %v8393_v11  ;;  %v10428_v50 = vld [vmem:[#allocation42_spill] sm:$0xff] }
 0x357   : > { %v6262_v25 = vpop.eup %6261  ;;  %v4119_v62 = vmul.f32 %v6260_v27, %v8950_v43  ;;  %6281 = vrcp.f32 %v3178_v20  ;;  %v9104_v51 = vadd.f32 %v10428_v50, %v8817_v33  ;;  %v9108_v43 = vadd.f32 %v8577_v38, %v8381_v53 }
 0x358   : > { %v6264_v48 = vpop.eup %6263  ;;  %v4501_v32 = vadd.f32 %v4500_v63, %v4000_v47  ;;  %v3060_v41 = vadd.f32 1.0, %v6262_v25  ;;  %6283 = vpow2.f32 %v5175_v22  ;;  %v5066_v44 = vmul.f32 -1.442695, %v9094_v13 }
 0x359   : > { %v6266_v4 = vpop.eup %6265  ;;  %v4476_v5 = vadd.f32 %v4475_v57, %v4119_v62  ;;  %v3179_v9 = vadd.f32 1.0, %v6264_v48  ;;  %6285 = vpow2.f32 %v5057_v17  ;;  %v5185_v47 = vmul.f32 -1.442695, %v9100_v26  ;;  %v9117_v17 = vpop.f32.mrb[160].mxu0 }
 0x35a   : > { %v6268_v20 = vpop.eup %6267  ;;  %6287 = vrcp.f32 %v3060_v41  ;;  %v3061_v27 = vadd.f32 1.0, %v6266_v4  ;;  %v9115_v57 = vadd.f32 %v8583_v2, %v8781_v45  ;;  %10429 = vst [vmem:[#allocation51_spill] sm:$0xff] %v9117_v17  ;;  %v9119_v48 = vpop.f32.mrb[120].mxu1  ;;  %v5067_v62 = vmul.f32 -1.442695, %v9104_v51 }
 0x35b   : > { %v6270_v63 = vpop.eup %6269  ;;  %v4001_v22 = vmul.f32 %v6268_v20, %v8969_v35  ;;  %6289 = vrcp.f32 %v3179_v9  ;;  %10430 = vst [vmem:[#allocation6_spill] sm:$0xff] %v9119_v48  ;;  %v9123_v41 = vpop.f32.mrb[161].mxu0  ;;  %v5194_v2 = vmul.f32 -1.442695, %v9108_v43 }
 0x35c   : > { %v6272_v38 = vpop.eup %6271  ;;  %v4128_v25 = vmul.f32 %v6270_v63, %v8973_v14  ;;  %6291 = vrcp.f32 %v3061_v27  ;;  %v9125_v35 = vpop.f32.mrb[121].mxu1  ;;  %v9132_v14 = vadd.f32 %v8595_v36, %v8393_v11 }
 0x35d   : > { %10431 = vst [vmem:[#allocation52_spill] sm:$0xff] %v9125_v35  ;;  %v6274_v50 = vpop.eup %6273  ;;  %v4538_v4 = vadd.f32 %v4537_v40, %v4001_v22  ;;  %v4010_v9 = vmul.f32 %v6272_v38, %v8981_v58  ;;  %6293 = vpow2.f32 %v5184_v54  ;;  %v9134_v27 = vpop.f32.mrb[162].mxu0  ;;  %v5076_v58 = vmul.f32 -1.442695, %v9115_v57 }
 0x35e   : > { %v6276_v20 = vpop.eup %6275  ;;  %v4440_v17 = vadd.f32 %v4439_v21, %v4128_v25  ;;  %v4129_v48 = vmul.f32 %v6274_v50, %v8990_v42  ;;  %6295 = vpow2.f32 %v5066_v44  ;;  %v9136_v63 = vpop.f32.mrb[122].mxu1  ;;  %v9142_v42 = vadd.f32 %v8600_v60, %v8817_v33 }
 0x35f   : > { %v6278_v35 = vpop.eup %6277  ;;  %v4502_v40 = vadd.f32 %v4501_v32, %v4010_v9  ;;  %v3188_v22 = vadd.f32 1.0, %v6276_v20  ;;  %6297 = vpow2.f32 %v5185_v47  ;;  %v9144_v36 = vpop.f32.mrb[163].mxu0  ;;  %v9148_v32 = vadd.f32 %v8621_v10, %v8381_v53 }
 0x360   : > { %v6280_v54 = vpop.eup %6279  ;;  %v4477_v38 = vadd.f32 %v4476_v5, %v4129_v48  ;;  %v4011_v21 = vmul.f32 %v6278_v35, %v8997_v39  ;;  %6299 = vpow2.f32 %v5067_v62  ;;  %v9150_v47 = vpop.f32.mrb[123].mxu1  ;;  %v5195_v62 = vmul.f32 -1.442695, %v9132_v14 }
 0x361   : > { %v6282_v44 = vpop.eup %6281  ;;  %6301 = vrcp.f32 %v3188_v22  ;;  %v3070_v25 = vadd.f32 1.0, %v6280_v54  ;;  %v5077_v22 = vmul.f32 -1.442695, %v9142_v42 }
 0x362   : > { %v6284_v50 = vpop.eup %6283  ;;  %v4539_v5 = vadd.f32 %v4538_v4, %v4011_v21  ;;  %v4138_v39 = vmul.f32 %v6282_v44, %v9014_v52  ;;  %6303 = vpow2.f32 %v5194_v2  ;;  %v5204_v4 = vmul.f32 -1.442695, %v9148_v32 }
 0x363   : > { %v6286_v48 = vpop.eup %6285  ;;  %6305 = vrcp.f32 %v3070_v25  ;;  %v3189_v60 = vadd.f32 1.0, %v6284_v50  ;;  %v9160_v2 = vadd.f32 %v8623_v8, %v8781_v45  ;;  %v9169_v8 = vpop.f32.mrb[124].mxu1 }
 0x364   : > { %v6288_v35 = vpop.eup %6287  ;;  %v4441_v9 = vadd.f32 %v4440_v17, %v4138_v39  ;;  %v3071_v20 = vadd.f32 1.0, %v6286_v48  ;;  %6307 = vpow2.f32 %v5076_v58 }
 0x365   : > { %v6290_v10 = vpop.eup %6289  ;;  %v4020_v54 = vmul.f32 %v6288_v35, %v9030_v59  ;;  %6309 = vrcp.f32 %v3189_v60  ;;  %v9165_v59 = vadd.f32 %v8627_v18, %v8393_v11  ;;  %v9167_v35 = vpop.f32.mrb[164].mxu0 }
 0x366   : > { %v6292_v21 = vpop.eup %6291  ;;  %v4139_v52 = vmul.f32 %v6290_v10, %v9034_v46  ;;  %6311 = vrcp.f32 %v3071_v20  ;;  %v9176_v20 = vpop.f32.mrb[165].mxu0 }
 0x367   : > { %v6294_v44 = vpop.eup %6293  ;;  %v4503_v17 = vadd.f32 %v4502_v40, %v4020_v54  ;;  %v4021_v58 = vmul.f32 %v6292_v21, %v9040_v28  ;;  %6313 = vpow2.f32 %v5195_v62  ;;  %v5086_v62 = vmul.f32 -1.442695, %v9160_v2 }
 0x368   : > { %v6296_v25 = vpop.eup %6295  ;;  %v4478_v50 = vadd.f32 %v4477_v38, %v4139_v52  ;;  %v3198_v39 = vadd.f32 1.0, %v6294_v44  ;;  %6315 = vpow2.f32 %v5077_v22  ;;  %v9174_v38 = vadd.f32 %v8629_v34, %v8817_v33  ;;  %v10432_v34 = vld [vmem:[#allocation43_spill] sm:$0xff] }
 0x369   : > { %v6298_v48 = vpop.eup %6297  ;;  %v4540_v46 = vadd.f32 %v4539_v5, %v4021_v58  ;;  %v3080_v60 = vadd.f32 1.0, %v6296_v25  ;;  %6317 = vpow2.f32 %v5204_v4  ;;  %v9180_v22 = vadd.f32 %v8642_v30, %v8381_v53  ;;  %v9188_v58 = vpop.f32.mrb[125].mxu1 }
 0x36a   : > { %v6300_v40 = vpop.eup %6299  ;;  %6319 = vrcp.f32 %v3198_v39  ;;  %v3199_v28 = vadd.f32 1.0, %v6298_v48  ;;  %v5205_v4 = vmul.f32 -1.442695, %v9165_v59  ;;  %v9186_v44 = vadd.f32 %v10432_v34, %v8781_v45 }
 0x36b   : > { %v6302_v18 = vpop.eup %6301  ;;  %6321 = vrcp.f32 %v3080_v60  ;;  %v3081_v5 = vadd.f32 1.0, %v6300_v40  ;;  %v5087_v48 = vmul.f32 -1.442695, %v9174_v38  ;;  %v5214_v40 = vmul.f32 -1.442695, %v9180_v22 }
 0x36c   : > { %v6304_v10 = vpop.eup %6303  ;;  %v4148_v54 = vmul.f32 %v6302_v18, %v9058_v19  ;;  %6323 = vrcp.f32 %v3199_v28 }
 0x36d   : > { %v6306_v21 = vpop.eup %6305  ;;  %6325 = vrcp.f32 %v3081_v5  ;;  %v3208_v52 = vadd.f32 1.0, %v6304_v10  ;;  %v10433_v10 = vld [vmem:[#allocation44_spill] sm:$0xff] }
 0x36e   : > { %v6308_v25 = vpop.eup %6307  ;;  %v4442_v39 = vadd.f32 %v4441_v9, %v4148_v54  ;;  %v4030_v30 = vmul.f32 %v6306_v21, %v9067_v37  ;;  %6327 = vpow2.f32 %v5086_v62  ;;  %v9196_v34 = vadd.f32 %v10433_v10, %v8393_v11  ;;  %v9198_v9 = vpop.f32.mrb[166].mxu0 }
 0x36f   : > { %v6310_v19 = vpop.eup %6309  ;;  %6329 = vrcp.f32 %v3208_v52  ;;  %v3090_v60 = vadd.f32 1.0, %v6308_v25  ;;  %10434 = vst [vmem:[#allocation24_spill] sm:$0xff] %v9198_v9  ;;  %v9200_v37 = vpop.f32.mrb[126].mxu1  ;;  %v5096_v21 = vmul.f32 -1.442695, %v9186_v44  ;;  %v10436_v52 = vld [vmem:[#allocation8_spill] sm:$0xff] }
 0x370   : > { %v6312_v28 = vpop.eup %6311  ;;  %v4504_v18 = vadd.f32 %v4503_v17, %v4030_v30  ;;  %v4149_v5 = vmul.f32 %v6310_v19, %v9072_v61  ;;  %6331 = vpow2.f32 %v5205_v4  ;;  %10435 = vst [vmem:[#allocation40_spill] sm:$0xff] %v9200_v37  ;;  %v9206_v17 = vadd.f32 %v10436_v52, %v8817_v33 }
 0x371   : > { %v6314_v62 = vpop.eup %6313  ;;  %v4031_v54 = vmul.f32 %v6312_v28, %v9076_v49  ;;  %6333 = vrcp.f32 %v3090_v60  ;;  %v9210_v30 = vadd.f32 %v8694_v3, %v8381_v53  ;;  %v9214_v49 = vadd.f32 %v8696_v6, %v8781_v45 }
 0x372   : > { %v6316_v61 = vpop.eup %6315  ;;  %v4479_v4 = vadd.f32 %v4478_v50, %v4149_v5  ;;  %v3209_v25 = vadd.f32 1.0, %v6314_v62  ;;  %6335 = vpow2.f32 %v5087_v48  ;;  %v5215_v52 = vmul.f32 -1.442695, %v9196_v34  ;;  %v9225_v5 = vpop.f32.mrb[127].mxu1 }
 0x373   : > { %v6318_v19 = vpop.eup %6317  ;;  %v4541_v10 = vadd.f32 %v4540_v46, %v4031_v54  ;;  %v3091_v37 = vadd.f32 1.0, %v6316_v61  ;;  %6337 = vpow2.f32 %v5214_v40  ;;  %v9219_v50 = vadd.f32 %v8700_v15, %v8393_v11  ;;  %v9223_v40 = vpop.f32.mrb[167].mxu0  ;;  %10438 = vst [vmem:[#allocation9_spill] sm:$0xff] %v9225_v5 }
 0x374   : > { %v6320_v60 = vpop.eup %6319  ;;  %6339 = vrcp.f32 %v3209_v25  ;;  %v3218_v28 = vadd.f32 1.0, %v6318_v19  ;;  %v5097_v46 = vmul.f32 -1.442695, %v9206_v17  ;;  %10437 = vst [vmem:[#allocation41_spill] sm:$0xff] %v9223_v40  ;;  %v5224_v54 = vmul.f32 -1.442695, %v9210_v30 }
 0x375   : > { %v6322_v48 = vpop.eup %6321  ;;  %v4158_v3 = vmul.f32 %v6320_v60, %v9082_v23  ;;  %6341 = vrcp.f32 %v3091_v37  ;;  %v5106_v23 = vmul.f32 -1.442695, %v9214_v49  ;;  %v5225_v5 = vmul.f32 -1.442695, %v9219_v50 }
 0x376   : > { %v6324_v6 = vpop.eup %6323  ;;  %v4040_v62 = vmul.f32 %v6322_v48, %v9094_v13  ;;  %6343 = vrcp.f32 %v3218_v28  ;;  %v10439_v28 = vld [vmem:[#allocation28_spill] sm:$0xff] }
 0x377   : > { %v6326_v61 = vpop.eup %6325  ;;  %v4443_v25 = vadd.f32 %v4442_v39, %v4158_v3  ;;  %v4159_v15 = vmul.f32 %v6324_v6, %v9100_v26  ;;  %6345 = vpow2.f32 %v5096_v21  ;;  %v9235_v48 = vadd.f32 %v10439_v28, %v8817_v33 }
 0x378   : > { %v6328_v37 = vpop.eup %6327  ;;  %v4505_v19 = vadd.f32 %v4504_v18, %v4040_v62  ;;  %v4041_v60 = vmul.f32 %v6326_v61, %v9104_v51  ;;  %6347 = vpow2.f32 %v5215_v52  ;;  %v10440_v18 = vld [vmem:[#allocation45_spill] sm:$0xff]  ;;  %v9248_v62 = vpop.f32.mrb[128].mxu1 }
 0x379   : > { %v6330_v40 = vpop.eup %6329  ;;  %v4480_v9 = vadd.f32 %v4479_v4, %v4159_v15  ;;  %v3100_v13 = vadd.f32 1.0, %v6328_v37  ;;  %6349 = vpow2.f32 %v5097_v46  ;;  %v9240_v3 = vadd.f32 %v10440_v18, %v8381_v53  ;;  %v10441_v4 = vld [vmem:[#allocation46_spill] sm:$0xff]  ;;  %v9246_v46 = vpop.f32.mrb[168].mxu0  ;;  %10443 = vst [vmem:[#allocation26_spill] sm:$0xff] %v9248_v62 }
 0x37a   : > { %v6332_v39 = vpop.eup %6331  ;;  %v4542_v26 = vadd.f32 %v4541_v10, %v4041_v60  ;;  %v4168_v21 = vmul.f32 %v6330_v40, %v9108_v43  ;;  %6351 = vpow2.f32 %v5224_v54  ;;  %v9244_v6 = vadd.f32 %v10441_v4, %v8781_v45  ;;  %10442 = vst [vmem:[#allocation27_spill] sm:$0xff] %v9246_v46  ;;  %v9251_v40 = vpop.f32.mrb[169].mxu0 }
 0x37b   : > { %v6334_v51 = vpop.eup %6333  ;;  %6353 = vrcp.f32 %v3100_v13  ;;  %v3219_v52 = vadd.f32 1.0, %v6332_v39  ;;  %10444 = vst [vmem:[#allocation29_spill] sm:$0xff] %v9251_v40  ;;  %v9253_v54 = vpop.f32.mrb[129].mxu1  ;;  %v5107_v60 = vmul.f32 -1.442695, %v9235_v48 }
 0x37c   : > { %v6336_v61 = vpop.eup %6335  ;;  %v4444_v10 = vadd.f32 %v4443_v25, %v4168_v21  ;;  %v4050_v43 = vmul.f32 %v6334_v51, %v9115_v57  ;;  %6355 = vpow2.f32 %v5106_v23  ;;  %10445 = vst [vmem:[#allocation42_spill] sm:$0xff] %v9253_v54  ;;  %v9256_v13 = vpop.f32.mrb[170].mxu0  ;;  %v5234_v25 = vmul.f32 -1.442695, %v9240_v3 }
 0x37d   : > { %v6338_v15 = vpop.eup %6337  ;;  %6357 = vrcp.f32 %v3219_v52  ;;  %v3101_v37 = vadd.f32 1.0, %v6336_v61  ;;  %10446 = vst [vmem:[#allocation43_spill] sm:$0xff] %v9256_v13  ;;  %v9259_v21 = vpop.f32.mrb[130].mxu1  ;;  %v5116_v51 = vmul.f32 -1.442695, %v9244_v6  ;;  %v10448_v61 = vld [vmem:[#allocation11_spill] sm:$0xff] }
 0x37e   : > { %v6340_v28 = vpop.eup %6339  ;;  %v4506_v39 = vadd.f32 %v4505_v19, %v4050_v43  ;;  %v3228_v18 = vadd.f32 1.0, %v6338_v15  ;;  %6359 = vpow2.f32 %v5225_v5  ;;  %10447 = vst [vmem:[#allocation44_spill] sm:$0xff] %v9259_v21  ;;  %v9266_v13 = vadd.f32 %v10448_v61, %v8393_v11  ;;  %v9268_v19 = vpop.f32.mrb[171].mxu0 }
 0x37f   : > { %v6342_v57 = vpop.eup %6341  ;;  %v4169_v23 = vmul.f32 %v6340_v28, %v9132_v14  ;;  %6361 = vrcp.f32 %v3101_v37  ;;  %10449 = vst [vmem:[#allocation8_spill] sm:$0xff] %v9268_v19  ;;  %v9270_v5 = vpop.f32.mrb[131].mxu1 }
 0x380   : > { %v6344_v52 = vpop.eup %6343  ;;  %v4051_v4 = vmul.f32 %v6342_v57, %v9142_v42  ;;  %6363 = vrcp.f32 %v3228_v18  ;;  %10450 = vst [vmem:[#allocation28_spill] sm:$0xff] %v9270_v5  ;;  %v10451_v42 = vld [vmem:[#allocation10_spill] sm:$0xff] }
 0x381   : > { %v6346_v43 = vpop.eup %6345  ;;  %v4481_v15 = vadd.f32 %v4480_v9, %v4169_v23  ;;  %v4178_v21 = vmul.f32 %v6344_v52, %v9148_v32  ;;  %6365 = vpow2.f32 %v5107_v60  ;;  %v9275_v18 = vadd.f32 %v10451_v42, %v8817_v33  ;;  %v10452_v32 = vld [vmem:[#allocation15_spill] sm:$0xff]  ;;  %v10453_v23 = vld [vmem:[#allocation13_spill] sm:$0xff] }
 0x382   : > { %v6348_v14 = vpop.eup %6347  ;;  %v4543_v37 = vadd.f32 %v4542_v26, %v4051_v4  ;;  %v3110_v28 = vadd.f32 1.0, %v6346_v43  ;;  %6367 = vpow2.f32 %v5234_v25  ;;  %v5235_v9 = vmul.f32 -1.442695, %v9266_v13 }
 0x383   : > { %v6350_v57 = vpop.eup %6349  ;;  %v4445_v61 = vadd.f32 %v4444_v10, %v4178_v21  ;;  %v3229_v54 = vadd.f32 1.0, %v6348_v14  ;;  %6369 = vpow2.f32 %v5116_v51  ;;  %v9280_v60 = vadd.f32 %v10452_v32, %v8381_v53  ;;  %v10454_v14 = vld [vmem:[#allocation17_spill] sm:$0xff] }
 0x384   : > { %v6352_v19 = vpop.eup %6351  ;;  %6371 = vrcp.f32 %v3110_v28  ;;  %v3111_v5 = vadd.f32 1.0, %v6350_v57  ;;  %v9284_v52 = vadd.f32 %v10453_v23, %v8781_v45  ;;  %v5117_v21 = vmul.f32 -1.442695, %v9275_v18 }
 0x385   : > { %v6354_v26 = vpop.eup %6353  ;;  %6373 = vrcp.f32 %v3229_v54  ;;  %v3238_v25 = vadd.f32 1.0, %v6352_v19  ;;  %v9290_v28 = vadd.f32 %v10454_v14, %v8393_v11  ;;  %v5244_v57 = vmul.f32 -1.442695, %v9280_v60 }
 0x386   : > { %v6356_v4 = vpop.eup %6355  ;;  %v4060_v10 = vmul.f32 %v6354_v26, %v9160_v2  ;;  %6375 = vrcp.f32 %v3111_v5  ;;  %v5126_v5 = vmul.f32 -1.442695, %v9284_v52 }
 0x387   : > { %v6358_v51 = vpop.eup %6357  ;;  %6377 = vrcp.f32 %v3238_v25  ;;  %v3120_v43 = vadd.f32 1.0, %v6356_v4  ;;  %v10455_v4 = vld [vmem:[#allocation3_spill] sm:$0xff] }
 0x388   : > { %v6360_v42 = vpop.eup %6359  ;;  %v4507_v54 = vadd.f32 %v4506_v39, %v4060_v10  ;;  %v4179_v19 = vmul.f32 %v6358_v51, %v9165_v59  ;;  %6379 = vpow2.f32 %v5235_v9  ;;  %v9298_v14 = vadd.f32 %v10455_v4, %v8817_v33  ;;  %v10456_v10 = vld [vmem:[#allocation53_spill] sm:$0xff]  ;;  %v10460_v4 = vld [vmem:[#allocation14_spill] sm:$0xff] }
 0x389   : > { %v6362_v32 = vpop.eup %6361  ;;  %6381 = vrcp.f32 %v3120_v43  ;;  %v3239_v2 = vadd.f32 1.0, %v6360_v42  ;;  %v5245_v9 = vmul.f32 -1.442695, %v9290_v28  ;;  %v9304_v51 = vadd.f32 %v10456_v10, %v8381_v53 }
 0x38a   : > { %v6364_v26 = vpop.eup %6363  ;;  %v4482_v23 = vadd.f32 %v4481_v15, %v4179_v19  ;;  %v4061_v25 = vmul.f32 %v6362_v32, %v9174_v38  ;;  %6383 = vpow2.f32 %v5117_v21  ;;  %v10457_v38 = vld [vmem:[#allocation54_spill] sm:$0xff]  ;;  %v9310_v19 = vpop.f32.mrb[172].mxu0  ;;  %v9316_v10 = vadd.f32 %v10460_v4, %v8393_v11 }
 0x38b   : > { %v6366_v39 = vpop.eup %6365  ;;  %v4188_v59 = vmul.f32 %v6364_v26, %v9180_v22  ;;  %6385 = vrcp.f32 %v3239_v2  ;;  %v9308_v21 = vadd.f32 %v10457_v38, %v8781_v45  ;;  %10458 = vst [vmem:[#allocation45_spill] sm:$0xff] %v9310_v19  ;;  %v9312_v32 = vpop.f32.mrb[132].mxu1 }
 0x38c   : > { %v6368_v43 = vpop.eup %6367  ;;  %v4544_v42 = vadd.f32 %v4543_v37, %v4061_v25  ;;  %v3121_v15 = vadd.f32 1.0, %v6366_v39  ;;  %6387 = vpow2.f32 %v5244_v57  ;;  %10459 = vst [vmem:[#allocation46_spill] sm:$0xff] %v9312_v32  ;;  %v9318_v40 = vpop.f32.mrb[173].mxu0  ;;  %v5127_v25 = vmul.f32 -1.442695, %v9298_v14  ;;  %v10462_v39 = vld [vmem:[#allocation5_spill] sm:$0xff] }
 0x38d   : > { %v6370_v22 = vpop.eup %6369  ;;  %v4446_v2 = vadd.f32 %v4445_v61, %v4188_v59  ;;  %v3248_v26 = vadd.f32 1.0, %v6368_v43  ;;  %6389 = vpow2.f32 %v5126_v5  ;;  %10461 = vst [vmem:[#allocation11_spill] sm:$0xff] %v9318_v40  ;;  %v9323_v38 = vadd.f32 %v10462_v39, %v8817_v33  ;;  %v9325_v32 = vpop.f32.mrb[133].mxu1 }
 0x38e   : > { %v6372_v37 = vpop.eup %6371  ;;  %6391 = vrcp.f32 %v3121_v15  ;;  %v3130_v57 = vadd.f32 1.0, %v6370_v22  ;;  %10463 = vst [vmem:[#allocation10_spill] sm:$0xff] %v9325_v32  ;;  %v5254_v59 = vmul.f32 -1.442695, %v9304_v51  ;;  %v5136_v15 = vmul.f32 -1.442695, %v9308_v21 }
 0x38f   : > { %v6374_v61 = vpop.eup %6373  ;;  %v4070_v5 = vmul.f32 %v6372_v37, %v9186_v44  ;;  %6393 = vrcp.f32 %v3248_v26  ;;  %v9331_v22 = vpop.f32.mrb[174].mxu0  ;;  %v5255_v44 = vmul.f32 -1.442695, %v9316_v10 }
 0x390   : > { %v6376_v43 = vpop.eup %6375  ;;  %v4189_v4 = vmul.f32 %v6374_v61, %v9196_v34  ;;  %6395 = vrcp.f32 %v3130_v57  ;;  %10464 = vst [vmem:[#allocation15_spill] sm:$0xff] %v9331_v22  ;;  %v9333_v40 = vpop.f32.mrb[134].mxu1  ;;  %v5137_v34 = vmul.f32 -1.442695, %v9323_v38 }
 0x391   : > { %10465 = vst [vmem:[#allocation13_spill] sm:$0xff] %v9333_v40  ;;  %v6378_v39 = vpop.eup %6377  ;;  %v4508_v19 = vadd.f32 %v4507_v54, %v4070_v5  ;;  %v4071_v32 = vmul.f32 %v6376_v43, %v9206_v17  ;;  %6397 = vpow2.f32 %v5245_v9  ;;  %v9339_v57 = vpop.f32.mrb[175].mxu0  ;;  %v10466_v17 = vld [vmem:[#allocation16_spill] sm:$0xff] }
 0x392   : > { %v6380_v26 = vpop.eup %6379  ;;  %v4483_v37 = vadd.f32 %v4482_v23, %v4189_v4  ;;  %v4198_v62 = vmul.f32 %v6378_v39, %v9210_v30  ;;  %6399 = vpow2.f32 %v5127_v25  ;;  %v9341_v61 = vpop.f32.mrb[135].mxu1  ;;  %v9345_v54 = vadd.f32 %v10466_v17, %v8381_v53  ;;  %v10467_v30 = vld [vmem:[#allocation31_spill] sm:$0xff] }
 0x393   : > { %v6382_v22 = vpop.eup %6381  ;;  %v4545_v40 = vadd.f32 %v4544_v42, %v4071_v32  ;;  %v3249_v46 = vadd.f32 1.0, %v6380_v26  ;;  %6401 = vpow2.f32 %v5254_v59  ;;  %v9350_v25 = vadd.f32 %v10467_v30, %v8781_v45  ;;  %v10468_v42 = vld [vmem:[#allocation30_spill] sm:$0xff] }
 0x394   : > { %v6384_v9 = vpop.eup %6383  ;;  %v4447_v5 = vadd.f32 %v4446_v2, %v4198_v62  ;;  %v4080_v23 = vmul.f32 %v6382_v22, %v9214_v49  ;;  %6403 = vpow2.f32 %v5136_v15  ;;  %v9354_v32 = vadd.f32 %v10468_v42, %v8393_v11 }
 0x395   : > { %v6386_v43 = vpop.eup %6385  ;;  %6405 = vrcp.f32 %v3249_v46  ;;  %v3131_v4 = vadd.f32 1.0, %v6384_v9  ;;  %v5264_v2 = vmul.f32 -1.442695, %v9345_v54  ;;  %v5146_v46 = vmul.f32 -1.442695, %v9350_v25  ;;  %v9359_v9 = vpop.f32.mrb[136].mxu1 }
 0x396   : > { %v6388_v59 = vpop.eup %6387  ;;  %v4509_v39 = vadd.f32 %v4508_v19, %v4080_v23  ;;  %v4199_v26 = vmul.f32 %v6386_v43, %v9219_v50  ;;  %6407 = vpow2.f32 %v5255_v44  ;;  %10469 = vst [vmem:[#allocation17_spill] sm:$0xff] %v9359_v9  ;;  %v5265_v50 = vmul.f32 -1.442695, %v9354_v32  ;;  %v9363_v19 = vpop.f32.mrb[137].mxu1 }
 0x397   : > { %v6390_v62 = vpop.eup %6389  ;;  %6409 = vrcp.f32 %v3131_v4  ;;  %v3258_v49 = vadd.f32 1.0, %v6388_v59  ;;  %10470 = vst [vmem:[#allocation3_spill] sm:$0xff] %v9363_v19 }
 0x398   : > { %v6392_v15 = vpop.eup %6391  ;;  %v4484_v22 = vadd.f32 %v4483_v37, %v4199_v26  ;;  %v3140_v17 = vadd.f32 1.0, %v6390_v62  ;;  %6411 = vpow2.f32 %v5137_v34  ;;  %v10471_v37 = vld [vmem:[#allocation55_spill] sm:$0xff]  ;;  %v9370_v34 = vpop.f32.mrb[138].mxu1 }
 0x399   : > { %v6394_v30 = vpop.eup %6393  ;;  %v4081_v42 = vmul.f32 %v6392_v15, %v9235_v48  ;;  %6413 = vrcp.f32 %v3258_v49  ;;  %v9368_v43 = vadd.f32 %v10471_v37, %v8817_v33  ;;  %10472 = vst [vmem:[#allocation53_spill] sm:$0xff] %v9370_v34  ;;  %v9373_v48 = vpop.f32.mrb[139].mxu1 }
 0x39a   : > { %v6396_v44 = vpop.eup %6395  ;;  %v4208_v23 = vmul.f32 %v6394_v30, %v9240_v3  ;;  %6415 = vrcp.f32 %v3140_v17  ;;  %10473 = vst [vmem:[#allocation54_spill] sm:$0xff] %v9373_v48  ;;  %v10474_v3 = vld [vmem:[#allocation33_spill] sm:$0xff] }
 0x39b   : > { %v6398_v4 = vpop.eup %6397  ;;  %v4546_v59 = vadd.f32 %v4545_v40, %v4081_v42  ;;  %v4090_v26 = vmul.f32 %v6396_v44, %v9244_v6  ;;  %6417 = vpow2.f32 %v5264_v2  ;;  %v9377_v17 = vadd.f32 %v10474_v3, %v8381_v53  ;;  %v10475_v2 = vld [vmem:[#allocation32_spill] sm:$0xff]  ;;  %v10476_v44 = vld [vmem:[#allocation18_spill] sm:$0xff] }
 0x39c   : > { %v6400_v62 = vpop.eup %6399  ;;  %v4448_v49 = vadd.f32 %v4447_v5, %v4208_v23  ;;  %v3259_v15 = vadd.f32 1.0, %v6398_v4  ;;  %6419 = vpow2.f32 %v5146_v46  ;;  %v5147_v6 = vmul.f32 -1.442695, %v9368_v43  ;;  %v10478_v3 = vld [vmem:[#allocation34_spill] sm:$0xff] }
 0x39d   : > { %v6402_v30 = vpop.eup %6401  ;;  %v4510_v37 = vadd.f32 %v4509_v39, %v4090_v26  ;;  %v3141_v19 = vadd.f32 1.0, %v6400_v62  ;;  %6421 = vpow2.f32 %v5265_v50  ;;  %v9382_v42 = vadd.f32 %v10475_v2, %v8781_v45  ;;  %v9390_v26 = vpop.f32.mrb[140].mxu1 }
 0x39e   : > { %v6404_v34 = vpop.eup %6403  ;;  %6423 = vrcp.f32 %v3259_v15  ;;  %v3268_v40 = vadd.f32 1.0, %v6402_v30  ;;  %v9386_v23 = vadd.f32 %v10476_v44, %v8393_v11  ;;  %v5274_v50 = vmul.f32 -1.442695, %v9377_v17  ;;  %10477 = vst [vmem:[#allocation14_spill] sm:$0xff] %v9390_v26 }
 0x39f   : > { %v6406_v5 = vpop.eup %6405  ;;  %6425 = vrcp.f32 %v3141_v19  ;;  %v3150_v46 = vadd.f32 1.0, %v6404_v34  ;;  %v9394_v30 = vadd.f32 %v10478_v3, %v8817_v33  ;;  %v5156_v44 = vmul.f32 -1.442695, %v9382_v42 }
 0x3a0   : > { %v6408_v4 = vpop.eup %6407  ;;  %v4209_v39 = vmul.f32 %v6406_v5, %v9266_v13  ;;  %6427 = vrcp.f32 %v3268_v40  ;;  %v9398_v13 = vpop.f32.mrb[141].mxu1  ;;  %v5275_v26 = vmul.f32 -1.442695, %v9386_v23 }
 0x3a1   : > { %v6410_v62 = vpop.eup %6409  ;;  %6429 = vrcp.f32 %v3150_v46  ;;  %v3269_v15 = vadd.f32 1.0, %v6408_v4  ;;  %10479 = vst [vmem:[#allocation5_spill] sm:$0xff] %v9398_v13 }
 0x3a2   : > { %v6412_v19 = vpop.eup %6411  ;;  %v4485_v34 = vadd.f32 %v4484_v22, %v4209_v39  ;;  %v4091_v2 = vmul.f32 %v6410_v62, %v9275_v18  ;;  %6431 = vpow2.f32 %v5147_v6  ;;  %v9404_v22 = vadd.f32 %v8912_v7, %v8381_v53  ;;  %v9406_v18 = vpop.f32.mrb[142].mxu1  ;;  %v10483_v7 = vld [vmem:[#allocation20_spill] sm:$0xff] }
 0x3a3   : > { %v6414_v40 = vpop.eup %6413  ;;  %6433 = vrcp.f32 %v3269_v15  ;;  %v3151_v5 = vadd.f32 1.0, %v6412_v19  ;;  %10480 = vst [vmem:[#allocation16_spill] sm:$0xff] %v9406_v18  ;;  %v5157_v62 = vmul.f32 -1.442695, %v9394_v30  ;;  %v10481_v15 = vld [vmem:[#allocation19_spill] sm:$0xff] }
 0x3a4   : > { %v6416_v46 = vpop.eup %6415  ;;  %v4547_v4 = vadd.f32 %v4546_v59, %v4091_v2  ;;  %v4218_v48 = vmul.f32 %v6414_v40, %v9280_v60  ;;  %6435 = vpow2.f32 %v5274_v50  ;;  %v9412_v3 = vadd.f32 %v10481_v15, %v8781_v45  ;;  %v9414_v59 = vpop.f32.mrb[143].mxu1 }
 0x3a5   : > { %v6418_v6 = vpop.eup %6417  ;;  %v4100_v39 = vmul.f32 %v6416_v46, %v9284_v52  ;;  %6437 = vrcp.f32 %v3151_v5  ;;  %10482 = vst [vmem:[#allocation31_spill] sm:$0xff] %v9414_v59  ;;  %v9418_v2 = vadd.f32 %v10483_v7, %v8393_v11  ;;  %v10484_v5 = vld [vmem:[#allocation22_spill] sm:$0xff]  ;;  %v5284_v59 = vmul.f32 -1.442695, %v9404_v22 }
 0x3a6   : > { %v6420_v60 = vpop.eup %6419  ;;  %v4449_v50 = vadd.f32 %v4448_v49, %v4218_v48  ;;  %v3278_v19 = vadd.f32 1.0, %v6418_v6  ;;  %6439 = vpow2.f32 %v5156_v44  ;;  %v9422_v46 = vadd.f32 %v10484_v5, %v8817_v33 }
 0x3a7   : > { %v6422_v40 = vpop.eup %6421  ;;  %v4511_v18 = vadd.f32 %v4510_v37, %v4100_v39  ;;  %v3160_v52 = vadd.f32 1.0, %v6420_v60  ;;  %6441 = vpow2.f32 %v5275_v26  ;;  %v5166_v44 = vmul.f32 -1.442695, %v9412_v3  ;;  %v10485_v39 = vld [vmem:[#allocation4_spill] sm:$0xff] }
 0x3a8   : > { %v6424_v15 = vpop.eup %6423  ;;  %6443 = vrcp.f32 %v3278_v19  ;;  %v3279_v13 = vadd.f32 1.0, %v6422_v40  ;;  %v5285_v26 = vmul.f32 -1.442695, %v9418_v2  ;;  %v9431_v60 = vadd.f32 %v10485_v39, %v8381_v53 }
 0x3a9   : > { %v6426_v48 = vpop.eup %6425  ;;  %v4219_v49 = vmul.f32 %v6424_v15, %v9290_v28  ;;  %6445 = vrcp.f32 %v3160_v52  ;;  %v5167_v28 = vmul.f32 -1.442695, %v9422_v46 }
 0x3aa   : > { %v6428_v6 = vpop.eup %6427  ;;  %v4101_v37 = vmul.f32 %v6426_v48, %v9298_v14  ;;  %6447 = vrcp.f32 %v3279_v13  ;;  %v10486_v14 = vld [vmem:[#allocation21_spill] sm:$0xff] }
 0x3ab   : > { %v6430_v19 = vpop.eup %6429  ;;  %v4486_v7 = vadd.f32 %v4485_v34, %v4219_v49  ;;  %v4228_v40 = vmul.f32 %v6428_v6, %v9304_v51  ;;  %6449 = vpow2.f32 %v5157_v62  ;;  %v9438_v13 = vadd.f32 %v10486_v14, %v8781_v45  ;;  %v10487_v34 = vld [vmem:[#allocation47_spill] sm:$0xff]  ;;  %v9444_v51 = vpop.f32.mrb[144].mxu1 }
 0x3ac   : > { %v6432_v52 = vpop.eup %6431  ;;  %v4548_v5 = vadd.f32 %v4547_v4, %v4101_v37  ;;  %v4110_v15 = vmul.f32 %v6430_v19, %v9308_v21  ;;  %6451 = vpow2.f32 %v5284_v59  ;;  %v9442_v49 = vadd.f32 %v10487_v34, %v8393_v11  ;;  %v9448_v59 = vpop.f32.mrb[145].mxu1  ;;  %v868_v11 = vld [vmem:[%s10138_s4 + $0x8] sm:$0x3] }
 0x3ad   : > { %v6434_v48 = vpop.eup %6433  ;;  %v4450_v9 = vadd.f32 %v4449_v50, %v4228_v40  ;;  %v3161_v53 = vadd.f32 1.0, %v6432_v52  ;;  %6453 = vpow2.f32 %v5166_v44  ;;  %v5294_v21 = vmul.f32 -1.442695, %v9431_v60  ;;  %10488 = vst [vmem:[#allocation30_spill] sm:$0xff] %v9448_v59  ;;  %v10489_v44 = vld [vmem:[#allocation35_spill] sm:$0xff]  ;;  %v9457_v19 = vpop.f32.mrb[146].mxu1 }
 0x3ae   : > { %v6436_v62 = vpop.eup %6435  ;;  %v4512_v6 = vadd.f32 %v4511_v18, %v4110_v15  ;;  %v4229_v4 = vmul.f32 %v6434_v48, %v9316_v10  ;;  %6455 = vpow2.f32 %v5285_v26  ;;  %v9452_v39 = vadd.f32 %v10489_v44, %v8817_v33  ;;  %10490 = vst [vmem:[#allocation55_spill] sm:$0xff] %v9457_v19  ;;  %v9460_v40 = vpop.f32.mrb[147].mxu1  ;;  %v10492_v44 = vld [vmem:[#allocation12_spill] sm:$0xff] }
 0x3af   : > { %v6438_v37 = vpop.eup %6437  ;;  %6457 = vrcp.f32 %v3161_v53  ;;  %v3288_v50 = vadd.f32 1.0, %v6436_v62  ;;  %10491 = vst [vmem:[#allocation33_spill] sm:$0xff] %v9460_v40  ;;  %v5176_v14 = vmul.f32 -1.442695, %v9438_v13  ;;  %v5295_v48 = vmul.f32 -1.442695, %v9442_v49 }
 0x3b0   : > { %v6440_v18 = vpop.eup %6439  ;;  %v4487_v10 = vadd.f32 %v4486_v7, %v4229_v4  ;;  %v4111_v26 = vmul.f32 %v6438_v37, %v9323_v38  ;;  %6459 = vpow2.f32 %v5167_v28  ;;  %v10493_v19 = vsub.s32 0, %v10492_v44 }
 0x3b1   : > { %v6442_v52 = vpop.eup %6441  ;;  %6461 = vrcp.f32 %v3288_v50  ;;  %v3170_v15 = vadd.f32 1.0, %v6440_v18  ;;  %v5177_v28 = vmul.f32 -1.442695, %v9452_v39  ;;  %v10494_v50 = vld [vmem:[#allocation23_spill] sm:$0xff] }
 0x3b2   : > { %v6444_v53 = vpop.eup %6443  ;;  %v4549_v34 = vadd.f32 %v4548_v5, %v4111_v26  ;;  %v3289_v62 = vadd.f32 1.0, %v6442_v52  ;;  %6463 = vpow2.f32 %v5294_v21  ;;  %v9466_v59 = vrot.slane %v868_v11, %v10493_v19 }
 0x3b3   : > { %v6446_v7 = vpop.eup %6445  ;;  %v4238_v38 = vmul.f32 %v6444_v53, %v9345_v54  ;;  %6465 = vrcp.f32 %v3170_v15  ;;  %v9473_v18 = vadd.f32 %v10494_v50, %v8781_v45  ;;  %v10495_v19 = vsub.s32 1, %v10492_v44  ;;  %v9480_v54 = vpop.f32.mrb[148].mxu1 }
 0x3b4   : > { %v6448_v4 = vpop.eup %6447  ;;  %v4120_v37 = vmul.f32 %v6446_v7, %v9350_v25  ;;  %6467 = vrcp.f32 %v3289_v62  ;;  %v10496_v25 = vld [vmem:[#allocation7_spill] sm:$0xff]  ;;  %v9486_v7 = vpop.f32.mrb[149].mxu1 }
 0x3b5   : > { %v6450_v5 = vpop.eup %6449  ;;  %v4451_v21 = vadd.f32 %v4450_v9, %v4238_v38  ;;  %v4239_v26 = vmul.f32 %v6448_v4, %v9354_v32  ;;  %6469 = vpow2.f32 %v5176_v14  ;;  %v9478_v52 = vrot.slane %v868_v11, %v10495_v19  ;;  %v9488_v14 = vpop.f32.mrb[150].mxu1 }
 0x3b6   : > { %v6452_v15 = vpop.eup %6451  ;;  %v4513_v53 = vadd.f32 %v4512_v6, %v4120_v37  ;;  %v3171_v40 = vadd.f32 1.0, %v6450_v5  ;;  %6471 = vpow2.f32 %v5295_v48  ;;  %v9484_v62 = vadd.f32 %v10496_v25, %v9466_v59  ;;  %v9495_v48 = vpop.f32.mrb[151].mxu1 }
 0x3b7   : > { %v6454_v9 = vpop.eup %6453  ;;  %v4488_v38 = vadd.f32 %v4487_v10, %v4239_v26  ;;  %v3298_v32 = vadd.f32 1.0, %v6452_v15  ;;  %6473 = vpow2.f32 %v5177_v28  ;;  %v5186_v4 = vmul.f32 -1.442695, %v9473_v18  ;;  %10497 = vst [vmem:[#allocation32_spill] sm:$0xff] %v9495_v48  ;;  %v10498_v10 = vld [vmem:[#allocation36_spill] sm:$0xff] }
 0x3b8   : > { %v6456_v11 = vpop.eup %6455  ;;  %6475 = vrcp.f32 %v3171_v40  ;;  %v3180_v44 = vadd.f32 1.0, %v6454_v9  ;;  %v9493_v6 = vadd.f32 %v8976_v12, %v8817_v33  ;;  %v9499_v5 = vadd.f32 %v10498_v10, %v9478_v52 }
 0x3b9   : > { %v6458_v37 = vpop.eup %6457  ;;  %6477 = vrcp.f32 %v3298_v32  ;;  %v3299_v50 = vadd.f32 1.0, %v6456_v11  ;;  %v4988_v40 = vmul.f32 -1.442695, %v9484_v62 }
 0x3ba   : > { %v6460_v28 = vpop.eup %6459  ;;  %v4121_v26 = vmul.f32 %v6458_v37, %v9368_v43  ;;  %6479 = vrcp.f32 %v3180_v44  ;;  %v5187_v32 = vmul.f32 -1.442695, %v9493_v6  ;;  %v4989_v48 = vmul.f32 -1.442695, %v9499_v5 }
 0x3bb   : > { %v6462_v19 = vpop.eup %6461  ;;  %6481 = vrcp.f32 %v3299_v50  ;;  %v3181_v15 = vadd.f32 1.0, %v6460_v28  ;;  %v9508_v43 = vadd.f32 %v8992_v31, %v8781_v45  ;;  %v9518_v28 = vadd.f32 %v9020_v16, %v8817_v33 }
 0x3bc   : > { %v6464_v12 = vpop.eup %6463  ;;  %v4550_v25 = vadd.f32 %v4549_v34, %v4121_v26  ;;  %v4248_v9 = vmul.f32 %v6462_v19, %v9377_v17  ;;  %6483 = vpow2.f32 %v5186_v4  ;;  %v9513_v17 = vadd.f32 %v9008_v56, %v9466_v59 }
 0x3bd   : > { %v6466_v11 = vpop.eup %6465  ;;  %6485 = vrcp.f32 %v3181_v15  ;;  %v3308_v10 = vadd.f32 1.0, %v6464_v12 }
 0x3be   : > { %v6468_v44 = vpop.eup %6467  ;;  %v4452_v37 = vadd.f32 %v4451_v21, %v4248_v9  ;;  %v4130_v50 = vmul.f32 %v6466_v11, %v9382_v42  ;;  %6487 = vpow2.f32 %v4988_v40  ;;  %v9522_v42 = vadd.f32 %v9022_v29, %v9478_v52  ;;  %v9524_v21 = vpop.f32.mrb[152].mxu1 }
 0x3bf   : > { %v6470_v34 = vpop.eup %6469  ;;  %v4249_v4 = vmul.f32 %v6468_v44, %v9386_v23  ;;  %6489 = vrcp.f32 %v3308_v10  ;;  %v5196_v23 = vmul.f32 -1.442695, %v9508_v43  ;;  %v9527_v12 = vpop.f32.mrb[153].mxu1 }
 0x3c0   : > { %v6472_v26 = vpop.eup %6471  ;;  %v4514_v31 = vadd.f32 %v4513_v53, %v4130_v50  ;;  %v3190_v19 = vadd.f32 1.0, %v6470_v34  ;;  %6491 = vpow2.f32 %v5187_v32  ;;  %v4998_v53 = vmul.f32 -1.442695, %v9513_v17  ;;  %v9534_v29 = vpop.f32.mrb[154].mxu1 }
 0x3c1   : > { %v6474_v56 = vpop.eup %6473  ;;  %v4489_v40 = vadd.f32 %v4488_v38, %v4249_v4  ;;  %v3309_v15 = vadd.f32 1.0, %v6472_v26  ;;  %6493 = vpow2.f32 %v4989_v48  ;;  %v9532_v32 = vadd.f32 %v9043_v0, %v8781_v45  ;;  %v9538_v10 = vpop.f32.mrb[155].mxu1 }
 0x3c2   : > { %v6476_v16 = vpop.eup %6475  ;;  %6495 = vrcp.f32 %v3190_v19  ;;  %v3191_v9 = vadd.f32 1.0, %v6474_v56  ;;  %v5197_v48 = vmul.f32 -1.442695, %v9518_v28  ;;  %10499 = vst [vmem:[#allocation18_spill] sm:$0xff] %v9538_v10  ;;  %v4999_v34 = vmul.f32 -1.442695, %v9522_v42 }
 0x3c3   : > { %v6478_v11 = vpop.eup %6477  ;;  %v4131_v38 = vmul.f32 %v6476_v16, %v9394_v30  ;;  %6497 = vrcp.f32 %v3309_v15  ;;  %v9544_v0 = vadd.f32 %v9045_v24, %v9466_v59  ;;  %v9549_v30 = vadd.f32 %v9048_v55, %v8817_v33 }
 0x3c4   : > { %v6480_v44 = vpop.eup %6479  ;;  %v4258_v50 = vmul.f32 %v6478_v11, %v9404_v22  ;;  %6499 = vrcp.f32 %v3191_v9  ;;  %v5206_v16 = vmul.f32 -1.442695, %v9532_v32 }
 0x3c5   : > { %v6482_v4 = vpop.eup %6481  ;;  %v4551_v26 = vadd.f32 %v4550_v25, %v4131_v38  ;;  %v4140_v19 = vmul.f32 %v6480_v44, %v9412_v3  ;;  %6501 = vpow2.f32 %v5196_v23  ;;  %v9555_v25 = vadd.f32 %v9051_v1, %v9478_v52  ;;  %v9559_v38 = vpop.f32.mrb[156].mxu1 }
 0x3c6   : > { %v6484_v56 = vpop.eup %6483  ;;  %v4453_v15 = vadd.f32 %v4452_v37, %v4258_v50  ;;  %v4259_v22 = vmul.f32 %v6482_v4, %v9418_v2  ;;  %6503 = vpow2.f32 %v4998_v53  ;;  %v5008_v37 = vmul.f32 -1.442695, %v9544_v0  ;;  %10500 = vst [vmem:[#allocation34_spill] sm:$0xff] %v9559_v38 }
 0x3c7   : > { %v6486_v9 = vpop.eup %6485  ;;  %v4515_v11 = vadd.f32 %v4514_v31, %v4140_v19  ;;  %v3200_v24 = vadd.f32 1.0, %v6484_v56  ;;  %6505 = vpow2.f32 %v5197_v48  ;;  %v10501_v31 = vld [vmem:[#allocation39_spill] sm:$0xff]  ;;  %v9565_v48 = vpop.f32.mrb[157].mxu1  ;;  %v5207_v19 = vmul.f32 -1.442695, %v9549_v30 }
 0x3c8   : > { %v6488_v3 = vpop.eup %6487  ;;  %v4490_v23 = vadd.f32 %v4489_v40, %v4259_v22  ;;  %v4141_v55 = vmul.f32 %v6486_v9, %v9422_v46  ;;  %6507 = vpow2.f32 %v4999_v34  ;;  %v9563_v44 = vadd.f32 %v10501_v31, %v8781_v45  ;;  %10502 = vst [vmem:[#allocation19_spill] sm:$0xff] %v9565_v48  ;;  %v9568_v46 = vpop.f32.mrb[158].mxu1 }
 0x3c9   : > { %v6490_v2 = vpop.eup %6489  ;;  %6509 = vrcp.f32 %v3200_v24  ;;  %v3002_v53 = vadd.f32 1.0, %v6488_v3  ;;  %10503 = vst [vmem:[#allocation20_spill] sm:$0xff] %v9568_v46  ;;  %v9571_v56 = vpop.f32.mrb[159].mxu1  ;;  %v5009_v3 = vmul.f32 -1.442695, %v9555_v25 }
 0x3ca   : > { %v6492_v1 = vpop.eup %6491  ;;  %v4552_v50 = vadd.f32 %v4551_v26, %v4141_v55  ;;  %v4268_v40 = vmul.f32 %v6490_v2, %v9431_v60  ;;  %6511 = vpow2.f32 %v5206_v16  ;;  %10504 = vst [vmem:[#allocation22_spill] sm:$0xff] %v9571_v56  ;;  %v5216_v60 = vmul.f32 -1.442695, %v9563_v44 }
 0x3cb   : > { %v6494_v34 = vpop.eup %6493  ;;  %6513 = vrcp.f32 %v3002_v53  ;;  %v3201_v4 = vadd.f32 1.0, %v6492_v1  ;;  %v10505_v53 = vld [vmem:[#allocation49_spill] sm:$0xff] }
 0x3cc   : > { %v6496_v22 = vpop.eup %6495  ;;  %v4454_v9 = vadd.f32 %v4453_v15, %v4268_v40  ;;  %v3003_v24 = vadd.f32 1.0, %v6494_v34  ;;  %6515 = vpow2.f32 %v5008_v37  ;;  %v9579_v1 = vadd.f32 %v10505_v53, %v9466_v59  ;;  %v10506_v34 = vld [vmem:[#allocation50_spill] sm:$0xff] }
 0x3cd   : > { %v6498_v31 = vpop.eup %6497  ;;  %v4150_v26 = vmul.f32 %v6496_v22, %v9438_v13  ;;  %6517 = vrcp.f32 %v3201_v4  ;;  %v9584_v13 = vadd.f32 %v10506_v34, %v8817_v33 }
 0x3ce   : > { %v6500_v16 = vpop.eup %6499  ;;  %v4455_v55 = vrot.slane %v4454_v9, 4  ;;  %v4269_v2 = vmul.f32 %v6498_v31, %v9442_v49  ;;  %6519 = vrcp.f32 %v3003_v24  ;;  %v9586_v49 = vpop.f32.mrb[160].mxu1 }
 0x3cf   : > { %v6502_v15 = vpop.eup %6501  ;;  %v4516_v40 = vadd.f32 %v4515_v11, %v4150_v26  ;;  %v4151_v37 = vmul.f32 %v6500_v16, %v9452_v39  ;;  %6521 = vpow2.f32 %v5207_v19  ;;  %10507 = vst [vmem:[#allocation4_spill] sm:$0xff] %v9586_v49  ;;  %v10508_v11 = vld [vmem:[#allocation25_spill] sm:$0xff]  ;;  %v9592_v39 = vpop.f32.mrb[161].mxu1 }
 0x3d0   : > { %v6504_v4 = vpop.eup %6503  ;;  %v4456_v22 = vadd.f32 %v4455_v55, %v4454_v9  ;;  %v4491_v56 = vadd.f32 %v4490_v23, %v4269_v2  ;;  %v3210_v46 = vadd.f32 1.0, %v6502_v15  ;;  %6523 = vpow2.f32 %v5009_v3  ;;  %10509 = vst [vmem:[#allocation21_spill] sm:$0xff] %v9592_v39  ;;  %v9594_v23 = vpop.f32.mrb[162].mxu1 }
 0x3d1   : > { %v6506_v24 = vpop.eup %6505  ;;  %v4553_v31 = vadd.f32 %v4552_v50, %v4151_v37  ;;  %v3012_v53 = vadd.f32 1.0, %v6504_v4  ;;  %6525 = vpow2.f32 %v5216_v60  ;;  %v9590_v26 = vadd.f32 %v10508_v11, %v9478_v52  ;;  %10510 = vst [vmem:[#allocation47_spill] sm:$0xff] %v9594_v23  ;;  %v10511_v60 = vld [vmem:[#allocation51_spill] sm:$0xff]  ;;  %v9601_v15 = vpop.f32.mrb[163].mxu1 }
 0x3d2   : > { %v6508_v19 = vpop.eup %6507  ;;  %v4457_v16 = vrot.slane %v4456_v22, 2  ;;  %v4492_v34 = vrot.slane %v4491_v56, 4  ;;  %6527 = vrcp.f32 %v3210_v46  ;;  %v3211_v9 = vadd.f32 1.0, %v6506_v24  ;;  %10512 = vst [vmem:[#allocation35_spill] sm:$0xff] %v9601_v15 }
 0x3d3   : > { %v6510_v3 = vpop.eup %6509  ;;  %6529 = vrcp.f32 %v3012_v53  ;;  %v3013_v55 = vadd.f32 1.0, %v6508_v19  ;;  %v5018_v50 = vmul.f32 -1.442695, %v9579_v1  ;;  %v9599_v2 = vadd.f32 %v10511_v60, %v8781_v45  ;;  %v10513_v19 = vld [vmem:[#allocation6_spill] sm:$0xff] }
 0x3d4   : > { %v6512_v37 = vpop.eup %6511  ;;  %v4458_v4 = vadd.f32 %v4457_v16, %v4456_v22  ;;  %v4493_v11 = vadd.f32 %v4492_v34, %v4491_v56  ;;  %v4160_v39 = vmul.f32 %v6510_v3, %v9473_v18  ;;  %6531 = vrcp.f32 %v3211_v9 }
 0x3d5   : > { %v6514_v46 = vpop.eup %6513  ;;  %6533 = vrcp.f32 %v3013_v55  ;;  %v3220_v24 = vadd.f32 1.0, %v6512_v37  ;;  %v5217_v53 = vmul.f32 -1.442695, %v9584_v13  ;;  %v9607_v23 = vadd.f32 %v10513_v19, %v9466_v59  ;;  %v10514_v55 = vld [vmem:[#allocation52_spill] sm:$0xff] }
 0x3d6   : > { %v6516_v49 = vpop.eup %6515  ;;  %v4459_v60 = vrot.slane %v4458_v4, 1  ;;  %v4494_v48 = vrot.slane %v4493_v11, 2  ;;  %v4517_v38 = vadd.f32 %v4516_v40, %v4160_v39  ;;  %v5019_v15 = vmul.f32 -1.442695, %v9590_v26  ;;  %v9620_v40 = vpop.f32.mrb[164].mxu1 }
 0x3d7   : > { %v6518_v22 = vpop.eup %6517  ;;  %6535 = vrcp.f32 %v3220_v24  ;;  %v3022_v56 = vadd.f32 1.0, %v6516_v49  ;;  %v5226_v18 = vmul.f32 -1.442695, %v9599_v2  ;;  %v9613_v16 = vadd.f32 %v9123_v41, %v8817_v33  ;;  %10515 = vst [vmem:[#allocation12_spill] sm:$0xff] %v9620_v40 }
 0x3d8   : > { %v6520_v34 = vpop.eup %6519  ;;  %v4495_v9 = vadd.f32 %v4494_v48, %v4493_v11  ;;  %v4161_v3 = vmul.f32 %v6518_v22, %v9493_v6  ;;  %6537 = vpow2.f32 %v5018_v50  ;;  %v9618_v37 = vadd.f32 %v10514_v55, %v9478_v52  ;;  %v9629_v48 = vpop.f32.mrb[165].mxu1 }
 0x3d9   : > { %v6522_v39 = vpop.eup %6521  ;;  %v9622_v24 = vadd.f32 %v4459_v60, %v4458_v4  ;;  %6539 = vrcp.f32 %v3022_v56  ;;  %v5028_v49 = vmul.f32 -1.442695, %v9607_v23  ;;  %v9627_v41 = vadd.f32 %v9134_v27, %v8781_v45  ;;  %10516 = vst [vmem:[#allocation23_spill] sm:$0xff] %v9629_v48  ;;  %v9631_v22 = vpop.f32.mrb[166].mxu1 }
 0x3da   : > { %v6524_v6 = vpop.eup %6523  ;;  %v4496_v50 = vrot.slane %v4495_v9, 1  ;;  %v4554_v11 = vadd.f32 %v4553_v31, %v4161_v3  ;;  %v3221_v19 = vadd.f32 1.0, %v6522_v39  ;;  %6541 = vpow2.f32 %v5217_v53  ;;  %10517 = vst [vmem:[#allocation7_spill] sm:$0xff] %v9631_v22  ;;  %v9638_v27 = vpop.f32.mrb[167].mxu1 }
 0x3db   : > { %v6526_v55 = vpop.eup %6525  ;;  %v3023_v40 = vadd.f32 1.0, %v6524_v6  ;;  %6543 = vpow2.f32 %v5019_v15  ;;  %v5227_v4 = vmul.f32 -1.442695, %v9613_v16  ;;  %v9636_v60 = vadd.f32 %v9136_v63, %v9466_v59  ;;  %10518 = vst [vmem:[#allocation36_spill] sm:$0xff] %v9638_v27  ;;  %v9657_v10 = vpop.f32.mrb[168].mxu1 }
 0x3dc   : > { %v6528_v56 = vpop.eup %6527  ;;  %v9640_v48 = vadd.f32 %v4496_v50, %v4495_v9  ;;  %6545 = vrcp.f32 %v3221_v19  ;;  %v3230_v31 = vadd.f32 1.0, %v6526_v55  ;;  %v5029_v53 = vmul.f32 -1.442695, %v9618_v37 }
 0x3dd   : > { %v6530_v3 = vpop.eup %6529  ;;  %v4170_v39 = vmul.f32 %v6528_v56, %v9508_v43  ;;  %6547 = vrcp.f32 %v3023_v40  ;;  %v5236_v15 = vmul.f32 -1.442695, %v9627_v41  ;;  %v9647_v6 = vadd.f32 %v9144_v36, %v8817_v33 }
 0x3de   : > { %v6532_v63 = vpop.eup %6531  ;;  %v3962_v9 = vmul.f32 %v6514_v46, %v9484_v62  ;;  %v3972_v50 = vmul.f32 %v6530_v3, %v9513_v17  ;;  %6549 = vrcp.f32 %v3230_v31  ;;  %v5038_v40 = vmul.f32 -1.442695, %v9636_v60 }
 0x3df   : > { %v6534_v19 = vpop.eup %6533  ;;  %v4518_v55 = vadd.f32 %v4517_v38, %v4170_v39  ;;  %v4171_v43 = vmul.f32 %v6532_v63, %v9518_v28  ;;  %6551 = vpow2.f32 %v5226_v18  ;;  %v3963_v56 = vmul.f32 %v6520_v34, %v9499_v5  ;;  %v9664_v28 = vpop.f32.mrb[169].mxu1 }
 0x3e0   : > { %v4572_v36 = vadd.f32 %v3972_v50, %v3962_v9  ;;  %v3973_v22 = vmul.f32 %v6534_v19, %v9522_v42  ;;  %6553 = vpow2.f32 %v5028_v49  ;;  %v5237_v17 = vmul.f32 -1.442695, %v9647_v6  ;;  %v9671_v34 = vpop.f32.mrb[170].mxu1 }
 0x3e1   : > { %v6536_v27 = vpop.eup %6535  ;;  %v4555_v62 = vadd.f32 %v4554_v11, %v4171_v43  ;;  %6555 = vpow2.f32 %v5227_v4  ;;  %v9662_v38 = vadd.f32 %v9150_v47, %v9478_v52  ;;  %v9669_v42 = vadd.f32 %v9167_v35, %v8781_v45  ;;  %v9677_v4 = vpop.f32.mrb[171].mxu1 }
 0x3e2   : > { %v6538_v46 = vpop.eup %6537  ;;  %v4609_v18 = vadd.f32 %v3973_v22, %v3963_v56  ;;  %v4180_v5 = vmul.f32 %v6536_v27, %v9532_v32  ;;  %6557 = vpow2.f32 %v5029_v53  ;;  %v9675_v47 = vadd.f32 %v9169_v8, %v9466_v59 }
 0x3e3   : > { %v6540_v49 = vpop.eup %6539  ;;  %v3032_v11 = vadd.f32 1.0, %v6538_v46  ;;  %6559 = vpow2.f32 %v5236_v15  ;;  %v5039_v53 = vmul.f32 -1.442695, %v9662_v38  ;;  %v5246_v15 = vmul.f32 -1.442695, %v9669_v42 }
 0x3e4   : > { %v6542_v31 = vpop.eup %6541  ;;  %v4519_v22 = vadd.f32 %v4518_v55, %v4180_v5  ;;  %v3982_v32 = vmul.f32 %v6540_v49, %v9544_v0  ;;  %6561 = vpow2.f32 %v5038_v40  ;;  %v5048_v50 = vmul.f32 -1.442695, %v9675_v47  ;;  %v9685_v55 = vpop.f32.mrb[172].mxu1 }
 0x3e5   : > { %v6544_v27 = vpop.eup %6543  ;;  %6563 = vrcp.f32 %v3032_v11  ;;  %v3231_v35 = vadd.f32 1.0, %v6542_v31 }
 0x3e6   : > { %v6546_v3 = vpop.eup %6545  ;;  %v4573_v39 = vadd.f32 %v4572_v36, %v3982_v32  ;;  %v3033_v63 = vadd.f32 1.0, %v6544_v27  ;;  %6565 = vpow2.f32 %v5237_v17  ;;  %v9688_v36 = vpop.f32.mrb[173].mxu1 }
 0x3e7   : > { %v6548_v8 = vpop.eup %6547  ;;  %v4181_v9 = vmul.f32 %v6546_v3, %v9549_v30  ;;  %6567 = vrcp.f32 %v3231_v35  ;;  %v9692_v30 = vadd.f32 %v9176_v20, %v8817_v33  ;;  %v9694_v49 = vpop.f32.mrb[174].mxu1  ;;  %v10520_v35 = vld [vmem:[#allocation24_spill] sm:$0xff] }
 0x3e8   : > { %v6550_v19 = vpop.eup %6549  ;;  %v3983_v0 = vmul.f32 %v6548_v8, %v9555_v25  ;;  %6569 = vrcp.f32 %v3033_v63 }
 0x3e9   : > { %v6552_v43 = vpop.eup %6551  ;;  %v4556_v40 = vadd.f32 %v4555_v62, %v4181_v9  ;;  %v4190_v56 = vmul.f32 %v6550_v19, %v9563_v44  ;;  %6571 = vpow2.f32 %v5039_v53  ;;  %v9698_v62 = vpop.f32.mrb[175].mxu1  ;;  %v9706_v53 = vadd.f32 %v10520_v35, %v8781_v45  ;;  %v10523_v35 = vld [vmem:[#allocation9_spill] sm:$0xff] }
 0x3ea   : > { %v6554_v17 = vpop.eup %6553  ;;  %v4610_v46 = vadd.f32 %v4609_v18, %v3983_v0  ;;  %v3240_v5 = vadd.f32 1.0, %v6552_v43  ;;  %6573 = vpow2.f32 %v5246_v15  ;;  %10519 = vst [vmem:[#allocation39_spill] sm:$0xff] %v9698_v62  ;;  %v9702_v18 = vadd.f32 %v9188_v58, %v9478_v52 }
 0x3eb   : > { %v6556_v25 = vpop.eup %6555  ;;  %v9696_v11 = vadd.f32 %v4519_v22, %v4190_v56  ;;  %v3042_v31 = vadd.f32 1.0, %v6554_v17  ;;  %6575 = vpow2.f32 %v5048_v50  ;;  %v10521_v22 = vld [vmem:[#allocation40_spill] sm:$0xff]  ;;  %v5247_v8 = vmul.f32 -1.442695, %v9692_v30 }
 0x3ec   : > { %v6558_v44 = vpop.eup %6557  ;;  %6577 = vrcp.f32 %v3240_v5  ;;  %v3241_v32 = vadd.f32 1.0, %v6556_v25  ;;  %v9710_v3 = vadd.f32 %v10521_v22, %v9466_v59  ;;  %v5049_v0 = vmul.f32 -1.442695, %v9702_v18 }
 0x3ed   : > { %v6560_v27 = vpop.eup %6559  ;;  %6579 = vrcp.f32 %v3042_v31  ;;  %v3043_v20 = vadd.f32 1.0, %v6558_v44  ;;  %v5256_v17 = vmul.f32 -1.442695, %v9706_v53  ;;  %v9725_v22 = vadd.f32 %v10523_v35, %v9478_v52 }
 0x3ee   : > { %v6562_v63 = vpop.eup %6561  ;;  %6581 = vrcp.f32 %v3241_v32  ;;  %v3250_v15 = vadd.f32 1.0, %v6560_v27  ;;  %v5058_v5 = vmul.f32 -1.442695, %v9710_v3  ;;  %v10522_v32 = vld [vmem:[#allocation41_spill] sm:$0xff] }
 0x3ef   : > { %v6564_v9 = vpop.eup %6563  ;;  %6583 = vrcp.f32 %v3043_v20  ;;  %v3052_v58 = vadd.f32 1.0, %v6562_v63  ;;  %v9720_v27 = vadd.f32 %v10522_v32, %v8817_v33  ;;  %v10524_v63 = vld [vmem:[#allocation27_spill] sm:$0xff] }
 0x3f0   : > { %v6566_v50 = vpop.eup %6565  ;;  %v3992_v19 = vmul.f32 %v6564_v9, %v9579_v1  ;;  %6585 = vrcp.f32 %v3250_v15  ;;  %v9729_v15 = vadd.f32 %v10524_v63, %v8781_v45  ;;  %v10527_v63 = vld [vmem:[#allocation42_spill] sm:$0xff] }
 0x3f1   : > { %v6568_v43 = vpop.eup %6567  ;;  %6587 = vrcp.f32 %v3052_v58  ;;  %v3251_v56 = vadd.f32 1.0, %v6566_v50  ;;  %v5257_v35 = vmul.f32 -1.442695, %v9720_v27 }
 0x3f2   : > { %v6570_v25 = vpop.eup %6569  ;;  %v4574_v31 = vadd.f32 %v4573_v39, %v3992_v19  ;;  %v4191_v44 = vmul.f32 %v6568_v43, %v9584_v13  ;;  %6589 = vpow2.f32 %v5247_v8  ;;  %v10525_v8 = vld [vmem:[#allocation26_spill] sm:$0xff]  ;;  %v10526_v43 = vld [vmem:[#allocation29_spill] sm:$0xff] }
 0x3f3   : > { %v6572_v1 = vpop.eup %6571  ;;  %v3993_v20 = vmul.f32 %v6570_v25, %v9590_v26  ;;  %6591 = vrcp.f32 %v3251_v56  ;;  %v9733_v58 = vadd.f32 %v10525_v8, %v9466_v59  ;;  %v9737_v56 = vadd.f32 %v10526_v43, %v8817_v33 }
 0x3f4   : > { %v6574_v39 = vpop.eup %6573  ;;  %v4557_v9 = vadd.f32 %v4556_v40, %v4191_v44  ;;  %v3053_v13 = vadd.f32 1.0, %v6572_v1  ;;  %6593 = vpow2.f32 %v5049_v0  ;;  %v5059_v44 = vmul.f32 -1.442695, %v9725_v22 }
 0x3f5   : > { %v6576_v50 = vpop.eup %6575  ;;  %v4611_v19 = vadd.f32 %v4610_v46, %v3993_v20  ;;  %v3260_v26 = vadd.f32 1.0, %v6574_v39  ;;  %6595 = vpow2.f32 %v5256_v17  ;;  %v5266_v1 = vmul.f32 -1.442695, %v9729_v15 }
 0x3f6   : > { %v6578_v25 = vpop.eup %6577  ;;  %6597 = vrcp.f32 %v3053_v13  ;;  %v3062_v32 = vadd.f32 1.0, %v6576_v50  ;;  %v5068_v20 = vmul.f32 -1.442695, %v9733_v58  ;;  %v9747_v39 = vadd.f32 %v10527_v63, %v9478_v52 }
 0x3f7   : > { %v6580_v40 = vpop.eup %6579  ;;  %v4200_v0 = vmul.f32 %v6578_v25, %v9599_v2  ;;  %6599 = vrcp.f32 %v3260_v26  ;;  %v5267_v50 = vmul.f32 -1.442695, %v9737_v56 }
 0x3f8   : > { %v6582_v46 = vpop.eup %6581  ;;  %v4002_v17 = vmul.f32 %v6580_v40, %v9607_v23  ;;  %6601 = vrcp.f32 %v3062_v32  ;;  %v10528_v23 = vld [vmem:[#allocation43_spill] sm:$0xff] }
 0x3f9   : > { %v6584_v13 = vpop.eup %6583  ;;  %v4521_v8 = vadd.f32 %v9696_v11, %v4200_v0  ;;  %v4201_v2 = vmul.f32 %v6582_v46, %v9613_v16  ;;  %6603 = vpow2.f32 %v5058_v5  ;;  %v9755_v32 = vadd.f32 %v10528_v23, %v8781_v45  ;;  %v10529_v11 = vld [vmem:[#allocation44_spill] sm:$0xff] }
 0x3fa   : > { %v6586_v26 = vpop.eup %6585  ;;  %v4575_v43 = vadd.f32 %v4574_v31, %v4002_v17  ;;  %v4003_v25 = vmul.f32 %v6584_v13, %v9618_v37  ;;  %6605 = vpow2.f32 %v5257_v35  ;;  %v9760_v16 = vadd.f32 %v10529_v11, %v9466_v59 }
 0x3fb   : > { %v6588_v40 = vpop.eup %6587  ;;  %v4558_v63 = vadd.f32 %v4557_v9, %v4201_v2  ;;  %v4210_v62 = vmul.f32 %v6586_v26, %v9627_v41  ;;  %6607 = vpow2.f32 %v5059_v44  ;;  %v5069_v37 = vmul.f32 -1.442695, %v9747_v39  ;;  %v10530_v9 = vld [vmem:[#allocation8_spill] sm:$0xff] }
 0x3fc   : > { %v6590_v5 = vpop.eup %6589  ;;  %v4612_v0 = vadd.f32 %v4611_v19, %v4003_v25  ;;  %v4012_v31 = vmul.f32 %v6588_v40, %v9636_v60  ;;  %6609 = vpow2.f32 %v5266_v1  ;;  %v9766_v13 = vadd.f32 %v10530_v9, %v8817_v33 }
 0x3fd   : > { %v6592_v35 = vpop.eup %6591  ;;  %v4522_v46 = vadd.f32 %v4521_v8, %v4210_v62  ;;  %v3261_v17 = vadd.f32 1.0, %v6590_v5  ;;  %6611 = vpow2.f32 %v5068_v20  ;;  %v5276_v60 = vmul.f32 -1.442695, %v9755_v32 }
 0x3fe   : > { %v6594_v41 = vpop.eup %6593  ;;  %v4576_v44 = vadd.f32 %v4575_v43, %v4012_v31  ;;  %v4211_v2 = vmul.f32 %v6592_v35, %v9647_v6  ;;  %6613 = vpow2.f32 %v5267_v50  ;;  %v5078_v62 = vmul.f32 -1.442695, %v9760_v16  ;;  %v10531_v35 = vld [vmem:[#allocation28_spill] sm:$0xff] }
 0x3ff   : > { %v6596_v26 = vpop.eup %6595  ;;  %6615 = vrcp.f32 %v3261_v17  ;;  %v3063_v19 = vadd.f32 1.0, %v6594_v41  ;;  %v5277_v43 = vmul.f32 -1.442695, %v9766_v13  ;;  %v9777_v17 = vadd.f32 %v10531_v35, %v9478_v52 }
 0x400   : > { %v6598_v1 = vpop.eup %6597  ;;  %v4559_v25 = vadd.f32 %v4558_v63, %v4211_v2  ;;  %v3270_v23 = vadd.f32 1.0, %v6596_v26  ;;  %6617 = vpow2.f32 %v5069_v37 }
 0x401   : > { %v6600_v20 = vpop.eup %6599  ;;  %v4013_v8 = vmul.f32 %v6598_v1, %v9662_v38  ;;  %6619 = vrcp.f32 %v3063_v19  ;;  %v10534_v1 = vld [vmem:[#allocation11_spill] sm:$0xff] }
 0x402   : > { %v6602_v40 = vpop.eup %6601  ;;  %v4220_v6 = vmul.f32 %v6600_v20, %v9669_v42  ;;  %6621 = vrcp.f32 %v3270_v23  ;;  %v10532_v42 = vld [vmem:[#allocation45_spill] sm:$0xff]  ;;  %v5079_v20 = vmul.f32 -1.442695, %v9777_v17 }
 0x403   : > { %v6604_v50 = vpop.eup %6603  ;;  %v4613_v11 = vadd.f32 %v4612_v0, %v4013_v8  ;;  %v4022_v5 = vmul.f32 %v6602_v40, %v9675_v47  ;;  %6623 = vpow2.f32 %v5276_v60  ;;  %v9783_v2 = vadd.f32 %v10532_v42, %v8781_v45 }
 0x404   : > { %v6606_v63 = vpop.eup %6605  ;;  %v4523_v31 = vadd.f32 %v4522_v46, %v4220_v6  ;;  %v3072_v37 = vadd.f32 1.0, %v6604_v50  ;;  %6625 = vpow2.f32 %v5078_v62  ;;  %v10533_v46 = vld [vmem:[#allocation46_spill] sm:$0xff] }
 0x405   : > { %v6608_v38 = vpop.eup %6607  ;;  %v9779_v9 = vadd.f32 %v4576_v44, %v4022_v5  ;;  %v3271_v41 = vadd.f32 1.0, %v6606_v63  ;;  %6627 = vpow2.f32 %v5277_v43  ;;  %v9787_v26 = vadd.f32 %v10533_v46, %v9466_v59  ;;  %v10535_v63 = vld [vmem:[#allocation10_spill] sm:$0xff] }
 0x406   : > { %v6610_v0 = vpop.eup %6609  ;;  %6629 = vrcp.f32 %v3072_v37  ;;  %v3073_v47 = vadd.f32 1.0, %v6608_v38  ;;  %v9791_v44 = vadd.f32 %v10534_v1, %v8817_v33  ;;  %v5286_v40 = vmul.f32 -1.442695, %v9783_v2  ;;  %v10539_v1 = vld [vmem:[#allocation15_spill] sm:$0xff] }
 0x407   : > { %v6612_v19 = vpop.eup %6611  ;;  %6631 = vrcp.f32 %v3271_v41  ;;  %v3280_v60 = vadd.f32 1.0, %v6610_v0  ;;  %v5088_v5 = vmul.f32 -1.442695, %v9787_v26  ;;  %v9799_v37 = vadd.f32 %v10535_v63, %v9478_v52 }
 0x408   : > { %v6614_v23 = vpop.eup %6613  ;;  %6633 = vrcp.f32 %v3073_v47  ;;  %v3082_v62 = vadd.f32 1.0, %v6612_v19  ;;  %v5287_v41 = vmul.f32 -1.442695, %v9791_v44  ;;  %v10536_v46 = vlaneseq }
 0x409   : > { %v6616_v8 = vpop.eup %6615  ;;  %6635 = vrcp.f32 %v3280_v60  ;;  %v3281_v43 = vadd.f32 1.0, %v6614_v23  ;;  %v9811_v23 = vadd.f32 %v10539_v1, %v8781_v45  ;;  %v9825_v63 = vadd.f32 %v9341_v61, %v9478_v52 }
 0x40a   : > { %v6618_v6 = vpop.eup %6617  ;;  %v4221_v50 = vmul.f32 %v6616_v8, %v9692_v30  ;;  %6637 = vrcp.f32 %v3082_v62  ;;  %vm9804_vm1 = vcmp.lt.s32.totalorder %v10536_v46, 256  ;;  %v10540_v62 = vld [vmem:[#allocation13_spill] sm:$0xff] }
 0x40b   : > { %v6620_v35 = vpop.eup %6619  ;;  %6639 = vrcp.f32 %v3281_v43  ;;  %v3083_v38 = vadd.f32 1.0, %v6618_v6  ;;  %v9815_v8 = vadd.f32 %v10540_v62, %v9466_v59  ;;  %v5099_v1 = vmul.f32 -1.442695, %v9825_v63 }
 0x40c   : > { %v6622_v42 = vpop.eup %6621  ;;  %v4560_v0 = vadd.f32 %v4559_v25, %v4221_v50  ;;  %v4023_v47 = vmul.f32 %v6620_v35, %v9702_v18  ;;  %6641 = vpow2.f32 %v5079_v20  ;;  %v6873_v25 = vmov 0.0  }
 0x40d   : > { %v6624_v19 = vpop.eup %6623  ;;  %v4230_v60 = vmul.f32 %v6622_v42, %v9706_v53  ;;  %6643 = vrcp.f32 %v3083_v38  ;;  %261 = vst.msk [vmem:[#allocation2 + $0x8] sm:$0x3] %vm9804_vm1, %v6873_v25  ;;  %v9821_v53 = vadd.f32 %v9339_v57, %v8817_v33  ;;  %v5089_v42 = vmul.f32 -1.442695, %v9799_v37  ;;  %v10541_v57 = vld [vmem:[#allocation17_spill] sm:$0xff] }
 0x40e   : > { %v6626_v18 = vpop.eup %6625  ;;  %v4614_v20 = vadd.f32 %v4613_v11, %v4023_v47  ;;  %v3290_v43 = vadd.f32 1.0, %v6624_v19  ;;  %6645 = vpow2.f32 %v5286_v40  ;;  %v5296_v33 = vmul.f32 -1.442695, %v9811_v23 }
 0x40f   : > { %v6628_v6 = vpop.eup %6627  ;;  %v4524_v50 = vadd.f32 %v4523_v31, %v4230_v60  ;;  %v3092_v45 = vadd.f32 1.0, %v6626_v18  ;;  %6647 = vpow2.f32 %v5088_v5  ;;  %v9832_v31 = vadd.f32 %v10541_v57, %v9466_v59 }
 0x410   : > { %v6630_v35 = vpop.eup %6629  ;;  %6649 = vrcp.f32 %v3290_v43  ;;  %v3291_v38 = vadd.f32 1.0, %v6628_v6  ;;  %v5098_v61 = vmul.f32 -1.442695, %v9815_v8  ;;  %v5297_v46 = vmul.f32 -1.442695, %v9821_v53 }
 0x411   : > { %v6632_v11 = vpop.eup %6631  ;;  %v4032_v40 = vmul.f32 %v6630_v35, %v9710_v3  ;;  %6651 = vrcp.f32 %v3092_v45 }
 0x412   : > { %v6634_v5 = vpop.eup %6633  ;;  %v4231_v47 = vmul.f32 %v6632_v11, %v9720_v27  ;;  %6653 = vrcp.f32 %v3291_v38  ;;  %v10542_v27 = vld [vmem:[#allocation3_spill] sm:$0xff] }
 0x413   : > { %v6636_v19 = vpop.eup %6635  ;;  %v4578_v60 = vadd.f32 %v9779_v9, %v4032_v40  ;;  %v4033_v3 = vmul.f32 %v6634_v5, %v9725_v22  ;;  %6655 = vpow2.f32 %v5287_v41  ;;  %v9843_v43 = vadd.f32 %v10542_v27, %v9478_v52 }
 0x414   : > { %v6638_v62 = vpop.eup %6637  ;;  %v4561_v25 = vadd.f32 %v4560_v0, %v4231_v47  ;;  %v4240_v18 = vmul.f32 %v6636_v19, %v9729_v15  ;;  %6657 = vpow2.f32 %v5089_v42  ;;  %v5108_v9 = vmul.f32 -1.442695, %v9832_v31  ;;  %v10543_v0 = vld [vmem:[#allocation53_spill] sm:$0xff] }
 0x415   : > { %v6640_v6 = vpop.eup %6639  ;;  %v4615_v45 = vadd.f32 %v4614_v20, %v4033_v3  ;;  %v4042_v35 = vmul.f32 %v6638_v62, %v9733_v58  ;;  %6659 = vpow2.f32 %v5296_v33  ;;  %v9850_v15 = vadd.f32 %v10543_v0, %v9466_v59  ;;  %v10544_v20 = vld [vmem:[#allocation54_spill] sm:$0xff] }
 0x416   : > { %v6642_v22 = vpop.eup %6641  ;;  %v4525_v41 = vadd.f32 %v4524_v50, %v4240_v18  ;;  %v4241_v38 = vmul.f32 %v6640_v6, %v9737_v56  ;;  %6661 = vpow2.f32 %v5098_v61  ;;  %v9854_v57 = vadd.f32 %v10544_v20, %v9478_v52 }
 0x417   : > { %v6644_v42 = vpop.eup %6643  ;;  %v4579_v11 = vadd.f32 %v4578_v60, %v4042_v35  ;;  %v3093_v40 = vadd.f32 1.0, %v6642_v22  ;;  %6663 = vpow2.f32 %v5297_v46  ;;  %v5109_v47 = vmul.f32 -1.442695, %v9843_v43  ;;  %v10545_v22 = vld [vmem:[#allocation14_spill] sm:$0xff] }
 0x418   : > { %v6646_v58 = vpop.eup %6645  ;;  %v4562_v33 = vadd.f32 %v4561_v25, %v4241_v38  ;;  %v4043_v5 = vmul.f32 %v6644_v42, %v9747_v39  ;;  %6665 = vpow2.f32 %v5099_v1  ;;  %v5118_v46 = vmul.f32 -1.442695, %v9850_v15 }
 0x419   : > { %v6648_v50 = vpop.eup %6647  ;;  %6667 = vrcp.f32 %v3093_v40  ;;  %v3300_v56 = vadd.f32 1.0, %v6646_v58  ;;  %v5119_v25 = vmul.f32 -1.442695, %v9854_v57  ;;  %v9865_v38 = vadd.f32 %v10545_v22, %v9466_v59  ;;  %v10547_v58 = vld [vmem:[#allocation16_spill] sm:$0xff] }
 0x41a   : > { %v6650_v61 = vpop.eup %6649  ;;  %v4616_v19 = vadd.f32 %v4615_v45, %v4043_v5  ;;  %v3102_v3 = vadd.f32 1.0, %v6648_v50  ;;  %6669 = vpow2.f32 %v5108_v9  ;;  %v9875_v5 = vadd.f32 %v10547_v58, %v9466_v59 }
 0x41b   : > { %v6652_v60 = vpop.eup %6651  ;;  %v4250_v62 = vmul.f32 %v6650_v61, %v9755_v32  ;;  %6671 = vrcp.f32 %v3300_v56  ;;  %v5128_v56 = vmul.f32 -1.442695, %v9865_v38 }
 0x41c   : > { %v6654_v18 = vpop.eup %6653  ;;  %v4052_v39 = vmul.f32 %v6652_v60, %v9760_v16  ;;  %6673 = vrcp.f32 %v3102_v3  ;;  %v10548_v3 = vld [vmem:[#allocation31_spill] sm:$0xff] }
 0x41d   : > { %v6656_v1 = vpop.eup %6655  ;;  %v4526_v27 = vadd.f32 %v4525_v41, %v4250_v62  ;;  %v4251_v6 = vmul.f32 %v6654_v18, %v9766_v13  ;;  %6675 = vpow2.f32 %v5109_v47  ;;  %v10546_v41 = vld [vmem:[#allocation5_spill] sm:$0xff]  ;;  %v10549_v62 = vld [vmem:[#allocation48_spill] sm:$0xff]  ;;  %v10551_v18 = vld [vmem:[#allocation38_spill] sm:$0xff] }
 0x41e   : > { %v6658_v45 = vpop.eup %6657  ;;  %v4580_v35 = vadd.f32 %v4579_v11, %v4052_v39  ;;  %v3301_v9 = vadd.f32 1.0, %v6656_v1  ;;  %6677 = vpow2.f32 %v5118_v46  ;;  %v9871_v13 = vadd.f32 %v10546_v41, %v9478_v52 }
 0x41f   : > { %v6660_v32 = vpop.eup %6659  ;;  %v9867_v0 = vadd.f32 %v4562_v33, %v4251_v6  ;;  %v3103_v42 = vadd.f32 1.0, %v6658_v45  ;;  %6679 = vpow2.f32 %v5119_v25  ;;  %v9880_v46 = vadd.f32 %v10548_v3, %v9478_v52  ;;  %v10550_v25 = vld [vmem:[#allocation37_spill] sm:$0xff] }
 0x420   : > { %v6662_v16 = vpop.eup %6661  ;;  %6681 = vrcp.f32 %v3301_v9  ;;  %v3310_v40 = vadd.f32 1.0, %v6660_v32  ;;  %v10552_v39 = vcombine.low %v10550_v25, %v10551_v18  ;;  %v5129_v45 = vmul.f32 -1.442695, %v9871_v13 }
 0x421   : > { %v6664_v20 = vpop.eup %6663  ;;  %6683 = vrcp.f32 %v3103_v42  ;;  %v3112_v11 = vadd.f32 1.0, %v6662_v16  ;;  %v5138_v32 = vmul.f32 -1.442695, %v9875_v5  ;;  %v9893_v42 = vadd.f32 %v9444_v51, %v9466_v59 }
 0x422   : > { %v6666_v50 = vpop.eup %6665  ;;  %6685 = vrcp.f32 %v3310_v40  ;;  %v3311_v33 = vadd.f32 1.0, %v6664_v20  ;;  %v9886_v1 = vrot.slane %v10552_v39, %v10549_v62  ;;  %v10553_v20 = vld [vmem:[#allocation30_spill] sm:$0xff] }
 0x423   : > { %v6668_v47 = vpop.eup %6667  ;;  %6687 = vrcp.f32 %v3112_v11  ;;  %v3113_v61 = vadd.f32 1.0, %v6666_v50  ;;  %v5139_v50 = vmul.f32 -1.442695, %v9880_v46 }
 0x424   : > { %v6670_v60 = vpop.eup %6669  ;;  %v4053_v6 = vmul.f32 %v6668_v47, %v9777_v17  ;;  %6689 = vrcp.f32 %v3311_v33  ;;  %v9898_v17 = vadd.f32 %v10553_v20, %v9478_v52  ;;  %v10554_v33 = vld [vmem:[#allocation55_spill] sm:$0xff] }
 0x425   : > { %v6672_v9 = vpop.eup %6671  ;;  %6691 = vrcp.f32 %v3113_v61  ;;  %v3122_v22 = vadd.f32 1.0, %v6670_v60  ;;  %v9904_v47 = vadd.f32 %v10554_v33, %v9466_v59 }
 0x426   : > { %v6674_v16 = vpop.eup %6673  ;;  %v4617_v40 = vadd.f32 %v4616_v19, %v4053_v6  ;;  %v4260_v41 = vmul.f32 %v6672_v9, %v9783_v2  ;;  %6693 = vpow2.f32 %v5128_v56  ;;  %v10555_v2 = vld [vmem:[#allocation33_spill] sm:$0xff]  ;;  %v5148_v6 = vmul.f32 -1.442695, %v9893_v42 }
 0x427   : > { %v6676_v11 = vpop.eup %6675  ;;  %v4062_v58 = vmul.f32 %v6674_v16, %v9787_v26  ;;  %6695 = vrcp.f32 %v3122_v22  ;;  %v9908_v56 = vadd.f32 %v10555_v2, %v9478_v52  ;;  %v9912_v26 = vadd.f32 %v9480_v54, %v9466_v59 }
 0x428   : > { %v6678_v51 = vpop.eup %6677  ;;  %v4527_v61 = vadd.f32 %v4526_v27, %v4260_v41  ;;  %v3123_v19 = vadd.f32 1.0, %v6676_v11  ;;  %6697 = vpow2.f32 %v5129_v45  ;;  %v5149_v27 = vmul.f32 -1.442695, %v9898_v17 }
 0x429   : > { %v6680_v3 = vpop.eup %6679  ;;  %v4581_v60 = vadd.f32 %v4580_v35, %v4062_v58  ;;  %v3132_v25 = vadd.f32 1.0, %v6678_v51  ;;  %6699 = vpow2.f32 %v5138_v32  ;;  %v5158_v22 = vmul.f32 -1.442695, %v9904_v47 }
 0x42a   : > { %v6682_v18 = vpop.eup %6681  ;;  %6701 = vrcp.f32 %v3123_v19  ;;  %v3133_v39 = vadd.f32 1.0, %v6680_v3  ;;  %v9920_v35 = vadd.f32 %v9486_v7, %v9478_v52  ;;  %v5159_v16 = vmul.f32 -1.442695, %v9908_v56 }
 0x42b   : > { %v6684_v45 = vpop.eup %6683  ;;  %v4261_v9 = vmul.f32 %v6682_v18, %v9791_v44  ;;  %6703 = vrcp.f32 %v3132_v25  ;;  %v9926_v41 = vadd.f32 %v9488_v14, %v9466_v59  ;;  %v5168_v58 = vmul.f32 -1.442695, %v9912_v26 }
 0x42c   : > { %v6686_v32 = vpop.eup %6685  ;;  %v4063_v54 = vmul.f32 %v6684_v45, %v9799_v37  ;;  %6705 = vrcp.f32 %v3133_v39  ;;  %v10556_v37 = vld [vmem:[#allocation32_spill] sm:$0xff] }
 0x42d   : > { %v6688_v20 = vpop.eup %6687  ;;  %v4564_v44 = vadd.f32 %v9867_v0, %v4261_v9  ;;  %v4270_v11 = vmul.f32 %v6686_v32, %v9811_v23  ;;  %6707 = vpow2.f32 %v5139_v50  ;;  %v9934_v19 = vadd.f32 %v10556_v37, %v9478_v52 }
 0x42e   : > { %v6690_v7 = vpop.eup %6689  ;;  %v4618_v33 = vadd.f32 %v4617_v40, %v4063_v54  ;;  %v4072_v51 = vmul.f32 %v6688_v20, %v9815_v8  ;;  %6709 = vpow2.f32 %v5148_v6  ;;  %v5169_v0 = vmul.f32 -1.442695, %v9920_v35 }
 0x42f   : > { %v6692_v2 = vpop.eup %6691  ;;  %v4528_v14 = vadd.f32 %v4527_v61, %v4270_v11  ;;  %v4271_v3 = vmul.f32 %v6690_v7, %v9821_v53  ;;  %6711 = vpow2.f32 %v5149_v27  ;;  %v5178_v40 = vmul.f32 -1.442695, %v9926_v41 }
 0x430   : > { %v6694_v23 = vpop.eup %6693  ;;  %v4582_v50 = vadd.f32 %v4581_v60, %v4072_v51  ;;  %v4073_v25 = vmul.f32 %v6692_v2, %v9825_v63  ;;  %6713 = vpow2.f32 %v5158_v22  ;;  %v9942_v53 = vmul.f32 -1.442695, %v9934_v19 }
 0x431   : > { %v6696_v8 = vpop.eup %6695  ;;  %v4529_v18 = vrot.slane %v4528_v14, 4  ;;  %v4565_v39 = vadd.f32 %v4564_v44, %v4271_v3  ;;  %v3142_v6 = vadd.f32 1.0, %v6694_v23  ;;  %6715 = vpow2.f32 %v5159_v16 }
 0x432   : > { %v6698_v45 = vpop.eup %6697  ;;  %v4619_v9 = vadd.f32 %v4618_v33, %v4073_v25  ;;  %v4082_v61 = vmul.f32 %v6696_v8, %v9832_v31  ;;  %6717 = vpow2.f32 %v5168_v58  ;;  %v9946_v16 = vadd.f32 %v9524_v21, %v9466_v59 }
 0x433   : > { %v6700_v27 = vpop.eup %6699  ;;  %v4530_v60 = vadd.f32 %v4529_v18, %v4528_v14  ;;  %v4566_v32 = vrot.slane %v4565_v39, 4  ;;  %6719 = vrcp.f32 %v3142_v6  ;;  %v3143_v63 = vadd.f32 1.0, %v6698_v45 }
 0x434   : > { %v6702_v22 = vpop.eup %6701  ;;  %v4583_v54 = vadd.f32 %v4582_v50, %v4082_v61  ;;  %v3152_v20 = vadd.f32 1.0, %v6700_v27  ;;  %6721 = vpow2.f32 %v5169_v0  ;;  %v9952_v51 = vadd.f32 %v9527_v12, %v9478_v52 }
 0x435   : > { %v6704_v44 = vpop.eup %6703  ;;  %v4531_v11 = vrot.slane %v4530_v60, 2  ;;  %v4567_v31 = vadd.f32 %v4566_v32, %v4565_v39  ;;  %v4083_v58 = vmul.f32 %v6702_v22, %v9843_v43  ;;  %6723 = vrcp.f32 %v3143_v63 }
 0x436   : > { %v6706_v7 = vpop.eup %6705  ;;  %v4092_v33 = vmul.f32 %v6704_v44, %v9850_v15  ;;  %6725 = vrcp.f32 %v3152_v20  ;;  %v9956_v37 = vadd.f32 %v9534_v29, %v9466_v59  ;;  %v10557_v15 = vld [vmem:[#allocation18_spill] sm:$0xff] }
 0x437   : > { %v6708_v21 = vpop.eup %6707  ;;  %v4532_v2 = vadd.f32 %v4531_v11, %v4530_v60  ;;  %v4568_v14 = vrot.slane %v4567_v31, 2  ;;  %v4620_v3 = vadd.f32 %v4619_v9, %v4083_v58  ;;  %v4093_v0 = vmul.f32 %v6706_v7, %v9854_v57  ;;  %v10558_v57 = vld [vmem:[#allocation34_spill] sm:$0xff] }
 0x438   : > { %v6710_v43 = vpop.eup %6709  ;;  %v4584_v23 = vadd.f32 %v4583_v54, %v4092_v33  ;;  %v3153_v50 = vadd.f32 1.0, %v6708_v21  ;;  %6727 = vpow2.f32 %v5178_v40  ;;  %v9961_v25 = vadd.f32 %v10557_v15, %v9478_v52 }
 0x439   : > { %v6712_v12 = vpop.eup %6711  ;;  %v4533_v8 = vrot.slane %v4532_v2, 1  ;;  %v4569_v18 = vadd.f32 %v4568_v14, %v4567_v31  ;;  %v4621_v39 = vadd.f32 %v4620_v3, %v4093_v0  ;;  %v3162_v29 = vadd.f32 1.0, %v6710_v43 }
 0x43a   : > { %v6714_v6 = vpop.eup %6713  ;;  %6729 = vrcp.f32 %v3153_v50  ;;  %v3163_v45 = vadd.f32 1.0, %v6712_v12  ;;  %v5188_v9 = vmul.f32 -1.442695, %v9946_v16  ;;  %v9966_v61 = vadd.f32 %v10558_v57, %v9466_v59  ;;  %v10560_v50 = vld [vmem:[#allocation20_spill] sm:$0xff] }
 0x43b   : > { %v6716_v27 = vpop.eup %6715  ;;  %v4534_v40 = vadd.f32 %v4533_v8, %v4532_v2  ;;  %v4570_v60 = vrot.slane %v4569_v18, 1  ;;  %6731 = vrcp.f32 %v3162_v29  ;;  %v3172_v32 = vadd.f32 1.0, %v6714_v6  ;;  %v10559_v2 = vld [vmem:[#allocation19_spill] sm:$0xff] }
 0x43c   : > { %v6718_v63 = vpop.eup %6717  ;;  %6733 = vrcp.f32 %v3163_v45  ;;  %v3173_v22 = vadd.f32 1.0, %v6716_v27  ;;  %v5189_v54 = vmul.f32 -1.442695, %v9952_v51  ;;  %v5198_v20 = vmul.f32 -1.442695, %v9956_v37 }
 0x43d   : > { %v6720_v44 = vpop.eup %6719  ;;  %v4571_v11 = vadd.f32 %v4570_v60, %v4569_v18  ;;  %6735 = vrcp.f32 %v3172_v32  ;;  %v3182_v31 = vadd.f32 1.0, %v6718_v63  ;;  %v5199_v58 = vmul.f32 -1.442695, %v9961_v25  ;;  %v10564_v60 = vld [vmem:[#allocation21_spill] sm:$0xff] }
 0x43e   : > { %v6722_v7 = vpop.eup %6721  ;;  %v4102_v33 = vmul.f32 %v6720_v44, %v9865_v38  ;;  %6737 = vrcp.f32 %v3173_v22  ;;  %v5208_v21 = vmul.f32 -1.442695, %v9966_v61  ;;  %v9975_v14 = vadd.f32 %v10559_v2, %v9478_v52  ;;  %v10561_v38 = vld [vmem:[#allocation22_spill] sm:$0xff] }
 0x43f   : > { %v6724_v3 = vpop.eup %6723  ;;  %v4659_v0 = vcombine.low %v4534_v40, %v4571_v11  ;;  %6739 = vrcp.f32 %v3182_v31  ;;  %v3183_v43 = vadd.f32 1.0, %v6722_v7  ;;  %v9979_v15 = vadd.f32 %v10560_v50, %v9466_v59 }
 0x440   : > { %v6726_v12 = vpop.eup %6725  ;;  %v4585_v8 = vadd.f32 %v4584_v23, %v4102_v33  ;;  %v4103_v18 = vmul.f32 %v6724_v3, %v9871_v13  ;;  %6741 = vpow2.f32 %v9942_v53  ;;  %v9985_v29 = vadd.f32 %v10561_v38, %v9478_v52  ;;  %v10563_v13 = vld [vmem:[#allocation4_spill] sm:$0xff] }
 0x441   : > { %v10562_v6 = vcombine.low %v9622_v24, %v9640_v48  ;;  %v4687_v57 = vrot.slane %v4659_v0, %v10549_v62  ;;  %v4112_v27 = vmul.f32 %v6726_v12, %v9875_v5  ;;  %6743 = vrcp.f32 %v3183_v43 }
 0x442   : > { %v6728_v40 = vpop.eup %6727  ;;  %v4622_v23 = vadd.f32 %v4621_v39, %v4103_v18  ;;  %6745 = vpow2.f32 %v5188_v9  ;;  %v9995_v53 = vadd.f32 %v10563_v13, %v9466_v59  ;;  %v9999_v32 = vadd.f32 %v10564_v60, %v9478_v52  ;;  %v10565_v9 = vld [vmem:[#allocation47_spill] sm:$0xff] }
 0x443   : > { %v4680_v45 = vrot.slane %v10562_v6, %v10549_v62  ;;  %v4586_v22 = vadd.f32 %v4585_v8, %v4112_v27  ;;  %v3192_v24 = vadd.f32 1.0, %v6728_v40  ;;  %6747 = vpow2.f32 %v5189_v54 }
 0x444   : > { %v6730_v48 = vpop.eup %6729  ;;  %6749 = vpow2.f32 %v5198_v20  ;;  %v5209_v5 = vmul.f32 -1.442695, %v9975_v14  ;;  %v5218_v39 = vmul.f32 -1.442695, %v9979_v15  ;;  %v10005_v44 = vadd.f32 %v10565_v9, %v9466_v59 }
 0x445   : > { %v4689_v63 = vcombine.low %v4680_v45, %v4687_v57  ;;  %v6732_v11 = vpop.eup %6731  ;;  %v4113_v7 = vmul.f32 %v6730_v48, %v9880_v46  ;;  %6751 = vrcp.f32 %v3192_v24  ;;  %v5219_v33 = vmul.f32 -1.442695, %v9985_v29 }
 0x446   : > { %v6734_v54 = vpop.eup %6733  ;;  %v4122_v2 = vmul.f32 %v6732_v11, %v9893_v42  ;;  %6753 = vpow2.f32 %v5199_v58  ;;  %v5228_v20 = vmul.f32 -1.442695, %v9995_v53  ;;  %v5229_v3 = vmul.f32 -1.442695, %v9999_v32 }
 0x447   : > { %v4703_v31 = vrot.slane %v4689_v63, %v10549_v62  ;;  %v6736_v0 = vpop.eup %6735  ;;  %v4623_v50 = vadd.f32 %v4622_v23, %v4113_v7  ;;  %v4123_v12 = vmul.f32 %v6734_v54, %v9898_v17  ;;  %6755 = vpow2.f32 %v5208_v21  ;;  %v10566_v17 = vld [vmem:[#allocation35_spill] sm:$0xff] }
 0x448   : > { %v6738_v46 = vpop.eup %6737  ;;  %v4587_v8 = vadd.f32 %v4586_v22, %v4122_v2  ;;  %v4132_v18 = vmul.f32 %v6736_v0, %v9904_v47  ;;  %6757 = vpow2.f32 %v5209_v5  ;;  %v5238_v42 = vmul.f32 -1.442695, %v10005_v44 }
 0x449   : > { %v4704_v43 = vcombine.low %v9886_v1, %v4703_v31  ;;  %v6740_v58 = vpop.eup %6739  ;;  %v4624_v38 = vadd.f32 %v4623_v50, %v4123_v12  ;;  %v4133_v6 = vmul.f32 %v6738_v46, %v9908_v56  ;;  %6759 = vpow2.f32 %v5218_v39  ;;  %v10568_v50 = vld [vmem:[#allocation23_spill] sm:$0xff] }
 0x44a   : > { %v6742_v45 = vpop.eup %6741  ;;  %v4588_v57 = vadd.f32 %v4587_v8, %v4132_v18  ;;  %v4142_v1 = vmul.f32 %v6740_v58, %v9912_v26  ;;  %6761 = vpow2.f32 %v5219_v33  ;;  %v10022_v21 = vadd.f32 %v10566_v17, %v9478_v52  ;;  %v10569_v8 = vld [vmem:[#allocation7_spill] sm:$0xff] }
 0x44b   : > { %v6744_v47 = vpop.eup %6743  ;;  %v4625_v27 = vadd.f32 %v4624_v38, %v4133_v6  ;;  %v3193_v40 = vadd.f32 1.0, %v6742_v45  ;;  %6763 = vpow2.f32 %v5228_v20  ;;  %v4735_v56 = vmul.f32 0.00390625, %v4704_v43  ;;  %v10567_v20 = vld [vmem:[#allocation12_spill] sm:$0xff] }
 0x44c   : > { %v6746_v23 = vpop.eup %6745  ;;  %v4589_v13 = vadd.f32 %v4588_v57, %v4142_v1  ;;  %v4143_v26 = vmul.f32 %v6744_v47, %v9920_v35  ;;  %6765 = vpow2.f32 %v5229_v3  ;;  %v5239_v5 = vmul.f32 -1.442695, %v10022_v21  ;;  %v10570_v38 = vld [vmem:[#allocation36_spill] sm:$0xff] }
 0x44d   : > { %v6748_v60 = vpop.eup %6747  ;;  %6767 = vrcp.f32 %v3193_v40  ;;  %v3202_v63 = vadd.f32 1.0, %v6746_v23  ;;  %4737 = vst [vmem:[%s10027_s15] sm:$0xff] %v4735_v56  ;;  %v10035_v3 = vadd.f32 %v10567_v20, %v9466_v59  ;;  %v10039_v12 = vadd.f32 %v10568_v50, %v9478_v52 }
 0x44e   : > { %v6750_v22 = vpop.eup %6749  ;;  %v4626_v24 = vadd.f32 %v4625_v27, %v4143_v26  ;;  %v3203_v48 = vadd.f32 1.0, %v6748_v60  ;;  %6769 = vpow2.f32 %v5238_v42  ;;  %v10043_v18 = vadd.f32 %v10569_v8, %v9466_v59 }
 0x44f   : > { %v6752_v39 = vpop.eup %6751  ;;  %6771 = vrcp.f32 %v3202_v63  ;;  %v3212_v9 = vadd.f32 1.0, %v6750_v22  ;;  %v10047_v6 = vadd.f32 %v10570_v38, %v9478_v52  ;;  %v10051_v45 = vadd.f32 %v9657_v10, %v9466_v59 }
 0x450   : > { %v6754_v11 = vpop.eup %6753  ;;  %v4152_v31 = vmul.f32 %v6752_v39, %v9926_v41  ;;  %6773 = vrcp.f32 %v3203_v48  ;;  %v5248_v17 = vmul.f32 -1.442695, %v10035_v3  ;;  %v10056_v47 = vadd.f32 %v9664_v28, %v9478_v52 }
 0x451   : > { %v6756_v7 = vpop.eup %6755  ;;  %6775 = vrcp.f32 %v3212_v9  ;;  %v3213_v35 = vadd.f32 1.0, %v6754_v11  ;;  %v5249_v56 = vmul.f32 -1.442695, %v10039_v12  ;;  %v5258_v10 = vmul.f32 -1.442695, %v10043_v18 }
 0x452   : > { %v6758_v33 = vpop.eup %6757  ;;  %v4590_v54 = vadd.f32 %v4589_v13, %v4152_v31  ;;  %v3222_v2 = vadd.f32 1.0, %v6756_v7  ;;  %6777 = vpow2.f32 %v5239_v5  ;;  %v10063_v26 = vadd.f32 %v9671_v34, %v9466_v59 }
 0x453   : > { %v6760_v0 = vpop.eup %6759  ;;  %6779 = vrcp.f32 %v3213_v35  ;;  %v3223_v43 = vadd.f32 1.0, %v6758_v33  ;;  %v5259_v28 = vmul.f32 -1.442695, %v10047_v6  ;;  %v5268_v22 = vmul.f32 -1.442695, %v10051_v45 }
 0x454   : > { %v6762_v41 = vpop.eup %6761  ;;  %6781 = vrcp.f32 %v3222_v2  ;;  %v3232_v46 = vadd.f32 1.0, %v6760_v0  ;;  %v10072_v34 = vadd.f32 %v9677_v4, %v9478_v52  ;;  %v10076_v31 = vadd.f32 %v9685_v55, %v9466_v59 }
 0x455   : > { %v6764_v42 = vpop.eup %6763  ;;  %6783 = vrcp.f32 %v3223_v43  ;;  %v3233_v58 = vadd.f32 1.0, %v6762_v41 }
 0x456   : > { %v6766_v57 = vpop.eup %6765  ;;  %6785 = vrcp.f32 %v3232_v46  ;;  %v3242_v1 = vadd.f32 1.0, %v6764_v42  ;;  %v5279_v50 = vmul.f32 -1.442695, %v10072_v34  ;;  %v5288_v41 = vmul.f32 -1.442695, %v10076_v31 }
 0x457   : > { %v6768_v27 = vpop.eup %6767  ;;  %6787 = vrcp.f32 %v3233_v58  ;;  %v3243_v40 = vadd.f32 1.0, %v6766_v57 }
 0x458   : > { %v6770_v23 = vpop.eup %6769  ;;  %v4153_v13 = vmul.f32 %v6768_v27, %v9934_v19  ;;  %6789 = vrcp.f32 %v3242_v1  ;;  %v5269_v19 = vmul.f32 -1.442695, %v10056_v47 }
 0x459   : > { %v6772_v60 = vpop.eup %6771  ;;  %6791 = vrcp.f32 %v3243_v40  ;;  %v3252_v63 = vadd.f32 1.0, %v6770_v23 }
 0x45a   : > { %v6774_v48 = vpop.eup %6773  ;;  %v4627_v5 = vadd.f32 %v4626_v24, %v4153_v13  ;;  %v4162_v39 = vmul.f32 %v6772_v60, %v9946_v16  ;;  %6793 = vpow2.f32 %v5248_v17  ;;  %v5278_v16 = vmul.f32 -1.442695, %v10063_v26 }
 0x45b   : > { %v6776_v9 = vpop.eup %6775  ;;  %v4163_v11 = vmul.f32 %v6774_v48, %v9952_v51  ;;  %6795 = vrcp.f32 %v3252_v63  ;;  %v10082_v51 = vadd.f32 %v9688_v36, %v9478_v52 }
 0x45c   : > { %v6778_v7 = vpop.eup %6777  ;;  %v4591_v35 = vadd.f32 %v4590_v54, %v4162_v39  ;;  %v4172_v24 = vmul.f32 %v6776_v9, %v9956_v37  ;;  %6797 = vpow2.f32 %v5249_v56  ;;  %v10087_v54 = vadd.f32 %v9694_v49, %v9466_v59 }
 0x45d   : > { %v6780_v33 = vpop.eup %6779  ;;  %v4628_v2 = vadd.f32 %v4627_v5, %v4163_v11  ;;  %v3253_v20 = vadd.f32 1.0, %v6778_v7  ;;  %6799 = vpow2.f32 %v5258_v10 }
 0x45e   : > { %v6782_v4 = vpop.eup %6781  ;;  %v4592_v0 = vadd.f32 %v4591_v35, %v4172_v24  ;;  %v4173_v55 = vmul.f32 %v6780_v33, %v9961_v25  ;;  %6801 = vpow2.f32 %v5259_v28  ;;  %v10571_v25 = vld [vmem:[#allocation39_spill] sm:$0xff]  ;;  %v5298_v17 = vmul.f32 -1.442695, %v10087_v54 }
 0x45f   : > { %v6784_v37 = vpop.eup %6783  ;;  %v4182_v43 = vmul.f32 %v6782_v4, %v9966_v61  ;;  %6803 = vrcp.f32 %v3253_v20  ;;  %v10095_v42 = vadd.f32 %v10571_v25, %v9478_v52  ;;  %v5289_v61 = vmul.f32 -1.442695, %v10082_v51 }
 0x460   : > { %v6786_v46 = vpop.eup %6785  ;;  %v4629_v36 = vadd.f32 %v4628_v2, %v4173_v55  ;;  %v4183_v8 = vmul.f32 %v6784_v37, %v9975_v14  ;;  %6805 = vpow2.f32 %v5268_v22 }
 0x461   : > { %v6788_v58 = vpop.eup %6787  ;;  %v4593_v59 = vadd.f32 %v4592_v0, %v4182_v43  ;;  %v4192_v49 = vmul.f32 %v6786_v46, %v9979_v15  ;;  %6807 = vpow2.f32 %v5269_v19  ;;  %v5299_v15 = vmul.f32 -1.442695, %v10095_v42 }
 0x462   : > { %v6790_v38 = vpop.eup %6789  ;;  %v4630_v57 = vadd.f32 %v4629_v36, %v4183_v8  ;;  %v4193_v1 = vmul.f32 %v6788_v58, %v9985_v29  ;;  %6809 = vpow2.f32 %v5278_v16 }
 0x463   : > { %v6792_v14 = vpop.eup %6791  ;;  %v4594_v27 = vadd.f32 %v4593_v59, %v4192_v49  ;;  %v4202_v40 = vmul.f32 %v6790_v38, %v9995_v53  ;;  %6811 = vpow2.f32 %v5279_v50 }
 0x464   : > { %v6794_v52 = vpop.eup %6793  ;;  %v4631_v56 = vadd.f32 %v4630_v57, %v4193_v1  ;;  %v4203_v23 = vmul.f32 %v6792_v14, %v9999_v32  ;;  %6813 = vpow2.f32 %v5288_v41 }
 0x465   : > { %v6796_v13 = vpop.eup %6795  ;;  %v4595_v10 = vadd.f32 %v4594_v27, %v4202_v40  ;;  %v3262_v60 = vadd.f32 1.0, %v6794_v52  ;;  %6815 = vpow2.f32 %v5289_v61 }
 0x466   : > { %v6798_v29 = vpop.eup %6797  ;;  %v4632_v63 = vadd.f32 %v4631_v56, %v4203_v23  ;;  %v4212_v28 = vmul.f32 %v6796_v13, %v10005_v44  ;;  %6817 = vpow2.f32 %v5298_v17 }
 0x467   : > { %v6800_v22 = vpop.eup %6799  ;;  %6819 = vrcp.f32 %v3262_v60  ;;  %v3263_v53 = vadd.f32 1.0, %v6798_v29 }
 0x468   : > { %v6802_v48 = vpop.eup %6801  ;;  %v4596_v5 = vadd.f32 %v4595_v10, %v4212_v28  ;;  %v3272_v39 = vadd.f32 1.0, %v6800_v22  ;;  %6821 = vpow2.f32 %v5299_v15 }
 0x469   : > { %v6804_v32 = vpop.eup %6803  ;;  %6823 = vrcp.f32 %v3263_v53  ;;  %v3273_v19 = vadd.f32 1.0, %v6802_v48 }
 0x46a   : > { %v6806_v9 = vpop.eup %6805  ;;  %v4213_v11 = vmul.f32 %v6804_v32, %v10022_v21  ;;  %6825 = vrcp.f32 %v3272_v39 }
 0x46b   : > { %v6808_v7 = vpop.eup %6807  ;;  %6827 = vrcp.f32 %v3273_v19  ;;  %v3282_v35 = vadd.f32 1.0, %v6806_v9 }
 0x46c   : > { %v6810_v24 = vpop.eup %6809  ;;  %v4633_v44 = vadd.f32 %v4632_v63, %v4213_v11  ;;  %v3283_v16 = vadd.f32 1.0, %v6808_v7 }
 0x46d   : > { %v6812_v33 = vpop.eup %6811  ;;  %6829 = vrcp.f32 %v3282_v35  ;;  %v3292_v2 = vadd.f32 1.0, %v6810_v24 }
 0x46e   : > { %v6814_v20 = vpop.eup %6813  ;;  %6831 = vrcp.f32 %v3283_v16  ;;  %v3293_v4 = vadd.f32 1.0, %v6812_v33  ;;  %v4275_v33 = vld [vmem:[#allocation2 + $0x8] sm:$0x3] }
 0x46f   : > { %v6816_v0 = vpop.eup %6815  ;;  %6833 = vrcp.f32 %v3292_v2  ;;  %v3302_v55 = vadd.f32 1.0, %v6814_v20 }
 0x470   : > { %v6818_v37 = vpop.eup %6817  ;;  %6835 = vrcp.f32 %v3293_v4  ;;  %v3303_v43 = vadd.f32 1.0, %v6816_v0 }
 0x471   : > { %v6820_v21 = vpop.eup %6819  ;;  %6837 = vrcp.f32 %v3302_v55  ;;  %v3312_v50 = vadd.f32 1.0, %v6818_v37 }
 0x472   : > { %v6822_v41 = vpop.eup %6821  ;;  %v4222_v46 = vmul.f32 %v6820_v21, %v10035_v3  ;;  %6839 = vrcp.f32 %v3303_v43 }
 0x473   : > { %v6824_v36 = vpop.eup %6823  ;;  %6841 = vrcp.f32 %v3312_v50  ;;  %v3313_v8 = vadd.f32 1.0, %v6822_v41 }
 0x474   : > { %v6826_v25 = vpop.eup %6825  ;;  %v4597_v58 = vadd.f32 %v4596_v5, %v4222_v46  ;;  %v4223_v59 = vmul.f32 %v6824_v36, %v10039_v12 }
 0x475   : > { %v6828_v49 = vpop.eup %6827  ;;  %v4232_v61 = vmul.f32 %v6826_v25, %v10043_v18  ;;  %6843 = vrcp.f32 %v3313_v8 }
 0x476   : > { %v4634_v38 = vadd.f32 %v4633_v44, %v4223_v59  ;;  %v4233_v57 = vmul.f32 %v6828_v49, %v10047_v6 }
 0x477   : > { %v6830_v1 = vpop.eup %6829  ;;  %v4598_v17 = vadd.f32 %v4597_v58, %v4232_v61 }
 0x478   : > { %v6832_v14 = vpop.eup %6831  ;;  %v4635_v27 = vadd.f32 %v4634_v38, %v4233_v57  ;;  %v4242_v3 = vmul.f32 %v6830_v1, %v10051_v45 }
 0x479   : > { %v6834_v40 = vpop.eup %6833  ;;  %v4243_v52 = vmul.f32 %v6832_v14, %v10056_v47 }
 0x47a   : > { %v6836_v56 = vpop.eup %6835  ;;  %v4599_v23 = vadd.f32 %v4598_v17, %v4242_v3  ;;  %v4252_v12 = vmul.f32 %v6834_v40, %v10063_v26 }
 0x47b   : > { %v6838_v15 = vpop.eup %6837  ;;  %v4636_v13 = vadd.f32 %v4635_v27, %v4243_v52  ;;  %v4253_v18 = vmul.f32 %v6836_v56, %v10072_v34 }
 0x47c   : > { %v6840_v10 = vpop.eup %6839  ;;  %v4600_v60 = vadd.f32 %v4599_v23, %v4252_v12  ;;  %v4262_v6 = vmul.f32 %v6838_v15, %v10076_v31 }
 0x47d   : > { %v6842_v29 = vpop.eup %6841  ;;  %v4637_v63 = vadd.f32 %v4636_v13, %v4253_v18  ;;  %v4263_v28 = vmul.f32 %v6840_v10, %v10082_v51 }
 0x47e   : > { %v4601_v45 = vadd.f32 %v4600_v60, %v4262_v6  ;;  %v4272_v22 = vmul.f32 %v6842_v29, %v10087_v54 }
 0x47f   : > { %v6844_v47 = vpop.eup %6843  ;;  %v4638_v53 = vadd.f32 %v4637_v63, %v4263_v28 }
 0x480   : > { %v4602_v48 = vadd.f32 %v4601_v45, %v4272_v22  ;;  %v4273_v26 = vmul.f32 %v6844_v47, %v10095_v42 }
 0x482   : > { %v4603_v5 = vrot.slane %v4602_v48, 4  ;;  %v4639_v39 = vadd.f32 %v4638_v53, %v4273_v26 }
 0x484   : > { %v4604_v32 = vadd.f32 %v4603_v5, %v4602_v48  ;;  %v4640_v34 = vrot.slane %v4639_v39, 4 }
 0x486   : > { %v4605_v19 = vrot.slane %v4604_v32, 2  ;;  %v4641_v9 = vadd.f32 %v4640_v34, %v4639_v39 }
 0x488   : > { %v4606_v31 = vadd.f32 %v4605_v19, %v4604_v32  ;;  %v4642_v11 = vrot.slane %v4641_v9, 2 }
 0x48a   : > { %v4607_v7 = vrot.slane %v4606_v31, 1  ;;  %v4643_v35 = vadd.f32 %v4642_v11, %v4641_v9 }
 0x48c   : > { %v4608_v51 = vadd.f32 %v4607_v7, %v4606_v31  ;;  %v4644_v24 = vrot.slane %v4643_v35, 1 }
 0x48e   : > { %v4645_v44 = vadd.f32 %v4644_v24, %v4643_v35 }
 0x490   : > { %v4705_v54 = vcombine.low %v4608_v51, %v4645_v44 }
 0x492   : > { %v4712_v16 = vrot.slane %v4705_v54, %v10549_v62 }
 0x494   : > { %v4719_v42 = vrot.slane %v4712_v16, %v10549_v62 }
 0x496   : > { %v4723_v2 = vadd.f32 %v4719_v42, %v4275_v33 }
 0x498   : > { %4729 = vst.msk [vmem:[#allocation2 + $0x8] sm:$0x3] %vm9804_vm1, %v4723_v2 }
 0x49f   : > { %v4734_v20 = vld [vmem:[#allocation2 + $0x8] sm:$0x3] }
 0x4a0   : > { %v4736_v4 = vmul.f32 0.00390625, %v4734_v20 }
 0x4a2   : > { %4738 = vst.msk [vmem:[%s10027_s15 + $0x8] sm:$0x3] %vm9804_vm1, %v4736_v4 }
 0x4a3 PF: > { %s15_s20 = sadd.s32 1, %s6869_s20   ;;  %s10572_s18 = smov %s6865_s19 }
 0x4a4   : > { %p12_p5 = scmp.ge.s32.totalorder %s15_s20, 4   ;;  %s10573_s19 = smov %s10575_s21 }
 0x4a6   :  { %14 = sbr.rel (!%p12_p5) target bundleno = 2 (0x2), region = 78 }

// kernel: mynet_forward.3
= control target key start
LH: loop header
LB: loop body
LE: loop exit
PB: predicated region body
PF: predicated region fallthrough
CT: control target
= control target key end

     0   :  { %v4066_v36 = vmov 1983009808   ;;  %v44_v38 = vlaneseq  ;;  %s5301_s0 = inlined_call_operand.vmem [shape: f32[2,1280], index: 0, kind: input, shape index: {}]   ;;  %s5302_s1 = inlined_call_operand.vmem [shape: bf16[1280,512], index: 1, kind: input, shape index: {}]   ;;  %s5303_s2 = inlined_call_operand.vmem [shape: f32[1,512], index: 2, kind: input, shape index: {}]   ;;  %s5304_s3 = inlined_call_operand.vmem [shape: bf16[512,128], index: 3, kind: input, shape index: {}]   ;;  %s5305_s4 = inlined_call_operand.vmem [shape: f32[1,128], index: 4, kind: input, shape index: {}]   ;;  %s5306_s5 = inlined_call_operand.vmem [shape: bf16[128,64], index: 5, kind: input, shape index: {}]   ;;  %s5307_s6 = inlined_call_operand.vmem [shape: f32[1,64], index: 6, kind: input, shape index: {}]   ;;  %s5308_s7 = inlined_call_operand.vmem [shape: bf16[64,128], index: 7, kind: input, shape index: {}]   ;;  %s5309_s8 = inlined_call_operand.vmem [shape: f32[1,128], index: 8, kind: input, shape index: {}]   ;;  %s5310_s9 = inlined_call_operand.hbm [shape: f32[2,128], index: 9, kind: output, shape index: {}]  }
   0x1   :  { %v3516_v0 = vld [vmem:[%s5302_s1 + $0x4] ss:$16 sps:$4 sm:$0xff]   ;;  %v3518_v1 = vld [vmem:[%s5302_s1 + $0xc] ss:$16 sps:$4 sm:$0xff]   ;;  %v3520_v2 = vld [vmem:[%s5302_s1] ss:$16 sps:$4 sm:$0xff]   ;;  %v42_v37 = vunpack.c.l.s4 %v4066_v36 }
   0x2   :  { %2044 = vmatprep.subr.bf16.mxu0 %v3516_v0  ;;  %v3521_v3 = vld [vmem:[%s5302_s1 + $0x8] ss:$16 sps:$4 sm:$0xff]   ;;  %2249 = vmatprep.subr.bf16.mxu1 %v3518_v1  ;;  %v3522_v4 = vld [vmem:[%s5302_s1 + $0x24] ss:$16 sps:$4 sm:$0xff]   ;;  %v3524_v5 = vld [vmem:[%s5302_s1 + $0x2c] ss:$16 sps:$4 sm:$0xff]  }
   0x3   :  { %2045 = vmatpush1.bf16.msra.mxu0 %v3520_v2  ;;  %2250 = vmatpush1.bf16.msra.mxu1 %v3521_v3  ;;  %v3526_v6 = vld [vmem:[%s5302_s1 + $0x20] ss:$16 sps:$4 sm:$0xff]   ;;  %v3527_v7 = vld [vmem:[%s5302_s1 + $0x28] ss:$16 sps:$4 sm:$0xff]   ;;  %v3528_v8 = vld [vmem:[%s5302_s1 + $0x44] ss:$16 sps:$4 sm:$0xff]   ;;  %v43_v42 = vunpack.c.0.s8 %v42_v37 }
   0x4   :  { %2046 = vmatprep.subr.bf16.mxu0 %v3522_v4  ;;  %2251 = vmatprep.subr.bf16.mxu1 %v3524_v5  ;;  %v3530_v9 = vld [vmem:[%s5302_s1 + $0x4c] ss:$16 sps:$4 sm:$0xff]   ;;  %v3532_v10 = vld [vmem:[%s5302_s1 + $0x40] ss:$16 sps:$4 sm:$0xff]   ;;  %v3533_v11 = vld [vmem:[%s5302_s1 + $0x48] ss:$16 sps:$4 sm:$0xff]  }
   0x5   :  { %v3534_v12 = vld [vmem:[%s5302_s1 + $0x64] ss:$16 sps:$4 sm:$0xff]   ;;  %v3536_v13 = vld [vmem:[%s5302_s1 + $0x6c] ss:$16 sps:$4 sm:$0xff]   ;;  %v3538_v14 = vld [vmem:[%s5302_s1 + $0x60] ss:$16 sps:$4 sm:$0xff]  }
   0x6   :  { %v3539_v15 = vld [vmem:[%s5302_s1 + $0x68] ss:$16 sps:$4 sm:$0xff]   ;;  %v3540_v16 = vld [vmem:[%s5302_s1 + $0x84] ss:$16 sps:$4 sm:$0xff]   ;;  %v3542_v17 = vld [vmem:[%s5302_s1 + $0x8c] ss:$16 sps:$4 sm:$0xff]  }
   0x7   :  { %2047 = vmatpush1.bf16.msra.mxu0 %v3526_v6  ;;  %2252 = vmatpush1.bf16.msra.mxu1 %v3527_v7  ;;  %v3544_v18 = vld [vmem:[%s5302_s1 + $0x80] ss:$16 sps:$4 sm:$0xff]   ;;  %v3545_v19 = vld [vmem:[%s5302_s1 + $0x88] ss:$16 sps:$4 sm:$0xff]   ;;  %v3546_v20 = vld [vmem:[%s5302_s1 + $0xa4] ss:$16 sps:$4 sm:$0xff]  }
   0x8   :  { %2048 = vmatprep.subr.bf16.mxu0 %v3528_v8  ;;  %2253 = vmatprep.subr.bf16.mxu1 %v3530_v9  ;;  %v3548_v21 = vld [vmem:[%s5302_s1 + $0xac] ss:$16 sps:$4 sm:$0xff]   ;;  %v3550_v22 = vld [vmem:[%s5302_s1 + $0xa0] ss:$16 sps:$4 sm:$0xff]   ;;  %v3551_v23 = vld [vmem:[%s5302_s1 + $0xa8] ss:$16 sps:$4 sm:$0xff]  }
   0x9   :  { %v3552_v24 = vld [vmem:[%s5302_s1 + $0xc4] ss:$16 sps:$4 sm:$0xff]   ;;  %v3554_v25 = vld [vmem:[%s5302_s1 + $0xcc] ss:$16 sps:$4 sm:$0xff]   ;;  %v3556_v26 = vld [vmem:[%s5302_s1 + $0xc0] ss:$16 sps:$4 sm:$0xff]  }
   0xa   :  { %v3557_v27 = vld [vmem:[%s5302_s1 + $0xc8] ss:$16 sps:$4 sm:$0xff]   ;;  %v3558_v28 = vld [vmem:[%s5302_s1 + $0xe4] ss:$16 sps:$4 sm:$0xff]   ;;  %v3560_v29 = vld [vmem:[%s5302_s1 + $0xec] ss:$16 sps:$4 sm:$0xff]  }
   0xb   :  { %2049 = vmatpush1.bf16.msra.mxu0 %v3532_v10  ;;  %2254 = vmatpush1.bf16.msra.mxu1 %v3533_v11  ;;  %v3562_v30 = vld [vmem:[%s5302_s1 + $0xe0] ss:$16 sps:$4 sm:$0xff]   ;;  %v3563_v31 = vld [vmem:[%s5302_s1 + $0xe8] ss:$16 sps:$4 sm:$0xff]   ;;  %v3564_v32 = vld [vmem:[%s5302_s1 + $0x104] ss:$16 sps:$4 sm:$0xff]  }
   0xc   :  { %2050 = vmatprep.subr.bf16.mxu0 %v3534_v12  ;;  %2255 = vmatprep.subr.bf16.mxu1 %v3536_v13  ;;  %v3566_v33 = vld [vmem:[%s5302_s1 + $0x10c] ss:$16 sps:$4 sm:$0xff]   ;;  %v3568_v34 = vld [vmem:[%s5302_s1 + $0x100] ss:$16 sps:$4 sm:$0xff]   ;;  %v3569_v35 = vld [vmem:[%s5302_s1 + $0x108] ss:$16 sps:$4 sm:$0xff]  }
   0xd   :  { %v3570_v39 = vld [vmem:[%s5302_s1 + $0x124] ss:$16 sps:$4 sm:$0xff]   ;;  %v3572_v40 = vld [vmem:[%s5302_s1 + $0x12c] ss:$16 sps:$4 sm:$0xff]   ;;  %v3574_v41 = vld [vmem:[%s5302_s1 + $0x120] ss:$16 sps:$4 sm:$0xff]  }
   0xe   :  { %v4237_v43 = vshrl.u32 %v44_v38, 7  ;;  %v3575_v44 = vld [vmem:[%s5302_s1 + $0x128] ss:$16 sps:$4 sm:$0xff]   ;;  %v3576_v45 = vld [vmem:[%s5302_s1 + $0x144] ss:$16 sps:$4 sm:$0xff]  }
   0xf   :  { %2051 = vmatpush1.bf16.msra.mxu0 %v3538_v14  ;;  %2256 = vmatpush1.bf16.msra.mxu1 %v3539_v15  ;;  %v3578_v46 = vld [vmem:[%s5302_s1 + $0x14c] ss:$16 sps:$4 sm:$0xff]   ;;  %v3580_v47 = vld [vmem:[%s5302_s1 + $0x140] ss:$16 sps:$4 sm:$0xff]   ;;  %v3581_v48 = vld [vmem:[%s5302_s1 + $0x148] ss:$16 sps:$4 sm:$0xff]  }
  0x10   :  { %2052 = vmatprep.subr.bf16.mxu0 %v3540_v16  ;;  %2257 = vmatprep.subr.bf16.mxu1 %v3542_v17  ;;  %v4255_v49 = vsub.s32 %v43_v42, %v4237_v43  ;;  %v3582_v50 = vld [vmem:[%s5302_s1 + $0x164] ss:$16 sps:$4 sm:$0xff]   ;;  %v3584_v51 = vld [vmem:[%s5302_s1 + $0x16c] ss:$16 sps:$4 sm:$0xff]   ;;  %v3586_v53 = vld [vmem:[%s5302_s1 + $0x160] ss:$16 sps:$4 sm:$0xff]  }
  0x11   :  { %v34_v52 = vld [vmem:[%s5301_s0] sm:$0xff]  ;;  %v3587_v55 = vld [vmem:[%s5302_s1 + $0x168] ss:$16 sps:$4 sm:$0xff]   ;;  %v3590_v57 = vld [vmem:[%s5302_s1 + $0x18c] ss:$16 sps:$4 sm:$0xff]  }
  0x12   :  { %v47_v54 = vrot.slane %v34_v52, %v4255_v49  ;;  %v3588_v56 = vld [vmem:[%s5302_s1 + $0x184] ss:$16 sps:$4 sm:$0xff]   ;;  %v3592_v59 = vld [vmem:[%s5302_s1 + $0x180] ss:$16 sps:$4 sm:$0xff]   ;;  %v3593_v61 = vld [vmem:[%s5302_s1 + $0x188] ss:$16 sps:$4 sm:$0xff]   ;;  %v40_v4 = vcombine.high %v34_v52, %v34_v52 }
  0x13   :  { %2053 = vmatpush1.bf16.msra.mxu0 %v3544_v18  ;;  %2258 = vmatpush1.bf16.msra.mxu1 %v3545_v19  ;;  %v3594_v62 = vld [vmem:[%s5302_s1 + $0x1a4] ss:$16 sps:$4 sm:$0xff]   ;;  %v3596_v63 = vld [vmem:[%s5302_s1 + $0x1ac] ss:$16 sps:$4 sm:$0xff]   ;;  %v3598_v0 = vld [vmem:[%s5302_s1 + $0x1a0] ss:$16 sps:$4 sm:$0xff]  }
  0x14   :  { %2054 = vmatprep.subr.bf16.mxu0 %v3546_v20  ;;  %2259 = vmatprep.subr.bf16.mxu1 %v3548_v21  ;;  %v55_v58 = vcombine.high %v47_v54, %v47_v54  ;;  %v3599_v1 = vld [vmem:[%s5302_s1 + $0x1a8] ss:$16 sps:$4 sm:$0xff]   ;;  %v3600_v2 = vld [vmem:[%s5302_s1 + $0x1c4] ss:$16 sps:$4 sm:$0xff]   ;;  %v3602_v3 = vld [vmem:[%s5302_s1 + $0x1cc] ss:$16 sps:$4 sm:$0xff]   ;;  %v4316_v9 = vrot.slane %v40_v4, %v4255_v49  ;;  %v92_v16 = vpack.c.bf16 %v47_v54, %v47_v54 }
  0x15   :  { %v3604_v5 = vld [vmem:[%s5302_s1 + $0x1c0] ss:$16 sps:$4 sm:$0xff]   ;;  %v3605_v6 = vld [vmem:[%s5302_s1 + $0x1c8] ss:$16 sps:$4 sm:$0xff]   ;;  %v3606_v7 = vld [vmem:[%s5302_s1 + $0x1e4] ss:$16 sps:$4 sm:$0xff]  }
  0x16   :  { %v93_v60 = vpack.c.bf16 %v55_v58, %v55_v58  ;;  %v3608_v8 = vld [vmem:[%s5302_s1 + $0x1ec] ss:$16 sps:$4 sm:$0xff]   ;;  %v3610_v10 = vld [vmem:[%s5302_s1 + $0x1e0] ss:$16 sps:$4 sm:$0xff]   ;;  %v3611_v11 = vld [vmem:[%s5302_s1 + $0x1e8] ss:$16 sps:$4 sm:$0xff]   ;;  %v56_v14 = vcombine.high %v4316_v9, %v4316_v9 }
  0x17   :  { %2055 = vmatpush1.bf16.msra.mxu0 %v3550_v22  ;;  %2260 = vmatpush1.bf16.msra.mxu1 %v3551_v23  ;;  %v3615_v12 = vld [vmem:[%s5302_s1 + $0x204] ss:$16 sps:$4 sm:$0xff]   ;;  %v3618_v13 = vld [vmem:[%s5302_s1 + $0x20c] ss:$16 sps:$4 sm:$0xff]   ;;  %v3613_v15 = vld [vmem:[%s5302_s1 + $0x200] ss:$16 sps:$4 sm:$0xff]  }
  0x18   :  { %2056 = vmatprep.subr.bf16.mxu0 %v3552_v24  ;;  %2261 = vmatprep.subr.bf16.mxu1 %v3554_v25  ;;  %v3616_v17 = vld [vmem:[%s5302_s1 + $0x208] ss:$16 sps:$4 sm:$0xff]   ;;  %v3621_v18 = vld [vmem:[%s5302_s1 + $0x224] ss:$16 sps:$4 sm:$0xff]   ;;  %v3624_v19 = vld [vmem:[%s5302_s1 + $0x22c] ss:$16 sps:$4 sm:$0xff]   ;;  %v95_v20 = vpack.c.bf16 %v56_v14, %v56_v14 }
  0x19   :  { %2076 = vmatprep.mubr.bf16.mxu0 %v93_v60  ;;  %2281 = vmatprep.mubr.bf16.mxu1 %v93_v60  ;;  %v3619_v21 = vld [vmem:[%s5302_s1 + $0x220] ss:$16 sps:$4 sm:$0xff]   ;;  %v3622_v22 = vld [vmem:[%s5302_s1 + $0x228] ss:$16 sps:$4 sm:$0xff]   ;;  %v3627_v23 = vld [vmem:[%s5302_s1 + $0x244] ss:$16 sps:$4 sm:$0xff]  }
  0x1a   :  { %v3630_v24 = vld [vmem:[%s5302_s1 + $0x24c] ss:$16 sps:$4 sm:$0xff]   ;;  %v3625_v25 = vld [vmem:[%s5302_s1 + $0x240] ss:$16 sps:$4 sm:$0xff]   ;;  %v3646_v38 = vld [vmem:[%s5302_s1 + $0x2a8] ss:$16 sps:$4 sm:$0xff]  }
  0x1b   :  { %2057 = vmatpush1.bf16.msra.mxu0 %v3556_v26  ;;  %2262 = vmatpush1.bf16.msra.mxu1 %v3557_v27  ;;  %v3628_v26 = vld [vmem:[%s5302_s1 + $0x248] ss:$16 sps:$4 sm:$0xff]   ;;  %v3633_v27 = vld [vmem:[%s5302_s1 + $0x264] ss:$16 sps:$4 sm:$0xff]   ;;  %v3648_v36 = vld [vmem:[%s5302_s1 + $0x2ac] ss:$16 sps:$4 sm:$0xff]  }
  0x1c   :  { %2058 = vmatprep.subr.bf16.mxu0 %v3558_v28  ;;  %2263 = vmatprep.subr.bf16.mxu1 %v3560_v29  ;;  %v3636_v28 = vld [vmem:[%s5302_s1 + $0x26c] ss:$16 sps:$4 sm:$0xff]   ;;  %v3631_v29 = vld [vmem:[%s5302_s1 + $0x260] ss:$16 sps:$4 sm:$0xff]   ;;  %v3652_v42 = vld [vmem:[%s5302_s1 + $0x2c8] ss:$16 sps:$4 sm:$0xff]  }
  0x1d   :  { %v3643_v37 = vld [vmem:[%s5302_s1 + $0x2a0] ss:$16 sps:$4 sm:$0xff]   ;;  %v3664_v52 = vld [vmem:[%s5302_s1 + $0x308] ss:$16 sps:$4 sm:$0xff]   ;;  %v3672_v54 = vld [vmem:[%s5302_s1 + $0x32c] ss:$16 sps:$4 sm:$0xff]  }
  0x1e   :  { %v3678_v58 = vld [vmem:[%s5302_s1 + $0x34c] ss:$16 sps:$4 sm:$0xff]   ;;  %v3676_v60 = vld [vmem:[%s5302_s1 + $0x348] ss:$16 sps:$4 sm:$0xff]   ;;  %v3705_v14 = vld [vmem:[%s5302_s1 + $0x3e4] ss:$16 sps:$4 sm:$0xff]  }
  0x1f   :  { %2059 = vmatpush1.bf16.msra.mxu0 %v3562_v30  ;;  %2264 = vmatpush1.bf16.msra.mxu1 %v3563_v31  ;;  %v3634_v30 = vld [vmem:[%s5302_s1 + $0x268] ss:$16 sps:$4 sm:$0xff]   ;;  %v3639_v31 = vld [vmem:[%s5302_s1 + $0x284] ss:$16 sps:$4 sm:$0xff]  }
  0x20   :  { %2060 = vmatprep.subr.bf16.mxu0 %v3564_v32  ;;  %2265 = vmatprep.subr.bf16.mxu1 %v3566_v33  ;;  %v3642_v32 = vld [vmem:[%s5302_s1 + $0x28c] ss:$16 sps:$4 sm:$0xff]   ;;  %v3637_v33 = vld [vmem:[%s5302_s1 + $0x280] ss:$16 sps:$4 sm:$0xff]   ;;  %v3688_v4 = vld [vmem:[%s5302_s1 + $0x388] ss:$16 sps:$4 sm:$0xff]  }
  0x23   :  { %2061 = vmatpush1.bf16.msra.mxu0 %v3568_v34  ;;  %2266 = vmatpush1.bf16.msra.mxu1 %v3569_v35  ;;  %v3640_v34 = vld [vmem:[%s5302_s1 + $0x288] ss:$16 sps:$4 sm:$0xff]   ;;  %v3645_v35 = vld [vmem:[%s5302_s1 + $0x2a4] ss:$16 sps:$4 sm:$0xff]  }
  0x24   :  { %2062 = vmatprep.subr.bf16.mxu0 %v3570_v39  ;;  %2267 = vmatprep.subr.bf16.mxu1 %v3572_v40  ;;  %v3651_v39 = vld [vmem:[%s5302_s1 + $0x2c4] ss:$16 sps:$4 sm:$0xff]   ;;  %v3654_v40 = vld [vmem:[%s5302_s1 + $0x2cc] ss:$16 sps:$4 sm:$0xff]  }
  0x27   :  { %2063 = vmatpush1.bf16.msra.mxu0 %v3574_v41  ;;  %2268 = vmatpush1.bf16.msra.mxu1 %v3575_v44  ;;  %v3649_v41 = vld [vmem:[%s5302_s1 + $0x2c0] ss:$16 sps:$4 sm:$0xff]   ;;  %v3657_v44 = vld [vmem:[%s5302_s1 + $0x2e4] ss:$16 sps:$4 sm:$0xff]  }
  0x28   :  { %2064 = vmatprep.subr.bf16.mxu0 %v3576_v45  ;;  %2269 = vmatprep.subr.bf16.mxu1 %v3578_v46  ;;  %v3660_v45 = vld [vmem:[%s5302_s1 + $0x2ec] ss:$16 sps:$4 sm:$0xff]   ;;  %v3655_v46 = vld [vmem:[%s5302_s1 + $0x2e0] ss:$16 sps:$4 sm:$0xff]  }
  0x2b   :  { %2065 = vmatpush1.bf16.msra.mxu0 %v3580_v47  ;;  %2270 = vmatpush1.bf16.msra.mxu1 %v3581_v48  ;;  %v3658_v47 = vld [vmem:[%s5302_s1 + $0x2e8] ss:$16 sps:$4 sm:$0xff]   ;;  %v3663_v48 = vld [vmem:[%s5302_s1 + $0x304] ss:$16 sps:$4 sm:$0xff]  }
  0x2c   :  { %2066 = vmatprep.subr.bf16.mxu0 %v3582_v50  ;;  %2271 = vmatprep.subr.bf16.mxu1 %v3584_v51  ;;  %v3666_v50 = vld [vmem:[%s5302_s1 + $0x30c] ss:$16 sps:$4 sm:$0xff]   ;;  %v3661_v51 = vld [vmem:[%s5302_s1 + $0x300] ss:$16 sps:$4 sm:$0xff]  }
  0x2f   :  { %2067 = vmatpush1.bf16.msra.mxu0 %v3586_v53  ;;  %2272 = vmatpush1.bf16.msra.mxu1 %v3587_v55  ;;  %v3669_v53 = vld [vmem:[%s5302_s1 + $0x324] ss:$16 sps:$4 sm:$0xff]   ;;  %v3667_v55 = vld [vmem:[%s5302_s1 + $0x320] ss:$16 sps:$4 sm:$0xff]  }
  0x30   :  { %2068 = vmatprep.subr.bf16.mxu0 %v3588_v56  ;;  %2273 = vmatprep.subr.bf16.mxu1 %v3590_v57  ;;  %v3670_v56 = vld [vmem:[%s5302_s1 + $0x328] ss:$16 sps:$4 sm:$0xff]   ;;  %v3675_v57 = vld [vmem:[%s5302_s1 + $0x344] ss:$16 sps:$4 sm:$0xff]  }
  0x33   :  { %2069 = vmatpush1.bf16.msra.mxu0 %v3592_v59  ;;  %2274 = vmatpush1.bf16.msra.mxu1 %v3593_v61  ;;  %v3673_v59 = vld [vmem:[%s5302_s1 + $0x340] ss:$16 sps:$4 sm:$0xff]   ;;  %v3681_v61 = vld [vmem:[%s5302_s1 + $0x364] ss:$16 sps:$4 sm:$0xff]  }
  0x34   :  { %2070 = vmatprep.subr.bf16.mxu0 %v3594_v62  ;;  %2275 = vmatprep.subr.bf16.mxu1 %v3596_v63  ;;  %v3684_v62 = vld [vmem:[%s5302_s1 + $0x36c] ss:$16 sps:$4 sm:$0xff]   ;;  %v3679_v63 = vld [vmem:[%s5302_s1 + $0x360] ss:$16 sps:$4 sm:$0xff]  }
  0x37   :  { %2071 = vmatpush1.bf16.msra.mxu0 %v3598_v0  ;;  %2276 = vmatpush1.bf16.msra.mxu1 %v3599_v1  ;;  %v3682_v0 = vld [vmem:[%s5302_s1 + $0x368] ss:$16 sps:$4 sm:$0xff]   ;;  %v3687_v1 = vld [vmem:[%s5302_s1 + $0x384] ss:$16 sps:$4 sm:$0xff]  }
  0x38   :  { %2072 = vmatprep.subr.bf16.mxu0 %v3600_v2  ;;  %2277 = vmatprep.subr.bf16.mxu1 %v3602_v3  ;;  %v3690_v2 = vld [vmem:[%s5302_s1 + $0x38c] ss:$16 sps:$4 sm:$0xff]   ;;  %v3685_v3 = vld [vmem:[%s5302_s1 + $0x380] ss:$16 sps:$4 sm:$0xff]  }
  0x3b   :  { %2073 = vmatpush1.bf16.msra.mxu0 %v3604_v5  ;;  %2278 = vmatpush1.bf16.msra.mxu1 %v3605_v6  ;;  %v3693_v5 = vld [vmem:[%s5302_s1 + $0x3a4] ss:$16 sps:$4 sm:$0xff]   ;;  %v3696_v6 = vld [vmem:[%s5302_s1 + $0x3ac] ss:$16 sps:$4 sm:$0xff]  }
  0x3c   :  { %2074 = vmatprep.subr.bf16.mxu0 %v3606_v7  ;;  %2279 = vmatprep.subr.bf16.mxu1 %v3608_v8  ;;  %v3691_v7 = vld [vmem:[%s5302_s1 + $0x3a0] ss:$16 sps:$4 sm:$0xff]   ;;  %v3694_v8 = vld [vmem:[%s5302_s1 + $0x3a8] ss:$16 sps:$4 sm:$0xff]  }
  0x3f   :  { %2075 = vmatpush1.bf16.msra.mxu0 %v3610_v10  ;;  %2280 = vmatpush1.bf16.msra.mxu1 %v3611_v11  ;;  %v3699_v10 = vld [vmem:[%s5302_s1 + $0x3c4] ss:$16 sps:$4 sm:$0xff]   ;;  %v3702_v11 = vld [vmem:[%s5302_s1 + $0x3cc] ss:$16 sps:$4 sm:$0xff]  }
  0x40   :  { %2085 = vmatprep.subr.bf16.mxu0 %v3615_v12  ;;  %2290 = vmatprep.subr.bf16.mxu1 %v3618_v13  ;;  %v3697_v12 = vld [vmem:[%s5302_s1 + $0x3c0] ss:$16 sps:$4 sm:$0xff]   ;;  %v3700_v13 = vld [vmem:[%s5302_s1 + $0x3c8] ss:$16 sps:$4 sm:$0xff]  }
  0x42   :  { %2077 = vmatmul.mubr.bf16.vlgmr.msra.gmra.mrb[0].mxu0 %v92_v16  ;;  %2282 = vmatmul.mubr.bf16.vlgmr.msra.gmra.mrb[0].mxu1 %v92_v16  ;;  %v3703_v16 = vld [vmem:[%s5302_s1 + $0x3e0] ss:$16 sps:$4 sm:$0xff]  }
  0x43   :  { %2086 = vmatpush1.bf16.msra.mxu0 %v3613_v15  ;;  %2291 = vmatpush1.bf16.msra.mxu1 %v3616_v17  ;;  %v3708_v15 = vld [vmem:[%s5302_s1 + $0x3ec] ss:$16 sps:$4 sm:$0xff]   ;;  %v3706_v17 = vld [vmem:[%s5302_s1 + $0x3e8] ss:$16 sps:$4 sm:$0xff]  }
  0x44   :  { %2087 = vmatprep.subr.bf16.mxu0 %v3621_v18  ;;  %2292 = vmatprep.subr.bf16.mxu1 %v3624_v19  ;;  %v3711_v18 = vld [vmem:[%s5302_s1 + $0x404] ss:$16 sps:$4 sm:$0xff]   ;;  %v3714_v19 = vld [vmem:[%s5302_s1 + $0x40c] ss:$16 sps:$4 sm:$0xff]  }
  0x45   :  { %2117 = vmatprep.mubr.bf16.mxu0 %v95_v20  ;;  %2322 = vmatprep.mubr.bf16.mxu1 %v95_v20  ;;  %v3709_v20 = vld [vmem:[%s5302_s1 + $0x400] ss:$16 sps:$4 sm:$0xff]  }
  0x47   :  { %2088 = vmatpush1.bf16.msra.mxu0 %v3619_v21  ;;  %2293 = vmatpush1.bf16.msra.mxu1 %v3622_v22  ;;  %v94_v21 = vpack.c.bf16 %v4316_v9, %v4316_v9  ;;  %v3712_v22 = vld [vmem:[%s5302_s1 + $0x408] ss:$16 sps:$4 sm:$0xff]   ;;  %v3720_v9 = vld [vmem:[%s5302_s1 + $0x42c] ss:$16 sps:$4 sm:$0xff]  }
  0x48   :  { %2089 = vmatprep.subr.bf16.mxu0 %v3627_v23  ;;  %2294 = vmatprep.subr.bf16.mxu1 %v3630_v24  ;;  %v4535_v23 = vld [vmem:[%s5301_s0 + $0x8] sm:$0xff]  ;;  %v3717_v24 = vld [vmem:[%s5302_s1 + $0x424] ss:$16 sps:$4 sm:$0xff]  }
  0x4b   :  { %2090 = vmatpush1.bf16.msra.mxu0 %v3625_v25  ;;  %2295 = vmatpush1.bf16.msra.mxu1 %v3628_v26  ;;  %v4545_v25 = vrot.slane %v4535_v23, %v4255_v49 }
  0x4c   :  { %2091 = vmatprep.subr.bf16.mxu0 %v3633_v27  ;;  %2296 = vmatprep.subr.bf16.mxu1 %v3636_v28  ;;  %v3715_v27 = vld [vmem:[%s5302_s1 + $0x420] ss:$16 sps:$4 sm:$0xff]   ;;  %v3718_v28 = vld [vmem:[%s5302_s1 + $0x428] ss:$16 sps:$4 sm:$0xff]  }
  0x4d   :  { %v72_v26 = vcombine.high %v4545_v25, %v4545_v25 }
  0x4f   :  { %2092 = vmatpush1.bf16.msra.mxu0 %v3631_v29  ;;  %2297 = vmatpush1.bf16.msra.mxu1 %v3634_v30  ;;  %v3723_v29 = vld [vmem:[%s5302_s1 + $0x444] ss:$16 sps:$4 sm:$0xff]   ;;  %v3726_v30 = vld [vmem:[%s5302_s1 + $0x44c] ss:$16 sps:$4 sm:$0xff]  }
  0x50   :  { %2093 = vmatprep.subr.bf16.mxu0 %v3639_v31  ;;  %2298 = vmatprep.subr.bf16.mxu1 %v3642_v32  ;;  %v97_v31 = vpack.c.bf16 %v72_v26, %v72_v26  ;;  %v3721_v32 = vld [vmem:[%s5302_s1 + $0x440] ss:$16 sps:$4 sm:$0xff]   ;;  %v3802_v26 = vld [vmem:[%s5302_s1 + $0x5e8] ss:$16 sps:$4 sm:$0xff]  }
  0x53   :  { %2094 = vmatpush1.bf16.msra.mxu0 %v3637_v33  ;;  %2299 = vmatpush1.bf16.msra.mxu1 %v3640_v34  ;;  %v3724_v33 = vld [vmem:[%s5302_s1 + $0x448] ss:$16 sps:$4 sm:$0xff]   ;;  %v3729_v34 = vld [vmem:[%s5302_s1 + $0x464] ss:$16 sps:$4 sm:$0xff]  }
  0x54   :  { %2095 = vmatprep.subr.bf16.mxu0 %v3645_v35  ;;  %2300 = vmatprep.subr.bf16.mxu1 %v3648_v36  ;;  %v3732_v35 = vld [vmem:[%s5302_s1 + $0x46c] ss:$16 sps:$4 sm:$0xff]   ;;  %v3727_v36 = vld [vmem:[%s5302_s1 + $0x460] ss:$16 sps:$4 sm:$0xff]  }
  0x57   :  { %2096 = vmatpush1.bf16.msra.mxu0 %v3643_v37  ;;  %2301 = vmatpush1.bf16.msra.mxu1 %v3646_v38  ;;  %v3730_v37 = vld [vmem:[%s5302_s1 + $0x468] ss:$16 sps:$4 sm:$0xff]   ;;  %v3735_v38 = vld [vmem:[%s5302_s1 + $0x484] ss:$16 sps:$4 sm:$0xff]  }
  0x58   :  { %2097 = vmatprep.subr.bf16.mxu0 %v3651_v39  ;;  %2302 = vmatprep.subr.bf16.mxu1 %v3654_v40  ;;  %v3738_v39 = vld [vmem:[%s5302_s1 + $0x48c] ss:$16 sps:$4 sm:$0xff]   ;;  %v3733_v40 = vld [vmem:[%s5302_s1 + $0x480] ss:$16 sps:$4 sm:$0xff]  }
  0x5b   :  { %2098 = vmatpush1.bf16.msra.mxu0 %v3649_v41  ;;  %2303 = vmatpush1.bf16.msra.mxu1 %v3652_v42  ;;  %v3736_v41 = vld [vmem:[%s5302_s1 + $0x488] ss:$16 sps:$4 sm:$0xff]   ;;  %v3741_v42 = vld [vmem:[%s5302_s1 + $0x4a4] ss:$16 sps:$4 sm:$0xff]  }
  0x5c   :  { %2099 = vmatprep.subr.bf16.mxu0 %v3657_v44  ;;  %2304 = vmatprep.subr.bf16.mxu1 %v3660_v45  ;;  %v3744_v44 = vld [vmem:[%s5302_s1 + $0x4ac] ss:$16 sps:$4 sm:$0xff]   ;;  %v3739_v45 = vld [vmem:[%s5302_s1 + $0x4a0] ss:$16 sps:$4 sm:$0xff]  }
  0x5f   :  { %2100 = vmatpush1.bf16.msra.mxu0 %v3655_v46  ;;  %2305 = vmatpush1.bf16.msra.mxu1 %v3658_v47  ;;  %v3742_v46 = vld [vmem:[%s5302_s1 + $0x4a8] ss:$16 sps:$4 sm:$0xff]   ;;  %v3747_v47 = vld [vmem:[%s5302_s1 + $0x4c4] ss:$16 sps:$4 sm:$0xff]  }
  0x60   :  { %2101 = vmatprep.subr.bf16.mxu0 %v3663_v48  ;;  %2306 = vmatprep.subr.bf16.mxu1 %v3666_v50  ;;  %v3750_v48 = vld [vmem:[%s5302_s1 + $0x4cc] ss:$16 sps:$4 sm:$0xff]   ;;  %v3745_v50 = vld [vmem:[%s5302_s1 + $0x4c0] ss:$16 sps:$4 sm:$0xff]  }
  0x63   :  { %2102 = vmatpush1.bf16.msra.mxu0 %v3661_v51  ;;  %2307 = vmatpush1.bf16.msra.mxu1 %v3664_v52  ;;  %v3748_v51 = vld [vmem:[%s5302_s1 + $0x4c8] ss:$16 sps:$4 sm:$0xff]   ;;  %v3753_v52 = vld [vmem:[%s5302_s1 + $0x4e4] ss:$16 sps:$4 sm:$0xff]  }
  0x64   :  { %2103 = vmatprep.subr.bf16.mxu0 %v3669_v53  ;;  %2308 = vmatprep.subr.bf16.mxu1 %v3672_v54  ;;  %v3756_v53 = vld [vmem:[%s5302_s1 + $0x4ec] ss:$16 sps:$4 sm:$0xff]   ;;  %v3751_v54 = vld [vmem:[%s5302_s1 + $0x4e0] ss:$16 sps:$4 sm:$0xff]  }
  0x67   :  { %2104 = vmatpush1.bf16.msra.mxu0 %v3667_v55  ;;  %2309 = vmatpush1.bf16.msra.mxu1 %v3670_v56  ;;  %v3754_v55 = vld [vmem:[%s5302_s1 + $0x4e8] ss:$16 sps:$4 sm:$0xff]   ;;  %v3759_v56 = vld [vmem:[%s5302_s1 + $0x504] ss:$16 sps:$4 sm:$0xff]  }
  0x68   :  { %2105 = vmatprep.subr.bf16.mxu0 %v3675_v57  ;;  %2310 = vmatprep.subr.bf16.mxu1 %v3678_v58  ;;  %v3762_v57 = vld [vmem:[%s5302_s1 + $0x50c] ss:$16 sps:$4 sm:$0xff]   ;;  %v3757_v58 = vld [vmem:[%s5302_s1 + $0x500] ss:$16 sps:$4 sm:$0xff]  }
  0x6b   :  { %2106 = vmatpush1.bf16.msra.mxu0 %v3673_v59  ;;  %2311 = vmatpush1.bf16.msra.mxu1 %v3676_v60  ;;  %v3760_v59 = vld [vmem:[%s5302_s1 + $0x508] ss:$16 sps:$4 sm:$0xff]   ;;  %v3765_v60 = vld [vmem:[%s5302_s1 + $0x524] ss:$16 sps:$4 sm:$0xff]  }
  0x6c   :  { %2107 = vmatprep.subr.bf16.mxu0 %v3681_v61  ;;  %2312 = vmatprep.subr.bf16.mxu1 %v3684_v62  ;;  %v3768_v61 = vld [vmem:[%s5302_s1 + $0x52c] ss:$16 sps:$4 sm:$0xff]   ;;  %v3763_v62 = vld [vmem:[%s5302_s1 + $0x520] ss:$16 sps:$4 sm:$0xff]  }
  0x6f   :  { %2108 = vmatpush1.bf16.msra.mxu0 %v3679_v63  ;;  %2313 = vmatpush1.bf16.msra.mxu1 %v3682_v0  ;;  %v3766_v63 = vld [vmem:[%s5302_s1 + $0x528] ss:$16 sps:$4 sm:$0xff]   ;;  %v3771_v0 = vld [vmem:[%s5302_s1 + $0x544] ss:$16 sps:$4 sm:$0xff]  }
  0x70   :  { %2109 = vmatprep.subr.bf16.mxu0 %v3687_v1  ;;  %2314 = vmatprep.subr.bf16.mxu1 %v3690_v2  ;;  %v3774_v1 = vld [vmem:[%s5302_s1 + $0x54c] ss:$16 sps:$4 sm:$0xff]   ;;  %v3769_v2 = vld [vmem:[%s5302_s1 + $0x540] ss:$16 sps:$4 sm:$0xff]  }
  0x73   :  { %2110 = vmatpush1.bf16.msra.mxu0 %v3685_v3  ;;  %2315 = vmatpush1.bf16.msra.mxu1 %v3688_v4  ;;  %v3772_v3 = vld [vmem:[%s5302_s1 + $0x548] ss:$16 sps:$4 sm:$0xff]   ;;  %v3777_v4 = vld [vmem:[%s5302_s1 + $0x564] ss:$16 sps:$4 sm:$0xff]  }
  0x74   :  { %2111 = vmatprep.subr.bf16.mxu0 %v3693_v5  ;;  %2316 = vmatprep.subr.bf16.mxu1 %v3696_v6  ;;  %v3780_v5 = vld [vmem:[%s5302_s1 + $0x56c] ss:$16 sps:$4 sm:$0xff]   ;;  %v3775_v6 = vld [vmem:[%s5302_s1 + $0x560] ss:$16 sps:$4 sm:$0xff]  }
  0x77   :  { %2112 = vmatpush1.bf16.msra.mxu0 %v3691_v7  ;;  %2317 = vmatpush1.bf16.msra.mxu1 %v3694_v8  ;;  %v3778_v7 = vld [vmem:[%s5302_s1 + $0x568] ss:$16 sps:$4 sm:$0xff]   ;;  %v3783_v8 = vld [vmem:[%s5302_s1 + $0x584] ss:$16 sps:$4 sm:$0xff]  }
  0x78   :  { %2113 = vmatprep.subr.bf16.mxu0 %v3699_v10  ;;  %2318 = vmatprep.subr.bf16.mxu1 %v3702_v11  ;;  %v3786_v10 = vld [vmem:[%s5302_s1 + $0x58c] ss:$16 sps:$4 sm:$0xff]   ;;  %v3781_v11 = vld [vmem:[%s5302_s1 + $0x580] ss:$16 sps:$4 sm:$0xff]  }
  0x7b   :  { %2114 = vmatpush1.bf16.msra.mxu0 %v3697_v12  ;;  %2319 = vmatpush1.bf16.msra.mxu1 %v3700_v13  ;;  %v3784_v12 = vld [vmem:[%s5302_s1 + $0x588] ss:$16 sps:$4 sm:$0xff]   ;;  %v3789_v13 = vld [vmem:[%s5302_s1 + $0x5a4] ss:$16 sps:$4 sm:$0xff]  }
  0x7c   :  { %2115 = vmatprep.subr.bf16.mxu0 %v3705_v14  ;;  %2320 = vmatprep.subr.bf16.mxu1 %v3708_v15  ;;  %v3792_v14 = vld [vmem:[%s5302_s1 + $0x5ac] ss:$16 sps:$4 sm:$0xff]   ;;  %v3787_v15 = vld [vmem:[%s5302_s1 + $0x5a0] ss:$16 sps:$4 sm:$0xff]  }
  0x7f   :  { %2116 = vmatpush1.bf16.msra.mxu0 %v3703_v16  ;;  %2321 = vmatpush1.bf16.msra.mxu1 %v3706_v17  ;;  %v3790_v16 = vld [vmem:[%s5302_s1 + $0x5a8] ss:$16 sps:$4 sm:$0xff]   ;;  %v3795_v17 = vld [vmem:[%s5302_s1 + $0x5c4] ss:$16 sps:$4 sm:$0xff]  }
  0x80   :  { %2126 = vmatprep.subr.bf16.mxu0 %v3711_v18  ;;  %2331 = vmatprep.subr.bf16.mxu1 %v3714_v19  ;;  %v3798_v18 = vld [vmem:[%s5302_s1 + $0x5cc] ss:$16 sps:$4 sm:$0xff]   ;;  %v57_v19 = vcombine.high %v4535_v23, %v4535_v23 }
  0x81   :  { %v3804_v23 = vld [vmem:[%s5302_s1 + $0x5ec] ss:$16 sps:$4 sm:$0xff]  }
  0x82   :  { %2118 = vmatmul.mubr.bf16.vlgmr.msra.gmra.mrb[0].mxu0 %v94_v21  ;;  %2323 = vmatmul.mubr.bf16.vlgmr.msra.gmra.mrb[0].mxu1 %v94_v21  ;;  %v3796_v21 = vld [vmem:[%s5302_s1 + $0x5c8] ss:$16 sps:$4 sm:$0xff]  }
  0x83   :  { %2127 = vmatpush1.bf16.msra.mxu0 %v3709_v20  ;;  %2332 = vmatpush1.bf16.msra.mxu1 %v3712_v22  ;;  %v3793_v20 = vld [vmem:[%s5302_s1 + $0x5c0] ss:$16 sps:$4 sm:$0xff]   ;;  %v3801_v22 = vld [vmem:[%s5302_s1 + $0x5e4] ss:$16 sps:$4 sm:$0xff]  }
  0x84   :  { %2128 = vmatprep.subr.bf16.mxu0 %v3717_v24  ;;  %2333 = vmatprep.subr.bf16.mxu1 %v3720_v9  ;;  %v4720_v24 = vrot.slane %v57_v19, %v4255_v49  ;;  %v3799_v9 = vld [vmem:[%s5302_s1 + $0x5e0] ss:$16 sps:$4 sm:$0xff]   ;;  %v3810_v49 = vld [vmem:[%s5302_s1 + $0x60c] ss:$16 sps:$4 sm:$0xff]   ;;  %v3885_v19 = vld [vmem:[%s5302_s1 + $0x7a4] ss:$16 sps:$4 sm:$0xff]  }
  0x85   :  { %2158 = vmatprep.mubr.bf16.mxu0 %v97_v31  ;;  %2363 = vmatprep.mubr.bf16.mxu1 %v97_v31  ;;  %v3808_v31 = vld [vmem:[%s5302_s1 + $0x608] ss:$16 sps:$4 sm:$0xff]  }
  0x87   :  { %2129 = vmatpush1.bf16.msra.mxu0 %v3715_v27  ;;  %2334 = vmatpush1.bf16.msra.mxu1 %v3718_v28  ;;  %v3807_v27 = vld [vmem:[%s5302_s1 + $0x604] ss:$16 sps:$4 sm:$0xff]   ;;  %v73_v28 = vcombine.high %v4720_v24, %v4720_v24 }
  0x88   :  { %2130 = vmatprep.subr.bf16.mxu0 %v3723_v29  ;;  %2335 = vmatprep.subr.bf16.mxu1 %v3726_v30  ;;  %v96_v29 = vpack.c.bf16 %v4545_v25, %v4545_v25  ;;  %v3805_v30 = vld [vmem:[%s5302_s1 + $0x600] ss:$16 sps:$4 sm:$0xff]   ;;  %v3816_v25 = vld [vmem:[%s5302_s1 + $0x62c] ss:$16 sps:$4 sm:$0xff]  }
  0x8b   :  { %2131 = vmatpush1.bf16.msra.mxu0 %v3721_v32  ;;  %2336 = vmatpush1.bf16.msra.mxu1 %v3724_v33  ;;  %v3813_v32 = vld [vmem:[%s5302_s1 + $0x624] ss:$16 sps:$4 sm:$0xff]   ;;  %v99_v33 = vpack.c.bf16 %v73_v28, %v73_v28  ;;  %v3900_v28 = vld [vmem:[%s5302_s1 + $0x7ec] ss:$16 sps:$4 sm:$0xff]  }
  0x8c   :  { %2132 = vmatprep.subr.bf16.mxu0 %v3729_v34  ;;  %2337 = vmatprep.subr.bf16.mxu1 %v3732_v35  ;;  %v3811_v34 = vld [vmem:[%s5302_s1 + $0x620] ss:$16 sps:$4 sm:$0xff]   ;;  %v3814_v35 = vld [vmem:[%s5302_s1 + $0x628] ss:$16 sps:$4 sm:$0xff]  }
  0x8f   :  { %2133 = vmatpush1.bf16.msra.mxu0 %v3727_v36  ;;  %2338 = vmatpush1.bf16.msra.mxu1 %v3730_v37  ;;  %v3819_v36 = vld [vmem:[%s5302_s1 + $0x644] ss:$16 sps:$4 sm:$0xff]   ;;  %v3822_v37 = vld [vmem:[%s5302_s1 + $0x64c] ss:$16 sps:$4 sm:$0xff]  }
  0x90   :  { %2134 = vmatprep.subr.bf16.mxu0 %v3735_v38  ;;  %2339 = vmatprep.subr.bf16.mxu1 %v3738_v39  ;;  %v3817_v38 = vld [vmem:[%s5302_s1 + $0x640] ss:$16 sps:$4 sm:$0xff]   ;;  %v3820_v39 = vld [vmem:[%s5302_s1 + $0x648] ss:$16 sps:$4 sm:$0xff]  }
  0x93   :  { %2135 = vmatpush1.bf16.msra.mxu0 %v3733_v40  ;;  %2340 = vmatpush1.bf16.msra.mxu1 %v3736_v41  ;;  %v3825_v40 = vld [vmem:[%s5302_s1 + $0x664] ss:$16 sps:$4 sm:$0xff]   ;;  %v3828_v41 = vld [vmem:[%s5302_s1 + $0x66c] ss:$16 sps:$4 sm:$0xff]  }
  0x94   :  { %2136 = vmatprep.subr.bf16.mxu0 %v3741_v42  ;;  %2341 = vmatprep.subr.bf16.mxu1 %v3744_v44  ;;  %v3823_v42 = vld [vmem:[%s5302_s1 + $0x660] ss:$16 sps:$4 sm:$0xff]   ;;  %v3826_v44 = vld [vmem:[%s5302_s1 + $0x668] ss:$16 sps:$4 sm:$0xff]  }
  0x97   :  { %2137 = vmatpush1.bf16.msra.mxu0 %v3739_v45  ;;  %2342 = vmatpush1.bf16.msra.mxu1 %v3742_v46  ;;  %v3831_v45 = vld [vmem:[%s5302_s1 + $0x684] ss:$16 sps:$4 sm:$0xff]   ;;  %v3834_v46 = vld [vmem:[%s5302_s1 + $0x68c] ss:$16 sps:$4 sm:$0xff]  }
  0x98   :  { %2138 = vmatprep.subr.bf16.mxu0 %v3747_v47  ;;  %2343 = vmatprep.subr.bf16.mxu1 %v3750_v48  ;;  %v3829_v47 = vld [vmem:[%s5302_s1 + $0x680] ss:$16 sps:$4 sm:$0xff]   ;;  %v3832_v48 = vld [vmem:[%s5302_s1 + $0x688] ss:$16 sps:$4 sm:$0xff]  }
  0x9b   :  { %2139 = vmatpush1.bf16.msra.mxu0 %v3745_v50  ;;  %2344 = vmatpush1.bf16.msra.mxu1 %v3748_v51  ;;  %v3837_v50 = vld [vmem:[%s5302_s1 + $0x6a4] ss:$16 sps:$4 sm:$0xff]   ;;  %v3840_v51 = vld [vmem:[%s5302_s1 + $0x6ac] ss:$16 sps:$4 sm:$0xff]  }
  0x9c   :  { %2140 = vmatprep.subr.bf16.mxu0 %v3753_v52  ;;  %2345 = vmatprep.subr.bf16.mxu1 %v3756_v53  ;;  %v3835_v52 = vld [vmem:[%s5302_s1 + $0x6a0] ss:$16 sps:$4 sm:$0xff]   ;;  %v3838_v53 = vld [vmem:[%s5302_s1 + $0x6a8] ss:$16 sps:$4 sm:$0xff]  }
  0x9f   :  { %2141 = vmatpush1.bf16.msra.mxu0 %v3751_v54  ;;  %2346 = vmatpush1.bf16.msra.mxu1 %v3754_v55  ;;  %v3843_v54 = vld [vmem:[%s5302_s1 + $0x6c4] ss:$16 sps:$4 sm:$0xff]   ;;  %v3846_v55 = vld [vmem:[%s5302_s1 + $0x6cc] ss:$16 sps:$4 sm:$0xff]  }
  0xa0   :  { %2142 = vmatprep.subr.bf16.mxu0 %v3759_v56  ;;  %2347 = vmatprep.subr.bf16.mxu1 %v3762_v57  ;;  %v3841_v56 = vld [vmem:[%s5302_s1 + $0x6c0] ss:$16 sps:$4 sm:$0xff]   ;;  %v3844_v57 = vld [vmem:[%s5302_s1 + $0x6c8] ss:$16 sps:$4 sm:$0xff]  }
  0xa3   :  { %2143 = vmatpush1.bf16.msra.mxu0 %v3757_v58  ;;  %2348 = vmatpush1.bf16.msra.mxu1 %v3760_v59  ;;  %v3849_v58 = vld [vmem:[%s5302_s1 + $0x6e4] ss:$16 sps:$4 sm:$0xff]   ;;  %v3852_v59 = vld [vmem:[%s5302_s1 + $0x6ec] ss:$16 sps:$4 sm:$0xff]  }
  0xa4   :  { %2144 = vmatprep.subr.bf16.mxu0 %v3765_v60  ;;  %2349 = vmatprep.subr.bf16.mxu1 %v3768_v61  ;;  %v3847_v60 = vld [vmem:[%s5302_s1 + $0x6e0] ss:$16 sps:$4 sm:$0xff]   ;;  %v3850_v61 = vld [vmem:[%s5302_s1 + $0x6e8] ss:$16 sps:$4 sm:$0xff]  }
  0xa7   :  { %2145 = vmatpush1.bf16.msra.mxu0 %v3763_v62  ;;  %2350 = vmatpush1.bf16.msra.mxu1 %v3766_v63  ;;  %v3855_v62 = vld [vmem:[%s5302_s1 + $0x704] ss:$16 sps:$4 sm:$0xff]   ;;  %v3858_v63 = vld [vmem:[%s5302_s1 + $0x70c] ss:$16 sps:$4 sm:$0xff]  }
  0xa8   :  { %2146 = vmatprep.subr.bf16.mxu0 %v3771_v0  ;;  %2351 = vmatprep.subr.bf16.mxu1 %v3774_v1  ;;  %v3853_v0 = vld [vmem:[%s5302_s1 + $0x700] ss:$16 sps:$4 sm:$0xff]   ;;  %v3856_v1 = vld [vmem:[%s5302_s1 + $0x708] ss:$16 sps:$4 sm:$0xff]  }
  0xab   :  { %2147 = vmatpush1.bf16.msra.mxu0 %v3769_v2  ;;  %2352 = vmatpush1.bf16.msra.mxu1 %v3772_v3  ;;  %v3861_v2 = vld [vmem:[%s5302_s1 + $0x724] ss:$16 sps:$4 sm:$0xff]   ;;  %v3864_v3 = vld [vmem:[%s5302_s1 + $0x72c] ss:$16 sps:$4 sm:$0xff]  }
  0xac   :  { %2148 = vmatprep.subr.bf16.mxu0 %v3777_v4  ;;  %2353 = vmatprep.subr.bf16.mxu1 %v3780_v5  ;;  %v3859_v4 = vld [vmem:[%s5302_s1 + $0x720] ss:$16 sps:$4 sm:$0xff]   ;;  %v3862_v5 = vld [vmem:[%s5302_s1 + $0x728] ss:$16 sps:$4 sm:$0xff]  }
  0xaf   :  { %2149 = vmatpush1.bf16.msra.mxu0 %v3775_v6  ;;  %2354 = vmatpush1.bf16.msra.mxu1 %v3778_v7  ;;  %v3867_v6 = vld [vmem:[%s5302_s1 + $0x744] ss:$16 sps:$4 sm:$0xff]   ;;  %v3870_v7 = vld [vmem:[%s5302_s1 + $0x74c] ss:$16 sps:$4 sm:$0xff]  }
  0xb0   :  { %2150 = vmatprep.subr.bf16.mxu0 %v3783_v8  ;;  %2355 = vmatprep.subr.bf16.mxu1 %v3786_v10  ;;  %v3865_v8 = vld [vmem:[%s5302_s1 + $0x740] ss:$16 sps:$4 sm:$0xff]   ;;  %v3868_v10 = vld [vmem:[%s5302_s1 + $0x748] ss:$16 sps:$4 sm:$0xff]  }
  0xb3   :  { %2151 = vmatpush1.bf16.msra.mxu0 %v3781_v11  ;;  %2356 = vmatpush1.bf16.msra.mxu1 %v3784_v12  ;;  %v3873_v11 = vld [vmem:[%s5302_s1 + $0x764] ss:$16 sps:$4 sm:$0xff]   ;;  %v3876_v12 = vld [vmem:[%s5302_s1 + $0x76c] ss:$16 sps:$4 sm:$0xff]  }
  0xb4   :  { %2152 = vmatprep.subr.bf16.mxu0 %v3789_v13  ;;  %2357 = vmatprep.subr.bf16.mxu1 %v3792_v14  ;;  %v3871_v13 = vld [vmem:[%s5302_s1 + $0x760] ss:$16 sps:$4 sm:$0xff]   ;;  %v3874_v14 = vld [vmem:[%s5302_s1 + $0x768] ss:$16 sps:$4 sm:$0xff]  }
  0xb7   :  { %2153 = vmatpush1.bf16.msra.mxu0 %v3787_v15  ;;  %2358 = vmatpush1.bf16.msra.mxu1 %v3790_v16  ;;  %v3879_v15 = vld [vmem:[%s5302_s1 + $0x784] ss:$16 sps:$4 sm:$0xff]   ;;  %v3882_v16 = vld [vmem:[%s5302_s1 + $0x78c] ss:$16 sps:$4 sm:$0xff]  }
  0xb8   :  { %2154 = vmatprep.subr.bf16.mxu0 %v3795_v17  ;;  %2359 = vmatprep.subr.bf16.mxu1 %v3798_v18  ;;  %v3877_v17 = vld [vmem:[%s5302_s1 + $0x780] ss:$16 sps:$4 sm:$0xff]   ;;  %v3880_v18 = vld [vmem:[%s5302_s1 + $0x788] ss:$16 sps:$4 sm:$0xff]  }
  0xbb   :  { %2155 = vmatpush1.bf16.msra.mxu0 %v3793_v20  ;;  %2360 = vmatpush1.bf16.msra.mxu1 %v3796_v21  ;;  %v3888_v20 = vld [vmem:[%s5302_s1 + $0x7ac] ss:$16 sps:$4 sm:$0xff]   ;;  %v3883_v21 = vld [vmem:[%s5302_s1 + $0x7a0] ss:$16 sps:$4 sm:$0xff]  }
  0xbc   :  { %2156 = vmatprep.subr.bf16.mxu0 %v3801_v22  ;;  %2361 = vmatprep.subr.bf16.mxu1 %v3804_v23  ;;  %v3886_v22 = vld [vmem:[%s5302_s1 + $0x7a8] ss:$16 sps:$4 sm:$0xff]   ;;  %v3891_v23 = vld [vmem:[%s5302_s1 + $0x7c4] ss:$16 sps:$4 sm:$0xff]  }
  0xbf   :  { %2157 = vmatpush1.bf16.msra.mxu0 %v3799_v9  ;;  %2362 = vmatpush1.bf16.msra.mxu1 %v3802_v26  ;;  %v3894_v9 = vld [vmem:[%s5302_s1 + $0x7cc] ss:$16 sps:$4 sm:$0xff]   ;;  %v3889_v26 = vld [vmem:[%s5302_s1 + $0x7c0] ss:$16 sps:$4 sm:$0xff]  }
  0xc0   :  { %2167 = vmatprep.subr.bf16.mxu0 %v3807_v27  ;;  %2372 = vmatprep.subr.bf16.mxu1 %v3810_v49  ;;  %v3892_v27 = vld [vmem:[%s5302_s1 + $0x7c8] ss:$16 sps:$4 sm:$0xff]   ;;  %v3897_v49 = vld [vmem:[%s5302_s1 + $0x7e4] ss:$16 sps:$4 sm:$0xff]  }
  0xc2   :  { %2159 = vmatmul.mubr.bf16.vlgmr.msra.gmra.mrb[0].mxu0 %v96_v29  ;;  %2364 = vmatmul.mubr.bf16.vlgmr.msra.gmra.mrb[0].mxu1 %v96_v29  ;;  %v4921_v29 = vld.sshfl [vmem:[%s5301_s0 + $0x10] sm:$0x33 pattern:$0x76325410] }
  0xc3   :  { %2168 = vmatpush1.bf16.msra.mxu0 %v3805_v30  ;;  %2373 = vmatpush1.bf16.msra.mxu1 %v3808_v31  ;;  %v3895_v30 = vld [vmem:[%s5302_s1 + $0x7e0] ss:$16 sps:$4 sm:$0xff]   ;;  %v3898_v31 = vld [vmem:[%s5302_s1 + $0x7e8] ss:$16 sps:$4 sm:$0xff]  }
  0xc4   :  { %2169 = vmatprep.subr.bf16.mxu0 %v3813_v32  ;;  %2374 = vmatprep.subr.bf16.mxu1 %v3816_v25 }
  0xc5   :  { %2199 = vmatprep.mubr.bf16.mxu0 %v99_v33  ;;  %2404 = vmatprep.mubr.bf16.mxu1 %v99_v33 }
  0xc7   :  { %2170 = vmatpush1.bf16.msra.mxu0 %v3811_v34  ;;  %2375 = vmatpush1.bf16.msra.mxu1 %v3814_v35 }
  0xc8   :  { %2171 = vmatprep.subr.bf16.mxu0 %v3819_v36  ;;  %2376 = vmatprep.subr.bf16.mxu1 %v3822_v37 }
  0xcb   :  { %2172 = vmatpush1.bf16.msra.mxu0 %v3817_v38  ;;  %2377 = vmatpush1.bf16.msra.mxu1 %v3820_v39 }
  0xcc   :  { %2173 = vmatprep.subr.bf16.mxu0 %v3825_v40  ;;  %2378 = vmatprep.subr.bf16.mxu1 %v3828_v41 }
  0xcf   :  { %2174 = vmatpush1.bf16.msra.mxu0 %v3823_v42  ;;  %2379 = vmatpush1.bf16.msra.mxu1 %v3826_v44 }
  0xd0   :  { %2175 = vmatprep.subr.bf16.mxu0 %v3831_v45  ;;  %2380 = vmatprep.subr.bf16.mxu1 %v3834_v46 }
  0xd3   :  { %2176 = vmatpush1.bf16.msra.mxu0 %v3829_v47  ;;  %2381 = vmatpush1.bf16.msra.mxu1 %v3832_v48 }
  0xd4   :  { %2177 = vmatprep.subr.bf16.mxu0 %v3837_v50  ;;  %2382 = vmatprep.subr.bf16.mxu1 %v3840_v51 }
  0xd7   :  { %2178 = vmatpush1.bf16.msra.mxu0 %v3835_v52  ;;  %2383 = vmatpush1.bf16.msra.mxu1 %v3838_v53 }
  0xd8   :  { %2179 = vmatprep.subr.bf16.mxu0 %v3843_v54  ;;  %2384 = vmatprep.subr.bf16.mxu1 %v3846_v55 }
  0xdb   :  { %2180 = vmatpush1.bf16.msra.mxu0 %v3841_v56  ;;  %2385 = vmatpush1.bf16.msra.mxu1 %v3844_v57 }
  0xdc   :  { %2181 = vmatprep.subr.bf16.mxu0 %v3849_v58  ;;  %2386 = vmatprep.subr.bf16.mxu1 %v3852_v59 }
  0xdf   :  { %2182 = vmatpush1.bf16.msra.mxu0 %v3847_v60  ;;  %2387 = vmatpush1.bf16.msra.mxu1 %v3850_v61 }
  0xe0   :  { %2183 = vmatprep.subr.bf16.mxu0 %v3855_v62  ;;  %2388 = vmatprep.subr.bf16.mxu1 %v3858_v63 }
  0xe3   :  { %2184 = vmatpush1.bf16.msra.mxu0 %v3853_v0  ;;  %2389 = vmatpush1.bf16.msra.mxu1 %v3856_v1 }
  0xe4   :  { %2185 = vmatprep.subr.bf16.mxu0 %v3861_v2  ;;  %2390 = vmatprep.subr.bf16.mxu1 %v3864_v3 }
  0xe7   :  { %2186 = vmatpush1.bf16.msra.mxu0 %v3859_v4  ;;  %2391 = vmatpush1.bf16.msra.mxu1 %v3862_v5 }
  0xe8   :  { %2187 = vmatprep.subr.bf16.mxu0 %v3867_v6  ;;  %2392 = vmatprep.subr.bf16.mxu1 %v3870_v7 }
  0xeb   :  { %2188 = vmatpush1.bf16.msra.mxu0 %v3865_v8  ;;  %2393 = vmatpush1.bf16.msra.mxu1 %v3868_v10 }
  0xec   :  { %2189 = vmatprep.subr.bf16.mxu0 %v3873_v11  ;;  %2394 = vmatprep.subr.bf16.mxu1 %v3876_v12 }
  0xef   :  { %2190 = vmatpush1.bf16.msra.mxu0 %v3871_v13  ;;  %2395 = vmatpush1.bf16.msra.mxu1 %v3874_v14 }
  0xf0   :  { %2191 = vmatprep.subr.bf16.mxu0 %v3879_v15  ;;  %2396 = vmatprep.subr.bf16.mxu1 %v3882_v16 }
  0xf3   :  { %2192 = vmatpush1.bf16.msra.mxu0 %v3877_v17  ;;  %2397 = vmatpush1.bf16.msra.mxu1 %v3880_v18 }
  0xf4   :  { %2193 = vmatprep.subr.bf16.mxu0 %v3885_v19  ;;  %2398 = vmatprep.subr.bf16.mxu1 %v3888_v20 }
  0xf7   :  { %2194 = vmatpush1.bf16.msra.mxu0 %v3883_v21  ;;  %2399 = vmatpush1.bf16.msra.mxu1 %v3886_v22 }
  0xf8   :  { %2195 = vmatprep.subr.bf16.mxu0 %v3891_v23  ;;  %2400 = vmatprep.subr.bf16.mxu1 %v3894_v9 }
  0xfb   :  { %2196 = vmatpush1.bf16.msra.mxu0 %v3889_v26  ;;  %2401 = vmatpush1.bf16.msra.mxu1 %v3892_v27 }
  0xfc   :  { %14 = vsyncpa [#allocation3], 0  ;;  %2197 = vmatprep.subr.bf16.mxu0 %v3897_v49  ;;  %2402 = vmatprep.subr.bf16.mxu1 %v3900_v28  ;;  %v3904_v32 = vld [vmem:[%s5302_s1 + $0x804] ss:$16 sps:$4 sm:$0xff]   ;;  %v3907_v25 = vld [vmem:[%s5302_s1 + $0x80c] ss:$16 sps:$4 sm:$0xff]   ;;  %v81_v33 = vcombine.high %v4921_v29, %v4921_v29  ;;  %v98_v34 = vpack.c.bf16 %v4720_v24, %v4720_v24 }
  0xfd   :  { %v3902_v35 = vld [vmem:[%s5302_s1 + $0x800] ss:$16 sps:$4 sm:$0xff]   ;;  %v3905_v36 = vld [vmem:[%s5302_s1 + $0x808] ss:$16 sps:$4 sm:$0xff]   ;;  %v3910_v37 = vld [vmem:[%s5302_s1 + $0x824] ss:$16 sps:$4 sm:$0xff]  }
  0xfe   :  { %v3913_v24 = vld [vmem:[%s5302_s1 + $0x82c] ss:$16 sps:$4 sm:$0xff]   ;;  %v101_v38 = vpack.c.bf16 %v81_v33, %v81_v33  ;;  %v3908_v39 = vld [vmem:[%s5302_s1 + $0x820] ss:$16 sps:$4 sm:$0xff]   ;;  %v3911_v40 = vld [vmem:[%s5302_s1 + $0x828] ss:$16 sps:$4 sm:$0xff]  }
  0xff   :  { %2198 = vmatpush1.bf16.msra.mxu0 %v3895_v30  ;;  %2403 = vmatpush1.bf16.msra.mxu1 %v3898_v31  ;;  %v3916_v41 = vld [vmem:[%s5302_s1 + $0x844] ss:$16 sps:$4 sm:$0xff]   ;;  %v3919_v42 = vld [vmem:[%s5302_s1 + $0x84c] ss:$16 sps:$4 sm:$0xff]   ;;  %v3914_v44 = vld [vmem:[%s5302_s1 + $0x840] ss:$16 sps:$4 sm:$0xff]  }
 0x100   :  { %2208 = vmatprep.subr.bf16.mxu0 %v3904_v32  ;;  %2413 = vmatprep.subr.bf16.mxu1 %v3907_v25  ;;  %v3917_v45 = vld [vmem:[%s5302_s1 + $0x848] ss:$16 sps:$4 sm:$0xff]   ;;  %v3922_v46 = vld [vmem:[%s5302_s1 + $0x864] ss:$16 sps:$4 sm:$0xff]   ;;  %v3925_v47 = vld [vmem:[%s5302_s1 + $0x86c] ss:$16 sps:$4 sm:$0xff]  }
 0x101   :  { %v3920_v48 = vld [vmem:[%s5302_s1 + $0x860] ss:$16 sps:$4 sm:$0xff]   ;;  %v3923_v50 = vld [vmem:[%s5302_s1 + $0x868] ss:$16 sps:$4 sm:$0xff]   ;;  %v3928_v51 = vld [vmem:[%s5302_s1 + $0x884] ss:$16 sps:$4 sm:$0xff]  }
 0x102   :  { %2200 = vmatmul.mubr.bf16.vlgmr.msra.gmra.mrb[0].mxu0 %v98_v34  ;;  %2405 = vmatmul.mubr.bf16.vlgmr.msra.gmra.mrb[0].mxu1 %v98_v34  ;;  %v3931_v52 = vld [vmem:[%s5302_s1 + $0x88c] ss:$16 sps:$4 sm:$0xff]   ;;  %v3926_v53 = vld [vmem:[%s5302_s1 + $0x880] ss:$16 sps:$4 sm:$0xff]   ;;  %v3929_v54 = vld [vmem:[%s5302_s1 + $0x888] ss:$16 sps:$4 sm:$0xff]  }
 0x103   :  { %2209 = vmatpush1.bf16.msra.mxu0 %v3902_v35  ;;  %2414 = vmatpush1.bf16.msra.mxu1 %v3905_v36  ;;  %v3934_v55 = vld [vmem:[%s5302_s1 + $0x8a4] ss:$16 sps:$4 sm:$0xff]   ;;  %v3937_v56 = vld [vmem:[%s5302_s1 + $0x8ac] ss:$16 sps:$4 sm:$0xff]   ;;  %v3932_v57 = vld [vmem:[%s5302_s1 + $0x8a0] ss:$16 sps:$4 sm:$0xff]  }
 0x104   :  { %2210 = vmatprep.subr.bf16.mxu0 %v3910_v37  ;;  %2415 = vmatprep.subr.bf16.mxu1 %v3913_v24  ;;  %v3935_v58 = vld [vmem:[%s5302_s1 + $0x8a8] ss:$16 sps:$4 sm:$0xff]   ;;  %v3940_v59 = vld [vmem:[%s5302_s1 + $0x8c4] ss:$16 sps:$4 sm:$0xff]   ;;  %v3943_v60 = vld [vmem:[%s5302_s1 + $0x8cc] ss:$16 sps:$4 sm:$0xff]   ;;  %v100_v24 = vpack.c.bf16 %v4921_v29, %v4921_v29 }
 0x105   :  { %2240 = vmatprep.mubr.bf16.mxu0 %v101_v38  ;;  %2445 = vmatprep.mubr.bf16.mxu1 %v101_v38  ;;  %v3938_v61 = vld [vmem:[%s5302_s1 + $0x8c0] ss:$16 sps:$4 sm:$0xff]   ;;  %v3941_v62 = vld [vmem:[%s5302_s1 + $0x8c8] ss:$16 sps:$4 sm:$0xff]   ;;  %v3946_v63 = vld [vmem:[%s5302_s1 + $0x8e4] ss:$16 sps:$4 sm:$0xff]  }
 0x106   :  { %v3949_v0 = vld [vmem:[%s5302_s1 + $0x8ec] ss:$16 sps:$4 sm:$0xff]   ;;  %v3944_v1 = vld [vmem:[%s5302_s1 + $0x8e0] ss:$16 sps:$4 sm:$0xff]   ;;  %v3947_v2 = vld [vmem:[%s5302_s1 + $0x8e8] ss:$16 sps:$4 sm:$0xff]  }
 0x107   :  { %2211 = vmatpush1.bf16.msra.mxu0 %v3908_v39  ;;  %2416 = vmatpush1.bf16.msra.mxu1 %v3911_v40  ;;  %v3952_v3 = vld [vmem:[%s5302_s1 + $0x904] ss:$16 sps:$4 sm:$0xff]   ;;  %v3955_v4 = vld [vmem:[%s5302_s1 + $0x90c] ss:$16 sps:$4 sm:$0xff]   ;;  %v3950_v5 = vld [vmem:[%s5302_s1 + $0x900] ss:$16 sps:$4 sm:$0xff]  }
 0x108   :  { %2212 = vmatprep.subr.bf16.mxu0 %v3916_v41  ;;  %2417 = vmatprep.subr.bf16.mxu1 %v3919_v42  ;;  %v3953_v6 = vld [vmem:[%s5302_s1 + $0x908] ss:$16 sps:$4 sm:$0xff]   ;;  %v3958_v7 = vld [vmem:[%s5302_s1 + $0x924] ss:$16 sps:$4 sm:$0xff]   ;;  %v3961_v8 = vld [vmem:[%s5302_s1 + $0x92c] ss:$16 sps:$4 sm:$0xff]  }
 0x109   :  { %v3956_v10 = vld [vmem:[%s5302_s1 + $0x920] ss:$16 sps:$4 sm:$0xff]   ;;  %v3959_v11 = vld [vmem:[%s5302_s1 + $0x928] ss:$16 sps:$4 sm:$0xff]   ;;  %v3964_v12 = vld [vmem:[%s5302_s1 + $0x944] ss:$16 sps:$4 sm:$0xff]  }
 0x10a   :  { %v3967_v13 = vld [vmem:[%s5302_s1 + $0x94c] ss:$16 sps:$4 sm:$0xff]   ;;  %v3962_v14 = vld [vmem:[%s5302_s1 + $0x940] ss:$16 sps:$4 sm:$0xff]   ;;  %v3965_v15 = vld [vmem:[%s5302_s1 + $0x948] ss:$16 sps:$4 sm:$0xff]  }
 0x10b   :  { %2213 = vmatpush1.bf16.msra.mxu0 %v3914_v44  ;;  %2418 = vmatpush1.bf16.msra.mxu1 %v3917_v45  ;;  %v3970_v16 = vld [vmem:[%s5302_s1 + $0x964] ss:$16 sps:$4 sm:$0xff]   ;;  %v3973_v17 = vld [vmem:[%s5302_s1 + $0x96c] ss:$16 sps:$4 sm:$0xff]   ;;  %v3968_v18 = vld [vmem:[%s5302_s1 + $0x960] ss:$16 sps:$4 sm:$0xff]  }
 0x10c   :  { %2214 = vmatprep.subr.bf16.mxu0 %v3922_v46  ;;  %2419 = vmatprep.subr.bf16.mxu1 %v3925_v47  ;;  %v3971_v19 = vld [vmem:[%s5302_s1 + $0x968] ss:$16 sps:$4 sm:$0xff]   ;;  %v3976_v20 = vld [vmem:[%s5302_s1 + $0x984] ss:$16 sps:$4 sm:$0xff]   ;;  %v3979_v21 = vld [vmem:[%s5302_s1 + $0x98c] ss:$16 sps:$4 sm:$0xff]  }
 0x10d   :  { %v3974_v22 = vld [vmem:[%s5302_s1 + $0x980] ss:$16 sps:$4 sm:$0xff]   ;;  %v3977_v23 = vld [vmem:[%s5302_s1 + $0x988] ss:$16 sps:$4 sm:$0xff]   ;;  %v3982_v9 = vld [vmem:[%s5302_s1 + $0x9a4] ss:$16 sps:$4 sm:$0xff]  }
 0x10e   :  { %v3985_v26 = vld [vmem:[%s5302_s1 + $0x9ac] ss:$16 sps:$4 sm:$0xff]   ;;  %v3980_v27 = vld [vmem:[%s5302_s1 + $0x9a0] ss:$16 sps:$4 sm:$0xff]   ;;  %v3983_v49 = vld [vmem:[%s5302_s1 + $0x9a8] ss:$16 sps:$4 sm:$0xff]  }
 0x10f   :  { %2215 = vmatpush1.bf16.msra.mxu0 %v3920_v48  ;;  %2420 = vmatpush1.bf16.msra.mxu1 %v3923_v50  ;;  %v3988_v28 = vld [vmem:[%s5302_s1 + $0x9c4] ss:$16 sps:$4 sm:$0xff]   ;;  %v3991_v30 = vld [vmem:[%s5302_s1 + $0x9cc] ss:$16 sps:$4 sm:$0xff]   ;;  %v3986_v31 = vld [vmem:[%s5302_s1 + $0x9c0] ss:$16 sps:$4 sm:$0xff]  }
 0x110   :  { %2216 = vmatprep.subr.bf16.mxu0 %v3928_v51  ;;  %2421 = vmatprep.subr.bf16.mxu1 %v3931_v52  ;;  %v3989_v32 = vld [vmem:[%s5302_s1 + $0x9c8] ss:$16 sps:$4 sm:$0xff]   ;;  %v3994_v25 = vld [vmem:[%s5302_s1 + $0x9e4] ss:$16 sps:$4 sm:$0xff]   ;;  %v3997_v33 = vld [vmem:[%s5302_s1 + $0x9ec] ss:$16 sps:$4 sm:$0xff]  }
 0x111   :  { %v3992_v34 = vld [vmem:[%s5302_s1 + $0x9e0] ss:$16 sps:$4 sm:$0xff]   ;;  %v3995_v35 = vld [vmem:[%s5302_s1 + $0x9e8] ss:$16 sps:$4 sm:$0xff]   ;;  %vm4068_vm0 = vmmov 0   ;;  %vm2958_vm1 = vcmask 523264  }
 0x112   :  { %v3998_v36 = vld [vmem:[%s5304_s3 + $0x40] sm:$0xff]   ;;  %v4002_v40 = vld [vmem:[%s5304_s3 + $0x48] sm:$0xff]   ;;  %v4006_v44 = vld [vmem:[%s5304_s3 + $0x50] sm:$0xff]   ;;  %s4069_s17 = smov [#allocation2]  }
 0x113   :  { %2217 = vmatpush1.bf16.msra.mxu0 %v3926_v53  ;;  %2422 = vmatpush1.bf16.msra.mxu1 %v3929_v54  ;;  %v3999_v37 = vld [vmem:[%s5304_s3 + $0xc0] sm:$0xff]   ;;  %v4003_v29 = vld [vmem:[%s5304_s3 + $0xc8] sm:$0xff]   ;;  %v4007_v45 = vld [vmem:[%s5304_s3 + $0xd0] sm:$0xff]   ;;  %s3009_s18 = sshll.u32 %s4069_s17, 4  ;;  %s3010_s18 = int_to_ptr.vmem [resolvable:$true] %s3009_s18 }
 0x114   :  { %2218 = vmatprep.subr.bf16.mxu0 %v3934_v55  ;;  %2423 = vmatprep.subr.bf16.mxu1 %v3937_v56  ;;  %v4000_v38 = vld [vmem:[%s5304_s3] sm:$0xff]   ;;  %v4004_v41 = vld [vmem:[%s5304_s3 + $0x8] sm:$0xff]   ;;  %v4008_v46 = vld [vmem:[%s5304_s3 + $0x10] sm:$0xff]   ;;  %p4047_p1 = scmp.lt.s32.totalorder %s3010_s18, %s3010_s18 }
 0x115   :  { %v4001_v39 = vld [vmem:[%s5304_s3 + $0x80] sm:$0xff]   ;;  %v4005_v42 = vld [vmem:[%s5304_s3 + $0x88] sm:$0xff]   ;;  %v4009_v47 = vld [vmem:[%s5304_s3 + $0x90] sm:$0xff]  }
 0x116   :  { %v4010_v48 = vld [vmem:[%s5304_s3 + $0x58] sm:$0xff]   ;;  %v4014_v53 = vld [vmem:[%s5304_s3 + $0x60] sm:$0xff]  }
 0x117   :  { %2219 = vmatpush1.bf16.msra.mxu0 %v3932_v57  ;;  %2424 = vmatpush1.bf16.msra.mxu1 %v3935_v58  ;;  %v4011_v50 = vld [vmem:[%s5304_s3 + $0xd8] sm:$0xff]   ;;  %v4015_v54 = vld [vmem:[%s5304_s3 + $0xe0] sm:$0xff]   ;;  %v4018_v57 = vld [vmem:[%s5304_s3 + $0x68] sm:$0xff]  }
 0x118   :  { %2220 = vmatprep.subr.bf16.mxu0 %v3940_v59  ;;  %2425 = vmatprep.subr.bf16.mxu1 %v3943_v60  ;;  %v4012_v51 = vld [vmem:[%s5304_s3 + $0x18] sm:$0xff]   ;;  %v4016_v55 = vld [vmem:[%s5304_s3 + $0x20] sm:$0xff]   ;;  %v4019_v58 = vld [vmem:[%s5304_s3 + $0xe8] sm:$0xff]  }
 0x119   :  { %v4013_v52 = vld [vmem:[%s5304_s3 + $0x98] sm:$0xff]   ;;  %v4017_v56 = vld [vmem:[%s5304_s3 + $0xa0] sm:$0xff]   ;;  %v4020_v59 = vld [vmem:[%s5304_s3 + $0x28] sm:$0xff]  }
 0x11a   :  { %v4021_v60 = vld [vmem:[%s5304_s3 + $0xa8] sm:$0xff]  }
 0x11b   :  { %2221 = vmatpush1.bf16.msra.mxu0 %v3938_v61  ;;  %2426 = vmatpush1.bf16.msra.mxu1 %v3941_v62  ;;  %v4022_v61 = vld [vmem:[%s5304_s3 + $0x70] sm:$0xff]  }
 0x11c   :  { %2222 = vmatprep.subr.bf16.mxu0 %v3946_v63  ;;  %2427 = vmatprep.subr.bf16.mxu1 %v3949_v0  ;;  %v4023_v62 = vld [vmem:[%s5304_s3 + $0xf0] sm:$0xff]  }
 0x11d   :  { %v4024_v63 = vld [vmem:[%s5304_s3 + $0x30] sm:$0xff]  }
 0x11e   :  { %v4025_v0 = vld [vmem:[%s5304_s3 + $0xb0] sm:$0xff]  }
 0x11f   :  { %2223 = vmatpush1.bf16.msra.mxu0 %v3944_v1  ;;  %2428 = vmatpush1.bf16.msra.mxu1 %v3947_v2  ;;  %v4026_v1 = vld [vmem:[%s5304_s3 + $0x78] sm:$0xff]  }
 0x120   :  { %2224 = vmatprep.subr.bf16.mxu0 %v3952_v3  ;;  %2429 = vmatprep.subr.bf16.mxu1 %v3955_v4  ;;  %v4027_v2 = vld [vmem:[%s5304_s3 + $0xf8] sm:$0xff]  }
 0x121   :  { %v4028_v3 = vld [vmem:[%s5304_s3 + $0x38] sm:$0xff]  }
 0x122   :  { %v4029_v4 = vld [vmem:[%s5304_s3 + $0xb8] sm:$0xff]  }
 0x123   :  { %2225 = vmatpush1.bf16.msra.mxu0 %v3950_v5  ;;  %2430 = vmatpush1.bf16.msra.mxu1 %v3953_v6  ;;  %v4067_v5 = vmov 0.0   ;;  %v426_v6 = vsub.s32 0, %v4237_v43 }
 0x124   :  { %2226 = vmatprep.subr.bf16.mxu0 %v3958_v7  ;;  %2431 = vmatprep.subr.bf16.mxu1 %v3961_v8  ;;  %v434_v7 = vsub.s32 2, %v4237_v43  ;;  %v422_v8 = vld [vmem:[%s5303_s2] sm:$0xf] }
 0x127   :  { %2227 = vmatpush1.bf16.msra.mxu0 %v3956_v10  ;;  %2432 = vmatpush1.bf16.msra.mxu1 %v3959_v11  ;;  %v430_v10 = vsub.s32 1, %v4237_v43  ;;  %v438_v11 = vsub.s32 3, %v4237_v43 }
 0x128   :  { %2228 = vmatprep.subr.bf16.mxu0 %v3964_v12  ;;  %2433 = vmatprep.subr.bf16.mxu1 %v3967_v13  ;;  %v427_v12 = vrot.slane %v422_v8, %v426_v6  ;;  %v435_v13 = vrot.slane %v422_v8, %v434_v7 }
 0x12b   :  { %2229 = vmatpush1.bf16.msra.mxu0 %v3962_v14  ;;  %2434 = vmatpush1.bf16.msra.mxu1 %v3965_v15  ;;  %v431_v14 = vrot.slane %v422_v8, %v430_v10  ;;  %v439_v15 = vrot.slane %v422_v8, %v438_v11 }
 0x12c   :  { %2230 = vmatprep.subr.bf16.mxu0 %v3970_v16  ;;  %2435 = vmatprep.subr.bf16.mxu1 %v3973_v17 }
 0x12f   :  { %2231 = vmatpush1.bf16.msra.mxu0 %v3968_v18  ;;  %2436 = vmatpush1.bf16.msra.mxu1 %v3971_v19 }
 0x130   :  { %2232 = vmatprep.subr.bf16.mxu0 %v3976_v20  ;;  %2437 = vmatprep.subr.bf16.mxu1 %v3979_v21 }
 0x133   :  { %2233 = vmatpush1.bf16.msra.mxu0 %v3974_v22  ;;  %2438 = vmatpush1.bf16.msra.mxu1 %v3977_v23 }
 0x134   :  { %2234 = vmatprep.subr.bf16.mxu0 %v3982_v9  ;;  %2439 = vmatprep.subr.bf16.mxu1 %v3985_v26 }
 0x137   :  { %2235 = vmatpush1.bf16.msra.mxu0 %v3980_v27  ;;  %2440 = vmatpush1.bf16.msra.mxu1 %v3983_v49 }
 0x138   :  { %2236 = vmatprep.subr.bf16.mxu0 %v3988_v28  ;;  %2441 = vmatprep.subr.bf16.mxu1 %v3991_v30 }
 0x13b   :  { %2237 = vmatpush1.bf16.msra.mxu0 %v3986_v31  ;;  %2442 = vmatpush1.bf16.msra.mxu1 %v3989_v32 }
 0x13c   :  { %2238 = vmatprep.subr.bf16.mxu0 %v3994_v25  ;;  %2443 = vmatprep.subr.bf16.mxu1 %v3997_v33  ;;  %v4030_v33 = vld [vmem:[%s5306_s5] sm:$0xff]  }
 0x13f   :  { %2239 = vmatpush1.bf16.msra.mxu0 %v3992_v34  ;;  %2444 = vmatpush1.bf16.msra.mxu1 %v3995_v35 }
 0x140   :  { %3386 = vmatprep.subr.bf16.mxu0 %v3998_v36  ;;  %3408 = vmatprep.subr.bf16.mxu1 %v3999_v37  ;;  %v4031_v36 = vld [vmem:[%s5306_s5 + $0x8] sm:$0xff]   ;;  %v4032_v37 = vld [vmem:[%s5306_s5 + $0x10] sm:$0xff]  }
 0x142   :  { %2241 = vmatmul.mubr.bf16.vlgmr.msra.gmra.mrb[0].mxu0 %v100_v24  ;;  %2446 = vmatmul.mubr.bf16.vlgmr.msra.gmra.mrb[0].mxu1 %v100_v24  ;;  %v4033_v24 = vld [vmem:[%s5306_s5 + $0x18] sm:$0xff]  }
 0x143   :  { %3387 = vmatpush3.bf16.msra.mxu0 %v4000_v38  ;;  %3409 = vmatpush3.bf16.msra.mxu1 %v4001_v39  ;;  %v4034_v38 = vld [vmem:[%s5306_s5 + $0x20] sm:$0xff]   ;;  %v4035_v39 = vld [vmem:[%s5306_s5 + $0x28] sm:$0xff]  }
 0x144   :  { %3388 = vmatprep.subr.bf16.mxu0 %v4002_v40  ;;  %3410 = vmatprep.subr.bf16.mxu1 %v4003_v29  ;;  %v4036_v40 = vld [vmem:[%s5306_s5 + $0x30] sm:$0xff]   ;;  %v4037_v29 = vld [vmem:[%s5306_s5 + $0x38] sm:$0xff]  }
 0x147   :  { %3389 = vmatpush3.bf16.msra.mxu0 %v4004_v41  ;;  %3411 = vmatpush3.bf16.msra.mxu1 %v4005_v42  ;;  %v4038_v41 = vld [vmem:[%s5308_s7] sm:$0xff]   ;;  %v4039_v42 = vld [vmem:[%s5308_s7 + $0x8] sm:$0xff]  }
 0x148   :  { %3390 = vmatprep.subr.bf16.mxu0 %v4006_v44  ;;  %3412 = vmatprep.subr.bf16.mxu1 %v4007_v45  ;;  %v4040_v44 = vld [vmem:[%s5308_s7 + $0x10] sm:$0xff]  }
 0x14b   :  { %3391 = vmatpush3.bf16.msra.mxu0 %v4008_v46  ;;  %3413 = vmatpush3.bf16.msra.mxu1 %v4009_v47  ;;  %v3338_v47 = vld [vmem:[%s5305_s4] ss:$0 sm:$0xff] }
 0x14c   :  { %3392 = vmatprep.subr.bf16.mxu0 %v4010_v48  ;;  %3414 = vmatprep.subr.bf16.mxu1 %v4011_v50 }
 0x14f   :  { %3393 = vmatpush3.bf16.msra.mxu0 %v4012_v51  ;;  %3415 = vmatpush3.bf16.msra.mxu1 %v4013_v52 }
 0x150   :  { %3394 = vmatprep.subr.bf16.mxu0 %v4014_v53  ;;  %3416 = vmatprep.subr.bf16.mxu1 %v4015_v54 }
 0x153   :  { %3395 = vmatpush3.bf16.msra.mxu0 %v4016_v55  ;;  %3417 = vmatpush3.bf16.msra.mxu1 %v4017_v56 }
 0x154   :  { %3396 = vmatprep.subr.bf16.mxu0 %v4018_v57  ;;  %3418 = vmatprep.subr.bf16.mxu1 %v4019_v58 }
 0x157   :  { %3397 = vmatpush3.bf16.msra.mxu0 %v4020_v59  ;;  %3419 = vmatpush3.bf16.msra.mxu1 %v4021_v60 }
 0x158   :  { %3398 = vmatprep.subr.bf16.mxu0 %v4022_v61  ;;  %3420 = vmatprep.subr.bf16.mxu1 %v4023_v62  ;;  %v4041_v61 = vld [vmem:[%s5308_s7 + $0x18] sm:$0xff]   ;;  %v3371_v62 = vld [vmem:[%s5307_s6] ss:$0 sm:$0xff]  ;;  %s4042_s6 = scalar_lea.vmem %s3010_s18, 32 }
 0x159   :  { %p4043_p0 = scmp.ne.s32.totalorder %s3010_s18, %s4042_s6  ;;  %p4048_p2 = scmp.lt.s32.totalorder %s4042_s6, %s4042_s6 }
 0x15b   :  { %3399 = vmatpush3.bf16.msra.mxu0 %v4024_v63  ;;  %3421 = vmatpush3.bf16.msra.mxu1 %v4025_v0  ;;  %p4049_p3 = por %p4048_p2, %p4047_p1 }
 0x15c   :  { %3400 = vmatprep.subr.bf16.mxu0 %v4026_v1  ;;  %3422 = vmatprep.subr.bf16.mxu1 %v4027_v2 }
 0x15d   :  { %p4050_p4 = pnand %p4049_p3, %p4043_p0 }
 0x15f   :  { %3401 = vmatpush3.bf16.msra.mxu0 %v4028_v3  ;;  %3423 = vmatpush3.bf16.msra.mxu1 %v4029_v4 }
 0x160   :  { %3444 = vmatprep.subr.bf16.mxu0 %v4067_v5  ;;  %3464 = vmatprep.subr.bf16.mxu1 %v4067_v5 }
 0x215   :  { %v2242_v16 = vpop.f32.mrb[0].mxu0  ;;  %v2447_v17 = vpop.f32.mrb[0].mxu1 }
 0x216   :  { %v3476_v18 = vadd.f32 %v2242_v16, %v427_v12  ;;  %v3478_v19 = vadd.f32 %v2447_v17, %v435_v13  ;;  %v2244_v20 = vpop.f32.mrb[1].mxu0  ;;  %v2449_v21 = vpop.f32.mrb[1].mxu1 }
 0x217   :  { %v3477_v22 = vadd.f32 %v2244_v20, %v431_v14  ;;  %v3479_v23 = vadd.f32 %v2449_v21, %v439_v15  ;;  %v2246_v9 = vpop.f32.mrb[2].mxu0  ;;  %v2451_v26 = vpop.f32.mrb[2].mxu1 }
 0x218   :  { %v2454_v27 = vmax.f32 %v3476_v18, 0.0  ;;  %v2456_v49 = vmax.f32 %v3478_v19, 0.0  ;;  %v2247_v28 = vpop.f32.mrb[3].mxu0  ;;  %v2452_v30 = vpop.f32.mrb[3].mxu1 }
 0x219   :  { %v2455_v31 = vmax.f32 %v3477_v22, 0.0  ;;  %v2457_v43 = vmax.f32 %v3479_v23, 0.0 }
 0x21a   :  { %v2458_v34 = vpack.c.bf16 %v2454_v27, %v2454_v27  ;;  %v2460_v35 = vpack.c.bf16 %v2456_v49, %v2456_v49 }
 0x21b   :  { %v2459_v32 = vpack.c.bf16 %v2455_v31, %v2455_v31  ;;  %v2461_v25 = vpack.c.bf16 %v2457_v43, %v2457_v43 }
 0x21d   :  { %2757 = vmatprep.mubr.bf16.mxu0 %v2459_v32  ;;  %2797 = vmatprep.mubr.bf16.mxu1 %v2461_v25 }
 0x21e   :  { %2758 = vmatmul.mubr.bf16.vlgmr.msra.gmra.mrb[4].mxu0 %v2458_v34  ;;  %2798 = vmatmul.mubr.bf16.vlgmr.msra.gmra.mrb[4].mxu1 %v2460_v35 }
 0x21f   :  { %3445 = vmatpush3.bf16.msra.mxu0 %v4030_v33  ;;  %3460 = vmatprep.mubr.msk.bf16.mxu0 %vm4068_vm0, %v4067_v5 }
 0x220   :  { %3446 = vmatprep.subr.bf16.mxu0 %v4067_v5  ;;  %3472 = vmatprep.mubr.msk.bf16.mxu1 %vm4068_vm0, %v4067_v5 }
 0x221   :  { %3465 = vmatpush3.bf16.msra.mxu1 %v4038_v41 }
 0x222   :  { %3466 = vmatprep.subr.bf16.mxu1 %v4067_v5 }
 0x223   :  { %3447 = vmatpush3.bf16.msra.mxu0 %v4031_v36 }
 0x224   :  { %3448 = vmatprep.subr.bf16.mxu0 %v4067_v5 }
 0x225   :  { %3467 = vmatpush3.bf16.msra.mxu1 %v4039_v42 }
 0x226   :  { %3468 = vmatprep.subr.bf16.mxu1 %v4067_v5 }
 0x227   :  { %3449 = vmatpush3.bf16.msra.mxu0 %v4032_v37 }
 0x228   :  { %3450 = vmatprep.subr.bf16.mxu0 %v4067_v5 }
 0x229   :  { %3469 = vmatpush3.bf16.msra.mxu1 %v4040_v44 }
 0x22a   :  { %3470 = vmatprep.subr.bf16.mxu1 %v4067_v5 }
 0x22b   :  { %3451 = vmatpush3.bf16.msra.mxu0 %v4033_v24 }
 0x22c   :  { %3452 = vmatprep.subr.bf16.mxu0 %v4067_v5 }
 0x22d   :  { %3471 = vmatpush3.bf16.msra.mxu1 %v4041_v61 }
 0x22f   :  { %3453 = vmatpush3.bf16.msra.mxu0 %v4034_v38 }
 0x230   :  { %3454 = vmatprep.subr.bf16.mxu0 %v4067_v5 }
 0x233   :  { %3455 = vmatpush3.bf16.msra.mxu0 %v4035_v39 }
 0x234   :  { %3456 = vmatprep.subr.bf16.mxu0 %v4067_v5 }
 0x237   :  { %3457 = vmatpush3.bf16.msra.mxu0 %v4036_v40 }
 0x238   :  { %3458 = vmatprep.subr.bf16.mxu0 %v4067_v5  ;;  %v3380_v5 = vld [vmem:[%s5309_s8] ss:$0 sm:$0xff] }
 0x23b   :  { %3459 = vmatpush3.bf16.msra.mxu0 %v4037_v29 }
 0x2f1   :  { %v3402_v45 = vpop.f32.mrb[4].mxu0  ;;  %v3424_v46 = vpop.f32.mrb[4].mxu1 }
 0x2f2   :  { %v3403_v48 = vpop.f32.mrb[5].mxu0  ;;  %v3425_v50 = vpop.f32.mrb[5].mxu1 }
 0x2f3   :  { %v3404_v51 = vadd.f32 %v3403_v48, %v3402_v45  ;;  %v3426_v52 = vadd.f32 %v3425_v50, %v3424_v46  ;;  %v3405_v53 = vpop.f32.mrb[6].mxu0  ;;  %v3427_v54 = vpop.f32.mrb[6].mxu1 }
 0x2f4   :  { %v3406_v55 = vpop.f32.mrb[7].mxu0  ;;  %v3428_v56 = vpop.f32.mrb[7].mxu1 }
 0x2f5   :  { %v2760_v57 = vadd.f32 %v3404_v51, %v3338_v47 }
 0x2f7   :  { %v2800_v58 = vadd.f32 %v3426_v52, %v2760_v57 }
 0x2f9   :  { %v2805_v59 = vmax.f32 %v2800_v58, 0.0 }
 0x2fb   :  { %v2806_v60 = vpack.c.bf16 %v2805_v59, %v2805_v59 }
 0x2fd   :  { %3461 = vmatmul.mubr.bf16.vlgmr.msra.gmra.mrb[8].mxu0 %v2806_v60 }
 0x3d0   :  { %v2912_v63 = vpop.f32.mrb[8].mxu0 }
 0x3d1   :  { %v2913_v0 = vadd.f32 %v3371_v62, %v2912_v63  ;;  %v3462_v1 = vpop.f32.mrb[9].mxu0 }
 0x3d2   :  { %v2915_v2 = vpop.f32.mrb[10].mxu0 }
 0x3d3   :  { %v2918_v3 = vpack.c.bf16 %v2913_v0, %v2913_v0  ;;  %v3463_v4 = vpop.f32.mrb[11].mxu0 }
 0x3d5   :  { %3473 = vmatmul.mubr.msk.bf16.vlgmr.msra.gmra.mrb[8].mxu1 %vm2958_vm1, %v2918_v3 }
 0x4a8   :  { %v2996_v6 = vpop.f32.mrb[8].mxu1 }
 0x4a9   :  { %v2997_v7 = vadd.f32 %v3380_v5, %v2996_v6  ;;  %v3474_v8 = vpop.f32.mrb[9].mxu1 }
 0x4aa   :  { %v2999_v10 = vpop.f32.mrb[10].mxu1 }
 0x4ab   :  { %3002 = vst [vmem:[#allocation2] sm:$0x3] %v2997_v7  ;;  %v3475_v11 = vpop.f32.mrb[11].mxu1 }
 0x4ac   :  { %4053 = shalt.err (!%p4050_p4)
}
 0x4ad   :  { %s4054_s8 = scalar_lea.hbm %s5310_s9, 32 }
 0x4ae   :  { %p4055_p5 = scmp.ne.s32.totalorder %s5310_s9, %s4054_s8  ;;  %p4058_p6 = scmp.lt.u32.totalorder %s4054_s8, %s5310_s9 }
 0x4b0   :  { %p4060_p7 = pnand %p4058_p6, %p4055_p5 }
 0x4b2   :  { %4063 = shalt.err (!%p4060_p7)
}
 0x4b3   :  { %3012 = dma.vmem_to_hbm [thread:$0]  %s3010_s18, 32, %s5310_s9, [#allocation3]  }
 0x4b4   :  { %4064 = dma.done.wait [#allocation3], 32  }
 0x4b5   :  { %4065 = vsyncadd [#allocation3], 4294967264 }
 0x4b6   :  { %3016 = vsyncpa [#allocation3], 1 }

</bundles_post_ra>
